<compile_context>
chip_gen: v7x
topology: tpu7x:2x2x1
jax: 0.10.0
libtpu: 0.0.40
codegen_flags: <defaults>
</compile_context>

<pallas_src>
import math

import jax
import jax.numpy as jnp
import numpy as np
from jax.experimental import pallas as pl
from jax.experimental.pallas import tpu as pltpu


# ----------------------------------------------------------------------------- kernel
def _make_segment_kernel(B_blk, S_pad, H, chunk, max_length, mm_dtype):
    FOURH = 4 * H

    def lstm_step(gx, h, c, w_vmem):
        # gx: (B_blk, 4H) f32 pre-projected input gates (both PyTorch biases folded in).
        # h, c: (B_blk, S_pad, H) f32 recurrent state, one row per span index.
        # w_vmem: (H, 4H) resident recurrent weights (bf16 on the fast path).
        # Operands cast to bf16 for the MXU, accumulation stays f32.
        gh = jnp.dot(h.reshape(B_blk * S_pad, H).astype(mm_dtype), w_vmem[...],
                     preferred_element_type=jnp.float32).reshape(B_blk, S_pad, FOURH)
        gates = gh + gx[:, None, :]                 # gate math kept in f32 (v5e has no bf16 EUP)
        i_g = jax.nn.sigmoid(gates[..., 0:H])
        f_g = jax.nn.sigmoid(gates[..., H:2 * H])
        g_g = jnp.tanh(gates[..., 2 * H:3 * H])
        o_g = jax.nn.sigmoid(gates[..., 3 * H:])
        c_new = f_g * c + i_g * g_g
        h_new = o_g * jnp.tanh(c_new)
        return h_new, c_new

    def kernel(gx_f_ref, gx_b_ref, wf_hbm, wb_hbm,      # inputs
               fwd_ref, bwd_ref,                        # outputs
               wf_vmem, wb_vmem, w_sem,                 # single-buffered weight scratch
               hf, cf, hb, cb):                         # recurrent state scratch
        tc = pl.program_id(1)                           # time-chunk index (innermost axis)

        @pl.when(tc == 0)
        def _():
            # Single-buffered weights: one explicit DMA into VMEM scratch per batch block
            # (it must re-fire per block so each megacore shard gets its own copy).
            cp_f = pltpu.make_async_copy(wf_hbm, wf_vmem, w_sem.at[0])
            cp_b = pltpu.make_async_copy(wb_hbm, wb_vmem, w_sem.at[1])
            cp_f.start()
            cp_b.start()
            cp_f.wait()
            cp_b.wait()
            hf[...] = jnp.zeros_like(hf)
            cf[...] = jnp.zeros_like(cf)
            hb[...] = jnp.zeros_like(hb)
            cb[...] = jnp.zeros_like(cb)

        # Span index: start index for the forward state rows, end index for the backward rows.
        idx = jax.lax.broadcasted_iota(jnp.int32, (B_blk, S_pad, 1), 1)

        # `chunk` time steps per grid invocation, statically unrolled so the two independent
        # (forward / backward) matmul + gate chains stay issued back-to-back.
        for j in range(chunk):
            t = tc * chunk + j              # forward consumes token t   (t  == end index)
            tb = S_pad - 1 - t              # backward consumes token tb (tb == start index)

            # ---- forward LSTM: state row i == LSTM started at position i -----------------
            h_new, c_new = lstm_step(gx_f_ref[:, j], hf[...], cf[...], wf_vmem)
            act_f = jnp.logical_and(idx <= t, idx > t - max_length)
            h_new = jnp.where(act_f, h_new, 0.0)
            c_new = jnp.where(act_f, c_new, 0.0)
            hf[...] = h_new
            cf[...] = c_new

            # ---- backward LSTM: state row e == LSTM started (from the right) at e --------
            hb_new, cb_new = lstm_step(gx_b_ref[:, chunk - 1 - j], hb[...], cb[...], wb_vmem)
            act_b = jnp.logical_and(idx >= tb, idx < tb + max_length)
            hb_new = jnp.where(act_b, hb_new, 0.0)
            cb_new = jnp.where(act_b, cb_new, 0.0)
            hb[...] = hb_new
            cb[...] = cb_new

            # Both halves go out directly in the FINAL [b, start, end, H] layout:
            #   forward  value for (start=*,  end=t ) -> fwd_ref[:, :, j]   (column slab)
            #   backward value for (start=tb, end=* ) -> bwd_ref[:, chunk-1-j] (row slab, dense)
            # The forward store is a sublane-offset (masked) write; cheap next to the serial
            # matmul/EUP chain and it removes the old post-kernel transpose+re-copy of the
            # dominant O(B*S^2*H) output stream.
            fwd_ref[:, :, j] = h_new.astype(fwd_ref.dtype)
            bwd_ref[:, chunk - 1 - j] = hb_new.astype(bwd_ref.dtype)

    return kernel


# ----------------------------------------------------------------------------- wrapper helpers
def _round_up(x, m):
    return (x + m - 1) // m * m


def _vmem_need_bytes(B_blk, S_pad, H, chunk, store_bytes, mm_bytes):
    out_bufs = 2 * 2 * B_blk * S_pad * chunk * H * store_bytes    # 2 outputs x double buffer
    gx_bufs = 2 * 2 * B_blk * chunk * 4 * H * 4                   # 2 dirs x double buffer (f32)
    state = 4 * B_blk * S_pad * H * 4                             # h, c for both dirs (f32)
    weights = 2 * H * 4 * H * mm_bytes                            # single-buffered VMEM copies
    return out_bufs + gx_bufs + state + weights


# ----------------------------------------------------------------------------- wrapper
def segment_embedder(x, params, max_length=None, mask=None, *,
                     precision="bf16", out_dtype=jnp.float32, num_batch_blocks=None):
    """x: (B, S, D) float32 -> (B, S, S, 2H)  (PyTorch SegmentEmbedder.forward).

    precision="bf16": bf16 MXU operands on the recurrence + bf16 kernel output stores
    (recommended; not bit-identical to the f32 module, deviations ~1e-2).
    precision="f32": all-f32 path for tight numerical checks.
    """
    B, S, D = x.shape
    H = params["whh_f"].shape[1]
    FOURH = 4 * H
    assert H % 128 == 0, "hidden_size must be a multiple of the 128-lane width"

    mm_dtype = jnp.bfloat16 if precision == "bf16" else jnp.float32
    store_dtype = mm_dtype
    mm_bytes = jnp.dtype(mm_dtype).itemsize
    store_bytes = jnp.dtype(store_dtype).itemsize

    # v7x megacore: leading "parallel" batch-block axis. Single-TC chips (v5e/v6e) run the
    # blocks sequentially; set num_batch_blocks=1 there if the batch is tiny/latency-bound.
    if num_batch_blocks is None:
        num_batch_blocks = 2 if (B > 1 and B % 2 == 0) else 1
    assert B % num_batch_blocks == 0
    nb = num_batch_blocks
    B_blk = B // nb

    # VMEM-aware chunk selection + explicit scoped-VMEM limit (v7x: 64 MiB vs 128 MiB).
    try:
        vmem_cap = int(pltpu.get_tpu_info().vmem_capacity_bytes)
    except Exception:
        vmem_cap = 64 * 1024 * 1024
    budget = int(0.7 * vmem_cap)
    chunk = 1
    for cand in (8, 4, 2, 1):
        if _vmem_need_bytes(B_blk, _round_up(S, cand), H, cand, store_bytes, mm_bytes) <= budget:
            chunk = cand
            break
    # Pad time up to a chunk multiple instead of shrinking the unroll / output slabs.
    S_pad = _round_up(S, chunk)
    nt = S_pad // chunk
    ml = S_pad if max_length is None else min(int(max_length), S_pad)
    need = _vmem_need_bytes(B_blk, S_pad, H, chunk, store_bytes, mm_bytes)
    vmem_limit = int(min(int(0.9 * vmem_cap), max(2 * need, 32 * 1024 * 1024)))

    f32 = jnp.float32
    # Hoisted input projection: one big matmul per direction with both PyTorch biases folded
    # in, instead of 2*S tiny per-step matmuls on the recurrent critical path.
    xf = x.astype(f32)
    gx_f = jnp.einsum("bsd,gd->bsg", xf, params["wih_f"]) + (params["bih_f"] + params["bhh_f"])
    gx_b = jnp.einsum("bsd,gd->bsg", xf, params["wih_b"]) + (params["bih_b"] + params["bhh_b"])
    if S_pad != S:
        gx_f = jnp.pad(gx_f, ((0, 0), (0, S_pad - S), (0, 0)))
        gx_b = jnp.pad(gx_b, ((0, 0), (0, S_pad - S), (0, 0)))

    whhT_f = jnp.transpose(params["whh_f"]).astype(mm_dtype)      # (H, 4H)
    whhT_b = jnp.transpose(params["whh_b"]).astype(mm_dtype)      # (H, 4H)

    in_specs = [
        pl.BlockSpec((B_blk, chunk, FOURH), lambda b, t: (b, t, 0)),           # forward tokens
        pl.BlockSpec((B_blk, chunk, FOURH), lambda b, t: (b, nt - 1 - t, 0)),  # backward tokens
        pl.BlockSpec(memory_space=pl.ANY),                                     # whhT_f (HBM)
        pl.BlockSpec(memory_space=pl.ANY),                                     # whhT_b (HBM)
    ]
    out_shapes = (
        jax.ShapeDtypeStruct((B, S_pad, S_pad, H), store_dtype),  # forward  [b, start, end, H]
        jax.ShapeDtypeStruct((B, S_pad, S_pad, H), store_dtype),  # backward [b, start, end, H]
    )
    out_specs = (
        pl.BlockSpec((B_blk, S_pad, chunk, H), lambda b, t: (b, 0, t, 0)),
        pl.BlockSpec((B_blk, chunk, S_pad, H), lambda b, t: (b, nt - 1 - t, 0, 0)),
    )

    fwd, bwd = pl.pallas_call(
        _make_segment_kernel(B_blk, S_pad, H, chunk, ml, mm_dtype),
        grid=(nb, nt),
        out_shape=out_shapes,
        in_specs=in_specs,
        out_specs=out_specs,
        scratch_shapes=[
            pltpu.VMEM((H, FOURH), mm_dtype),        # whhT_f, single-buffered resident copy
            pltpu.VMEM((H, FOURH), mm_dtype),        # whhT_b, single-buffered resident copy
            pltpu.SemaphoreType.DMA((2,)),
            pltpu.VMEM((B_blk, S_pad, H), f32),      # h forward  (persists across time chunks)
            pltpu.VMEM((B_blk, S_pad, H), f32),      # c forward
            pltpu.VMEM((B_blk, S_pad, H), f32),      # h backward
            pltpu.VMEM((B_blk, S_pad, H), f32),      # c backward
        ],
        compiler_params=pltpu.CompilerParams(
            dimension_semantics=("parallel", "arbitrary"),   # batch blocks || , time carries state
            vmem_limit_bytes=vmem_limit,
        ),
    )(gx_f, gx_b, whhT_f, whhT_b)

    # Epilogue (one XLA fusion when jitted): slice off time padding, concat the two halves,
    # apply the optional segment mask, cast. No transpose - both halves are already in the
    # final [b, start, end, H] layout.
    if S_pad != S:
        fwd = fwd[:, :S, :S, :]
        bwd = bwd[:, :S, :S, :]
    out = jnp.concatenate([fwd, bwd], axis=-1).astype(out_dtype)
    if mask is not None:
        seg = (mask[:, :, None] * mask[:, None, :]).astype(out_dtype)
        out = out * seg[..., None]
    return out


# ----------------------------------------------------------------------------- pure-JAX reference
def _lstm_ref(x_seq, wih, whh, b_ih, b_hh):
    B, T, _ = x_seq.shape
    H = whh.shape[1]

    def step(carry, x_t):
        h, c = carry
        gates = x_t @ wih.T + b_ih + h @ whh.T + b_hh
        i = jax.nn.sigmoid(gates[:, 0:H])
        f = jax.nn.sigmoid(gates[:, H:2 * H])
        g = jnp.tanh(gates[:, 2 * H:3 * H])
        o = jax.nn.sigmoid(gates[:, 3 * H:4 * H])
        c = f * c + i * g
        h = o * jnp.tanh(c)
        return (h, c), h

    init = (jnp.zeros((B, H), jnp.float32), jnp.zeros((B, H), jnp.float32))
    _, hs = jax.lax.scan(step, init, jnp.transpose(x_seq, (1, 0, 2)))
    return jnp.transpose(hs, (1, 0, 2))


def segment_embedder_ref(x, params, max_length=None, mask=None):
    B, S, _ = x.shape
    H = params["whh_f"].shape[1]
    ml = S if max_length is None else max_length

    forward = jnp.zeros((B, S, S, H), jnp.float32)
    for i in range(S):
        j = min(S, i + ml)
        row = _lstm_ref(x[:, i:j], params["wih_f"], params["whh_f"],
                        params["bih_f"], params["bhh_f"])
        forward = forward.at[:, i, i:j, :].set(row)

    backward = jnp.zeros((B, S, S, H), jnp.float32)
    xr = x[:, ::-1, :]
    for i in range(S):
        j = min(S, i + ml)
        rr = _lstm_ref(xr[:, i:j], params["wih_b"], params["whh_b"],
                       params["bih_b"], params["bhh_b"])
        backward = backward.at[:, S - i - 1, S - j:S - i, :].set(rr[:, ::-1, :])
    backward = jnp.transpose(backward, (0, 2, 1, 3))

    out = jnp.concatenate([forward, backward], -1)
    if mask is not None:
        seg_mask = mask[:, None, :] * mask[:, :, None]
        out = out * seg_mask[..., None]
    return out


# ----------------------------------------------------------------------------- params
def init_params(key, input_size, hidden_size):
    # PyTorch nn.LSTM default: uniform(-1/sqrt(H), 1/sqrt(H)) for all weights/biases.
    bound = 1.0 / math.sqrt(hidden_size)
    keys = jax.random.split(key, 8)

    def u(k, shape):
        return jax.random.uniform(k, shape, jnp.float32, -bound, bound)

    return dict(
        wih_f=u(keys[0], (4 * hidden_size, input_size)),
        whh_f=u(keys[1], (4 * hidden_size, hidden_size)),
        bih_f=u(keys[2], (4 * hidden_size,)),
        bhh_f=u(keys[3], (4 * hidden_size,)),
        wih_b=u(keys[4], (4 * hidden_size, input_size)),
        whh_b=u(keys[5], (4 * hidden_size, hidden_size)),
        bih_b=u(keys[6], (4 * hidden_size,)),
        bhh_b=u(keys[7], (4 * hidden_size,)),
    )


# ----------------------------------------------------------------------------- main
if __name__ == "__main__":
    key = jax.random.PRNGKey(0)
    kx1, kx2, kp, km = jax.random.split(key, 4)

    B, D, H = 2, 32, 128
    params = init_params(kp, D, H)

    run = jax.jit(segment_embedder,
                  static_argnames=("max_length", "precision", "out_dtype", "num_batch_blocks"))

    # Case 1: fast path (bf16 MXU operands + bf16 output stores), no mask, unrestricted spans.
    # Not bit-identical to the f32 module: bf16 operand/store rounding accumulated over up to
    # S recurrent steps gives worst-case deviations ~1e-2; tolerances loosened accordingly.
    S1 = 16
    x1 = jax.random.normal(kx1, (B, S1, D), jnp.float32)
    out1 = jax.block_until_ready(run(x1, params, max_length=None, mask=None))
    assert out1.shape == (B, S1, S1, 2 * H) and out1.dtype == jnp.float32
    ref1 = segment_embedder_ref(x1, params, max_length=None, mask=None)
    err = np.abs(np.asarray(out1) - np.asarray(ref1))
    np.testing.assert_allclose(np.asarray(out1), np.asarray(ref1), atol=4e-2, rtol=4e-2)
    assert float(err.mean()) < 5e-3, f"mean abs error too large: {err.mean()}"

    # Case 2: f32 path with tight tolerances; S not a multiple of the 8-step chunk (exercises
    # time padding), restricted span length and a token mask.
    S2 = 12
    x2 = jax.random.normal(kx2, (B, S2, D), jnp.float32)
    mask = (jax.random.uniform(km, (B, S2)) > 0.3).astype(jnp.float32)
    out2 = jax.block_until_ready(run(x2, params, max_length=5, mask=mask, precision="f32"))
    ref2 = segment_embedder_ref(x2, params, max_length=5, mask=mask)
    np.testing.assert_allclose(np.asarray(out2), np.asarray(ref2), atol=1e-3, rtol=1e-3)

    print("KERNEL_OK")
</pallas_src>

<mosaic_0001>
module attributes {stable_mosaic.version = 11 : i64} {
  func.func @kernel(%arg0: i32, %arg1: i32, %arg2: memref<1x8x512xf32, #tpu.memory_space<vmem>>, %arg3: memref<1x8x512xf32, #tpu.memory_space<vmem>>, %arg4: memref<128x512xbf16, #tpu.memory_space<any>>, %arg5: memref<128x512xbf16, #tpu.memory_space<any>>, %arg6: memref<1x16x8x128xbf16, #tpu.memory_space<vmem>>, %arg7: memref<1x8x16x128xbf16, #tpu.memory_space<vmem>>, %arg8: memref<128x512xbf16, #tpu.memory_space<vmem>>, %arg9: memref<128x512xbf16, #tpu.memory_space<vmem>>, %arg10: memref<2x!tpu.dma_semaphore, #tpu.memory_space<semaphore_mem>>, %arg11: memref<1x16x128xf32, #tpu.memory_space<vmem>>, %arg12: memref<1x16x128xf32, #tpu.memory_space<vmem>>, %arg13: memref<1x16x128xf32, #tpu.memory_space<vmem>>, %arg14: memref<1x16x128xf32, #tpu.memory_space<vmem>>) attributes {dimension_semantics = [#tpu.dimension_semantics<parallel>, #tpu.dimension_semantics<arbitrary>], iteration_bounds = array<i64: 2, 2>, scalar_prefetch = 0 : i64, scratch_operands = 7 : i64, tpu.core_type = #tpu.core_type<tc>, window_params = [{transform_indices = @transform_0, window_bounds = array<i64: 1, 8, 512>}, {transform_indices = @transform_1, window_bounds = array<i64: 1, 8, 512>}, {}, {}, {transform_indices = @transform_4, window_bounds = array<i64: 1, 16, 8, 128>}, {transform_indices = @transform_5, window_bounds = array<i64: 1, 8, 16, 128>}]} {
    %c0_i32 = arith.constant 0 : i32
    %0 = arith.cmpi eq, %arg1, %c0_i32 : i32
    %1 = arith.extui %0 : i1 to i32
    %c0_i32_0 = arith.constant 0 : i32
    %2 = arith.cmpi ne, %1, %c0_i32_0 : i32
    scf.if %2 {
      %c0_i32_454 = arith.constant 0 : i32
      %940 = tpu.memref_slice %arg10[%c0_i32_454] : memref<2x!tpu.dma_semaphore, #tpu.memory_space<semaphore_mem>> -> memref<1x!tpu.dma_semaphore, #tpu.memory_space<semaphore_mem>>
      %941 = tpu.memref_squeeze %940 : memref<1x!tpu.dma_semaphore, #tpu.memory_space<semaphore_mem>> -> memref<!tpu.dma_semaphore, #tpu.memory_space<semaphore_mem>>
      tpu.enqueue_dma source(%arg4 : memref<128x512xbf16, #tpu.memory_space<any>>) target(%arg8 : memref<128x512xbf16, #tpu.memory_space<vmem>>) target_semaphore(%941 : memref<!tpu.dma_semaphore, #tpu.memory_space<semaphore_mem>>)
      %c1_i32_455 = arith.constant 1 : i32
      %942 = tpu.memref_slice %arg10[%c1_i32_455] : memref<2x!tpu.dma_semaphore, #tpu.memory_space<semaphore_mem>> -> memref<1x!tpu.dma_semaphore, #tpu.memory_space<semaphore_mem>>
      %943 = tpu.memref_squeeze %942 : memref<1x!tpu.dma_semaphore, #tpu.memory_space<semaphore_mem>> -> memref<!tpu.dma_semaphore, #tpu.memory_space<semaphore_mem>>
      tpu.enqueue_dma source(%arg5 : memref<128x512xbf16, #tpu.memory_space<any>>) target(%arg9 : memref<128x512xbf16, #tpu.memory_space<vmem>>) target_semaphore(%943 : memref<!tpu.dma_semaphore, #tpu.memory_space<semaphore_mem>>)
      %c0_i32_456 = arith.constant 0 : i32
      %944 = tpu.memref_slice %arg10[%c0_i32_456] : memref<2x!tpu.dma_semaphore, #tpu.memory_space<semaphore_mem>> -> memref<1x!tpu.dma_semaphore, #tpu.memory_space<semaphore_mem>>
      %945 = tpu.memref_squeeze %944 : memref<1x!tpu.dma_semaphore, #tpu.memory_space<semaphore_mem>> -> memref<!tpu.dma_semaphore, #tpu.memory_space<semaphore_mem>>
      tpu.wait_dma2 semaphore(%945 : memref<!tpu.dma_semaphore, #tpu.memory_space<semaphore_mem>>) src(%arg4 : memref<128x512xbf16, #tpu.memory_space<any>>) dst(%arg8 : memref<128x512xbf16, #tpu.memory_space<vmem>>)
      %c1_i32_457 = arith.constant 1 : i32
      %946 = tpu.memref_slice %arg10[%c1_i32_457] : memref<2x!tpu.dma_semaphore, #tpu.memory_space<semaphore_mem>> -> memref<1x!tpu.dma_semaphore, #tpu.memory_space<semaphore_mem>>
      %947 = tpu.memref_squeeze %946 : memref<1x!tpu.dma_semaphore, #tpu.memory_space<semaphore_mem>> -> memref<!tpu.dma_semaphore, #tpu.memory_space<semaphore_mem>>
      tpu.wait_dma2 semaphore(%947 : memref<!tpu.dma_semaphore, #tpu.memory_space<semaphore_mem>>) src(%arg5 : memref<128x512xbf16, #tpu.memory_space<any>>) dst(%arg9 : memref<128x512xbf16, #tpu.memory_space<vmem>>)
      %cst_458 = arith.constant 0.000000e+00 : f32
      %948 = vector.broadcast %cst_458 : f32 to vector<1x16x128xf32>
      %c0_459 = arith.constant 0 : index
      %c0_460 = arith.constant 0 : index
      %c0_461 = arith.constant 0 : index
      %949 = vector.load %arg11[%c0_459, %c0_460, %c0_461] : memref<1x16x128xf32, #tpu.memory_space<vmem>>, vector<1x16x128xf32>
      tpu.vector_store %arg11[%c0_459, %c0_460, %c0_461], %948 {strides = array<i32>} : memref<1x16x128xf32, #tpu.memory_space<vmem>>, vector<1x16x128xf32>,
      %cst_462 = arith.constant 0.000000e+00 : f32
      %950 = vector.broadcast %cst_462 : f32 to vector<1x16x128xf32>
      %c0_463 = arith.constant 0 : index
      %c0_464 = arith.constant 0 : index
      %c0_465 = arith.constant 0 : index
      %951 = vector.load %arg12[%c0_463, %c0_464, %c0_465] : memref<1x16x128xf32, #tpu.memory_space<vmem>>, vector<1x16x128xf32>
      tpu.vector_store %arg12[%c0_463, %c0_464, %c0_465], %950 {strides = array<i32>} : memref<1x16x128xf32, #tpu.memory_space<vmem>>, vector<1x16x128xf32>,
      %cst_466 = arith.constant 0.000000e+00 : f32
      %952 = vector.broadcast %cst_466 : f32 to vector<1x16x128xf32>
      %c0_467 = arith.constant 0 : index
      %c0_468 = arith.constant 0 : index
      %c0_469 = arith.constant 0 : index
      %953 = vector.load %arg13[%c0_467, %c0_468, %c0_469] : memref<1x16x128xf32, #tpu.memory_space<vmem>>, vector<1x16x128xf32>
      tpu.vector_store %arg13[%c0_467, %c0_468, %c0_469], %952 {strides = array<i32>} : memref<1x16x128xf32, #tpu.memory_space<vmem>>, vector<1x16x128xf32>,
      %cst_470 = arith.constant 0.000000e+00 : f32
      %954 = vector.broadcast %cst_470 : f32 to vector<1x16x128xf32>
      %c0_471 = arith.constant 0 : index
      %c0_472 = arith.constant 0 : index
      %c0_473 = arith.constant 0 : index
      %955 = vector.load %arg14[%c0_471, %c0_472, %c0_473] : memref<1x16x128xf32, #tpu.memory_space<vmem>>, vector<1x16x128xf32>
      tpu.vector_store %arg14[%c0_471, %c0_472, %c0_473], %954 {strides = array<i32>} : memref<1x16x128xf32, #tpu.memory_space<vmem>>, vector<1x16x128xf32>,
    } else {
    }
    %3 = tpu.iota {dimensions = array<i32: 1>} : vector<1x16x1xi32>
    %c8_i32 = arith.constant 8 : i32
    %4 = arith.muli %arg1, %c8_i32 : i32
    %c0_i32_1 = arith.constant 0 : i32
    %5 = arith.addi %4, %c0_i32_1 : i32
    %c15_i32 = arith.constant 15 : i32
    %6 = arith.subi %c15_i32, %5 : i32
    %c0 = arith.constant 0 : index
    %c0_2 = arith.constant 0 : index
    %c0_3 = arith.constant 0 : index
    %7 = vector.load %arg2[%c0, %c0_2, %c0_3] : memref<1x8x512xf32, #tpu.memory_space<vmem>>, vector<1x1x512xf32>
    %8 = vector.shape_cast %7 : vector<1x1x512xf32> to vector<1x512xf32>
    %c0_4 = arith.constant 0 : index
    %c0_5 = arith.constant 0 : index
    %c0_6 = arith.constant 0 : index
    %9 = vector.load %arg11[%c0_4, %c0_5, %c0_6] : memref<1x16x128xf32, #tpu.memory_space<vmem>>, vector<1x16x128xf32>
    %c0_7 = arith.constant 0 : index
    %c0_8 = arith.constant 0 : index
    %c0_9 = arith.constant 0 : index
    %10 = vector.load %arg12[%c0_7, %c0_8, %c0_9] : memref<1x16x128xf32, #tpu.memory_space<vmem>>, vector<1x16x128xf32>
    %11 = vector.shape_cast %9 : vector<1x16x128xf32> to vector<16x128xf32>
    %12 = arith.truncf %11 : vector<16x128xf32> to vector<16x128xbf16>
    %c0_10 = arith.constant 0 : index
    %c0_11 = arith.constant 0 : index
    %13 = vector.load %arg8[%c0_10, %c0_11] : memref<128x512xbf16, #tpu.memory_space<vmem>>, vector<128x512xbf16>
    %cst = arith.constant dense<0.000000e+00> : vector<16x512xf32>
    %14 = tpu.matmul %12, %13, %cst {dimension_numbers = #tpu.dot_dimension_numbers<[1], [0], [0], [1], [0, 0, 1, 1], [], []>} : vector<16x128xbf16>, vector<128x512xbf16>, vector<16x512xf32> -> vector<16x512xf32>
    %15 = vector.shape_cast %14 : vector<16x512xf32> to vector<1x16x512xf32>
    %16 = vector.shape_cast %8 : vector<1x512xf32> to vector<1x1x512xf32>
    %17 = vector.broadcast %16 : vector<1x1x512xf32> to vector<1x16x512xf32>
    %18 = arith.addf %15, %17 : vector<1x16x512xf32>
    %19 = vector.extract_strided_slice %18 {offsets = [0, 0, 0], sizes = [1, 16, 128], strides = [1, 1, 1]} : vector<1x16x512xf32> to vector<1x16x128xf32>
    %20 = arith.negf %19 : vector<1x16x128xf32>
    %21 = math.exp %20 : vector<1x16x128xf32>
    %cst_12 = arith.constant 1.000000e+00 : f32
    %22 = vector.broadcast %cst_12 : f32 to vector<1x16x128xf32>
    %23 = arith.addf %22, %21 : vector<1x16x128xf32>
    %24 = arith.divf %22, %23 : vector<1x16x128xf32>
    %25 = vector.extract_strided_slice %18 {offsets = [0, 0, 128], sizes = [1, 16, 128], strides = [1, 1, 1]} : vector<1x16x512xf32> to vector<1x16x128xf32>
    %26 = arith.negf %25 : vector<1x16x128xf32>
    %27 = math.exp %26 : vector<1x16x128xf32>
    %cst_13 = arith.constant 1.000000e+00 : f32
    %28 = vector.broadcast %cst_13 : f32 to vector<1x16x128xf32>
    %29 = arith.addf %28, %27 : vector<1x16x128xf32>
    %30 = arith.divf %28, %29 : vector<1x16x128xf32>
    %31 = vector.extract_strided_slice %18 {offsets = [0, 0, 256], sizes = [1, 16, 128], strides = [1, 1, 1]} : vector<1x16x512xf32> to vector<1x16x128xf32>
    %32 = math.tanh %31 : vector<1x16x128xf32>
    %33 = vector.extract_strided_slice %18 {offsets = [0, 0, 384], sizes = [1, 16, 128], strides = [1, 1, 1]} : vector<1x16x512xf32> to vector<1x16x128xf32>
    %34 = arith.negf %33 : vector<1x16x128xf32>
    %35 = math.exp %34 : vector<1x16x128xf32>
    %cst_14 = arith.constant 1.000000e+00 : f32
    %36 = vector.broadcast %cst_14 : f32 to vector<1x16x128xf32>
    %37 = arith.addf %36, %35 : vector<1x16x128xf32>
    %38 = arith.divf %36, %37 : vector<1x16x128xf32>
    %39 = arith.mulf %30, %10 : vector<1x16x128xf32>
    %40 = arith.mulf %24, %32 : vector<1x16x128xf32>
    %41 = arith.addf %39, %40 : vector<1x16x128xf32>
    %42 = math.tanh %41 : vector<1x16x128xf32>
    %43 = arith.mulf %38, %42 : vector<1x16x128xf32>
    %44 = vector.broadcast %5 : i32 to vector<1x16x1xi32>
    %45 = arith.cmpi sle, %3, %44 : vector<1x16x1xi32>
    %c16_i32 = arith.constant 16 : i32
    %46 = arith.subi %5, %c16_i32 : i32
    %47 = vector.broadcast %46 : i32 to vector<1x16x1xi32>
    %48 = arith.cmpi sgt, %3, %47 : vector<1x16x1xi32>
    %49 = arith.andi %45, %48 : vector<1x16x1xi1>
    %cst_15 = arith.constant 0.000000e+00 : f32
    %50 = vector.shape_cast %49 : vector<1x16x1xi1> to vector<1x16x1xi1>
    %51 = vector.broadcast %50 : vector<1x16x1xi1> to vector<1x16x128xi1>
    %52 = vector.broadcast %cst_15 : f32 to vector<1x16x128xf32>
    %53 = arith.select %51, %43, %52 : vector<1x16x128xi1>, vector<1x16x128xf32>
    %cst_16 = arith.constant 0.000000e+00 : f32
    %54 = vector.shape_cast %49 : vector<1x16x1xi1> to vector<1x16x1xi1>
    %55 = vector.broadcast %54 : vector<1x16x1xi1> to vector<1x16x128xi1>
    %56 = vector.broadcast %cst_16 : f32 to vector<1x16x128xf32>
    %57 = arith.select %55, %41, %56 : vector<1x16x128xi1>, vector<1x16x128xf32>
    %c0_17 = arith.constant 0 : index
    %c0_18 = arith.constant 0 : index
    %c0_19 = arith.constant 0 : index
    %58 = vector.load %arg11[%c0_17, %c0_18, %c0_19] : memref<1x16x128xf32, #tpu.memory_space<vmem>>, vector<1x16x128xf32>
    tpu.vector_store %arg11[%c0_17, %c0_18, %c0_19], %53 {strides = array<i32>} : memref<1x16x128xf32, #tpu.memory_space<vmem>>, vector<1x16x128xf32>,
    %c0_20 = arith.constant 0 : index
    %c0_21 = arith.constant 0 : index
    %c0_22 = arith.constant 0 : index
    %59 = vector.load %arg12[%c0_20, %c0_21, %c0_22] : memref<1x16x128xf32, #tpu.memory_space<vmem>>, vector<1x16x128xf32>
    tpu.vector_store %arg12[%c0_20, %c0_21, %c0_22], %57 {strides = array<i32>} : memref<1x16x128xf32, #tpu.memory_space<vmem>>, vector<1x16x128xf32>,
    %c0_23 = arith.constant 0 : index
    %c7 = arith.constant 7 : index
    %c0_24 = arith.constant 0 : index
    %60 = vector.load %arg3[%c0_23, %c7, %c0_24] : memref<1x8x512xf32, #tpu.memory_space<vmem>>, vector<1x1x512xf32>
    %61 = vector.shape_cast %60 : vector<1x1x512xf32> to vector<1x512xf32>
    %c0_25 = arith.constant 0 : index
    %c0_26 = arith.constant 0 : index
    %c0_27 = arith.constant 0 : index
    %62 = vector.load %arg13[%c0_25, %c0_26, %c0_27] : memref<1x16x128xf32, #tpu.memory_space<vmem>>, vector<1x16x128xf32>
    %c0_28 = arith.constant 0 : index
    %c0_29 = arith.constant 0 : index
    %c0_30 = arith.constant 0 : index
    %63 = vector.load %arg14[%c0_28, %c0_29, %c0_30] : memref<1x16x128xf32, #tpu.memory_space<vmem>>, vector<1x16x128xf32>
    %64 = vector.shape_cast %62 : vector<1x16x128xf32> to vector<16x128xf32>
    %65 = arith.truncf %64 : vector<16x128xf32> to vector<16x128xbf16>
    %c0_31 = arith.constant 0 : index
    %c0_32 = arith.constant 0 : index
    %66 = vector.load %arg9[%c0_31, %c0_32] : memref<128x512xbf16, #tpu.memory_space<vmem>>, vector<128x512xbf16>
    %cst_33 = arith.constant dense<0.000000e+00> : vector<16x512xf32>
    %67 = tpu.matmul %65, %66, %cst_33 {dimension_numbers = #tpu.dot_dimension_numbers<[1], [0], [0], [1], [0, 0, 1, 1], [], []>} : vector<16x128xbf16>, vector<128x512xbf16>, vector<16x512xf32> -> vector<16x512xf32>
    %68 = vector.shape_cast %67 : vector<16x512xf32> to vector<1x16x512xf32>
    %69 = vector.shape_cast %61 : vector<1x512xf32> to vector<1x1x512xf32>
    %70 = vector.broadcast %69 : vector<1x1x512xf32> to vector<1x16x512xf32>
    %71 = arith.addf %68, %70 : vector<1x16x512xf32>
    %72 = vector.extract_strided_slice %71 {offsets = [0, 0, 0], sizes = [1, 16, 128], strides = [1, 1, 1]} : vector<1x16x512xf32> to vector<1x16x128xf32>
    %73 = arith.negf %72 : vector<1x16x128xf32>
    %74 = math.exp %73 : vector<1x16x128xf32>
    %cst_34 = arith.constant 1.000000e+00 : f32
    %75 = vector.broadcast %cst_34 : f32 to vector<1x16x128xf32>
    %76 = arith.addf %75, %74 : vector<1x16x128xf32>
    %77 = arith.divf %75, %76 : vector<1x16x128xf32>
    %78 = vector.extract_strided_slice %71 {offsets = [0, 0, 128], sizes = [1, 16, 128], strides = [1, 1, 1]} : vector<1x16x512xf32> to vector<1x16x128xf32>
    %79 = arith.negf %78 : vector<1x16x128xf32>
    %80 = math.exp %79 : vector<1x16x128xf32>
    %cst_35 = arith.constant 1.000000e+00 : f32
    %81 = vector.broadcast %cst_35 : f32 to vector<1x16x128xf32>
    %82 = arith.addf %81, %80 : vector<1x16x128xf32>
    %83 = arith.divf %81, %82 : vector<1x16x128xf32>
    %84 = vector.extract_strided_slice %71 {offsets = [0, 0, 256], sizes = [1, 16, 128], strides = [1, 1, 1]} : vector<1x16x512xf32> to vector<1x16x128xf32>
    %85 = math.tanh %84 : vector<1x16x128xf32>
    %86 = vector.extract_strided_slice %71 {offsets = [0, 0, 384], sizes = [1, 16, 128], strides = [1, 1, 1]} : vector<1x16x512xf32> to vector<1x16x128xf32>
    %87 = arith.negf %86 : vector<1x16x128xf32>
    %88 = math.exp %87 : vector<1x16x128xf32>
    %cst_36 = arith.constant 1.000000e+00 : f32
    %89 = vector.broadcast %cst_36 : f32 to vector<1x16x128xf32>
    %90 = arith.addf %89, %88 : vector<1x16x128xf32>
    %91 = arith.divf %89, %90 : vector<1x16x128xf32>
    %92 = arith.mulf %83, %63 : vector<1x16x128xf32>
    %93 = arith.mulf %77, %85 : vector<1x16x128xf32>
    %94 = arith.addf %92, %93 : vector<1x16x128xf32>
    %95 = math.tanh %94 : vector<1x16x128xf32>
    %96 = arith.mulf %91, %95 : vector<1x16x128xf32>
    %97 = vector.broadcast %6 : i32 to vector<1x16x1xi32>
    %98 = arith.cmpi sge, %3, %97 : vector<1x16x1xi32>
    %c16_i32_37 = arith.constant 16 : i32
    %99 = arith.addi %6, %c16_i32_37 : i32
    %100 = vector.broadcast %99 : i32 to vector<1x16x1xi32>
    %101 = arith.cmpi slt, %3, %100 : vector<1x16x1xi32>
    %102 = arith.andi %98, %101 : vector<1x16x1xi1>
    %cst_38 = arith.constant 0.000000e+00 : f32
    %103 = vector.shape_cast %102 : vector<1x16x1xi1> to vector<1x16x1xi1>
    %104 = vector.broadcast %103 : vector<1x16x1xi1> to vector<1x16x128xi1>
    %105 = vector.broadcast %cst_38 : f32 to vector<1x16x128xf32>
    %106 = arith.select %104, %96, %105 : vector<1x16x128xi1>, vector<1x16x128xf32>
    %cst_39 = arith.constant 0.000000e+00 : f32
    %107 = vector.shape_cast %102 : vector<1x16x1xi1> to vector<1x16x1xi1>
    %108 = vector.broadcast %107 : vector<1x16x1xi1> to vector<1x16x128xi1>
    %109 = vector.broadcast %cst_39 : f32 to vector<1x16x128xf32>
    %110 = arith.select %108, %94, %109 : vector<1x16x128xi1>, vector<1x16x128xf32>
    %c0_40 = arith.constant 0 : index
    %c0_41 = arith.constant 0 : index
    %c0_42 = arith.constant 0 : index
    %111 = vector.load %arg13[%c0_40, %c0_41, %c0_42] : memref<1x16x128xf32, #tpu.memory_space<vmem>>, vector<1x16x128xf32>
    tpu.vector_store %arg13[%c0_40, %c0_41, %c0_42], %106 {strides = array<i32>} : memref<1x16x128xf32, #tpu.memory_space<vmem>>, vector<1x16x128xf32>,
    %c0_43 = arith.constant 0 : index
    %c0_44 = arith.constant 0 : index
    %c0_45 = arith.constant 0 : index
    %112 = vector.load %arg14[%c0_43, %c0_44, %c0_45] : memref<1x16x128xf32, #tpu.memory_space<vmem>>, vector<1x16x128xf32>
    tpu.vector_store %arg14[%c0_43, %c0_44, %c0_45], %110 {strides = array<i32>} : memref<1x16x128xf32, #tpu.memory_space<vmem>>, vector<1x16x128xf32>,
    %113 = arith.truncf %53 : vector<1x16x128xf32> to vector<1x16x128xbf16>
    %c0_46 = arith.constant 0 : index
    %c0_47 = arith.constant 0 : index
    %c0_48 = arith.constant 0 : index
    %c0_49 = arith.constant 0 : index
    %114 = vector.load %arg6[%c0_46, %c0_47, %c0_48, %c0_49] : memref<1x16x8x128xbf16, #tpu.memory_space<vmem>>, vector<1x16x1x128xbf16>
    %115 = vector.shape_cast %114 : vector<1x16x1x128xbf16> to vector<1x16x128xbf16>
    %116 = vector.shape_cast %113 : vector<1x16x128xbf16> to vector<1x16x1x128xbf16>
    tpu.vector_store %arg6[%c0_46, %c0_47, %c0_48, %c0_49], %116 {strides = array<i32>} : memref<1x16x8x128xbf16, #tpu.memory_space<vmem>>, vector<1x16x1x128xbf16>,
    %117 = arith.truncf %106 : vector<1x16x128xf32> to vector<1x16x128xbf16>
    %c0_50 = arith.constant 0 : index
    %c7_51 = arith.constant 7 : index
    %c0_52 = arith.constant 0 : index
    %c0_53 = arith.constant 0 : index
    %118 = vector.load %arg7[%c0_50, %c7_51, %c0_52, %c0_53] : memref<1x8x16x128xbf16, #tpu.memory_space<vmem>>, vector<1x1x16x128xbf16>
    %119 = vector.shape_cast %118 : vector<1x1x16x128xbf16> to vector<1x16x128xbf16>
    %120 = vector.shape_cast %117 : vector<1x16x128xbf16> to vector<1x1x16x128xbf16>
    tpu.vector_store %arg7[%c0_50, %c7_51, %c0_52, %c0_53], %120 {strides = array<i32>} : memref<1x8x16x128xbf16, #tpu.memory_space<vmem>>, vector<1x1x16x128xbf16>,
    %c8_i32_54 = arith.constant 8 : i32
    %121 = arith.muli %arg1, %c8_i32_54 : i32
    %c1_i32 = arith.constant 1 : i32
    %122 = arith.addi %121, %c1_i32 : i32
    %c15_i32_55 = arith.constant 15 : i32
    %123 = arith.subi %c15_i32_55, %122 : i32
    %c0_56 = arith.constant 0 : index
    %c1 = arith.constant 1 : index
    %c0_57 = arith.constant 0 : index
    %124 = vector.load %arg2[%c0_56, %c1, %c0_57] : memref<1x8x512xf32, #tpu.memory_space<vmem>>, vector<1x1x512xf32>
    %125 = vector.shape_cast %124 : vector<1x1x512xf32> to vector<1x512xf32>
    %c0_58 = arith.constant 0 : index
    %c0_59 = arith.constant 0 : index
    %c0_60 = arith.constant 0 : index
    %126 = vector.load %arg11[%c0_58, %c0_59, %c0_60] : memref<1x16x128xf32, #tpu.memory_space<vmem>>, vector<1x16x128xf32>
    %c0_61 = arith.constant 0 : index
    %c0_62 = arith.constant 0 : index
    %c0_63 = arith.constant 0 : index
    %127 = vector.load %arg12[%c0_61, %c0_62, %c0_63] : memref<1x16x128xf32, #tpu.memory_space<vmem>>, vector<1x16x128xf32>
    %128 = vector.shape_cast %126 : vector<1x16x128xf32> to vector<16x128xf32>
    %129 = arith.truncf %128 : vector<16x128xf32> to vector<16x128xbf16>
    %c0_64 = arith.constant 0 : index
    %c0_65 = arith.constant 0 : index
    %130 = vector.load %arg8[%c0_64, %c0_65] : memref<128x512xbf16, #tpu.memory_space<vmem>>, vector<128x512xbf16>
    %cst_66 = arith.constant dense<0.000000e+00> : vector<16x512xf32>
    %131 = tpu.matmul %129, %130, %cst_66 {dimension_numbers = #tpu.dot_dimension_numbers<[1], [0], [0], [1], [0, 0, 1, 1], [], []>} : vector<16x128xbf16>, vector<128x512xbf16>, vector<16x512xf32> -> vector<16x512xf32>
    %132 = vector.shape_cast %131 : vector<16x512xf32> to vector<1x16x512xf32>
    %133 = vector.shape_cast %125 : vector<1x512xf32> to vector<1x1x512xf32>
    %134 = vector.broadcast %133 : vector<1x1x512xf32> to vector<1x16x512xf32>
    %135 = arith.addf %132, %134 : vector<1x16x512xf32>
    %136 = vector.extract_strided_slice %135 {offsets = [0, 0, 0], sizes = [1, 16, 128], strides = [1, 1, 1]} : vector<1x16x512xf32> to vector<1x16x128xf32>
    %137 = arith.negf %136 : vector<1x16x128xf32>
    %138 = math.exp %137 : vector<1x16x128xf32>
    %cst_67 = arith.constant 1.000000e+00 : f32
    %139 = vector.broadcast %cst_67 : f32 to vector<1x16x128xf32>
    %140 = arith.addf %139, %138 : vector<1x16x128xf32>
    %141 = arith.divf %139, %140 : vector<1x16x128xf32>
    %142 = vector.extract_strided_slice %135 {offsets = [0, 0, 128], sizes = [1, 16, 128], strides = [1, 1, 1]} : vector<1x16x512xf32> to vector<1x16x128xf32>
    %143 = arith.negf %142 : vector<1x16x128xf32>
    %144 = math.exp %143 : vector<1x16x128xf32>
    %cst_68 = arith.constant 1.000000e+00 : f32
    %145 = vector.broadcast %cst_68 : f32 to vector<1x16x128xf32>
    %146 = arith.addf %145, %144 : vector<1x16x128xf32>
    %147 = arith.divf %145, %146 : vector<1x16x128xf32>
    %148 = vector.extract_strided_slice %135 {offsets = [0, 0, 256], sizes = [1, 16, 128], strides = [1, 1, 1]} : vector<1x16x512xf32> to vector<1x16x128xf32>
    %149 = math.tanh %148 : vector<1x16x128xf32>
    %150 = vector.extract_strided_slice %135 {offsets = [0, 0, 384], sizes = [1, 16, 128], strides = [1, 1, 1]} : vector<1x16x512xf32> to vector<1x16x128xf32>
    %151 = arith.negf %150 : vector<1x16x128xf32>
    %152 = math.exp %151 : vector<1x16x128xf32>
    %cst_69 = arith.constant 1.000000e+00 : f32
    %153 = vector.broadcast %cst_69 : f32 to vector<1x16x128xf32>
    %154 = arith.addf %153, %152 : vector<1x16x128xf32>
    %155 = arith.divf %153, %154 : vector<1x16x128xf32>
    %156 = arith.mulf %147, %127 : vector<1x16x128xf32>
    %157 = arith.mulf %141, %149 : vector<1x16x128xf32>
    %158 = arith.addf %156, %157 : vector<1x16x128xf32>
    %159 = math.tanh %158 : vector<1x16x128xf32>
    %160 = arith.mulf %155, %159 : vector<1x16x128xf32>
    %161 = vector.broadcast %122 : i32 to vector<1x16x1xi32>
    %162 = arith.cmpi sle, %3, %161 : vector<1x16x1xi32>
    %c16_i32_70 = arith.constant 16 : i32
    %163 = arith.subi %122, %c16_i32_70 : i32
    %164 = vector.broadcast %163 : i32 to vector<1x16x1xi32>
    %165 = arith.cmpi sgt, %3, %164 : vector<1x16x1xi32>
    %166 = arith.andi %162, %165 : vector<1x16x1xi1>
    %cst_71 = arith.constant 0.000000e+00 : f32
    %167 = vector.shape_cast %166 : vector<1x16x1xi1> to vector<1x16x1xi1>
    %168 = vector.broadcast %167 : vector<1x16x1xi1> to vector<1x16x128xi1>
    %169 = vector.broadcast %cst_71 : f32 to vector<1x16x128xf32>
    %170 = arith.select %168, %160, %169 : vector<1x16x128xi1>, vector<1x16x128xf32>
    %cst_72 = arith.constant 0.000000e+00 : f32
    %171 = vector.shape_cast %166 : vector<1x16x1xi1> to vector<1x16x1xi1>
    %172 = vector.broadcast %171 : vector<1x16x1xi1> to vector<1x16x128xi1>
    %173 = vector.broadcast %cst_72 : f32 to vector<1x16x128xf32>
    %174 = arith.select %172, %158, %173 : vector<1x16x128xi1>, vector<1x16x128xf32>
    %c0_73 = arith.constant 0 : index
    %c0_74 = arith.constant 0 : index
    %c0_75 = arith.constant 0 : index
    %175 = vector.load %arg11[%c0_73, %c0_74, %c0_75] : memref<1x16x128xf32, #tpu.memory_space<vmem>>, vector<1x16x128xf32>
    tpu.vector_store %arg11[%c0_73, %c0_74, %c0_75], %170 {strides = array<i32>} : memref<1x16x128xf32, #tpu.memory_space<vmem>>, vector<1x16x128xf32>,
    %c0_76 = arith.constant 0 : index
    %c0_77 = arith.constant 0 : index
    %c0_78 = arith.constant 0 : index
    %176 = vector.load %arg12[%c0_76, %c0_77, %c0_78] : memref<1x16x128xf32, #tpu.memory_space<vmem>>, vector<1x16x128xf32>
    tpu.vector_store %arg12[%c0_76, %c0_77, %c0_78], %174 {strides = array<i32>} : memref<1x16x128xf32, #tpu.memory_space<vmem>>, vector<1x16x128xf32>,
    %c0_79 = arith.constant 0 : index
    %c6 = arith.constant 6 : index
    %c0_80 = arith.constant 0 : index
    %177 = vector.load %arg3[%c0_79, %c6, %c0_80] : memref<1x8x512xf32, #tpu.memory_space<vmem>>, vector<1x1x512xf32>
    %178 = vector.shape_cast %177 : vector<1x1x512xf32> to vector<1x512xf32>
    %c0_81 = arith.constant 0 : index
    %c0_82 = arith.constant 0 : index
    %c0_83 = arith.constant 0 : index
    %179 = vector.load %arg13[%c0_81, %c0_82, %c0_83] : memref<1x16x128xf32, #tpu.memory_space<vmem>>, vector<1x16x128xf32>
    %c0_84 = arith.constant 0 : index
    %c0_85 = arith.constant 0 : index
    %c0_86 = arith.constant 0 : index
    %180 = vector.load %arg14[%c0_84, %c0_85, %c0_86] : memref<1x16x128xf32, #tpu.memory_space<vmem>>, vector<1x16x128xf32>
    %181 = vector.shape_cast %179 : vector<1x16x128xf32> to vector<16x128xf32>
    %182 = arith.truncf %181 : vector<16x128xf32> to vector<16x128xbf16>
    %c0_87 = arith.constant 0 : index
    %c0_88 = arith.constant 0 : index
    %183 = vector.load %arg9[%c0_87, %c0_88] : memref<128x512xbf16, #tpu.memory_space<vmem>>, vector<128x512xbf16>
    %cst_89 = arith.constant dense<0.000000e+00> : vector<16x512xf32>
    %184 = tpu.matmul %182, %183, %cst_89 {dimension_numbers = #tpu.dot_dimension_numbers<[1], [0], [0], [1], [0, 0, 1, 1], [], []>} : vector<16x128xbf16>, vector<128x512xbf16>, vector<16x512xf32> -> vector<16x512xf32>
    %185 = vector.shape_cast %184 : vector<16x512xf32> to vector<1x16x512xf32>
    %186 = vector.shape_cast %178 : vector<1x512xf32> to vector<1x1x512xf32>
    %187 = vector.broadcast %186 : vector<1x1x512xf32> to vector<1x16x512xf32>
    %188 = arith.addf %185, %187 : vector<1x16x512xf32>
    %189 = vector.extract_strided_slice %188 {offsets = [0, 0, 0], sizes = [1, 16, 128], strides = [1, 1, 1]} : vector<1x16x512xf32> to vector<1x16x128xf32>
    %190 = arith.negf %189 : vector<1x16x128xf32>
    %191 = math.exp %190 : vector<1x16x128xf32>
    %cst_90 = arith.constant 1.000000e+00 : f32
    %192 = vector.broadcast %cst_90 : f32 to vector<1x16x128xf32>
    %193 = arith.addf %192, %191 : vector<1x16x128xf32>
    %194 = arith.divf %192, %193 : vector<1x16x128xf32>
    %195 = vector.extract_strided_slice %188 {offsets = [0, 0, 128], sizes = [1, 16, 128], strides = [1, 1, 1]} : vector<1x16x512xf32> to vector<1x16x128xf32>
    %196 = arith.negf %195 : vector<1x16x128xf32>
    %197 = math.exp %196 : vector<1x16x128xf32>
    %cst_91 = arith.constant 1.000000e+00 : f32
    %198 = vector.broadcast %cst_91 : f32 to vector<1x16x128xf32>
    %199 = arith.addf %198, %197 : vector<1x16x128xf32>
    %200 = arith.divf %198, %199 : vector<1x16x128xf32>
    %201 = vector.extract_strided_slice %188 {offsets = [0, 0, 256], sizes = [1, 16, 128], strides = [1, 1, 1]} : vector<1x16x512xf32> to vector<1x16x128xf32>
    %202 = math.tanh %201 : vector<1x16x128xf32>
    %203 = vector.extract_strided_slice %188 {offsets = [0, 0, 384], sizes = [1, 16, 128], strides = [1, 1, 1]} : vector<1x16x512xf32> to vector<1x16x128xf32>
    %204 = arith.negf %203 : vector<1x16x128xf32>
    %205 = math.exp %204 : vector<1x16x128xf32>
    %cst_92 = arith.constant 1.000000e+00 : f32
    %206 = vector.broadcast %cst_92 : f32 to vector<1x16x128xf32>
    %207 = arith.addf %206, %205 : vector<1x16x128xf32>
    %208 = arith.divf %206, %207 : vector<1x16x128xf32>
    %209 = arith.mulf %200, %180 : vector<1x16x128xf32>
    %210 = arith.mulf %194, %202 : vector<1x16x128xf32>
    %211 = arith.addf %209, %210 : vector<1x16x128xf32>
    %212 = math.tanh %211 : vector<1x16x128xf32>
    %213 = arith.mulf %208, %212 : vector<1x16x128xf32>
    %214 = vector.broadcast %123 : i32 to vector<1x16x1xi32>
    %215 = arith.cmpi sge, %3, %214 : vector<1x16x1xi32>
    %c16_i32_93 = arith.constant 16 : i32
    %216 = arith.addi %123, %c16_i32_93 : i32
    %217 = vector.broadcast %216 : i32 to vector<1x16x1xi32>
    %218 = arith.cmpi slt, %3, %217 : vector<1x16x1xi32>
    %219 = arith.andi %215, %218 : vector<1x16x1xi1>
    %cst_94 = arith.constant 0.000000e+00 : f32
    %220 = vector.shape_cast %219 : vector<1x16x1xi1> to vector<1x16x1xi1>
    %221 = vector.broadcast %220 : vector<1x16x1xi1> to vector<1x16x128xi1>
    %222 = vector.broadcast %cst_94 : f32 to vector<1x16x128xf32>
    %223 = arith.select %221, %213, %222 : vector<1x16x128xi1>, vector<1x16x128xf32>
    %cst_95 = arith.constant 0.000000e+00 : f32
    %224 = vector.shape_cast %219 : vector<1x16x1xi1> to vector<1x16x1xi1>
    %225 = vector.broadcast %224 : vector<1x16x1xi1> to vector<1x16x128xi1>
    %226 = vector.broadcast %cst_95 : f32 to vector<1x16x128xf32>
    %227 = arith.select %225, %211, %226 : vector<1x16x128xi1>, vector<1x16x128xf32>
    %c0_96 = arith.constant 0 : index
    %c0_97 = arith.constant 0 : index
    %c0_98 = arith.constant 0 : index
    %228 = vector.load %arg13[%c0_96, %c0_97, %c0_98] : memref<1x16x128xf32, #tpu.memory_space<vmem>>, vector<1x16x128xf32>
    tpu.vector_store %arg13[%c0_96, %c0_97, %c0_98], %223 {strides = array<i32>} : memref<1x16x128xf32, #tpu.memory_space<vmem>>, vector<1x16x128xf32>,
    %c0_99 = arith.constant 0 : index
    %c0_100 = arith.constant 0 : index
    %c0_101 = arith.constant 0 : index
    %229 = vector.load %arg14[%c0_99, %c0_100, %c0_101] : memref<1x16x128xf32, #tpu.memory_space<vmem>>, vector<1x16x128xf32>
    tpu.vector_store %arg14[%c0_99, %c0_100, %c0_101], %227 {strides = array<i32>} : memref<1x16x128xf32, #tpu.memory_space<vmem>>, vector<1x16x128xf32>,
    %230 = arith.truncf %170 : vector<1x16x128xf32> to vector<1x16x128xbf16>
    %c0_102 = arith.constant 0 : index
    %c0_103 = arith.constant 0 : index
    %c1_104 = arith.constant 1 : index
    %c0_105 = arith.constant 0 : index
    %231 = vector.load %arg6[%c0_102, %c0_103, %c1_104, %c0_105] : memref<1x16x8x128xbf16, #tpu.memory_space<vmem>>, vector<1x16x1x128xbf16>
    %232 = vector.shape_cast %231 : vector<1x16x1x128xbf16> to vector<1x16x128xbf16>
    %233 = vector.shape_cast %230 : vector<1x16x128xbf16> to vector<1x16x1x128xbf16>
    tpu.vector_store %arg6[%c0_102, %c0_103, %c1_104, %c0_105], %233 {strides = array<i32>} : memref<1x16x8x128xbf16, #tpu.memory_space<vmem>>, vector<1x16x1x128xbf16>,
    %234 = arith.truncf %223 : vector<1x16x128xf32> to vector<1x16x128xbf16>
    %c0_106 = arith.constant 0 : index
    %c6_107 = arith.constant 6 : index
    %c0_108 = arith.constant 0 : index
    %c0_109 = arith.constant 0 : index
    %235 = vector.load %arg7[%c0_106, %c6_107, %c0_108, %c0_109] : memref<1x8x16x128xbf16, #tpu.memory_space<vmem>>, vector<1x1x16x128xbf16>
    %236 = vector.shape_cast %235 : vector<1x1x16x128xbf16> to vector<1x16x128xbf16>
    %237 = vector.shape_cast %234 : vector<1x16x128xbf16> to vector<1x1x16x128xbf16>
    tpu.vector_store %arg7[%c0_106, %c6_107, %c0_108, %c0_109], %237 {strides = array<i32>} : memref<1x8x16x128xbf16, #tpu.memory_space<vmem>>, vector<1x1x16x128xbf16>,
    %c8_i32_110 = arith.constant 8 : i32
    %238 = arith.muli %arg1, %c8_i32_110 : i32
    %c2_i32 = arith.constant 2 : i32
    %239 = arith.addi %238, %c2_i32 : i32
    %c15_i32_111 = arith.constant 15 : i32
    %240 = arith.subi %c15_i32_111, %239 : i32
    %c0_112 = arith.constant 0 : index
    %c2 = arith.constant 2 : index
    %c0_113 = arith.constant 0 : index
    %241 = vector.load %arg2[%c0_112, %c2, %c0_113] : memref<1x8x512xf32, #tpu.memory_space<vmem>>, vector<1x1x512xf32>
    %242 = vector.shape_cast %241 : vector<1x1x512xf32> to vector<1x512xf32>
    %c0_114 = arith.constant 0 : index
    %c0_115 = arith.constant 0 : index
    %c0_116 = arith.constant 0 : index
    %243 = vector.load %arg11[%c0_114, %c0_115, %c0_116] : memref<1x16x128xf32, #tpu.memory_space<vmem>>, vector<1x16x128xf32>
    %c0_117 = arith.constant 0 : index
    %c0_118 = arith.constant 0 : index
    %c0_119 = arith.constant 0 : index
    %244 = vector.load %arg12[%c0_117, %c0_118, %c0_119] : memref<1x16x128xf32, #tpu.memory_space<vmem>>, vector<1x16x128xf32>
    %245 = vector.shape_cast %243 : vector<1x16x128xf32> to vector<16x128xf32>
    %246 = arith.truncf %245 : vector<16x128xf32> to vector<16x128xbf16>
    %c0_120 = arith.constant 0 : index
    %c0_121 = arith.constant 0 : index
    %247 = vector.load %arg8[%c0_120, %c0_121] : memref<128x512xbf16, #tpu.memory_space<vmem>>, vector<128x512xbf16>
    %cst_122 = arith.constant dense<0.000000e+00> : vector<16x512xf32>
    %248 = tpu.matmul %246, %247, %cst_122 {dimension_numbers = #tpu.dot_dimension_numbers<[1], [0], [0], [1], [0, 0, 1, 1], [], []>} : vector<16x128xbf16>, vector<128x512xbf16>, vector<16x512xf32> -> vector<16x512xf32>
    %249 = vector.shape_cast %248 : vector<16x512xf32> to vector<1x16x512xf32>
    %250 = vector.shape_cast %242 : vector<1x512xf32> to vector<1x1x512xf32>
    %251 = vector.broadcast %250 : vector<1x1x512xf32> to vector<1x16x512xf32>
    %252 = arith.addf %249, %251 : vector<1x16x512xf32>
    %253 = vector.extract_strided_slice %252 {offsets = [0, 0, 0], sizes = [1, 16, 128], strides = [1, 1, 1]} : vector<1x16x512xf32> to vector<1x16x128xf32>
    %254 = arith.negf %253 : vector<1x16x128xf32>
    %255 = math.exp %254 : vector<1x16x128xf32>
    %cst_123 = arith.constant 1.000000e+00 : f32
    %256 = vector.broadcast %cst_123 : f32 to vector<1x16x128xf32>
    %257 = arith.addf %256, %255 : vector<1x16x128xf32>
    %258 = arith.divf %256, %257 : vector<1x16x128xf32>
    %259 = vector.extract_strided_slice %252 {offsets = [0, 0, 128], sizes = [1, 16, 128], strides = [1, 1, 1]} : vector<1x16x512xf32> to vector<1x16x128xf32>
    %260 = arith.negf %259 : vector<1x16x128xf32>
    %261 = math.exp %260 : vector<1x16x128xf32>
    %cst_124 = arith.constant 1.000000e+00 : f32
    %262 = vector.broadcast %cst_124 : f32 to vector<1x16x128xf32>
    %263 = arith.addf %262, %261 : vector<1x16x128xf32>
    %264 = arith.divf %262, %263 : vector<1x16x128xf32>
    %265 = vector.extract_strided_slice %252 {offsets = [0, 0, 256], sizes = [1, 16, 128], strides = [1, 1, 1]} : vector<1x16x512xf32> to vector<1x16x128xf32>
    %266 = math.tanh %265 : vector<1x16x128xf32>
    %267 = vector.extract_strided_slice %252 {offsets = [0, 0, 384], sizes = [1, 16, 128], strides = [1, 1, 1]} : vector<1x16x512xf32> to vector<1x16x128xf32>
    %268 = arith.negf %267 : vector<1x16x128xf32>
    %269 = math.exp %268 : vector<1x16x128xf32>
    %cst_125 = arith.constant 1.000000e+00 : f32
    %270 = vector.broadcast %cst_125 : f32 to vector<1x16x128xf32>
    %271 = arith.addf %270, %269 : vector<1x16x128xf32>
    %272 = arith.divf %270, %271 : vector<1x16x128xf32>
    %273 = arith.mulf %264, %244 : vector<1x16x128xf32>
    %274 = arith.mulf %258, %266 : vector<1x16x128xf32>
    %275 = arith.addf %273, %274 : vector<1x16x128xf32>
    %276 = math.tanh %275 : vector<1x16x128xf32>
    %277 = arith.mulf %272, %276 : vector<1x16x128xf32>
    %278 = vector.broadcast %239 : i32 to vector<1x16x1xi32>
    %279 = arith.cmpi sle, %3, %278 : vector<1x16x1xi32>
    %c16_i32_126 = arith.constant 16 : i32
    %280 = arith.subi %239, %c16_i32_126 : i32
    %281 = vector.broadcast %280 : i32 to vector<1x16x1xi32>
    %282 = arith.cmpi sgt, %3, %281 : vector<1x16x1xi32>
    %283 = arith.andi %279, %282 : vector<1x16x1xi1>
    %cst_127 = arith.constant 0.000000e+00 : f32
    %284 = vector.shape_cast %283 : vector<1x16x1xi1> to vector<1x16x1xi1>
    %285 = vector.broadcast %284 : vector<1x16x1xi1> to vector<1x16x128xi1>
    %286 = vector.broadcast %cst_127 : f32 to vector<1x16x128xf32>
    %287 = arith.select %285, %277, %286 : vector<1x16x128xi1>, vector<1x16x128xf32>
    %cst_128 = arith.constant 0.000000e+00 : f32
    %288 = vector.shape_cast %283 : vector<1x16x1xi1> to vector<1x16x1xi1>
    %289 = vector.broadcast %288 : vector<1x16x1xi1> to vector<1x16x128xi1>
    %290 = vector.broadcast %cst_128 : f32 to vector<1x16x128xf32>
    %291 = arith.select %289, %275, %290 : vector<1x16x128xi1>, vector<1x16x128xf32>
    %c0_129 = arith.constant 0 : index
    %c0_130 = arith.constant 0 : index
    %c0_131 = arith.constant 0 : index
    %292 = vector.load %arg11[%c0_129, %c0_130, %c0_131] : memref<1x16x128xf32, #tpu.memory_space<vmem>>, vector<1x16x128xf32>
    tpu.vector_store %arg11[%c0_129, %c0_130, %c0_131], %287 {strides = array<i32>} : memref<1x16x128xf32, #tpu.memory_space<vmem>>, vector<1x16x128xf32>,
    %c0_132 = arith.constant 0 : index
    %c0_133 = arith.constant 0 : index
    %c0_134 = arith.constant 0 : index
    %293 = vector.load %arg12[%c0_132, %c0_133, %c0_134] : memref<1x16x128xf32, #tpu.memory_space<vmem>>, vector<1x16x128xf32>
    tpu.vector_store %arg12[%c0_132, %c0_133, %c0_134], %291 {strides = array<i32>} : memref<1x16x128xf32, #tpu.memory_space<vmem>>, vector<1x16x128xf32>,
    %c0_135 = arith.constant 0 : index
    %c5 = arith.constant 5 : index
    %c0_136 = arith.constant 0 : index
    %294 = vector.load %arg3[%c0_135, %c5, %c0_136] : memref<1x8x512xf32, #tpu.memory_space<vmem>>, vector<1x1x512xf32>
    %295 = vector.shape_cast %294 : vector<1x1x512xf32> to vector<1x512xf32>
    %c0_137 = arith.constant 0 : index
    %c0_138 = arith.constant 0 : index
    %c0_139 = arith.constant 0 : index
    %296 = vector.load %arg13[%c0_137, %c0_138, %c0_139] : memref<1x16x128xf32, #tpu.memory_space<vmem>>, vector<1x16x128xf32>
    %c0_140 = arith.constant 0 : index
    %c0_141 = arith.constant 0 : index
    %c0_142 = arith.constant 0 : index
    %297 = vector.load %arg14[%c0_140, %c0_141, %c0_142] : memref<1x16x128xf32, #tpu.memory_space<vmem>>, vector<1x16x128xf32>
    %298 = vector.shape_cast %296 : vector<1x16x128xf32> to vector<16x128xf32>
    %299 = arith.truncf %298 : vector<16x128xf32> to vector<16x128xbf16>
    %c0_143 = arith.constant 0 : index
    %c0_144 = arith.constant 0 : index
    %300 = vector.load %arg9[%c0_143, %c0_144] : memref<128x512xbf16, #tpu.memory_space<vmem>>, vector<128x512xbf16>
    %cst_145 = arith.constant dense<0.000000e+00> : vector<16x512xf32>
    %301 = tpu.matmul %299, %300, %cst_145 {dimension_numbers = #tpu.dot_dimension_numbers<[1], [0], [0], [1], [0, 0, 1, 1], [], []>} : vector<16x128xbf16>, vector<128x512xbf16>, vector<16x512xf32> -> vector<16x512xf32>
    %302 = vector.shape_cast %301 : vector<16x512xf32> to vector<1x16x512xf32>
    %303 = vector.shape_cast %295 : vector<1x512xf32> to vector<1x1x512xf32>
    %304 = vector.broadcast %303 : vector<1x1x512xf32> to vector<1x16x512xf32>
    %305 = arith.addf %302, %304 : vector<1x16x512xf32>
    %306 = vector.extract_strided_slice %305 {offsets = [0, 0, 0], sizes = [1, 16, 128], strides = [1, 1, 1]} : vector<1x16x512xf32> to vector<1x16x128xf32>
    %307 = arith.negf %306 : vector<1x16x128xf32>
    %308 = math.exp %307 : vector<1x16x128xf32>
    %cst_146 = arith.constant 1.000000e+00 : f32
    %309 = vector.broadcast %cst_146 : f32 to vector<1x16x128xf32>
    %310 = arith.addf %309, %308 : vector<1x16x128xf32>
    %311 = arith.divf %309, %310 : vector<1x16x128xf32>
    %312 = vector.extract_strided_slice %305 {offsets = [0, 0, 128], sizes = [1, 16, 128], strides = [1, 1, 1]} : vector<1x16x512xf32> to vector<1x16x128xf32>
    %313 = arith.negf %312 : vector<1x16x128xf32>
    %314 = math.exp %313 : vector<1x16x128xf32>
    %cst_147 = arith.constant 1.000000e+00 : f32
    %315 = vector.broadcast %cst_147 : f32 to vector<1x16x128xf32>
    %316 = arith.addf %315, %314 : vector<1x16x128xf32>
    %317 = arith.divf %315, %316 : vector<1x16x128xf32>
    %318 = vector.extract_strided_slice %305 {offsets = [0, 0, 256], sizes = [1, 16, 128], strides = [1, 1, 1]} : vector<1x16x512xf32> to vector<1x16x128xf32>
    %319 = math.tanh %318 : vector<1x16x128xf32>
    %320 = vector.extract_strided_slice %305 {offsets = [0, 0, 384], sizes = [1, 16, 128], strides = [1, 1, 1]} : vector<1x16x512xf32> to vector<1x16x128xf32>
    %321 = arith.negf %320 : vector<1x16x128xf32>
    %322 = math.exp %321 : vector<1x16x128xf32>
    %cst_148 = arith.constant 1.000000e+00 : f32
    %323 = vector.broadcast %cst_148 : f32 to vector<1x16x128xf32>
    %324 = arith.addf %323, %322 : vector<1x16x128xf32>
    %325 = arith.divf %323, %324 : vector<1x16x128xf32>
    %326 = arith.mulf %317, %297 : vector<1x16x128xf32>
    %327 = arith.mulf %311, %319 : vector<1x16x128xf32>
    %328 = arith.addf %326, %327 : vector<1x16x128xf32>
    %329 = math.tanh %328 : vector<1x16x128xf32>
    %330 = arith.mulf %325, %329 : vector<1x16x128xf32>
    %331 = vector.broadcast %240 : i32 to vector<1x16x1xi32>
    %332 = arith.cmpi sge, %3, %331 : vector<1x16x1xi32>
    %c16_i32_149 = arith.constant 16 : i32
    %333 = arith.addi %240, %c16_i32_149 : i32
    %334 = vector.broadcast %333 : i32 to vector<1x16x1xi32>
    %335 = arith.cmpi slt, %3, %334 : vector<1x16x1xi32>
    %336 = arith.andi %332, %335 : vector<1x16x1xi1>
    %cst_150 = arith.constant 0.000000e+00 : f32
    %337 = vector.shape_cast %336 : vector<1x16x1xi1> to vector<1x16x1xi1>
    %338 = vector.broadcast %337 : vector<1x16x1xi1> to vector<1x16x128xi1>
    %339 = vector.broadcast %cst_150 : f32 to vector<1x16x128xf32>
    %340 = arith.select %338, %330, %339 : vector<1x16x128xi1>, vector<1x16x128xf32>
    %cst_151 = arith.constant 0.000000e+00 : f32
    %341 = vector.shape_cast %336 : vector<1x16x1xi1> to vector<1x16x1xi1>
    %342 = vector.broadcast %341 : vector<1x16x1xi1> to vector<1x16x128xi1>
    %343 = vector.broadcast %cst_151 : f32 to vector<1x16x128xf32>
    %344 = arith.select %342, %328, %343 : vector<1x16x128xi1>, vector<1x16x128xf32>
    %c0_152 = arith.constant 0 : index
    %c0_153 = arith.constant 0 : index
    %c0_154 = arith.constant 0 : index
    %345 = vector.load %arg13[%c0_152, %c0_153, %c0_154] : memref<1x16x128xf32, #tpu.memory_space<vmem>>, vector<1x16x128xf32>
    tpu.vector_store %arg13[%c0_152, %c0_153, %c0_154], %340 {strides = array<i32>} : memref<1x16x128xf32, #tpu.memory_space<vmem>>, vector<1x16x128xf32>,
    %c0_155 = arith.constant 0 : index
    %c0_156 = arith.constant 0 : index
    %c0_157 = arith.constant 0 : index
    %346 = vector.load %arg14[%c0_155, %c0_156, %c0_157] : memref<1x16x128xf32, #tpu.memory_space<vmem>>, vector<1x16x128xf32>
    tpu.vector_store %arg14[%c0_155, %c0_156, %c0_157], %344 {strides = array<i32>} : memref<1x16x128xf32, #tpu.memory_space<vmem>>, vector<1x16x128xf32>,
    %347 = arith.truncf %287 : vector<1x16x128xf32> to vector<1x16x128xbf16>
    %c0_158 = arith.constant 0 : index
    %c0_159 = arith.constant 0 : index
    %c2_160 = arith.constant 2 : index
    %c0_161 = arith.constant 0 : index
    %348 = vector.load %arg6[%c0_158, %c0_159, %c2_160, %c0_161] : memref<1x16x8x128xbf16, #tpu.memory_space<vmem>>, vector<1x16x1x128xbf16>
    %349 = vector.shape_cast %348 : vector<1x16x1x128xbf16> to vector<1x16x128xbf16>
    %350 = vector.shape_cast %347 : vector<1x16x128xbf16> to vector<1x16x1x128xbf16>
    tpu.vector_store %arg6[%c0_158, %c0_159, %c2_160, %c0_161], %350 {strides = array<i32>} : memref<1x16x8x128xbf16, #tpu.memory_space<vmem>>, vector<1x16x1x128xbf16>,
    %351 = arith.truncf %340 : vector<1x16x128xf32> to vector<1x16x128xbf16>
    %c0_162 = arith.constant 0 : index
    %c5_163 = arith.constant 5 : index
    %c0_164 = arith.constant 0 : index
    %c0_165 = arith.constant 0 : index
    %352 = vector.load %arg7[%c0_162, %c5_163, %c0_164, %c0_165] : memref<1x8x16x128xbf16, #tpu.memory_space<vmem>>, vector<1x1x16x128xbf16>
    %353 = vector.shape_cast %352 : vector<1x1x16x128xbf16> to vector<1x16x128xbf16>
    %354 = vector.shape_cast %351 : vector<1x16x128xbf16> to vector<1x1x16x128xbf16>
    tpu.vector_store %arg7[%c0_162, %c5_163, %c0_164, %c0_165], %354 {strides = array<i32>} : memref<1x8x16x128xbf16, #tpu.memory_space<vmem>>, vector<1x1x16x128xbf16>,
    %c8_i32_166 = arith.constant 8 : i32
    %355 = arith.muli %arg1, %c8_i32_166 : i32
    %c3_i32 = arith.constant 3 : i32
    %356 = arith.addi %355, %c3_i32 : i32
    %c15_i32_167 = arith.constant 15 : i32
    %357 = arith.subi %c15_i32_167, %356 : i32
    %c0_168 = arith.constant 0 : index
    %c3 = arith.constant 3 : index
    %c0_169 = arith.constant 0 : index
    %358 = vector.load %arg2[%c0_168, %c3, %c0_169] : memref<1x8x512xf32, #tpu.memory_space<vmem>>, vector<1x1x512xf32>
    %359 = vector.shape_cast %358 : vector<1x1x512xf32> to vector<1x512xf32>
    %c0_170 = arith.constant 0 : index
    %c0_171 = arith.constant 0 : index
    %c0_172 = arith.constant 0 : index
    %360 = vector.load %arg11[%c0_170, %c0_171, %c0_172] : memref<1x16x128xf32, #tpu.memory_space<vmem>>, vector<1x16x128xf32>
    %c0_173 = arith.constant 0 : index
    %c0_174 = arith.constant 0 : index
    %c0_175 = arith.constant 0 : index
    %361 = vector.load %arg12[%c0_173, %c0_174, %c0_175] : memref<1x16x128xf32, #tpu.memory_space<vmem>>, vector<1x16x128xf32>
    %362 = vector.shape_cast %360 : vector<1x16x128xf32> to vector<16x128xf32>
    %363 = arith.truncf %362 : vector<16x128xf32> to vector<16x128xbf16>
    %c0_176 = arith.constant 0 : index
    %c0_177 = arith.constant 0 : index
    %364 = vector.load %arg8[%c0_176, %c0_177] : memref<128x512xbf16, #tpu.memory_space<vmem>>, vector<128x512xbf16>
    %cst_178 = arith.constant dense<0.000000e+00> : vector<16x512xf32>
    %365 = tpu.matmul %363, %364, %cst_178 {dimension_numbers = #tpu.dot_dimension_numbers<[1], [0], [0], [1], [0, 0, 1, 1], [], []>} : vector<16x128xbf16>, vector<128x512xbf16>, vector<16x512xf32> -> vector<16x512xf32>
    %366 = vector.shape_cast %365 : vector<16x512xf32> to vector<1x16x512xf32>
    %367 = vector.shape_cast %359 : vector<1x512xf32> to vector<1x1x512xf32>
    %368 = vector.broadcast %367 : vector<1x1x512xf32> to vector<1x16x512xf32>
    %369 = arith.addf %366, %368 : vector<1x16x512xf32>
    %370 = vector.extract_strided_slice %369 {offsets = [0, 0, 0], sizes = [1, 16, 128], strides = [1, 1, 1]} : vector<1x16x512xf32> to vector<1x16x128xf32>
    %371 = arith.negf %370 : vector<1x16x128xf32>
    %372 = math.exp %371 : vector<1x16x128xf32>
    %cst_179 = arith.constant 1.000000e+00 : f32
    %373 = vector.broadcast %cst_179 : f32 to vector<1x16x128xf32>
    %374 = arith.addf %373, %372 : vector<1x16x128xf32>
    %375 = arith.divf %373, %374 : vector<1x16x128xf32>
    %376 = vector.extract_strided_slice %369 {offsets = [0, 0, 128], sizes = [1, 16, 128], strides = [1, 1, 1]} : vector<1x16x512xf32> to vector<1x16x128xf32>
    %377 = arith.negf %376 : vector<1x16x128xf32>
    %378 = math.exp %377 : vector<1x16x128xf32>
    %cst_180 = arith.constant 1.000000e+00 : f32
    %379 = vector.broadcast %cst_180 : f32 to vector<1x16x128xf32>
    %380 = arith.addf %379, %378 : vector<1x16x128xf32>
    %381 = arith.divf %379, %380 : vector<1x16x128xf32>
    %382 = vector.extract_strided_slice %369 {offsets = [0, 0, 256], sizes = [1, 16, 128], strides = [1, 1, 1]} : vector<1x16x512xf32> to vector<1x16x128xf32>
    %383 = math.tanh %382 : vector<1x16x128xf32>
    %384 = vector.extract_strided_slice %369 {offsets = [0, 0, 384], sizes = [1, 16, 128], strides = [1, 1, 1]} : vector<1x16x512xf32> to vector<1x16x128xf32>
    %385 = arith.negf %384 : vector<1x16x128xf32>
    %386 = math.exp %385 : vector<1x16x128xf32>
    %cst_181 = arith.constant 1.000000e+00 : f32
    %387 = vector.broadcast %cst_181 : f32 to vector<1x16x128xf32>
    %388 = arith.addf %387, %386 : vector<1x16x128xf32>
    %389 = arith.divf %387, %388 : vector<1x16x128xf32>
    %390 = arith.mulf %381, %361 : vector<1x16x128xf32>
    %391 = arith.mulf %375, %383 : vector<1x16x128xf32>
    %392 = arith.addf %390, %391 : vector<1x16x128xf32>
    %393 = math.tanh %392 : vector<1x16x128xf32>
    %394 = arith.mulf %389, %393 : vector<1x16x128xf32>
    %395 = vector.broadcast %356 : i32 to vector<1x16x1xi32>
    %396 = arith.cmpi sle, %3, %395 : vector<1x16x1xi32>
    %c16_i32_182 = arith.constant 16 : i32
    %397 = arith.subi %356, %c16_i32_182 : i32
    %398 = vector.broadcast %397 : i32 to vector<1x16x1xi32>
    %399 = arith.cmpi sgt, %3, %398 : vector<1x16x1xi32>
    %400 = arith.andi %396, %399 : vector<1x16x1xi1>
    %cst_183 = arith.constant 0.000000e+00 : f32
    %401 = vector.shape_cast %400 : vector<1x16x1xi1> to vector<1x16x1xi1>
    %402 = vector.broadcast %401 : vector<1x16x1xi1> to vector<1x16x128xi1>
    %403 = vector.broadcast %cst_183 : f32 to vector<1x16x128xf32>
    %404 = arith.select %402, %394, %403 : vector<1x16x128xi1>, vector<1x16x128xf32>
    %cst_184 = arith.constant 0.000000e+00 : f32
    %405 = vector.shape_cast %400 : vector<1x16x1xi1> to vector<1x16x1xi1>
    %406 = vector.broadcast %405 : vector<1x16x1xi1> to vector<1x16x128xi1>
    %407 = vector.broadcast %cst_184 : f32 to vector<1x16x128xf32>
    %408 = arith.select %406, %392, %407 : vector<1x16x128xi1>, vector<1x16x128xf32>
    %c0_185 = arith.constant 0 : index
    %c0_186 = arith.constant 0 : index
    %c0_187 = arith.constant 0 : index
    %409 = vector.load %arg11[%c0_185, %c0_186, %c0_187] : memref<1x16x128xf32, #tpu.memory_space<vmem>>, vector<1x16x128xf32>
    tpu.vector_store %arg11[%c0_185, %c0_186, %c0_187], %404 {strides = array<i32>} : memref<1x16x128xf32, #tpu.memory_space<vmem>>, vector<1x16x128xf32>,
    %c0_188 = arith.constant 0 : index
    %c0_189 = arith.constant 0 : index
    %c0_190 = arith.constant 0 : index
    %410 = vector.load %arg12[%c0_188, %c0_189, %c0_190] : memref<1x16x128xf32, #tpu.memory_space<vmem>>, vector<1x16x128xf32>
    tpu.vector_store %arg12[%c0_188, %c0_189, %c0_190], %408 {strides = array<i32>} : memref<1x16x128xf32, #tpu.memory_space<vmem>>, vector<1x16x128xf32>,
    %c0_191 = arith.constant 0 : index
    %c4 = arith.constant 4 : index
    %c0_192 = arith.constant 0 : index
    %411 = vector.load %arg3[%c0_191, %c4, %c0_192] : memref<1x8x512xf32, #tpu.memory_space<vmem>>, vector<1x1x512xf32>
    %412 = vector.shape_cast %411 : vector<1x1x512xf32> to vector<1x512xf32>
    %c0_193 = arith.constant 0 : index
    %c0_194 = arith.constant 0 : index
    %c0_195 = arith.constant 0 : index
    %413 = vector.load %arg13[%c0_193, %c0_194, %c0_195] : memref<1x16x128xf32, #tpu.memory_space<vmem>>, vector<1x16x128xf32>
    %c0_196 = arith.constant 0 : index
    %c0_197 = arith.constant 0 : index
    %c0_198 = arith.constant 0 : index
    %414 = vector.load %arg14[%c0_196, %c0_197, %c0_198] : memref<1x16x128xf32, #tpu.memory_space<vmem>>, vector<1x16x128xf32>
    %415 = vector.shape_cast %413 : vector<1x16x128xf32> to vector<16x128xf32>
    %416 = arith.truncf %415 : vector<16x128xf32> to vector<16x128xbf16>
    %c0_199 = arith.constant 0 : index
    %c0_200 = arith.constant 0 : index
    %417 = vector.load %arg9[%c0_199, %c0_200] : memref<128x512xbf16, #tpu.memory_space<vmem>>, vector<128x512xbf16>
    %cst_201 = arith.constant dense<0.000000e+00> : vector<16x512xf32>
    %418 = tpu.matmul %416, %417, %cst_201 {dimension_numbers = #tpu.dot_dimension_numbers<[1], [0], [0], [1], [0, 0, 1, 1], [], []>} : vector<16x128xbf16>, vector<128x512xbf16>, vector<16x512xf32> -> vector<16x512xf32>
    %419 = vector.shape_cast %418 : vector<16x512xf32> to vector<1x16x512xf32>
    %420 = vector.shape_cast %412 : vector<1x512xf32> to vector<1x1x512xf32>
    %421 = vector.broadcast %420 : vector<1x1x512xf32> to vector<1x16x512xf32>
    %422 = arith.addf %419, %421 : vector<1x16x512xf32>
    %423 = vector.extract_strided_slice %422 {offsets = [0, 0, 0], sizes = [1, 16, 128], strides = [1, 1, 1]} : vector<1x16x512xf32> to vector<1x16x128xf32>
    %424 = arith.negf %423 : vector<1x16x128xf32>
    %425 = math.exp %424 : vector<1x16x128xf32>
    %cst_202 = arith.constant 1.000000e+00 : f32
    %426 = vector.broadcast %cst_202 : f32 to vector<1x16x128xf32>
    %427 = arith.addf %426, %425 : vector<1x16x128xf32>
    %428 = arith.divf %426, %427 : vector<1x16x128xf32>
    %429 = vector.extract_strided_slice %422 {offsets = [0, 0, 128], sizes = [1, 16, 128], strides = [1, 1, 1]} : vector<1x16x512xf32> to vector<1x16x128xf32>
    %430 = arith.negf %429 : vector<1x16x128xf32>
    %431 = math.exp %430 : vector<1x16x128xf32>
    %cst_203 = arith.constant 1.000000e+00 : f32
    %432 = vector.broadcast %cst_203 : f32 to vector<1x16x128xf32>
    %433 = arith.addf %432, %431 : vector<1x16x128xf32>
    %434 = arith.divf %432, %433 : vector<1x16x128xf32>
    %435 = vector.extract_strided_slice %422 {offsets = [0, 0, 256], sizes = [1, 16, 128], strides = [1, 1, 1]} : vector<1x16x512xf32> to vector<1x16x128xf32>
    %436 = math.tanh %435 : vector<1x16x128xf32>
    %437 = vector.extract_strided_slice %422 {offsets = [0, 0, 384], sizes = [1, 16, 128], strides = [1, 1, 1]} : vector<1x16x512xf32> to vector<1x16x128xf32>
    %438 = arith.negf %437 : vector<1x16x128xf32>
    %439 = math.exp %438 : vector<1x16x128xf32>
    %cst_204 = arith.constant 1.000000e+00 : f32
    %440 = vector.broadcast %cst_204 : f32 to vector<1x16x128xf32>
    %441 = arith.addf %440, %439 : vector<1x16x128xf32>
    %442 = arith.divf %440, %441 : vector<1x16x128xf32>
    %443 = arith.mulf %434, %414 : vector<1x16x128xf32>
    %444 = arith.mulf %428, %436 : vector<1x16x128xf32>
    %445 = arith.addf %443, %444 : vector<1x16x128xf32>
    %446 = math.tanh %445 : vector<1x16x128xf32>
    %447 = arith.mulf %442, %446 : vector<1x16x128xf32>
    %448 = vector.broadcast %357 : i32 to vector<1x16x1xi32>
    %449 = arith.cmpi sge, %3, %448 : vector<1x16x1xi32>
    %c16_i32_205 = arith.constant 16 : i32
    %450 = arith.addi %357, %c16_i32_205 : i32
    %451 = vector.broadcast %450 : i32 to vector<1x16x1xi32>
    %452 = arith.cmpi slt, %3, %451 : vector<1x16x1xi32>
    %453 = arith.andi %449, %452 : vector<1x16x1xi1>
    %cst_206 = arith.constant 0.000000e+00 : f32
    %454 = vector.shape_cast %453 : vector<1x16x1xi1> to vector<1x16x1xi1>
    %455 = vector.broadcast %454 : vector<1x16x1xi1> to vector<1x16x128xi1>
    %456 = vector.broadcast %cst_206 : f32 to vector<1x16x128xf32>
    %457 = arith.select %455, %447, %456 : vector<1x16x128xi1>, vector<1x16x128xf32>
    %cst_207 = arith.constant 0.000000e+00 : f32
    %458 = vector.shape_cast %453 : vector<1x16x1xi1> to vector<1x16x1xi1>
    %459 = vector.broadcast %458 : vector<1x16x1xi1> to vector<1x16x128xi1>
    %460 = vector.broadcast %cst_207 : f32 to vector<1x16x128xf32>
    %461 = arith.select %459, %445, %460 : vector<1x16x128xi1>, vector<1x16x128xf32>
    %c0_208 = arith.constant 0 : index
    %c0_209 = arith.constant 0 : index
    %c0_210 = arith.constant 0 : index
    %462 = vector.load %arg13[%c0_208, %c0_209, %c0_210] : memref<1x16x128xf32, #tpu.memory_space<vmem>>, vector<1x16x128xf32>
    tpu.vector_store %arg13[%c0_208, %c0_209, %c0_210], %457 {strides = array<i32>} : memref<1x16x128xf32, #tpu.memory_space<vmem>>, vector<1x16x128xf32>,
    %c0_211 = arith.constant 0 : index
    %c0_212 = arith.constant 0 : index
    %c0_213 = arith.constant 0 : index
    %463 = vector.load %arg14[%c0_211, %c0_212, %c0_213] : memref<1x16x128xf32, #tpu.memory_space<vmem>>, vector<1x16x128xf32>
    tpu.vector_store %arg14[%c0_211, %c0_212, %c0_213], %461 {strides = array<i32>} : memref<1x16x128xf32, #tpu.memory_space<vmem>>, vector<1x16x128xf32>,
    %464 = arith.truncf %404 : vector<1x16x128xf32> to vector<1x16x128xbf16>
    %c0_214 = arith.constant 0 : index
    %c0_215 = arith.constant 0 : index
    %c3_216 = arith.constant 3 : index
    %c0_217 = arith.constant 0 : index
    %465 = vector.load %arg6[%c0_214, %c0_215, %c3_216, %c0_217] : memref<1x16x8x128xbf16, #tpu.memory_space<vmem>>, vector<1x16x1x128xbf16>
    %466 = vector.shape_cast %465 : vector<1x16x1x128xbf16> to vector<1x16x128xbf16>
    %467 = vector.shape_cast %464 : vector<1x16x128xbf16> to vector<1x16x1x128xbf16>
    tpu.vector_store %arg6[%c0_214, %c0_215, %c3_216, %c0_217], %467 {strides = array<i32>} : memref<1x16x8x128xbf16, #tpu.memory_space<vmem>>, vector<1x16x1x128xbf16>,
    %468 = arith.truncf %457 : vector<1x16x128xf32> to vector<1x16x128xbf16>
    %c0_218 = arith.constant 0 : index
    %c4_219 = arith.constant 4 : index
    %c0_220 = arith.constant 0 : index
    %c0_221 = arith.constant 0 : index
    %469 = vector.load %arg7[%c0_218, %c4_219, %c0_220, %c0_221] : memref<1x8x16x128xbf16, #tpu.memory_space<vmem>>, vector<1x1x16x128xbf16>
    %470 = vector.shape_cast %469 : vector<1x1x16x128xbf16> to vector<1x16x128xbf16>
    %471 = vector.shape_cast %468 : vector<1x16x128xbf16> to vector<1x1x16x128xbf16>
    tpu.vector_store %arg7[%c0_218, %c4_219, %c0_220, %c0_221], %471 {strides = array<i32>} : memref<1x8x16x128xbf16, #tpu.memory_space<vmem>>, vector<1x1x16x128xbf16>,
    %c8_i32_222 = arith.constant 8 : i32
    %472 = arith.muli %arg1, %c8_i32_222 : i32
    %c4_i32 = arith.constant 4 : i32
    %473 = arith.addi %472, %c4_i32 : i32
    %c15_i32_223 = arith.constant 15 : i32
    %474 = arith.subi %c15_i32_223, %473 : i32
    %c0_224 = arith.constant 0 : index
    %c4_225 = arith.constant 4 : index
    %c0_226 = arith.constant 0 : index
    %475 = vector.load %arg2[%c0_224, %c4_225, %c0_226] : memref<1x8x512xf32, #tpu.memory_space<vmem>>, vector<1x1x512xf32>
    %476 = vector.shape_cast %475 : vector<1x1x512xf32> to vector<1x512xf32>
    %c0_227 = arith.constant 0 : index
    %c0_228 = arith.constant 0 : index
    %c0_229 = arith.constant 0 : index
    %477 = vector.load %arg11[%c0_227, %c0_228, %c0_229] : memref<1x16x128xf32, #tpu.memory_space<vmem>>, vector<1x16x128xf32>
    %c0_230 = arith.constant 0 : index
    %c0_231 = arith.constant 0 : index
    %c0_232 = arith.constant 0 : index
    %478 = vector.load %arg12[%c0_230, %c0_231, %c0_232] : memref<1x16x128xf32, #tpu.memory_space<vmem>>, vector<1x16x128xf32>
    %479 = vector.shape_cast %477 : vector<1x16x128xf32> to vector<16x128xf32>
    %480 = arith.truncf %479 : vector<16x128xf32> to vector<16x128xbf16>
    %c0_233 = arith.constant 0 : index
    %c0_234 = arith.constant 0 : index
    %481 = vector.load %arg8[%c0_233, %c0_234] : memref<128x512xbf16, #tpu.memory_space<vmem>>, vector<128x512xbf16>
    %cst_235 = arith.constant dense<0.000000e+00> : vector<16x512xf32>
    %482 = tpu.matmul %480, %481, %cst_235 {dimension_numbers = #tpu.dot_dimension_numbers<[1], [0], [0], [1], [0, 0, 1, 1], [], []>} : vector<16x128xbf16>, vector<128x512xbf16>, vector<16x512xf32> -> vector<16x512xf32>
    %483 = vector.shape_cast %482 : vector<16x512xf32> to vector<1x16x512xf32>
    %484 = vector.shape_cast %476 : vector<1x512xf32> to vector<1x1x512xf32>
    %485 = vector.broadcast %484 : vector<1x1x512xf32> to vector<1x16x512xf32>
    %486 = arith.addf %483, %485 : vector<1x16x512xf32>
    %487 = vector.extract_strided_slice %486 {offsets = [0, 0, 0], sizes = [1, 16, 128], strides = [1, 1, 1]} : vector<1x16x512xf32> to vector<1x16x128xf32>
    %488 = arith.negf %487 : vector<1x16x128xf32>
    %489 = math.exp %488 : vector<1x16x128xf32>
    %cst_236 = arith.constant 1.000000e+00 : f32
    %490 = vector.broadcast %cst_236 : f32 to vector<1x16x128xf32>
    %491 = arith.addf %490, %489 : vector<1x16x128xf32>
    %492 = arith.divf %490, %491 : vector<1x16x128xf32>
    %493 = vector.extract_strided_slice %486 {offsets = [0, 0, 128], sizes = [1, 16, 128], strides = [1, 1, 1]} : vector<1x16x512xf32> to vector<1x16x128xf32>
    %494 = arith.negf %493 : vector<1x16x128xf32>
    %495 = math.exp %494 : vector<1x16x128xf32>
    %cst_237 = arith.constant 1.000000e+00 : f32
    %496 = vector.broadcast %cst_237 : f32 to vector<1x16x128xf32>
    %497 = arith.addf %496, %495 : vector<1x16x128xf32>
    %498 = arith.divf %496, %497 : vector<1x16x128xf32>
    %499 = vector.extract_strided_slice %486 {offsets = [0, 0, 256], sizes = [1, 16, 128], strides = [1, 1, 1]} : vector<1x16x512xf32> to vector<1x16x128xf32>
    %500 = math.tanh %499 : vector<1x16x128xf32>
    %501 = vector.extract_strided_slice %486 {offsets = [0, 0, 384], sizes = [1, 16, 128], strides = [1, 1, 1]} : vector<1x16x512xf32> to vector<1x16x128xf32>
    %502 = arith.negf %501 : vector<1x16x128xf32>
    %503 = math.exp %502 : vector<1x16x128xf32>
    %cst_238 = arith.constant 1.000000e+00 : f32
    %504 = vector.broadcast %cst_238 : f32 to vector<1x16x128xf32>
    %505 = arith.addf %504, %503 : vector<1x16x128xf32>
    %506 = arith.divf %504, %505 : vector<1x16x128xf32>
    %507 = arith.mulf %498, %478 : vector<1x16x128xf32>
    %508 = arith.mulf %492, %500 : vector<1x16x128xf32>
    %509 = arith.addf %507, %508 : vector<1x16x128xf32>
    %510 = math.tanh %509 : vector<1x16x128xf32>
    %511 = arith.mulf %506, %510 : vector<1x16x128xf32>
    %512 = vector.broadcast %473 : i32 to vector<1x16x1xi32>
    %513 = arith.cmpi sle, %3, %512 : vector<1x16x1xi32>
    %c16_i32_239 = arith.constant 16 : i32
    %514 = arith.subi %473, %c16_i32_239 : i32
    %515 = vector.broadcast %514 : i32 to vector<1x16x1xi32>
    %516 = arith.cmpi sgt, %3, %515 : vector<1x16x1xi32>
    %517 = arith.andi %513, %516 : vector<1x16x1xi1>
    %cst_240 = arith.constant 0.000000e+00 : f32
    %518 = vector.shape_cast %517 : vector<1x16x1xi1> to vector<1x16x1xi1>
    %519 = vector.broadcast %518 : vector<1x16x1xi1> to vector<1x16x128xi1>
    %520 = vector.broadcast %cst_240 : f32 to vector<1x16x128xf32>
    %521 = arith.select %519, %511, %520 : vector<1x16x128xi1>, vector<1x16x128xf32>
    %cst_241 = arith.constant 0.000000e+00 : f32
    %522 = vector.shape_cast %517 : vector<1x16x1xi1> to vector<1x16x1xi1>
    %523 = vector.broadcast %522 : vector<1x16x1xi1> to vector<1x16x128xi1>
    %524 = vector.broadcast %cst_241 : f32 to vector<1x16x128xf32>
    %525 = arith.select %523, %509, %524 : vector<1x16x128xi1>, vector<1x16x128xf32>
    %c0_242 = arith.constant 0 : index
    %c0_243 = arith.constant 0 : index
    %c0_244 = arith.constant 0 : index
    %526 = vector.load %arg11[%c0_242, %c0_243, %c0_244] : memref<1x16x128xf32, #tpu.memory_space<vmem>>, vector<1x16x128xf32>
    tpu.vector_store %arg11[%c0_242, %c0_243, %c0_244], %521 {strides = array<i32>} : memref<1x16x128xf32, #tpu.memory_space<vmem>>, vector<1x16x128xf32>,
    %c0_245 = arith.constant 0 : index
    %c0_246 = arith.constant 0 : index
    %c0_247 = arith.constant 0 : index
    %527 = vector.load %arg12[%c0_245, %c0_246, %c0_247] : memref<1x16x128xf32, #tpu.memory_space<vmem>>, vector<1x16x128xf32>
    tpu.vector_store %arg12[%c0_245, %c0_246, %c0_247], %525 {strides = array<i32>} : memref<1x16x128xf32, #tpu.memory_space<vmem>>, vector<1x16x128xf32>,
    %c0_248 = arith.constant 0 : index
    %c3_249 = arith.constant 3 : index
    %c0_250 = arith.constant 0 : index
    %528 = vector.load %arg3[%c0_248, %c3_249, %c0_250] : memref<1x8x512xf32, #tpu.memory_space<vmem>>, vector<1x1x512xf32>
    %529 = vector.shape_cast %528 : vector<1x1x512xf32> to vector<1x512xf32>
    %c0_251 = arith.constant 0 : index
    %c0_252 = arith.constant 0 : index
    %c0_253 = arith.constant 0 : index
    %530 = vector.load %arg13[%c0_251, %c0_252, %c0_253] : memref<1x16x128xf32, #tpu.memory_space<vmem>>, vector<1x16x128xf32>
    %c0_254 = arith.constant 0 : index
    %c0_255 = arith.constant 0 : index
    %c0_256 = arith.constant 0 : index
    %531 = vector.load %arg14[%c0_254, %c0_255, %c0_256] : memref<1x16x128xf32, #tpu.memory_space<vmem>>, vector<1x16x128xf32>
    %532 = vector.shape_cast %530 : vector<1x16x128xf32> to vector<16x128xf32>
    %533 = arith.truncf %532 : vector<16x128xf32> to vector<16x128xbf16>
    %c0_257 = arith.constant 0 : index
    %c0_258 = arith.constant 0 : index
    %534 = vector.load %arg9[%c0_257, %c0_258] : memref<128x512xbf16, #tpu.memory_space<vmem>>, vector<128x512xbf16>
    %cst_259 = arith.constant dense<0.000000e+00> : vector<16x512xf32>
    %535 = tpu.matmul %533, %534, %cst_259 {dimension_numbers = #tpu.dot_dimension_numbers<[1], [0], [0], [1], [0, 0, 1, 1], [], []>} : vector<16x128xbf16>, vector<128x512xbf16>, vector<16x512xf32> -> vector<16x512xf32>
    %536 = vector.shape_cast %535 : vector<16x512xf32> to vector<1x16x512xf32>
    %537 = vector.shape_cast %529 : vector<1x512xf32> to vector<1x1x512xf32>
    %538 = vector.broadcast %537 : vector<1x1x512xf32> to vector<1x16x512xf32>
    %539 = arith.addf %536, %538 : vector<1x16x512xf32>
    %540 = vector.extract_strided_slice %539 {offsets = [0, 0, 0], sizes = [1, 16, 128], strides = [1, 1, 1]} : vector<1x16x512xf32> to vector<1x16x128xf32>
    %541 = arith.negf %540 : vector<1x16x128xf32>
    %542 = math.exp %541 : vector<1x16x128xf32>
    %cst_260 = arith.constant 1.000000e+00 : f32
    %543 = vector.broadcast %cst_260 : f32 to vector<1x16x128xf32>
    %544 = arith.addf %543, %542 : vector<1x16x128xf32>
    %545 = arith.divf %543, %544 : vector<1x16x128xf32>
    %546 = vector.extract_strided_slice %539 {offsets = [0, 0, 128], sizes = [1, 16, 128], strides = [1, 1, 1]} : vector<1x16x512xf32> to vector<1x16x128xf32>
    %547 = arith.negf %546 : vector<1x16x128xf32>
    %548 = math.exp %547 : vector<1x16x128xf32>
    %cst_261 = arith.constant 1.000000e+00 : f32
    %549 = vector.broadcast %cst_261 : f32 to vector<1x16x128xf32>
    %550 = arith.addf %549, %548 : vector<1x16x128xf32>
    %551 = arith.divf %549, %550 : vector<1x16x128xf32>
    %552 = vector.extract_strided_slice %539 {offsets = [0, 0, 256], sizes = [1, 16, 128], strides = [1, 1, 1]} : vector<1x16x512xf32> to vector<1x16x128xf32>
    %553 = math.tanh %552 : vector<1x16x128xf32>
    %554 = vector.extract_strided_slice %539 {offsets = [0, 0, 384], sizes = [1, 16, 128], strides = [1, 1, 1]} : vector<1x16x512xf32> to vector<1x16x128xf32>
    %555 = arith.negf %554 : vector<1x16x128xf32>
    %556 = math.exp %555 : vector<1x16x128xf32>
    %cst_262 = arith.constant 1.000000e+00 : f32
    %557 = vector.broadcast %cst_262 : f32 to vector<1x16x128xf32>
    %558 = arith.addf %557, %556 : vector<1x16x128xf32>
    %559 = arith.divf %557, %558 : vector<1x16x128xf32>
    %560 = arith.mulf %551, %531 : vector<1x16x128xf32>
    %561 = arith.mulf %545, %553 : vector<1x16x128xf32>
    %562 = arith.addf %560, %561 : vector<1x16x128xf32>
    %563 = math.tanh %562 : vector<1x16x128xf32>
    %564 = arith.mulf %559, %563 : vector<1x16x128xf32>
    %565 = vector.broadcast %474 : i32 to vector<1x16x1xi32>
    %566 = arith.cmpi sge, %3, %565 : vector<1x16x1xi32>
    %c16_i32_263 = arith.constant 16 : i32
    %567 = arith.addi %474, %c16_i32_263 : i32
    %568 = vector.broadcast %567 : i32 to vector<1x16x1xi32>
    %569 = arith.cmpi slt, %3, %568 : vector<1x16x1xi32>
    %570 = arith.andi %566, %569 : vector<1x16x1xi1>
    %cst_264 = arith.constant 0.000000e+00 : f32
    %571 = vector.shape_cast %570 : vector<1x16x1xi1> to vector<1x16x1xi1>
    %572 = vector.broadcast %571 : vector<1x16x1xi1> to vector<1x16x128xi1>
    %573 = vector.broadcast %cst_264 : f32 to vector<1x16x128xf32>
    %574 = arith.select %572, %564, %573 : vector<1x16x128xi1>, vector<1x16x128xf32>
    %cst_265 = arith.constant 0.000000e+00 : f32
    %575 = vector.shape_cast %570 : vector<1x16x1xi1> to vector<1x16x1xi1>
    %576 = vector.broadcast %575 : vector<1x16x1xi1> to vector<1x16x128xi1>
    %577 = vector.broadcast %cst_265 : f32 to vector<1x16x128xf32>
    %578 = arith.select %576, %562, %577 : vector<1x16x128xi1>, vector<1x16x128xf32>
    %c0_266 = arith.constant 0 : index
    %c0_267 = arith.constant 0 : index
    %c0_268 = arith.constant 0 : index
    %579 = vector.load %arg13[%c0_266, %c0_267, %c0_268] : memref<1x16x128xf32, #tpu.memory_space<vmem>>, vector<1x16x128xf32>
    tpu.vector_store %arg13[%c0_266, %c0_267, %c0_268], %574 {strides = array<i32>} : memref<1x16x128xf32, #tpu.memory_space<vmem>>, vector<1x16x128xf32>,
    %c0_269 = arith.constant 0 : index
    %c0_270 = arith.constant 0 : index
    %c0_271 = arith.constant 0 : index
    %580 = vector.load %arg14[%c0_269, %c0_270, %c0_271] : memref<1x16x128xf32, #tpu.memory_space<vmem>>, vector<1x16x128xf32>
    tpu.vector_store %arg14[%c0_269, %c0_270, %c0_271], %578 {strides = array<i32>} : memref<1x16x128xf32, #tpu.memory_space<vmem>>, vector<1x16x128xf32>,
    %581 = arith.truncf %521 : vector<1x16x128xf32> to vector<1x16x128xbf16>
    %c0_272 = arith.constant 0 : index
    %c0_273 = arith.constant 0 : index
    %c4_274 = arith.constant 4 : index
    %c0_275 = arith.constant 0 : index
    %582 = vector.load %arg6[%c0_272, %c0_273, %c4_274, %c0_275] : memref<1x16x8x128xbf16, #tpu.memory_space<vmem>>, vector<1x16x1x128xbf16>
    %583 = vector.shape_cast %582 : vector<1x16x1x128xbf16> to vector<1x16x128xbf16>
    %584 = vector.shape_cast %581 : vector<1x16x128xbf16> to vector<1x16x1x128xbf16>
    tpu.vector_store %arg6[%c0_272, %c0_273, %c4_274, %c0_275], %584 {strides = array<i32>} : memref<1x16x8x128xbf16, #tpu.memory_space<vmem>>, vector<1x16x1x128xbf16>,
    %585 = arith.truncf %574 : vector<1x16x128xf32> to vector<1x16x128xbf16>
    %c0_276 = arith.constant 0 : index
    %c3_277 = arith.constant 3 : index
    %c0_278 = arith.constant 0 : index
    %c0_279 = arith.constant 0 : index
    %586 = vector.load %arg7[%c0_276, %c3_277, %c0_278, %c0_279] : memref<1x8x16x128xbf16, #tpu.memory_space<vmem>>, vector<1x1x16x128xbf16>
    %587 = vector.shape_cast %586 : vector<1x1x16x128xbf16> to vector<1x16x128xbf16>
    %588 = vector.shape_cast %585 : vector<1x16x128xbf16> to vector<1x1x16x128xbf16>
    tpu.vector_store %arg7[%c0_276, %c3_277, %c0_278, %c0_279], %588 {strides = array<i32>} : memref<1x8x16x128xbf16, #tpu.memory_space<vmem>>, vector<1x1x16x128xbf16>,
    %c8_i32_280 = arith.constant 8 : i32
    %589 = arith.muli %arg1, %c8_i32_280 : i32
    %c5_i32 = arith.constant 5 : i32
    %590 = arith.addi %589, %c5_i32 : i32
    %c15_i32_281 = arith.constant 15 : i32
    %591 = arith.subi %c15_i32_281, %590 : i32
    %c0_282 = arith.constant 0 : index
    %c5_283 = arith.constant 5 : index
    %c0_284 = arith.constant 0 : index
    %592 = vector.load %arg2[%c0_282, %c5_283, %c0_284] : memref<1x8x512xf32, #tpu.memory_space<vmem>>, vector<1x1x512xf32>
    %593 = vector.shape_cast %592 : vector<1x1x512xf32> to vector<1x512xf32>
    %c0_285 = arith.constant 0 : index
    %c0_286 = arith.constant 0 : index
    %c0_287 = arith.constant 0 : index
    %594 = vector.load %arg11[%c0_285, %c0_286, %c0_287] : memref<1x16x128xf32, #tpu.memory_space<vmem>>, vector<1x16x128xf32>
    %c0_288 = arith.constant 0 : index
    %c0_289 = arith.constant 0 : index
    %c0_290 = arith.constant 0 : index
    %595 = vector.load %arg12[%c0_288, %c0_289, %c0_290] : memref<1x16x128xf32, #tpu.memory_space<vmem>>, vector<1x16x128xf32>
    %596 = vector.shape_cast %594 : vector<1x16x128xf32> to vector<16x128xf32>
    %597 = arith.truncf %596 : vector<16x128xf32> to vector<16x128xbf16>
    %c0_291 = arith.constant 0 : index
    %c0_292 = arith.constant 0 : index
    %598 = vector.load %arg8[%c0_291, %c0_292] : memref<128x512xbf16, #tpu.memory_space<vmem>>, vector<128x512xbf16>
    %cst_293 = arith.constant dense<0.000000e+00> : vector<16x512xf32>
    %599 = tpu.matmul %597, %598, %cst_293 {dimension_numbers = #tpu.dot_dimension_numbers<[1], [0], [0], [1], [0, 0, 1, 1], [], []>} : vector<16x128xbf16>, vector<128x512xbf16>, vector<16x512xf32> -> vector<16x512xf32>
    %600 = vector.shape_cast %599 : vector<16x512xf32> to vector<1x16x512xf32>
    %601 = vector.shape_cast %593 : vector<1x512xf32> to vector<1x1x512xf32>
    %602 = vector.broadcast %601 : vector<1x1x512xf32> to vector<1x16x512xf32>
    %603 = arith.addf %600, %602 : vector<1x16x512xf32>
    %604 = vector.extract_strided_slice %603 {offsets = [0, 0, 0], sizes = [1, 16, 128], strides = [1, 1, 1]} : vector<1x16x512xf32> to vector<1x16x128xf32>
    %605 = arith.negf %604 : vector<1x16x128xf32>
    %606 = math.exp %605 : vector<1x16x128xf32>
    %cst_294 = arith.constant 1.000000e+00 : f32
    %607 = vector.broadcast %cst_294 : f32 to vector<1x16x128xf32>
    %608 = arith.addf %607, %606 : vector<1x16x128xf32>
    %609 = arith.divf %607, %608 : vector<1x16x128xf32>
    %610 = vector.extract_strided_slice %603 {offsets = [0, 0, 128], sizes = [1, 16, 128], strides = [1, 1, 1]} : vector<1x16x512xf32> to vector<1x16x128xf32>
    %611 = arith.negf %610 : vector<1x16x128xf32>
    %612 = math.exp %611 : vector<1x16x128xf32>
    %cst_295 = arith.constant 1.000000e+00 : f32
    %613 = vector.broadcast %cst_295 : f32 to vector<1x16x128xf32>
    %614 = arith.addf %613, %612 : vector<1x16x128xf32>
    %615 = arith.divf %613, %614 : vector<1x16x128xf32>
    %616 = vector.extract_strided_slice %603 {offsets = [0, 0, 256], sizes = [1, 16, 128], strides = [1, 1, 1]} : vector<1x16x512xf32> to vector<1x16x128xf32>
    %617 = math.tanh %616 : vector<1x16x128xf32>
    %618 = vector.extract_strided_slice %603 {offsets = [0, 0, 384], sizes = [1, 16, 128], strides = [1, 1, 1]} : vector<1x16x512xf32> to vector<1x16x128xf32>
    %619 = arith.negf %618 : vector<1x16x128xf32>
    %620 = math.exp %619 : vector<1x16x128xf32>
    %cst_296 = arith.constant 1.000000e+00 : f32
    %621 = vector.broadcast %cst_296 : f32 to vector<1x16x128xf32>
    %622 = arith.addf %621, %620 : vector<1x16x128xf32>
    %623 = arith.divf %621, %622 : vector<1x16x128xf32>
    %624 = arith.mulf %615, %595 : vector<1x16x128xf32>
    %625 = arith.mulf %609, %617 : vector<1x16x128xf32>
    %626 = arith.addf %624, %625 : vector<1x16x128xf32>
    %627 = math.tanh %626 : vector<1x16x128xf32>
    %628 = arith.mulf %623, %627 : vector<1x16x128xf32>
    %629 = vector.broadcast %590 : i32 to vector<1x16x1xi32>
    %630 = arith.cmpi sle, %3, %629 : vector<1x16x1xi32>
    %c16_i32_297 = arith.constant 16 : i32
    %631 = arith.subi %590, %c16_i32_297 : i32
    %632 = vector.broadcast %631 : i32 to vector<1x16x1xi32>
    %633 = arith.cmpi sgt, %3, %632 : vector<1x16x1xi32>
    %634 = arith.andi %630, %633 : vector<1x16x1xi1>
    %cst_298 = arith.constant 0.000000e+00 : f32
    %635 = vector.shape_cast %634 : vector<1x16x1xi1> to vector<1x16x1xi1>
    %636 = vector.broadcast %635 : vector<1x16x1xi1> to vector<1x16x128xi1>
    %637 = vector.broadcast %cst_298 : f32 to vector<1x16x128xf32>
    %638 = arith.select %636, %628, %637 : vector<1x16x128xi1>, vector<1x16x128xf32>
    %cst_299 = arith.constant 0.000000e+00 : f32
    %639 = vector.shape_cast %634 : vector<1x16x1xi1> to vector<1x16x1xi1>
    %640 = vector.broadcast %639 : vector<1x16x1xi1> to vector<1x16x128xi1>
    %641 = vector.broadcast %cst_299 : f32 to vector<1x16x128xf32>
    %642 = arith.select %640, %626, %641 : vector<1x16x128xi1>, vector<1x16x128xf32>
    %c0_300 = arith.constant 0 : index
    %c0_301 = arith.constant 0 : index
    %c0_302 = arith.constant 0 : index
    %643 = vector.load %arg11[%c0_300, %c0_301, %c0_302] : memref<1x16x128xf32, #tpu.memory_space<vmem>>, vector<1x16x128xf32>
    tpu.vector_store %arg11[%c0_300, %c0_301, %c0_302], %638 {strides = array<i32>} : memref<1x16x128xf32, #tpu.memory_space<vmem>>, vector<1x16x128xf32>,
    %c0_303 = arith.constant 0 : index
    %c0_304 = arith.constant 0 : index
    %c0_305 = arith.constant 0 : index
    %644 = vector.load %arg12[%c0_303, %c0_304, %c0_305] : memref<1x16x128xf32, #tpu.memory_space<vmem>>, vector<1x16x128xf32>
    tpu.vector_store %arg12[%c0_303, %c0_304, %c0_305], %642 {strides = array<i32>} : memref<1x16x128xf32, #tpu.memory_space<vmem>>, vector<1x16x128xf32>,
    %c0_306 = arith.constant 0 : index
    %c2_307 = arith.constant 2 : index
    %c0_308 = arith.constant 0 : index
    %645 = vector.load %arg3[%c0_306, %c2_307, %c0_308] : memref<1x8x512xf32, #tpu.memory_space<vmem>>, vector<1x1x512xf32>
    %646 = vector.shape_cast %645 : vector<1x1x512xf32> to vector<1x512xf32>
    %c0_309 = arith.constant 0 : index
    %c0_310 = arith.constant 0 : index
    %c0_311 = arith.constant 0 : index
    %647 = vector.load %arg13[%c0_309, %c0_310, %c0_311] : memref<1x16x128xf32, #tpu.memory_space<vmem>>, vector<1x16x128xf32>
    %c0_312 = arith.constant 0 : index
    %c0_313 = arith.constant 0 : index
    %c0_314 = arith.constant 0 : index
    %648 = vector.load %arg14[%c0_312, %c0_313, %c0_314] : memref<1x16x128xf32, #tpu.memory_space<vmem>>, vector<1x16x128xf32>
    %649 = vector.shape_cast %647 : vector<1x16x128xf32> to vector<16x128xf32>
    %650 = arith.truncf %649 : vector<16x128xf32> to vector<16x128xbf16>
    %c0_315 = arith.constant 0 : index
    %c0_316 = arith.constant 0 : index
    %651 = vector.load %arg9[%c0_315, %c0_316] : memref<128x512xbf16, #tpu.memory_space<vmem>>, vector<128x512xbf16>
    %cst_317 = arith.constant dense<0.000000e+00> : vector<16x512xf32>
    %652 = tpu.matmul %650, %651, %cst_317 {dimension_numbers = #tpu.dot_dimension_numbers<[1], [0], [0], [1], [0, 0, 1, 1], [], []>} : vector<16x128xbf16>, vector<128x512xbf16>, vector<16x512xf32> -> vector<16x512xf32>
    %653 = vector.shape_cast %652 : vector<16x512xf32> to vector<1x16x512xf32>
    %654 = vector.shape_cast %646 : vector<1x512xf32> to vector<1x1x512xf32>
    %655 = vector.broadcast %654 : vector<1x1x512xf32> to vector<1x16x512xf32>
    %656 = arith.addf %653, %655 : vector<1x16x512xf32>
    %657 = vector.extract_strided_slice %656 {offsets = [0, 0, 0], sizes = [1, 16, 128], strides = [1, 1, 1]} : vector<1x16x512xf32> to vector<1x16x128xf32>
    %658 = arith.negf %657 : vector<1x16x128xf32>
    %659 = math.exp %658 : vector<1x16x128xf32>
    %cst_318 = arith.constant 1.000000e+00 : f32
    %660 = vector.broadcast %cst_318 : f32 to vector<1x16x128xf32>
    %661 = arith.addf %660, %659 : vector<1x16x128xf32>
    %662 = arith.divf %660, %661 : vector<1x16x128xf32>
    %663 = vector.extract_strided_slice %656 {offsets = [0, 0, 128], sizes = [1, 16, 128], strides = [1, 1, 1]} : vector<1x16x512xf32> to vector<1x16x128xf32>
    %664 = arith.negf %663 : vector<1x16x128xf32>
    %665 = math.exp %664 : vector<1x16x128xf32>
    %cst_319 = arith.constant 1.000000e+00 : f32
    %666 = vector.broadcast %cst_319 : f32 to vector<1x16x128xf32>
    %667 = arith.addf %666, %665 : vector<1x16x128xf32>
    %668 = arith.divf %666, %667 : vector<1x16x128xf32>
    %669 = vector.extract_strided_slice %656 {offsets = [0, 0, 256], sizes = [1, 16, 128], strides = [1, 1, 1]} : vector<1x16x512xf32> to vector<1x16x128xf32>
    %670 = math.tanh %669 : vector<1x16x128xf32>
    %671 = vector.extract_strided_slice %656 {offsets = [0, 0, 384], sizes = [1, 16, 128], strides = [1, 1, 1]} : vector<1x16x512xf32> to vector<1x16x128xf32>
    %672 = arith.negf %671 : vector<1x16x128xf32>
    %673 = math.exp %672 : vector<1x16x128xf32>
    %cst_320 = arith.constant 1.000000e+00 : f32
    %674 = vector.broadcast %cst_320 : f32 to vector<1x16x128xf32>
    %675 = arith.addf %674, %673 : vector<1x16x128xf32>
    %676 = arith.divf %674, %675 : vector<1x16x128xf32>
    %677 = arith.mulf %668, %648 : vector<1x16x128xf32>
    %678 = arith.mulf %662, %670 : vector<1x16x128xf32>
    %679 = arith.addf %677, %678 : vector<1x16x128xf32>
    %680 = math.tanh %679 : vector<1x16x128xf32>
    %681 = arith.mulf %676, %680 : vector<1x16x128xf32>
    %682 = vector.broadcast %591 : i32 to vector<1x16x1xi32>
    %683 = arith.cmpi sge, %3, %682 : vector<1x16x1xi32>
    %c16_i32_321 = arith.constant 16 : i32
    %684 = arith.addi %591, %c16_i32_321 : i32
    %685 = vector.broadcast %684 : i32 to vector<1x16x1xi32>
    %686 = arith.cmpi slt, %3, %685 : vector<1x16x1xi32>
    %687 = arith.andi %683, %686 : vector<1x16x1xi1>
    %cst_322 = arith.constant 0.000000e+00 : f32
    %688 = vector.shape_cast %687 : vector<1x16x1xi1> to vector<1x16x1xi1>
    %689 = vector.broadcast %688 : vector<1x16x1xi1> to vector<1x16x128xi1>
    %690 = vector.broadcast %cst_322 : f32 to vector<1x16x128xf32>
    %691 = arith.select %689, %681, %690 : vector<1x16x128xi1>, vector<1x16x128xf32>
    %cst_323 = arith.constant 0.000000e+00 : f32
    %692 = vector.shape_cast %687 : vector<1x16x1xi1> to vector<1x16x1xi1>
    %693 = vector.broadcast %692 : vector<1x16x1xi1> to vector<1x16x128xi1>
    %694 = vector.broadcast %cst_323 : f32 to vector<1x16x128xf32>
    %695 = arith.select %693, %679, %694 : vector<1x16x128xi1>, vector<1x16x128xf32>
    %c0_324 = arith.constant 0 : index
    %c0_325 = arith.constant 0 : index
    %c0_326 = arith.constant 0 : index
    %696 = vector.load %arg13[%c0_324, %c0_325, %c0_326] : memref<1x16x128xf32, #tpu.memory_space<vmem>>, vector<1x16x128xf32>
    tpu.vector_store %arg13[%c0_324, %c0_325, %c0_326], %691 {strides = array<i32>} : memref<1x16x128xf32, #tpu.memory_space<vmem>>, vector<1x16x128xf32>,
    %c0_327 = arith.constant 0 : index
    %c0_328 = arith.constant 0 : index
    %c0_329 = arith.constant 0 : index
    %697 = vector.load %arg14[%c0_327, %c0_328, %c0_329] : memref<1x16x128xf32, #tpu.memory_space<vmem>>, vector<1x16x128xf32>
    tpu.vector_store %arg14[%c0_327, %c0_328, %c0_329], %695 {strides = array<i32>} : memref<1x16x128xf32, #tpu.memory_space<vmem>>, vector<1x16x128xf32>,
    %698 = arith.truncf %638 : vector<1x16x128xf32> to vector<1x16x128xbf16>
    %c0_330 = arith.constant 0 : index
    %c0_331 = arith.constant 0 : index
    %c5_332 = arith.constant 5 : index
    %c0_333 = arith.constant 0 : index
    %699 = vector.load %arg6[%c0_330, %c0_331, %c5_332, %c0_333] : memref<1x16x8x128xbf16, #tpu.memory_space<vmem>>, vector<1x16x1x128xbf16>
    %700 = vector.shape_cast %699 : vector<1x16x1x128xbf16> to vector<1x16x128xbf16>
    %701 = vector.shape_cast %698 : vector<1x16x128xbf16> to vector<1x16x1x128xbf16>
    tpu.vector_store %arg6[%c0_330, %c0_331, %c5_332, %c0_333], %701 {strides = array<i32>} : memref<1x16x8x128xbf16, #tpu.memory_space<vmem>>, vector<1x16x1x128xbf16>,
    %702 = arith.truncf %691 : vector<1x16x128xf32> to vector<1x16x128xbf16>
    %c0_334 = arith.constant 0 : index
    %c2_335 = arith.constant 2 : index
    %c0_336 = arith.constant 0 : index
    %c0_337 = arith.constant 0 : index
    %703 = vector.load %arg7[%c0_334, %c2_335, %c0_336, %c0_337] : memref<1x8x16x128xbf16, #tpu.memory_space<vmem>>, vector<1x1x16x128xbf16>
    %704 = vector.shape_cast %703 : vector<1x1x16x128xbf16> to vector<1x16x128xbf16>
    %705 = vector.shape_cast %702 : vector<1x16x128xbf16> to vector<1x1x16x128xbf16>
    tpu.vector_store %arg7[%c0_334, %c2_335, %c0_336, %c0_337], %705 {strides = array<i32>} : memref<1x8x16x128xbf16, #tpu.memory_space<vmem>>, vector<1x1x16x128xbf16>,
    %c8_i32_338 = arith.constant 8 : i32
    %706 = arith.muli %arg1, %c8_i32_338 : i32
    %c6_i32 = arith.constant 6 : i32
    %707 = arith.addi %706, %c6_i32 : i32
    %c15_i32_339 = arith.constant 15 : i32
    %708 = arith.subi %c15_i32_339, %707 : i32
    %c0_340 = arith.constant 0 : index
    %c6_341 = arith.constant 6 : index
    %c0_342 = arith.constant 0 : index
    %709 = vector.load %arg2[%c0_340, %c6_341, %c0_342] : memref<1x8x512xf32, #tpu.memory_space<vmem>>, vector<1x1x512xf32>
    %710 = vector.shape_cast %709 : vector<1x1x512xf32> to vector<1x512xf32>
    %c0_343 = arith.constant 0 : index
    %c0_344 = arith.constant 0 : index
    %c0_345 = arith.constant 0 : index
    %711 = vector.load %arg11[%c0_343, %c0_344, %c0_345] : memref<1x16x128xf32, #tpu.memory_space<vmem>>, vector<1x16x128xf32>
    %c0_346 = arith.constant 0 : index
    %c0_347 = arith.constant 0 : index
    %c0_348 = arith.constant 0 : index
    %712 = vector.load %arg12[%c0_346, %c0_347, %c0_348] : memref<1x16x128xf32, #tpu.memory_space<vmem>>, vector<1x16x128xf32>
    %713 = vector.shape_cast %711 : vector<1x16x128xf32> to vector<16x128xf32>
    %714 = arith.truncf %713 : vector<16x128xf32> to vector<16x128xbf16>
    %c0_349 = arith.constant 0 : index
    %c0_350 = arith.constant 0 : index
    %715 = vector.load %arg8[%c0_349, %c0_350] : memref<128x512xbf16, #tpu.memory_space<vmem>>, vector<128x512xbf16>
    %cst_351 = arith.constant dense<0.000000e+00> : vector<16x512xf32>
    %716 = tpu.matmul %714, %715, %cst_351 {dimension_numbers = #tpu.dot_dimension_numbers<[1], [0], [0], [1], [0, 0, 1, 1], [], []>} : vector<16x128xbf16>, vector<128x512xbf16>, vector<16x512xf32> -> vector<16x512xf32>
    %717 = vector.shape_cast %716 : vector<16x512xf32> to vector<1x16x512xf32>
    %718 = vector.shape_cast %710 : vector<1x512xf32> to vector<1x1x512xf32>
    %719 = vector.broadcast %718 : vector<1x1x512xf32> to vector<1x16x512xf32>
    %720 = arith.addf %717, %719 : vector<1x16x512xf32>
    %721 = vector.extract_strided_slice %720 {offsets = [0, 0, 0], sizes = [1, 16, 128], strides = [1, 1, 1]} : vector<1x16x512xf32> to vector<1x16x128xf32>
    %722 = arith.negf %721 : vector<1x16x128xf32>
    %723 = math.exp %722 : vector<1x16x128xf32>
    %cst_352 = arith.constant 1.000000e+00 : f32
    %724 = vector.broadcast %cst_352 : f32 to vector<1x16x128xf32>
    %725 = arith.addf %724, %723 : vector<1x16x128xf32>
    %726 = arith.divf %724, %725 : vector<1x16x128xf32>
    %727 = vector.extract_strided_slice %720 {offsets = [0, 0, 128], sizes = [1, 16, 128], strides = [1, 1, 1]} : vector<1x16x512xf32> to vector<1x16x128xf32>
    %728 = arith.negf %727 : vector<1x16x128xf32>
    %729 = math.exp %728 : vector<1x16x128xf32>
    %cst_353 = arith.constant 1.000000e+00 : f32
    %730 = vector.broadcast %cst_353 : f32 to vector<1x16x128xf32>
    %731 = arith.addf %730, %729 : vector<1x16x128xf32>
    %732 = arith.divf %730, %731 : vector<1x16x128xf32>
    %733 = vector.extract_strided_slice %720 {offsets = [0, 0, 256], sizes = [1, 16, 128], strides = [1, 1, 1]} : vector<1x16x512xf32> to vector<1x16x128xf32>
    %734 = math.tanh %733 : vector<1x16x128xf32>
    %735 = vector.extract_strided_slice %720 {offsets = [0, 0, 384], sizes = [1, 16, 128], strides = [1, 1, 1]} : vector<1x16x512xf32> to vector<1x16x128xf32>
    %736 = arith.negf %735 : vector<1x16x128xf32>
    %737 = math.exp %736 : vector<1x16x128xf32>
    %cst_354 = arith.constant 1.000000e+00 : f32
    %738 = vector.broadcast %cst_354 : f32 to vector<1x16x128xf32>
    %739 = arith.addf %738, %737 : vector<1x16x128xf32>
    %740 = arith.divf %738, %739 : vector<1x16x128xf32>
    %741 = arith.mulf %732, %712 : vector<1x16x128xf32>
    %742 = arith.mulf %726, %734 : vector<1x16x128xf32>
    %743 = arith.addf %741, %742 : vector<1x16x128xf32>
    %744 = math.tanh %743 : vector<1x16x128xf32>
    %745 = arith.mulf %740, %744 : vector<1x16x128xf32>
    %746 = vector.broadcast %707 : i32 to vector<1x16x1xi32>
    %747 = arith.cmpi sle, %3, %746 : vector<1x16x1xi32>
    %c16_i32_355 = arith.constant 16 : i32
    %748 = arith.subi %707, %c16_i32_355 : i32
    %749 = vector.broadcast %748 : i32 to vector<1x16x1xi32>
    %750 = arith.cmpi sgt, %3, %749 : vector<1x16x1xi32>
    %751 = arith.andi %747, %750 : vector<1x16x1xi1>
    %cst_356 = arith.constant 0.000000e+00 : f32
    %752 = vector.shape_cast %751 : vector<1x16x1xi1> to vector<1x16x1xi1>
    %753 = vector.broadcast %752 : vector<1x16x1xi1> to vector<1x16x128xi1>
    %754 = vector.broadcast %cst_356 : f32 to vector<1x16x128xf32>
    %755 = arith.select %753, %745, %754 : vector<1x16x128xi1>, vector<1x16x128xf32>
    %cst_357 = arith.constant 0.000000e+00 : f32
    %756 = vector.shape_cast %751 : vector<1x16x1xi1> to vector<1x16x1xi1>
    %757 = vector.broadcast %756 : vector<1x16x1xi1> to vector<1x16x128xi1>
    %758 = vector.broadcast %cst_357 : f32 to vector<1x16x128xf32>
    %759 = arith.select %757, %743, %758 : vector<1x16x128xi1>, vector<1x16x128xf32>
    %c0_358 = arith.constant 0 : index
    %c0_359 = arith.constant 0 : index
    %c0_360 = arith.constant 0 : index
    %760 = vector.load %arg11[%c0_358, %c0_359, %c0_360] : memref<1x16x128xf32, #tpu.memory_space<vmem>>, vector<1x16x128xf32>
    tpu.vector_store %arg11[%c0_358, %c0_359, %c0_360], %755 {strides = array<i32>} : memref<1x16x128xf32, #tpu.memory_space<vmem>>, vector<1x16x128xf32>,
    %c0_361 = arith.constant 0 : index
    %c0_362 = arith.constant 0 : index
    %c0_363 = arith.constant 0 : index
    %761 = vector.load %arg12[%c0_361, %c0_362, %c0_363] : memref<1x16x128xf32, #tpu.memory_space<vmem>>, vector<1x16x128xf32>
    tpu.vector_store %arg12[%c0_361, %c0_362, %c0_363], %759 {strides = array<i32>} : memref<1x16x128xf32, #tpu.memory_space<vmem>>, vector<1x16x128xf32>,
    %c0_364 = arith.constant 0 : index
    %c1_365 = arith.constant 1 : index
    %c0_366 = arith.constant 0 : index
    %762 = vector.load %arg3[%c0_364, %c1_365, %c0_366] : memref<1x8x512xf32, #tpu.memory_space<vmem>>, vector<1x1x512xf32>
    %763 = vector.shape_cast %762 : vector<1x1x512xf32> to vector<1x512xf32>
    %c0_367 = arith.constant 0 : index
    %c0_368 = arith.constant 0 : index
    %c0_369 = arith.constant 0 : index
    %764 = vector.load %arg13[%c0_367, %c0_368, %c0_369] : memref<1x16x128xf32, #tpu.memory_space<vmem>>, vector<1x16x128xf32>
    %c0_370 = arith.constant 0 : index
    %c0_371 = arith.constant 0 : index
    %c0_372 = arith.constant 0 : index
    %765 = vector.load %arg14[%c0_370, %c0_371, %c0_372] : memref<1x16x128xf32, #tpu.memory_space<vmem>>, vector<1x16x128xf32>
    %766 = vector.shape_cast %764 : vector<1x16x128xf32> to vector<16x128xf32>
    %767 = arith.truncf %766 : vector<16x128xf32> to vector<16x128xbf16>
    %c0_373 = arith.constant 0 : index
    %c0_374 = arith.constant 0 : index
    %768 = vector.load %arg9[%c0_373, %c0_374] : memref<128x512xbf16, #tpu.memory_space<vmem>>, vector<128x512xbf16>
    %cst_375 = arith.constant dense<0.000000e+00> : vector<16x512xf32>
    %769 = tpu.matmul %767, %768, %cst_375 {dimension_numbers = #tpu.dot_dimension_numbers<[1], [0], [0], [1], [0, 0, 1, 1], [], []>} : vector<16x128xbf16>, vector<128x512xbf16>, vector<16x512xf32> -> vector<16x512xf32>
    %770 = vector.shape_cast %769 : vector<16x512xf32> to vector<1x16x512xf32>
    %771 = vector.shape_cast %763 : vector<1x512xf32> to vector<1x1x512xf32>
    %772 = vector.broadcast %771 : vector<1x1x512xf32> to vector<1x16x512xf32>
    %773 = arith.addf %770, %772 : vector<1x16x512xf32>
    %774 = vector.extract_strided_slice %773 {offsets = [0, 0, 0], sizes = [1, 16, 128], strides = [1, 1, 1]} : vector<1x16x512xf32> to vector<1x16x128xf32>
    %775 = arith.negf %774 : vector<1x16x128xf32>
    %776 = math.exp %775 : vector<1x16x128xf32>
    %cst_376 = arith.constant 1.000000e+00 : f32
    %777 = vector.broadcast %cst_376 : f32 to vector<1x16x128xf32>
    %778 = arith.addf %777, %776 : vector<1x16x128xf32>
    %779 = arith.divf %777, %778 : vector<1x16x128xf32>
    %780 = vector.extract_strided_slice %773 {offsets = [0, 0, 128], sizes = [1, 16, 128], strides = [1, 1, 1]} : vector<1x16x512xf32> to vector<1x16x128xf32>
    %781 = arith.negf %780 : vector<1x16x128xf32>
    %782 = math.exp %781 : vector<1x16x128xf32>
    %cst_377 = arith.constant 1.000000e+00 : f32
    %783 = vector.broadcast %cst_377 : f32 to vector<1x16x128xf32>
    %784 = arith.addf %783, %782 : vector<1x16x128xf32>
    %785 = arith.divf %783, %784 : vector<1x16x128xf32>
    %786 = vector.extract_strided_slice %773 {offsets = [0, 0, 256], sizes = [1, 16, 128], strides = [1, 1, 1]} : vector<1x16x512xf32> to vector<1x16x128xf32>
    %787 = math.tanh %786 : vector<1x16x128xf32>
    %788 = vector.extract_strided_slice %773 {offsets = [0, 0, 384], sizes = [1, 16, 128], strides = [1, 1, 1]} : vector<1x16x512xf32> to vector<1x16x128xf32>
    %789 = arith.negf %788 : vector<1x16x128xf32>
    %790 = math.exp %789 : vector<1x16x128xf32>
    %cst_378 = arith.constant 1.000000e+00 : f32
    %791 = vector.broadcast %cst_378 : f32 to vector<1x16x128xf32>
    %792 = arith.addf %791, %790 : vector<1x16x128xf32>
    %793 = arith.divf %791, %792 : vector<1x16x128xf32>
    %794 = arith.mulf %785, %765 : vector<1x16x128xf32>
    %795 = arith.mulf %779, %787 : vector<1x16x128xf32>
    %796 = arith.addf %794, %795 : vector<1x16x128xf32>
    %797 = math.tanh %796 : vector<1x16x128xf32>
    %798 = arith.mulf %793, %797 : vector<1x16x128xf32>
    %799 = vector.broadcast %708 : i32 to vector<1x16x1xi32>
    %800 = arith.cmpi sge, %3, %799 : vector<1x16x1xi32>
    %c16_i32_379 = arith.constant 16 : i32
    %801 = arith.addi %708, %c16_i32_379 : i32
    %802 = vector.broadcast %801 : i32 to vector<1x16x1xi32>
    %803 = arith.cmpi slt, %3, %802 : vector<1x16x1xi32>
    %804 = arith.andi %800, %803 : vector<1x16x1xi1>
    %cst_380 = arith.constant 0.000000e+00 : f32
    %805 = vector.shape_cast %804 : vector<1x16x1xi1> to vector<1x16x1xi1>
    %806 = vector.broadcast %805 : vector<1x16x1xi1> to vector<1x16x128xi1>
    %807 = vector.broadcast %cst_380 : f32 to vector<1x16x128xf32>
    %808 = arith.select %806, %798, %807 : vector<1x16x128xi1>, vector<1x16x128xf32>
    %cst_381 = arith.constant 0.000000e+00 : f32
    %809 = vector.shape_cast %804 : vector<1x16x1xi1> to vector<1x16x1xi1>
    %810 = vector.broadcast %809 : vector<1x16x1xi1> to vector<1x16x128xi1>
    %811 = vector.broadcast %cst_381 : f32 to vector<1x16x128xf32>
    %812 = arith.select %810, %796, %811 : vector<1x16x128xi1>, vector<1x16x128xf32>
    %c0_382 = arith.constant 0 : index
    %c0_383 = arith.constant 0 : index
    %c0_384 = arith.constant 0 : index
    %813 = vector.load %arg13[%c0_382, %c0_383, %c0_384] : memref<1x16x128xf32, #tpu.memory_space<vmem>>, vector<1x16x128xf32>
    tpu.vector_store %arg13[%c0_382, %c0_383, %c0_384], %808 {strides = array<i32>} : memref<1x16x128xf32, #tpu.memory_space<vmem>>, vector<1x16x128xf32>,
    %c0_385 = arith.constant 0 : index
    %c0_386 = arith.constant 0 : index
    %c0_387 = arith.constant 0 : index
    %814 = vector.load %arg14[%c0_385, %c0_386, %c0_387] : memref<1x16x128xf32, #tpu.memory_space<vmem>>, vector<1x16x128xf32>
    tpu.vector_store %arg14[%c0_385, %c0_386, %c0_387], %812 {strides = array<i32>} : memref<1x16x128xf32, #tpu.memory_space<vmem>>, vector<1x16x128xf32>,
    %815 = arith.truncf %755 : vector<1x16x128xf32> to vector<1x16x128xbf16>
    %c0_388 = arith.constant 0 : index
    %c0_389 = arith.constant 0 : index
    %c6_390 = arith.constant 6 : index
    %c0_391 = arith.constant 0 : index
    %816 = vector.load %arg6[%c0_388, %c0_389, %c6_390, %c0_391] : memref<1x16x8x128xbf16, #tpu.memory_space<vmem>>, vector<1x16x1x128xbf16>
    %817 = vector.shape_cast %816 : vector<1x16x1x128xbf16> to vector<1x16x128xbf16>
    %818 = vector.shape_cast %815 : vector<1x16x128xbf16> to vector<1x16x1x128xbf16>
    tpu.vector_store %arg6[%c0_388, %c0_389, %c6_390, %c0_391], %818 {strides = array<i32>} : memref<1x16x8x128xbf16, #tpu.memory_space<vmem>>, vector<1x16x1x128xbf16>,
    %819 = arith.truncf %808 : vector<1x16x128xf32> to vector<1x16x128xbf16>
    %c0_392 = arith.constant 0 : index
    %c1_393 = arith.constant 1 : index
    %c0_394 = arith.constant 0 : index
    %c0_395 = arith.constant 0 : index
    %820 = vector.load %arg7[%c0_392, %c1_393, %c0_394, %c0_395] : memref<1x8x16x128xbf16, #tpu.memory_space<vmem>>, vector<1x1x16x128xbf16>
    %821 = vector.shape_cast %820 : vector<1x1x16x128xbf16> to vector<1x16x128xbf16>
    %822 = vector.shape_cast %819 : vector<1x16x128xbf16> to vector<1x1x16x128xbf16>
    tpu.vector_store %arg7[%c0_392, %c1_393, %c0_394, %c0_395], %822 {strides = array<i32>} : memref<1x8x16x128xbf16, #tpu.memory_space<vmem>>, vector<1x1x16x128xbf16>,
    %c8_i32_396 = arith.constant 8 : i32
    %823 = arith.muli %arg1, %c8_i32_396 : i32
    %c7_i32 = arith.constant 7 : i32
    %824 = arith.addi %823, %c7_i32 : i32
    %c15_i32_397 = arith.constant 15 : i32
    %825 = arith.subi %c15_i32_397, %824 : i32
    %c0_398 = arith.constant 0 : index
    %c7_399 = arith.constant 7 : index
    %c0_400 = arith.constant 0 : index
    %826 = vector.load %arg2[%c0_398, %c7_399, %c0_400] : memref<1x8x512xf32, #tpu.memory_space<vmem>>, vector<1x1x512xf32>
    %827 = vector.shape_cast %826 : vector<1x1x512xf32> to vector<1x512xf32>
    %c0_401 = arith.constant 0 : index
    %c0_402 = arith.constant 0 : index
    %c0_403 = arith.constant 0 : index
    %828 = vector.load %arg11[%c0_401, %c0_402, %c0_403] : memref<1x16x128xf32, #tpu.memory_space<vmem>>, vector<1x16x128xf32>
    %c0_404 = arith.constant 0 : index
    %c0_405 = arith.constant 0 : index
    %c0_406 = arith.constant 0 : index
    %829 = vector.load %arg12[%c0_404, %c0_405, %c0_406] : memref<1x16x128xf32, #tpu.memory_space<vmem>>, vector<1x16x128xf32>
    %830 = vector.shape_cast %828 : vector<1x16x128xf32> to vector<16x128xf32>
    %831 = arith.truncf %830 : vector<16x128xf32> to vector<16x128xbf16>
    %c0_407 = arith.constant 0 : index
    %c0_408 = arith.constant 0 : index
    %832 = vector.load %arg8[%c0_407, %c0_408] : memref<128x512xbf16, #tpu.memory_space<vmem>>, vector<128x512xbf16>
    %cst_409 = arith.constant dense<0.000000e+00> : vector<16x512xf32>
    %833 = tpu.matmul %831, %832, %cst_409 {dimension_numbers = #tpu.dot_dimension_numbers<[1], [0], [0], [1], [0, 0, 1, 1], [], []>} : vector<16x128xbf16>, vector<128x512xbf16>, vector<16x512xf32> -> vector<16x512xf32>
    %834 = vector.shape_cast %833 : vector<16x512xf32> to vector<1x16x512xf32>
    %835 = vector.shape_cast %827 : vector<1x512xf32> to vector<1x1x512xf32>
    %836 = vector.broadcast %835 : vector<1x1x512xf32> to vector<1x16x512xf32>
    %837 = arith.addf %834, %836 : vector<1x16x512xf32>
    %838 = vector.extract_strided_slice %837 {offsets = [0, 0, 0], sizes = [1, 16, 128], strides = [1, 1, 1]} : vector<1x16x512xf32> to vector<1x16x128xf32>
    %839 = arith.negf %838 : vector<1x16x128xf32>
    %840 = math.exp %839 : vector<1x16x128xf32>
    %cst_410 = arith.constant 1.000000e+00 : f32
    %841 = vector.broadcast %cst_410 : f32 to vector<1x16x128xf32>
    %842 = arith.addf %841, %840 : vector<1x16x128xf32>
    %843 = arith.divf %841, %842 : vector<1x16x128xf32>
    %844 = vector.extract_strided_slice %837 {offsets = [0, 0, 128], sizes = [1, 16, 128], strides = [1, 1, 1]} : vector<1x16x512xf32> to vector<1x16x128xf32>
    %845 = arith.negf %844 : vector<1x16x128xf32>
    %846 = math.exp %845 : vector<1x16x128xf32>
    %cst_411 = arith.constant 1.000000e+00 : f32
    %847 = vector.broadcast %cst_411 : f32 to vector<1x16x128xf32>
    %848 = arith.addf %847, %846 : vector<1x16x128xf32>
    %849 = arith.divf %847, %848 : vector<1x16x128xf32>
    %850 = vector.extract_strided_slice %837 {offsets = [0, 0, 256], sizes = [1, 16, 128], strides = [1, 1, 1]} : vector<1x16x512xf32> to vector<1x16x128xf32>
    %851 = math.tanh %850 : vector<1x16x128xf32>
    %852 = vector.extract_strided_slice %837 {offsets = [0, 0, 384], sizes = [1, 16, 128], strides = [1, 1, 1]} : vector<1x16x512xf32> to vector<1x16x128xf32>
    %853 = arith.negf %852 : vector<1x16x128xf32>
    %854 = math.exp %853 : vector<1x16x128xf32>
    %cst_412 = arith.constant 1.000000e+00 : f32
    %855 = vector.broadcast %cst_412 : f32 to vector<1x16x128xf32>
    %856 = arith.addf %855, %854 : vector<1x16x128xf32>
    %857 = arith.divf %855, %856 : vector<1x16x128xf32>
    %858 = arith.mulf %849, %829 : vector<1x16x128xf32>
    %859 = arith.mulf %843, %851 : vector<1x16x128xf32>
    %860 = arith.addf %858, %859 : vector<1x16x128xf32>
    %861 = math.tanh %860 : vector<1x16x128xf32>
    %862 = arith.mulf %857, %861 : vector<1x16x128xf32>
    %863 = vector.broadcast %824 : i32 to vector<1x16x1xi32>
    %864 = arith.cmpi sle, %3, %863 : vector<1x16x1xi32>
    %c16_i32_413 = arith.constant 16 : i32
    %865 = arith.subi %824, %c16_i32_413 : i32
    %866 = vector.broadcast %865 : i32 to vector<1x16x1xi32>
    %867 = arith.cmpi sgt, %3, %866 : vector<1x16x1xi32>
    %868 = arith.andi %864, %867 : vector<1x16x1xi1>
    %cst_414 = arith.constant 0.000000e+00 : f32
    %869 = vector.shape_cast %868 : vector<1x16x1xi1> to vector<1x16x1xi1>
    %870 = vector.broadcast %869 : vector<1x16x1xi1> to vector<1x16x128xi1>
    %871 = vector.broadcast %cst_414 : f32 to vector<1x16x128xf32>
    %872 = arith.select %870, %862, %871 : vector<1x16x128xi1>, vector<1x16x128xf32>
    %cst_415 = arith.constant 0.000000e+00 : f32
    %873 = vector.shape_cast %868 : vector<1x16x1xi1> to vector<1x16x1xi1>
    %874 = vector.broadcast %873 : vector<1x16x1xi1> to vector<1x16x128xi1>
    %875 = vector.broadcast %cst_415 : f32 to vector<1x16x128xf32>
    %876 = arith.select %874, %860, %875 : vector<1x16x128xi1>, vector<1x16x128xf32>
    %c0_416 = arith.constant 0 : index
    %c0_417 = arith.constant 0 : index
    %c0_418 = arith.constant 0 : index
    %877 = vector.load %arg11[%c0_416, %c0_417, %c0_418] : memref<1x16x128xf32, #tpu.memory_space<vmem>>, vector<1x16x128xf32>
    tpu.vector_store %arg11[%c0_416, %c0_417, %c0_418], %872 {strides = array<i32>} : memref<1x16x128xf32, #tpu.memory_space<vmem>>, vector<1x16x128xf32>,
    %c0_419 = arith.constant 0 : index
    %c0_420 = arith.constant 0 : index
    %c0_421 = arith.constant 0 : index
    %878 = vector.load %arg12[%c0_419, %c0_420, %c0_421] : memref<1x16x128xf32, #tpu.memory_space<vmem>>, vector<1x16x128xf32>
    tpu.vector_store %arg12[%c0_419, %c0_420, %c0_421], %876 {strides = array<i32>} : memref<1x16x128xf32, #tpu.memory_space<vmem>>, vector<1x16x128xf32>,
    %c0_422 = arith.constant 0 : index
    %c0_423 = arith.constant 0 : index
    %c0_424 = arith.constant 0 : index
    %879 = vector.load %arg3[%c0_422, %c0_423, %c0_424] : memref<1x8x512xf32, #tpu.memory_space<vmem>>, vector<1x1x512xf32>
    %880 = vector.shape_cast %879 : vector<1x1x512xf32> to vector<1x512xf32>
    %c0_425 = arith.constant 0 : index
    %c0_426 = arith.constant 0 : index
    %c0_427 = arith.constant 0 : index
    %881 = vector.load %arg13[%c0_425, %c0_426, %c0_427] : memref<1x16x128xf32, #tpu.memory_space<vmem>>, vector<1x16x128xf32>
    %c0_428 = arith.constant 0 : index
    %c0_429 = arith.constant 0 : index
    %c0_430 = arith.constant 0 : index
    %882 = vector.load %arg14[%c0_428, %c0_429, %c0_430] : memref<1x16x128xf32, #tpu.memory_space<vmem>>, vector<1x16x128xf32>
    %883 = vector.shape_cast %881 : vector<1x16x128xf32> to vector<16x128xf32>
    %884 = arith.truncf %883 : vector<16x128xf32> to vector<16x128xbf16>
    %c0_431 = arith.constant 0 : index
    %c0_432 = arith.constant 0 : index
    %885 = vector.load %arg9[%c0_431, %c0_432] : memref<128x512xbf16, #tpu.memory_space<vmem>>, vector<128x512xbf16>
    %cst_433 = arith.constant dense<0.000000e+00> : vector<16x512xf32>
    %886 = tpu.matmul %884, %885, %cst_433 {dimension_numbers = #tpu.dot_dimension_numbers<[1], [0], [0], [1], [0, 0, 1, 1], [], []>} : vector<16x128xbf16>, vector<128x512xbf16>, vector<16x512xf32> -> vector<16x512xf32>
    %887 = vector.shape_cast %886 : vector<16x512xf32> to vector<1x16x512xf32>
    %888 = vector.shape_cast %880 : vector<1x512xf32> to vector<1x1x512xf32>
    %889 = vector.broadcast %888 : vector<1x1x512xf32> to vector<1x16x512xf32>
    %890 = arith.addf %887, %889 : vector<1x16x512xf32>
    %891 = vector.extract_strided_slice %890 {offsets = [0, 0, 0], sizes = [1, 16, 128], strides = [1, 1, 1]} : vector<1x16x512xf32> to vector<1x16x128xf32>
    %892 = arith.negf %891 : vector<1x16x128xf32>
    %893 = math.exp %892 : vector<1x16x128xf32>
    %cst_434 = arith.constant 1.000000e+00 : f32
    %894 = vector.broadcast %cst_434 : f32 to vector<1x16x128xf32>
    %895 = arith.addf %894, %893 : vector<1x16x128xf32>
    %896 = arith.divf %894, %895 : vector<1x16x128xf32>
    %897 = vector.extract_strided_slice %890 {offsets = [0, 0, 128], sizes = [1, 16, 128], strides = [1, 1, 1]} : vector<1x16x512xf32> to vector<1x16x128xf32>
    %898 = arith.negf %897 : vector<1x16x128xf32>
    %899 = math.exp %898 : vector<1x16x128xf32>
    %cst_435 = arith.constant 1.000000e+00 : f32
    %900 = vector.broadcast %cst_435 : f32 to vector<1x16x128xf32>
    %901 = arith.addf %900, %899 : vector<1x16x128xf32>
    %902 = arith.divf %900, %901 : vector<1x16x128xf32>
    %903 = vector.extract_strided_slice %890 {offsets = [0, 0, 256], sizes = [1, 16, 128], strides = [1, 1, 1]} : vector<1x16x512xf32> to vector<1x16x128xf32>
    %904 = math.tanh %903 : vector<1x16x128xf32>
    %905 = vector.extract_strided_slice %890 {offsets = [0, 0, 384], sizes = [1, 16, 128], strides = [1, 1, 1]} : vector<1x16x512xf32> to vector<1x16x128xf32>
    %906 = arith.negf %905 : vector<1x16x128xf32>
    %907 = math.exp %906 : vector<1x16x128xf32>
    %cst_436 = arith.constant 1.000000e+00 : f32
    %908 = vector.broadcast %cst_436 : f32 to vector<1x16x128xf32>
    %909 = arith.addf %908, %907 : vector<1x16x128xf32>
    %910 = arith.divf %908, %909 : vector<1x16x128xf32>
    %911 = arith.mulf %902, %882 : vector<1x16x128xf32>
    %912 = arith.mulf %896, %904 : vector<1x16x128xf32>
    %913 = arith.addf %911, %912 : vector<1x16x128xf32>
    %914 = math.tanh %913 : vector<1x16x128xf32>
    %915 = arith.mulf %910, %914 : vector<1x16x128xf32>
    %916 = vector.broadcast %825 : i32 to vector<1x16x1xi32>
    %917 = arith.cmpi sge, %3, %916 : vector<1x16x1xi32>
    %c16_i32_437 = arith.constant 16 : i32
    %918 = arith.addi %825, %c16_i32_437 : i32
    %919 = vector.broadcast %918 : i32 to vector<1x16x1xi32>
    %920 = arith.cmpi slt, %3, %919 : vector<1x16x1xi32>
    %921 = arith.andi %917, %920 : vector<1x16x1xi1>
    %cst_438 = arith.constant 0.000000e+00 : f32
    %922 = vector.shape_cast %921 : vector<1x16x1xi1> to vector<1x16x1xi1>
    %923 = vector.broadcast %922 : vector<1x16x1xi1> to vector<1x16x128xi1>
    %924 = vector.broadcast %cst_438 : f32 to vector<1x16x128xf32>
    %925 = arith.select %923, %915, %924 : vector<1x16x128xi1>, vector<1x16x128xf32>
    %cst_439 = arith.constant 0.000000e+00 : f32
    %926 = vector.shape_cast %921 : vector<1x16x1xi1> to vector<1x16x1xi1>
    %927 = vector.broadcast %926 : vector<1x16x1xi1> to vector<1x16x128xi1>
    %928 = vector.broadcast %cst_439 : f32 to vector<1x16x128xf32>
    %929 = arith.select %927, %913, %928 : vector<1x16x128xi1>, vector<1x16x128xf32>
    %c0_440 = arith.constant 0 : index
    %c0_441 = arith.constant 0 : index
    %c0_442 = arith.constant 0 : index
    %930 = vector.load %arg13[%c0_440, %c0_441, %c0_442] : memref<1x16x128xf32, #tpu.memory_space<vmem>>, vector<1x16x128xf32>
    tpu.vector_store %arg13[%c0_440, %c0_441, %c0_442], %925 {strides = array<i32>} : memref<1x16x128xf32, #tpu.memory_space<vmem>>, vector<1x16x128xf32>,
    %c0_443 = arith.constant 0 : index
    %c0_444 = arith.constant 0 : index
    %c0_445 = arith.constant 0 : index
    %931 = vector.load %arg14[%c0_443, %c0_444, %c0_445] : memref<1x16x128xf32, #tpu.memory_space<vmem>>, vector<1x16x128xf32>
    tpu.vector_store %arg14[%c0_443, %c0_444, %c0_445], %929 {strides = array<i32>} : memref<1x16x128xf32, #tpu.memory_space<vmem>>, vector<1x16x128xf32>,
    %932 = arith.truncf %872 : vector<1x16x128xf32> to vector<1x16x128xbf16>
    %c0_446 = arith.constant 0 : index
    %c0_447 = arith.constant 0 : index
    %c7_448 = arith.constant 7 : index
    %c0_449 = arith.constant 0 : index
    %933 = vector.load %arg6[%c0_446, %c0_447, %c7_448, %c0_449] : memref<1x16x8x128xbf16, #tpu.memory_space<vmem>>, vector<1x16x1x128xbf16>
    %934 = vector.shape_cast %933 : vector<1x16x1x128xbf16> to vector<1x16x128xbf16>
    %935 = vector.shape_cast %932 : vector<1x16x128xbf16> to vector<1x16x1x128xbf16>
    tpu.vector_store %arg6[%c0_446, %c0_447, %c7_448, %c0_449], %935 {strides = array<i32>} : memref<1x16x8x128xbf16, #tpu.memory_space<vmem>>, vector<1x16x1x128xbf16>,
    %936 = arith.truncf %925 : vector<1x16x128xf32> to vector<1x16x128xbf16>
    %c0_450 = arith.constant 0 : index
    %c0_451 = arith.constant 0 : index
    %c0_452 = arith.constant 0 : index
    %c0_453 = arith.constant 0 : index
    %937 = vector.load %arg7[%c0_450, %c0_451, %c0_452, %c0_453] : memref<1x8x16x128xbf16, #tpu.memory_space<vmem>>, vector<1x1x16x128xbf16>
    %938 = vector.shape_cast %937 : vector<1x1x16x128xbf16> to vector<1x16x128xbf16>
    %939 = vector.shape_cast %936 : vector<1x16x128xbf16> to vector<1x1x16x128xbf16>
    tpu.vector_store %arg7[%c0_450, %c0_451, %c0_452, %c0_453], %939 {strides = array<i32>} : memref<1x8x16x128xbf16, #tpu.memory_space<vmem>>, vector<1x1x16x128xbf16>,
    return
  }
  func.func @transform_0(%arg0: i32, %arg1: i32) -> (i32, i32, i32) {
    %c0_i32 = arith.constant 0 : i32
    %c0_i32_0 = arith.constant 0 : i32
    return %arg0, %arg1, %c0_i32 : i32, i32, i32
  }
  func.func @transform_1(%arg0: i32, %arg1: i32) -> (i32, i32, i32) {
    %c1_i32 = arith.constant 1 : i32
    %0 = arith.subi %c1_i32, %arg1 : i32
    %c0_i32 = arith.constant 0 : i32
    %c0_i32_0 = arith.constant 0 : i32
    return %arg0, %0, %c0_i32 : i32, i32, i32
  }
  func.func @transform_4(%arg0: i32, %arg1: i32) -> (i32, i32, i32, i32) {
    %c0_i32 = arith.constant 0 : i32
    %c0_i32_0 = arith.constant 0 : i32
    %c0_i32_1 = arith.constant 0 : i32
    return %arg0, %c0_i32, %arg1, %c0_i32_0 : i32, i32, i32, i32
  }
  func.func @transform_5(%arg0: i32, %arg1: i32) -> (i32, i32, i32, i32) {
    %c1_i32 = arith.constant 1 : i32
    %0 = arith.subi %c1_i32, %arg1 : i32
    %c0_i32 = arith.constant 0 : i32
    %c0_i32_0 = arith.constant 0 : i32
    %c0_i32_1 = arith.constant 0 : i32
    return %arg0, %0, %c0_i32, %c0_i32_0 : i32, i32, i32, i32
  }
}

</mosaic_0001>

<bundles_post_ra>
// kernel: segment_embedder.1
= control target key start
LH: loop header
LB: loop body
LE: loop exit
PB: predicated region body
PF: predicated region fallthrough
CT: control target
= control target key end

     0   :  { %s8013_s18 = smov 0   ;;  %s8015_s19 = smov 0   ;;  %s11412_s0 = inlined_call_operand.vmem [shape: f32[2,16,512], index: 0, kind: input, shape index: {}]   ;;  %s11413_s1 = inlined_call_operand.vmem [shape: f32[2,16,512], index: 1, kind: input, shape index: {}]   ;;  %s11414_s2 = inlined_call_operand.vmem [shape: bf16[128,512], index: 2, kind: input, shape index: {}]   ;;  %s11415_s3 = inlined_call_operand.vmem [shape: bf16[128,512], index: 3, kind: input, shape index: {}]   ;;  %s11416_s4 = inlined_call_operand.vmem [shape: bf16[2,16,16,128], index: 4, kind: output, shape index: {0}]   ;;  %s11417_s5 = inlined_call_operand.vmem [shape: bf16[2,16,16,128], index: 5, kind: output, shape index: {1}]  }
   0x1   :  { %s8017_s20 = smov 0   ;;  %s8019_s21 = smov 0  }
   0x2   :  { %s8021_s22 = smov 0   ;;  %s8023_s23 = smov 0  }
   0x3   :  { %s8025_s24 = smov 0  }
   0x4 LB: > { %11602 = sst [smem:[#allocation14_spill]] %s7957_s19  ;;  %s25_s25 = sadd.s32 1, %s7969_s22  ;;  %s7977_s24 = sphi %s8025_s24, %s16_s24   ;;  %s7973_s23 = sphi %s8023_s23, %s12037_s23   ;;  %s7969_s22 = sphi %s8021_s22, %s12036_s22   ;;  %s7965_s21 = sphi %s8019_s21, %s12035_s21   ;;  %s7961_s20 = sphi %s8017_s20, %s12034_s20   ;;  %s7957_s19 = sphi %s8015_s19, %s12033_s19   ;;  %s7953_s18 = sphi %s8013_s18, %s12032_s18  }
   0x5   : > { %11603 = sst [smem:[#allocation15_spill]] %s7969_s22  ;;  %p26_p0 = scmp.ge.s32.totalorder %s25_s25, 2 }
   0x6   : > { %11604 = sst [smem:[#allocation16_spill]] %s7973_s23  ;;  %s28_s26 = sadd.s32 1, %s7973_s23 }
   0x7   : > { %s6963_s27 = sadd.s32 4294967295, %s7977_s24   ;;  %p105_p1 = scmp.ne.s32.totalorder %s7957_s19, %s7953_s18 }
   0x8   : > { %s12039_s25 = smov (%p26_p0, %s25_s25), 0  ;;  %s12041_s26 = smov (!%p26_p0, %s28_s26), %s7973_s23 }
   0x9   : > { %11605 = sst [smem:[#allocation17_spill]] %s12039_s25  ;;  %s91_s28 = ssub.s32 %s7969_s22, %s12039_s25 }
   0xa   : > { %p106_p2 = scmp.eq.s32.totalorder %s6963_s27, 3  ;;  %p30_p3 = scmp.ge.s32.totalorder %s12041_s26, 2 }
   0xb   : > { %p6967_p4 = scmp.ge.s32.totalorder %s7977_s24, 1  ;;  %p186_p6 = scmp.lt.s32.totalorder %s7977_s24, 5 }
   0xc   : > { %p8059_p5 = por %p106_p2, %p105_p1  ;;  %s12043_s26 = smov (%p30_p3, %s12041_s26), 0 }
   0xd   : > { %11607 = sst [smem:[#allocation18_spill]] %s12043_s26  ;;  %p187_p7 = pnand %p6967_p4, %p186_p6 }
   0xe   : > { %s90_s30 = ssub.s32 %s7973_s23, %s12043_s26  ;;  %s95_s7 = sadd.s32 1, %s7957_s19 }
   0xf   : > { %s92_s6 = sor.u32 %s91_s28, %s90_s30  ;;  %190 = sbr.rel (%p187_p7) target bundleno = 2324 (0x914), region = 28 }
  0x10   : > { %p93_p8 = scmp.eq.s32.totalorder %s92_s6, 0 }
  0x12   : > { %s8070_s8 = scalar_select %p93_p8, %s7957_s19, %s95_s7  }
  0x14   : > { %11608 = sst [smem:[#allocation19_spill]] %s8070_s8 }
  0x16   : > { %s218_s9 = sand.u32 1, %s7953_s18   ;;  %p234_p9 = scmp.lt.s32.totalorder %s7965_s21, 1 }
  0x17   : > { %s6968_s10 = sshll.u32 %s218_s9, 6  ;;  %p236_p10 = scmp.lt.s32.totalorder %s7961_s20, 1 }
  0x18   : > { %s243_s11 = ssub.s32 1, %s7961_s20  ;;  %p6979_p13 = scmp.ne.s32.totalorder %s7961_s20, 0 }
  0x19   : > { %s235_s12 = scalar_select %p234_p9, %s7965_s21, 1 }
  0x1a   : > { %s237_s13 = scalar_select %p236_p10, %s7961_s20, 1 }
  0x1b   : > { %s6970_s14 = sshll.u32 %s235_s12, 3  ;;  %p246_p11 = scmp.lt.s32.totalorder %s243_s11, 1  ;;  %v289_v0 = vld [vmem:[%s11414_s2] sm:$0xf] (!%p6979_p13)  ;;  %v291_v1 = vld [vmem:[%s11414_s2 + $0x10] sm:$0xf] (!%p6979_p13) }
  0x1c   : > { %s6969_s15 = sshll.u32 %s237_s13, 2  ;;  %s6975_s16 = sshll.u32 %s243_s11, 3  ;;  %v293_v2 = vld [vmem:[%s11414_s2 + $0x4] sm:$0xf] (!%p6979_p13)  ;;  %290 = vst [vmem:[#allocation2] sm:$0xf] (!%p6979_p13), %v289_v0 }
  0x1d   : > { %s240_s17 = sadd.s32 %s6970_s14, %s6969_s15  ;;  %p258_p12 = scmp.lt.s32.totalorder %s6975_s16, 15  ;;  %292 = vst [vmem:[#allocation2 + $0x4] sm:$0xf] (!%p6979_p13), %v291_v1  ;;  %294 = vst [vmem:[#allocation2 + $0x8] sm:$0xf] (!%p6979_p13), %v293_v2  ;;  %v303_v7 = vld [vmem:[%s11414_s2 + $0x1c] sm:$0xff] (!%p6979_p13)  }
  0x1e   : > { %s6971_s27 = sshll.u32 %s240_s17, 3  ;;  %s6977_s7 = sshll.u32 %s235_s12, 5  ;;  %v295_v3 = vld [vmem:[%s11414_s2 + $0x14] sm:$0xf] (!%p6979_p13)  ;;  %v297_v4 = vld [vmem:[%s11414_s2 + $0x8] sm:$0xf] (!%p6979_p13) }
  0x1f   : > { %s8081_s6 = scalar_lea.vmem %s11412_s0, %s6971_s27  ;;  %s12045_s11 = smov (!%p246_p11, %s243_s11), 1  ;;  %v299_v5 = vld [vmem:[%s11414_s2 + $0x18] sm:$0xf] (!%p6979_p13)  ;;  %296 = vst [vmem:[#allocation2 + $0xc] sm:$0xf] (!%p6979_p13), %v295_v3  ;;  %304 = vst [vmem:[#allocation2 + $0x1c] sm:$0xff] (!%p6979_p13), %v303_v7  }
  0x20   : > { %s12047_s16 = smov (!%p258_p12, %s6975_s16), 15  ;;  %s6972_s18 = sshll.u32 %s12045_s11, 2  ;;  %298 = vst [vmem:[#allocation2 + $0x10] sm:$0xf] (!%p6979_p13), %v297_v4  ;;  %300 = vst [vmem:[#allocation2 + $0x14] sm:$0xf] (!%p6979_p13), %v299_v5 }
  0x21   : > { %s250_s9 = sadd.s32 %s6972_s18, %s6970_s14  ;;  %s6976_s26 = sshll.u32 %s12047_s16, 1  ;;  %v301_v6 = vld [vmem:[%s11414_s2 + $0xc] sm:$0xf] (!%p6979_p13)  ;;  %v307_v8 = vld [vmem:[%s11414_s2 + $0x30] sm:$0xf] (!%p6979_p13)  ;;  %v319_v14 = vld [vmem:[%s11414_s2 + $0x3c] sm:$0xff] (!%p6979_p13)  }
  0x22   : > { %s6974_s25 = sshll.u32 %s250_s9, 3  ;;  %s262_s23 = sadd.s32 %s6977_s7, %s6976_s26  ;;  %302 = vst [vmem:[#allocation2 + $0x18] sm:$0xf] (!%p6979_p13), %v301_v6  ;;  %308 = vst [vmem:[#allocation2 + $0x24] sm:$0xf] (!%p6979_p13), %v307_v8  ;;  %v335_v21 = vld [vmem:[%s11414_s2 + $0x5c] sm:$0xff] (!%p6979_p13)  }
  0x23   : > { %s8086_s13 = scalar_lea.vmem %s11413_s1, %s6974_s25  ;;  %s6978_s15 = sshll.u32 %s262_s23, 2  ;;  %v309_v9 = vld [vmem:[%s11414_s2 + $0x24] sm:$0xf] (!%p6979_p13)  ;;  %v311_v10 = vld [vmem:[%s11414_s2 + $0x34] sm:$0xf] (!%p6979_p13)  ;;  %320 = vst [vmem:[#allocation2 + $0x3c] sm:$0xff] (!%p6979_p13), %v319_v14  }
  0x24   : > { %s8091_s28 = scalar_lea.vmem %s11417_s5, %s6978_s15  ;;  %s8093_s27 = scalar_lea.vmem [#allocation9], %s6968_s10  ;;  %v313_v11 = vld [vmem:[%s11414_s2 + $0x28] sm:$0xf] (!%p6979_p13)  ;;  %310 = vst [vmem:[#allocation2 + $0x28] sm:$0xf] (!%p6979_p13), %v309_v9  ;;  %336 = vst [vmem:[#allocation2 + $0x5c] sm:$0xff] (!%p6979_p13), %v335_v21  }
  0x25   : > { %271 = sbr.rel (%p6979_p13) target bundleno = 112 (0x70), region = 32  ;;  %312 = vst [vmem:[#allocation2 + $0x2c] sm:$0xf] (!%p6979_p13), %v311_v10  ;;  %314 = vst [vmem:[#allocation2 + $0x30] sm:$0xf] (!%p6979_p13), %v313_v11  ;;  %v351_v28 = vld [vmem:[%s11414_s2 + $0x7c] sm:$0xff] (!%p6979_p13)  }
  0x26   : > { %v315_v12 = vld [vmem:[%s11414_s2 + $0x38] sm:$0xf] (!%p6979_p13)  ;;  %v317_v13 = vld [vmem:[%s11414_s2 + $0x2c] sm:$0xf] (!%p6979_p13)  ;;  %v323_v15 = vld [vmem:[%s11414_s2 + $0x50] sm:$0xf] (!%p6979_p13) }
  0x27   : > { %316 = vst [vmem:[#allocation2 + $0x34] sm:$0xf] (!%p6979_p13), %v315_v12  ;;  %318 = vst [vmem:[#allocation2 + $0x38] sm:$0xf] (!%p6979_p13), %v317_v13  ;;  %v325_v16 = vld [vmem:[%s11414_s2 + $0x44] sm:$0xf] (!%p6979_p13) }
  0x28   : > { %v327_v17 = vld [vmem:[%s11414_s2 + $0x54] sm:$0xf] (!%p6979_p13)  ;;  %324 = vst [vmem:[#allocation2 + $0x44] sm:$0xf] (!%p6979_p13), %v323_v15  ;;  %326 = vst [vmem:[#allocation2 + $0x48] sm:$0xf] (!%p6979_p13), %v325_v16 }
  0x29   : > { %328 = vst [vmem:[#allocation2 + $0x4c] sm:$0xf] (!%p6979_p13), %v327_v17  ;;  %v329_v18 = vld [vmem:[%s11414_s2 + $0x48] sm:$0xf] (!%p6979_p13)  ;;  %v331_v19 = vld [vmem:[%s11414_s2 + $0x58] sm:$0xf] (!%p6979_p13) }
  0x2a   : > { %v333_v20 = vld [vmem:[%s11414_s2 + $0x4c] sm:$0xf] (!%p6979_p13)  ;;  %330 = vst [vmem:[#allocation2 + $0x50] sm:$0xf] (!%p6979_p13), %v329_v18  ;;  %332 = vst [vmem:[#allocation2 + $0x54] sm:$0xf] (!%p6979_p13), %v331_v19 }
  0x2b   : > { %334 = vst [vmem:[#allocation2 + $0x58] sm:$0xf] (!%p6979_p13), %v333_v20  ;;  %v339_v22 = vld [vmem:[%s11414_s2 + $0x70] sm:$0xf] (!%p6979_p13)  ;;  %v341_v23 = vld [vmem:[%s11414_s2 + $0x64] sm:$0xf] (!%p6979_p13) }
  0x2c   : > { %340 = vst [vmem:[#allocation2 + $0x64] sm:$0xf] %v339_v22  ;;  %342 = vst [vmem:[#allocation2 + $0x68] sm:$0xf] %v341_v23  ;;  %v343_v24 = vld [vmem:[%s11414_s2 + $0x74] sm:$0xf] }
  0x2d   : > { %v345_v25 = vld [vmem:[%s11414_s2 + $0x68] sm:$0xf]  ;;  %v347_v26 = vld [vmem:[%s11414_s2 + $0x78] sm:$0xf]  ;;  %344 = vst [vmem:[#allocation2 + $0x6c] sm:$0xf] %v343_v24 }
  0x2e   : > { %346 = vst [vmem:[#allocation2 + $0x70] sm:$0xf] %v345_v25  ;;  %348 = vst [vmem:[#allocation2 + $0x74] sm:$0xf] %v347_v26  ;;  %v349_v27 = vld [vmem:[%s11414_s2 + $0x6c] sm:$0xf] }
  0x2f   : > { %v355_v29 = vld [vmem:[%s11414_s2 + $0x90] sm:$0xf]  ;;  %350 = vst [vmem:[#allocation2 + $0x78] sm:$0xf] %v349_v27  ;;  %352 = vst [vmem:[#allocation2 + $0x7c] sm:$0xff] %v351_v28   ;;  %v367_v35 = vld [vmem:[%s11414_s2 + $0x9c] sm:$0xff]  }
  0x30   : > { %356 = vst [vmem:[#allocation2 + $0x84] sm:$0xf] %v355_v29  ;;  %v357_v30 = vld [vmem:[%s11414_s2 + $0x84] sm:$0xf]  ;;  %v359_v31 = vld [vmem:[%s11414_s2 + $0x94] sm:$0xf] }
  0x31   : > { %v361_v32 = vld [vmem:[%s11414_s2 + $0x88] sm:$0xf]  ;;  %358 = vst [vmem:[#allocation2 + $0x88] sm:$0xf] %v357_v30  ;;  %360 = vst [vmem:[#allocation2 + $0x8c] sm:$0xf] %v359_v31 }
  0x32   : > { %362 = vst [vmem:[#allocation2 + $0x90] sm:$0xf] %v361_v32  ;;  %v363_v33 = vld [vmem:[%s11414_s2 + $0x98] sm:$0xf]  ;;  %v365_v34 = vld [vmem:[%s11414_s2 + $0x8c] sm:$0xf] }
  0x33   : > { %364 = vst [vmem:[#allocation2 + $0x94] sm:$0xf] %v363_v33  ;;  %366 = vst [vmem:[#allocation2 + $0x98] sm:$0xf] %v365_v34  ;;  %v371_v36 = vld [vmem:[%s11414_s2 + $0xb0] sm:$0xf] }
  0x34   : > { %368 = vst [vmem:[#allocation2 + $0x9c] sm:$0xff] %v367_v35   ;;  %v373_v37 = vld [vmem:[%s11414_s2 + $0xa4] sm:$0xf]  ;;  %v375_v38 = vld [vmem:[%s11414_s2 + $0xb4] sm:$0xf]  ;;  %v383_v42 = vld [vmem:[%s11414_s2 + $0xbc] sm:$0xff]  }
  0x35   : > { %372 = vst [vmem:[#allocation2 + $0xa4] sm:$0xf] %v371_v36  ;;  %374 = vst [vmem:[#allocation2 + $0xa8] sm:$0xf] %v373_v37  ;;  %v377_v39 = vld [vmem:[%s11414_s2 + $0xa8] sm:$0xf] }
  0x36   : > { %376 = vst [vmem:[#allocation2 + $0xac] sm:$0xf] %v375_v38  ;;  %v379_v40 = vld [vmem:[%s11414_s2 + $0xb8] sm:$0xf]  ;;  %v381_v41 = vld [vmem:[%s11414_s2 + $0xac] sm:$0xf] }
  0x37   : > { %378 = vst [vmem:[#allocation2 + $0xb0] sm:$0xf] %v377_v39  ;;  %380 = vst [vmem:[#allocation2 + $0xb4] sm:$0xf] %v379_v40  ;;  %v387_v43 = vld [vmem:[%s11414_s2 + $0xd0] sm:$0xf] }
  0x38   : > { %382 = vst [vmem:[#allocation2 + $0xb8] sm:$0xf] %v381_v41  ;;  %v389_v44 = vld [vmem:[%s11414_s2 + $0xc4] sm:$0xf]  ;;  %384 = vst [vmem:[#allocation2 + $0xbc] sm:$0xff] %v383_v42   ;;  %v399_v49 = vld [vmem:[%s11414_s2 + $0xdc] sm:$0xff]  }
  0x39   : > { %388 = vst [vmem:[#allocation2 + $0xc4] sm:$0xf] %v387_v43  ;;  %390 = vst [vmem:[#allocation2 + $0xc8] sm:$0xf] %v389_v44  ;;  %v391_v45 = vld [vmem:[%s11414_s2 + $0xd4] sm:$0xf] }
  0x3a   : > { %v393_v46 = vld [vmem:[%s11414_s2 + $0xc8] sm:$0xf]  ;;  %v395_v47 = vld [vmem:[%s11414_s2 + $0xd8] sm:$0xf]  ;;  %392 = vst [vmem:[#allocation2 + $0xcc] sm:$0xf] %v391_v45 }
  0x3b   : > { %394 = vst [vmem:[#allocation2 + $0xd0] sm:$0xf] %v393_v46  ;;  %396 = vst [vmem:[#allocation2 + $0xd4] sm:$0xf] %v395_v47  ;;  %v397_v48 = vld [vmem:[%s11414_s2 + $0xcc] sm:$0xf] }
  0x3c   : > { %v403_v50 = vld [vmem:[%s11414_s2 + $0xf0] sm:$0xf]  ;;  %398 = vst [vmem:[#allocation2 + $0xd8] sm:$0xf] %v397_v48  ;;  %400 = vst [vmem:[#allocation2 + $0xdc] sm:$0xff] %v399_v49  }
  0x3d   : > { %404 = vst [vmem:[#allocation2 + $0xe4] sm:$0xf] %v403_v50  ;;  %v405_v51 = vld [vmem:[%s11414_s2 + $0xe4] sm:$0xf]  ;;  %v407_v52 = vld [vmem:[%s11414_s2 + $0xf4] sm:$0xf] }
  0x3e   : > { %v409_v53 = vld [vmem:[%s11414_s2 + $0xe8] sm:$0xf]  ;;  %406 = vst [vmem:[#allocation2 + $0xe8] sm:$0xf] %v405_v51  ;;  %408 = vst [vmem:[#allocation2 + $0xec] sm:$0xf] %v407_v52 }
  0x3f   : > { %410 = vst [vmem:[#allocation2 + $0xf0] sm:$0xf] %v409_v53  ;;  %v411_v54 = vld [vmem:[%s11414_s2 + $0xf8] sm:$0xf]  ;;  %v413_v55 = vld [vmem:[%s11414_s2 + $0xec] sm:$0xf] }
  0x40   : > { %v415_v56 = vld [vmem:[%s11414_s2 + $0xfc] sm:$0xf]  ;;  %412 = vst [vmem:[#allocation2 + $0xf4] sm:$0xf] %v411_v54  ;;  %414 = vst [vmem:[#allocation2 + $0xf8] sm:$0xf] %v413_v55 }
  0x41   : > { %416 = vst [vmem:[#allocation2 + $0xfc] sm:$0xf] %v415_v56 }
  0x42   : > { %575 = vsyncadd [#allocation4], 4096  ;;  %v594_v57 = vld [vmem:[%s11415_s3] sm:$0xf]  ;;  %v596_v58 = vld [vmem:[%s11415_s3 + $0x10] sm:$0xf] }
  0x43   : > { %595 = vst [vmem:[#allocation3] sm:$0xf] %v594_v57  ;;  %597 = vst [vmem:[#allocation3 + $0x4] sm:$0xf] %v596_v58  ;;  %v598_v59 = vld [vmem:[%s11415_s3 + $0x4] sm:$0xf] }
  0x44   : > { %v600_v60 = vld [vmem:[%s11415_s3 + $0x14] sm:$0xf]  ;;  %v602_v61 = vld [vmem:[%s11415_s3 + $0x8] sm:$0xf]  ;;  %599 = vst [vmem:[#allocation3 + $0x8] sm:$0xf] %v598_v59 }
  0x45   : > { %601 = vst [vmem:[#allocation3 + $0xc] sm:$0xf] %v600_v60  ;;  %603 = vst [vmem:[#allocation3 + $0x10] sm:$0xf] %v602_v61  ;;  %v604_v62 = vld [vmem:[%s11415_s3 + $0x18] sm:$0xf] }
  0x46   : > { %v606_v63 = vld [vmem:[%s11415_s3 + $0xc] sm:$0xf]  ;;  %v608_v0 = vld [vmem:[%s11415_s3 + $0x1c] sm:$0xff]   ;;  %605 = vst [vmem:[#allocation3 + $0x14] sm:$0xf] %v604_v62 }
  0x47   : > { %607 = vst [vmem:[#allocation3 + $0x18] sm:$0xf] %v606_v63  ;;  %609 = vst [vmem:[#allocation3 + $0x1c] sm:$0xff] %v608_v0   ;;  %v612_v1 = vld [vmem:[%s11415_s3 + $0x30] sm:$0xf]  ;;  %v624_v7 = vld [vmem:[%s11415_s3 + $0x3c] sm:$0xff]  }
  0x48   : > { %v614_v2 = vld [vmem:[%s11415_s3 + $0x24] sm:$0xf]  ;;  %v616_v3 = vld [vmem:[%s11415_s3 + $0x34] sm:$0xf]  ;;  %613 = vst [vmem:[#allocation3 + $0x24] sm:$0xf] %v612_v1 }
  0x49   : > { %615 = vst [vmem:[#allocation3 + $0x28] sm:$0xf] %v614_v2  ;;  %617 = vst [vmem:[#allocation3 + $0x2c] sm:$0xf] %v616_v3  ;;  %v618_v4 = vld [vmem:[%s11415_s3 + $0x28] sm:$0xf] }
  0x4a   : > { %v620_v5 = vld [vmem:[%s11415_s3 + $0x38] sm:$0xf]  ;;  %v622_v6 = vld [vmem:[%s11415_s3 + $0x2c] sm:$0xf]  ;;  %619 = vst [vmem:[#allocation3 + $0x30] sm:$0xf] %v618_v4 }
  0x4b   : > { %621 = vst [vmem:[#allocation3 + $0x34] sm:$0xf] %v620_v5  ;;  %623 = vst [vmem:[#allocation3 + $0x38] sm:$0xf] %v622_v6  ;;  %v628_v8 = vld [vmem:[%s11415_s3 + $0x50] sm:$0xf] }
  0x4c   : > { %v630_v9 = vld [vmem:[%s11415_s3 + $0x44] sm:$0xf]  ;;  %625 = vst [vmem:[#allocation3 + $0x3c] sm:$0xff] %v624_v7   ;;  %629 = vst [vmem:[#allocation3 + $0x44] sm:$0xf] %v628_v8  ;;  %v640_v14 = vld [vmem:[%s11415_s3 + $0x5c] sm:$0xff]  }
  0x4d   : > { %631 = vst [vmem:[#allocation3 + $0x48] sm:$0xf] %v630_v9  ;;  %v632_v10 = vld [vmem:[%s11415_s3 + $0x54] sm:$0xf]  ;;  %v634_v11 = vld [vmem:[%s11415_s3 + $0x48] sm:$0xf] }
  0x4e   : > { %v636_v12 = vld [vmem:[%s11415_s3 + $0x58] sm:$0xf]  ;;  %633 = vst [vmem:[#allocation3 + $0x4c] sm:$0xf] %v632_v10  ;;  %635 = vst [vmem:[#allocation3 + $0x50] sm:$0xf] %v634_v11 }
  0x4f   : > { %637 = vst [vmem:[#allocation3 + $0x54] sm:$0xf] %v636_v12  ;;  %v638_v13 = vld [vmem:[%s11415_s3 + $0x4c] sm:$0xf]  ;;  %v644_v15 = vld [vmem:[%s11415_s3 + $0x70] sm:$0xf] }
  0x50   : > { %639 = vst [vmem:[#allocation3 + $0x58] sm:$0xf] %v638_v13  ;;  %641 = vst [vmem:[#allocation3 + $0x5c] sm:$0xff] %v640_v14   ;;  %v646_v16 = vld [vmem:[%s11415_s3 + $0x64] sm:$0xf]  ;;  %v656_v21 = vld [vmem:[%s11415_s3 + $0x7c] sm:$0xff]  }
  0x51   : > { %645 = vst [vmem:[#allocation3 + $0x64] sm:$0xf] %v644_v15  ;;  %v648_v17 = vld [vmem:[%s11415_s3 + $0x74] sm:$0xf]  ;;  %v650_v18 = vld [vmem:[%s11415_s3 + $0x68] sm:$0xf] }
  0x52   : > { %647 = vst [vmem:[#allocation3 + $0x68] sm:$0xf] %v646_v16  ;;  %649 = vst [vmem:[#allocation3 + $0x6c] sm:$0xf] %v648_v17  ;;  %v652_v19 = vld [vmem:[%s11415_s3 + $0x78] sm:$0xf] }
  0x53   : > { %651 = vst [vmem:[#allocation3 + $0x70] sm:$0xf] %v650_v18  ;;  %v654_v20 = vld [vmem:[%s11415_s3 + $0x6c] sm:$0xf]  ;;  %653 = vst [vmem:[#allocation3 + $0x74] sm:$0xf] %v652_v19 }
  0x54   : > { %655 = vst [vmem:[#allocation3 + $0x78] sm:$0xf] %v654_v20  ;;  %657 = vst [vmem:[#allocation3 + $0x7c] sm:$0xff] %v656_v21   ;;  %v660_v22 = vld [vmem:[%s11415_s3 + $0x90] sm:$0xf]  ;;  %v672_v28 = vld [vmem:[%s11415_s3 + $0x9c] sm:$0xff]  }
  0x55   : > { %v662_v23 = vld [vmem:[%s11415_s3 + $0x84] sm:$0xf]  ;;  %v664_v24 = vld [vmem:[%s11415_s3 + $0x94] sm:$0xf]  ;;  %661 = vst [vmem:[#allocation3 + $0x84] sm:$0xf] %v660_v22 }
  0x56   : > { %663 = vst [vmem:[#allocation3 + $0x88] sm:$0xf] %v662_v23  ;;  %665 = vst [vmem:[#allocation3 + $0x8c] sm:$0xf] %v664_v24  ;;  %v666_v25 = vld [vmem:[%s11415_s3 + $0x88] sm:$0xf] }
  0x57   : > { %v668_v26 = vld [vmem:[%s11415_s3 + $0x98] sm:$0xf]  ;;  %v670_v27 = vld [vmem:[%s11415_s3 + $0x8c] sm:$0xf]  ;;  %667 = vst [vmem:[#allocation3 + $0x90] sm:$0xf] %v666_v25 }
  0x58   : > { %669 = vst [vmem:[#allocation3 + $0x94] sm:$0xf] %v668_v26  ;;  %671 = vst [vmem:[#allocation3 + $0x98] sm:$0xf] %v670_v27  ;;  %v676_v29 = vld [vmem:[%s11415_s3 + $0xb0] sm:$0xf] }
  0x59   : > { %v678_v30 = vld [vmem:[%s11415_s3 + $0xa4] sm:$0xf]  ;;  %673 = vst [vmem:[#allocation3 + $0x9c] sm:$0xff] %v672_v28   ;;  %677 = vst [vmem:[#allocation3 + $0xa4] sm:$0xf] %v676_v29  ;;  %v688_v35 = vld [vmem:[%s11415_s3 + $0xbc] sm:$0xff]  }
  0x5a   : > { %679 = vst [vmem:[#allocation3 + $0xa8] sm:$0xf] %v678_v30  ;;  %v680_v31 = vld [vmem:[%s11415_s3 + $0xb4] sm:$0xf]  ;;  %v682_v32 = vld [vmem:[%s11415_s3 + $0xa8] sm:$0xf] }
  0x5b   : > { %v684_v33 = vld [vmem:[%s11415_s3 + $0xb8] sm:$0xf]  ;;  %681 = vst [vmem:[#allocation3 + $0xac] sm:$0xf] %v680_v31  ;;  %683 = vst [vmem:[#allocation3 + $0xb0] sm:$0xf] %v682_v32 }
  0x5c   : > { %685 = vst [vmem:[#allocation3 + $0xb4] sm:$0xf] %v684_v33  ;;  %v686_v34 = vld [vmem:[%s11415_s3 + $0xac] sm:$0xf]  ;;  %v692_v36 = vld [vmem:[%s11415_s3 + $0xd0] sm:$0xf] }
  0x5d   : > { %687 = vst [vmem:[#allocation3 + $0xb8] sm:$0xf] %v686_v34  ;;  %689 = vst [vmem:[#allocation3 + $0xbc] sm:$0xff] %v688_v35   ;;  %v694_v37 = vld [vmem:[%s11415_s3 + $0xc4] sm:$0xf]  ;;  %v704_v42 = vld [vmem:[%s11415_s3 + $0xdc] sm:$0xff]  }
  0x5e   : > { %693 = vst [vmem:[#allocation3 + $0xc4] sm:$0xf] %v692_v36  ;;  %v696_v38 = vld [vmem:[%s11415_s3 + $0xd4] sm:$0xf]  ;;  %v698_v39 = vld [vmem:[%s11415_s3 + $0xc8] sm:$0xf] }
  0x5f   : > { %695 = vst [vmem:[#allocation3 + $0xc8] sm:$0xf] %v694_v37  ;;  %697 = vst [vmem:[#allocation3 + $0xcc] sm:$0xf] %v696_v38  ;;  %v700_v40 = vld [vmem:[%s11415_s3 + $0xd8] sm:$0xf] }
  0x60   : > { %699 = vst [vmem:[#allocation3 + $0xd0] sm:$0xf] %v698_v39  ;;  %v702_v41 = vld [vmem:[%s11415_s3 + $0xcc] sm:$0xf]  ;;  %701 = vst [vmem:[#allocation3 + $0xd4] sm:$0xf] %v700_v40 }
  0x61   : > { %703 = vst [vmem:[#allocation3 + $0xd8] sm:$0xf] %v702_v41  ;;  %705 = vst [vmem:[#allocation3 + $0xdc] sm:$0xff] %v704_v42   ;;  %v708_v43 = vld [vmem:[%s11415_s3 + $0xf0] sm:$0xf] }
  0x62   : > { %v710_v44 = vld [vmem:[%s11415_s3 + $0xe4] sm:$0xf]  ;;  %v712_v45 = vld [vmem:[%s11415_s3 + $0xf4] sm:$0xf]  ;;  %709 = vst [vmem:[#allocation3 + $0xe4] sm:$0xf] %v708_v43 }
  0x63   : > { %711 = vst [vmem:[#allocation3 + $0xe8] sm:$0xf] %v710_v44  ;;  %713 = vst [vmem:[#allocation3 + $0xec] sm:$0xf] %v712_v45  ;;  %v714_v46 = vld [vmem:[%s11415_s3 + $0xe8] sm:$0xf] }
  0x64   : > { %v716_v47 = vld [vmem:[%s11415_s3 + $0xf8] sm:$0xf]  ;;  %v718_v48 = vld [vmem:[%s11415_s3 + $0xec] sm:$0xf]  ;;  %715 = vst [vmem:[#allocation3 + $0xf0] sm:$0xf] %v714_v46 }
  0x65   : > { %717 = vst [vmem:[#allocation3 + $0xf4] sm:$0xf] %v716_v47  ;;  %719 = vst [vmem:[#allocation3 + $0xf8] sm:$0xf] %v718_v48  ;;  %v720_v49 = vld [vmem:[%s11415_s3 + $0xfc] sm:$0xf] }
  0x66   : > { %721 = vst [vmem:[#allocation3 + $0xfc] sm:$0xf] %v720_v49 }
  0x67   : > { %880 = vsyncadd [#allocation4 + $0x1], 4096 }
  0x68   : > { %7947 = dma.done.wait [#allocation4], 4096 }
  0x69   : > { %7948 = vsyncadd [#allocation4], 4294963200 }
  0x6a   : > { %7949 = dma.done.wait [#allocation4 + $0x1], 4096 }
  0x6b   : > { %7950 = vsyncadd [#allocation4 + $0x1], 4294963200  ;;  %v7979_v50 = vmov 0.0  }
  0x6c   : > { %887 = vst [vmem:[#allocation5] sm:$0xff] %v7979_v50  ;;  %888 = vst [vmem:[#allocation5 + $0x8] sm:$0xff] %v7979_v50 }
  0x6d   : > { %889 = vst [vmem:[#allocation6] sm:$0xff] %v7979_v50  ;;  %890 = vst [vmem:[#allocation6 + $0x8] sm:$0xff] %v7979_v50 }
  0x6e   : > { %891 = vst [vmem:[#allocation7] sm:$0xff] %v7979_v50  ;;  %892 = vst [vmem:[#allocation7 + $0x8] sm:$0xff] %v7979_v50 }
  0x6f   : > { %893 = vst [vmem:[#allocation8] sm:$0xff] %v7979_v50  ;;  %894 = vst [vmem:[#allocation8 + $0x8] sm:$0xff] %v7979_v50 }
  0x70 PF: > { %v8438_v51 = vld [vmem:[#allocation2 + $0x8] sm:$0xff]  ;;  %v8440_v52 = vld [vmem:[#allocation2] sm:$0xff]  ;;  %v11423_v54 = vmov 0   ;;  %v8447_v55 = vld [vmem:[#allocation2 + $0x18] sm:$0xff]  ;;  %s8690_s25 = sshll.u32 %s7961_s20, 3  ;;  %vm1556_vm7 = vcmask 1040384  }
  0x71   : > { %v8442_v53 = vld [vmem:[#allocation2 + $0x28] sm:$0xff]  ;;  %938 = vmatprep.subr.bf16.mxu0 %v8438_v51  ;;  %970 = vmatprep.mubr.bf16.mxu0 %v11423_v54  ;;  %v8451_v56 = vld [vmem:[#allocation2 + $0x20] sm:$0xff]  ;;  %v8454_v57 = vld [vmem:[#allocation2 + $0x10] sm:$0xff]  ;;  %s1104_s8 = sadd.s32 4294967280, %s8690_s25  ;;  %s899_s10 = ssub.s32 15, %s8690_s25 }
  0x72   : > { %939 = vmatpush1.bf16.msra.mxu0 %v8440_v52  ;;  %1013 = vmatprep.mubr.bf16.mxu1 %v11423_v54  ;;  %v8456_v58 = vld [vmem:[#allocation2 + $0x38] sm:$0xff]  ;;  %v8462_v60 = vld [vmem:[#allocation2 + $0x30] sm:$0xff]  ;;  %v8482_v3 = vld [vmem:[#allocation2 + $0x88] sm:$0xff]  ;;  %s1327_s16 = ssub.s32 31, %s8690_s25  ;;  %vm1557_vm8 = vsmask.f32 256 }
  0x73   : > { %940 = vmatprep.subr.bf16.mxu0 %v8442_v53  ;;  %981 = vmatprep.subr.bf16.mxu1 %v8447_v55  ;;  %v8468_v62 = vld [vmem:[#allocation2 + $0x40] sm:$0xff]  ;;  %v8477_v1 = vld [vmem:[#allocation2 + $0x78] sm:$0xff]  ;;  %v8486_v4 = vld [vmem:[#allocation2 + $0x70] sm:$0xff]  ;;  %s1618_s30 = sadd.s32 1, %s8690_s25  ;;  %s1825_s7 = sadd.s32 4294967281, %s8690_s25 }
  0x74   : > { %v8458_v59 = vld [vmem:[#allocation2 + $0x48] sm:$0xff]  ;;  %982 = vmatpush1.bf16.msra.mxu1 %v8454_v57  ;;  %v8489_v5 = vld [vmem:[#allocation2 + $0x98] sm:$0xff]  ;;  %v8492_v6 = vld [vmem:[#allocation2 + $0x80] sm:$0xff]  ;;  %s1619_s18 = ssub.s32 14, %s8690_s25  ;;  %s2048_s9 = ssub.s32 30, %s8690_s25 }
  0x75   : > { %983 = vmatprep.subr.bf16.mxu1 %v8456_v58  ;;  %v8474_v0 = vld [vmem:[#allocation2 + $0x50] sm:$0xff]  ;;  %v8494_v7 = vld [vmem:[#allocation2 + $0xa8] sm:$0xff]  ;;  %v8501_v9 = vld [vmem:[#allocation2 + $0xb8] sm:$0xff]  ;;  %s2338_s15 = sadd.s32 2, %s8690_s25  ;;  %s2545_s17 = sadd.s32 4294967282, %s8690_s25 }
  0x76   : > { %941 = vmatpush1.bf16.msra.mxu0 %v8451_v56  ;;  %v8465_v61 = vld [vmem:[#allocation2 + $0x58] sm:$0xff]  ;;  %v8498_v8 = vld [vmem:[#allocation2 + $0x90] sm:$0xff]  ;;  %v8504_v10 = vld [vmem:[#allocation2 + $0xa0] sm:$0xff]  ;;  %s2339_s11 = ssub.s32 13, %s8690_s25  ;;  %s2768_s12 = ssub.s32 29, %s8690_s25 }
  0x77   : > { %942 = vmatprep.subr.bf16.mxu0 %v8458_v59  ;;  %v8470_v63 = vld [vmem:[#allocation2 + $0x68] sm:$0xff]  ;;  %v8480_v2 = vld [vmem:[#allocation2 + $0x60] sm:$0xff]  ;;  %v8510_v12 = vld [vmem:[#allocation2 + $0xb0] sm:$0xff]  ;;  %s3059_s26 = sadd.s32 3, %s8690_s25  ;;  %s3266_s14 = sadd.s32 4294967283, %s8690_s25 }
  0x78   : > { %984 = vmatpush1.bf16.msra.mxu1 %v8462_v60  ;;  %v8506_v11 = vld [vmem:[#allocation2 + $0xc8] sm:$0xff]  ;;  %v8513_v13 = vld [vmem:[#allocation2 + $0xd8] sm:$0xff]  ;;  %v8516_v14 = vld [vmem:[#allocation2 + $0xc0] sm:$0xff]  ;;  %s3060_s22 = ssub.s32 12, %s8690_s25  ;;  %s3489_s23 = ssub.s32 28, %s8690_s25 }
  0x79   : > { %985 = vmatprep.subr.bf16.mxu1 %v8465_v61  ;;  %v8518_v15 = vld [vmem:[#allocation2 + $0xe8] sm:$0xff]  ;;  %v8522_v16 = vld [vmem:[#allocation2 + $0xd0] sm:$0xff]  ;;  %v901_v17 = vld [vmem:[#allocation5] sm:$0xff]  ;;  %s3779_s19 = sadd.s32 4, %s8690_s25 }
  0x7a   : > { %943 = vmatpush1.bf16.msra.mxu0 %v8468_v62  ;;  %v902_v18 = vld [vmem:[#allocation5 + $0x8] sm:$0xff]  ;;  %v8525_v19 = vld [vmem:[#allocation2 + $0xf8] sm:$0xff]  ;;  %v8528_v20 = vld [vmem:[#allocation2 + $0xe0] sm:$0xff] }
  0x7b   : > { %944 = vmatprep.subr.bf16.mxu0 %v8470_v63  ;;  %v8530_v21 = vld [vmem:[#allocation3 + $0x8] sm:$0xff]  ;;  %v905_v22 = vpack.c.bf16 %v902_v18, %v901_v17  ;;  %v8534_v23 = vld [vmem:[#allocation2 + $0xf0] sm:$0xff]  ;;  %v8537_v24 = vld [vmem:[#allocation3 + $0x18] sm:$0xff] }
  0x7c   : > { %986 = vmatpush1.bf16.msra.mxu1 %v8474_v0  ;;  %v8540_v25 = vld [vmem:[#allocation3] sm:$0xff]  ;;  %v8542_v26 = vld [vmem:[#allocation3 + $0x28] sm:$0xff]  ;;  %v8546_v27 = vld [vmem:[#allocation3 + $0x10] sm:$0xff] }
  0x7d   : > { %987 = vmatprep.subr.bf16.mxu1 %v8477_v1  ;;  %v8549_v28 = vld [vmem:[#allocation3 + $0x38] sm:$0xff]  ;;  %v8553_v29 = vld [vmem:[#allocation3 + $0x20] sm:$0xff]  ;;  %v8555_v30 = vld [vmem:[#allocation3 + $0x48] sm:$0xff] }
  0x7e   : > { %945 = vmatpush1.bf16.msra.mxu0 %v8480_v2  ;;  %v8560_v31 = vld [vmem:[#allocation3 + $0x30] sm:$0xff]  ;;  %v8563_v32 = vld [vmem:[#allocation3 + $0x58] sm:$0xff]  ;;  %v8566_v33 = vld [vmem:[#allocation3 + $0x40] sm:$0xff] }
  0x7f   : > { %946 = vmatprep.subr.bf16.mxu0 %v8482_v3  ;;  %v8568_v34 = vld [vmem:[#allocation3 + $0x68] sm:$0xff]  ;;  %v8572_v35 = vld [vmem:[#allocation3 + $0x50] sm:$0xff]  ;;  %v8575_v36 = vld [vmem:[#allocation3 + $0x78] sm:$0xff] }
  0x80   : > { %988 = vmatpush1.bf16.msra.mxu1 %v8486_v4  ;;  %v8578_v37 = vld [vmem:[#allocation3 + $0x60] sm:$0xff]  ;;  %v8580_v38 = vld [vmem:[#allocation3 + $0x88] sm:$0xff]  ;;  %v8584_v39 = vld [vmem:[#allocation3 + $0x70] sm:$0xff] }
  0x81   : > { %989 = vmatprep.subr.bf16.mxu1 %v8489_v5  ;;  %v8587_v40 = vld [vmem:[#allocation3 + $0x98] sm:$0xff]  ;;  %v8590_v41 = vld [vmem:[#allocation3 + $0x80] sm:$0xff]  ;;  %v8592_v42 = vld [vmem:[#allocation3 + $0xa8] sm:$0xff] }
  0x82   : > { %947 = vmatpush1.bf16.msra.mxu0 %v8492_v6  ;;  %v8596_v43 = vld [vmem:[#allocation3 + $0x90] sm:$0xff]  ;;  %v8599_v44 = vld [vmem:[#allocation3 + $0xb8] sm:$0xff]  ;;  %v8602_v45 = vld [vmem:[#allocation3 + $0xa0] sm:$0xff] }
  0x83   : > { %948 = vmatprep.subr.bf16.mxu0 %v8494_v7  ;;  %11609 = vst [vmem:[#allocation20_spill] sm:$0xff] %v8602_v45  ;;  %v8604_v46 = vld [vmem:[#allocation3 + $0xc8] sm:$0xff]  ;;  %v8608_v47 = vld [vmem:[#allocation3 + $0xb0] sm:$0xff]  ;;  %v8611_v48 = vld [vmem:[#allocation3 + $0xd8] sm:$0xff] }
  0x84   : > { %990 = vmatpush1.bf16.msra.mxu1 %v8498_v8  ;;  %11610 = vst [vmem:[#allocation21_spill] sm:$0xff] %v8604_v46  ;;  %11611 = vst [vmem:[#allocation22_spill] sm:$0xff] %v8608_v47  ;;  %v8614_v49 = vld [vmem:[#allocation3 + $0xc0] sm:$0xff]  ;;  %v8616_v50 = vld [vmem:[#allocation3 + $0xe8] sm:$0xff] }
  0x85   : > { %991 = vmatprep.subr.bf16.mxu1 %v8501_v9  ;;  %11612 = vst [vmem:[#allocation23_spill] sm:$0xff] %v8616_v50  ;;  %v8620_v17 = vld [vmem:[#allocation3 + $0xd0] sm:$0xff]  ;;  %v1124_v18 = vld [vmem:[#allocation7] sm:$0xff]  ;;  %vm8831_vm13 = vmand %vm1556_vm7, %vm1557_vm8 }
  0x86   : > { %949 = vmatpush1.bf16.msra.mxu0 %v8504_v10 }
  0x87   : > { %950 = vmatprep.subr.bf16.mxu0 %v8506_v11 }
  0x88   : > { %992 = vmatpush1.bf16.msra.mxu1 %v8510_v12 }
  0x89   : > { %993 = vmatprep.subr.bf16.mxu1 %v8513_v13 }
  0x8a   : > { %951 = vmatpush1.bf16.msra.mxu0 %v8516_v14 }
  0x8b   : > { %952 = vmatprep.subr.bf16.mxu0 %v8518_v15 }
  0x8c   : > { %994 = vmatpush1.bf16.msra.mxu1 %v8522_v16 }
  0x8d   : > { %995 = vmatprep.subr.bf16.mxu1 %v8525_v19 }
  0x8e   : > { %953 = vmatpush1.bf16.msra.mxu0 %v8528_v20 }
  0x8f   : > { %1161 = vmatprep.subr.bf16.mxu0 %v8530_v21 }
  0x90   : > { %996 = vmatpush1.bf16.msra.mxu1 %v8534_v23 }
  0x91   : > { %971 = vmatmul.mubr.bf16.vlgmr.msra.gmra.mrb[0].mxu0 %v905_v22  ;;  %1204 = vmatprep.subr.bf16.mxu1 %v8537_v24 }
  0x92   : > { %1162 = vmatpush1.bf16.msra.mxu0 %v8540_v25  ;;  %1193 = vmatprep.mubr.bf16.mxu0 %v11423_v54 }
  0x93   : > { %1163 = vmatprep.subr.bf16.mxu0 %v8542_v26  ;;  %1014 = vmatmul.mubr.bf16.vlgmr.msra.gmra.mrb[0].mxu1 %v905_v22  ;;  %v1125_v22 = vld [vmem:[#allocation7 + $0x8] sm:$0xff] }
  0x94   : > { %1205 = vmatpush1.bf16.msra.mxu1 %v8546_v27  ;;  %1236 = vmatprep.mubr.bf16.mxu1 %v11423_v54  ;;  %v8623_v54 = vld [vmem:[#allocation3 + $0xf8] sm:$0xff] }
  0x95   : > { %1206 = vmatprep.subr.bf16.mxu1 %v8549_v28 }
  0x96   : > { %1164 = vmatpush1.bf16.msra.mxu0 %v8553_v29 }
  0x97   : > { %1165 = vmatprep.subr.bf16.mxu0 %v8555_v30 }
  0x98   : > { %1207 = vmatpush1.bf16.msra.mxu1 %v8560_v31 }
  0x99   : > { %1208 = vmatprep.subr.bf16.mxu1 %v8563_v32 }
  0x9a   : > { %1166 = vmatpush1.bf16.msra.mxu0 %v8566_v33 }
  0x9b   : > { %1167 = vmatprep.subr.bf16.mxu0 %v8568_v34 }
  0x9c   : > { %1209 = vmatpush1.bf16.msra.mxu1 %v8572_v35 }
  0x9d   : > { %1210 = vmatprep.subr.bf16.mxu1 %v8575_v36 }
  0x9e   : > { %1168 = vmatpush1.bf16.msra.mxu0 %v8578_v37 }
  0x9f   : > { %1169 = vmatprep.subr.bf16.mxu0 %v8580_v38 }
  0xa0   : > { %1211 = vmatpush1.bf16.msra.mxu1 %v8584_v39 }
  0xa1   : > { %1212 = vmatprep.subr.bf16.mxu1 %v8587_v40 }
  0xa2   : > { %1170 = vmatpush1.bf16.msra.mxu0 %v8590_v41 }
  0xa3   : > { %1171 = vmatprep.subr.bf16.mxu0 %v8592_v42 }
  0xa4   : > { %1213 = vmatpush1.bf16.msra.mxu1 %v8596_v43 }
  0xa5   : > { %1214 = vmatprep.subr.bf16.mxu1 %v8599_v44 }
  0xa6   : > { %1172 = vmatpush1.bf16.msra.mxu0 %v8602_v45  ;;  %v8626_v45 = vld [vmem:[#allocation3 + $0xe0] sm:$0xff] }
  0xa7   : > { %1173 = vmatprep.subr.bf16.mxu0 %v8604_v46  ;;  %v1128_v46 = vpack.c.bf16 %v1125_v22, %v1124_v18 }
  0xa8   : > { %1215 = vmatpush1.bf16.msra.mxu1 %v8608_v47  ;;  %v8630_v47 = vld [vmem:[#allocation3 + $0xf0] sm:$0xff] }
  0xa9   : > { %1216 = vmatprep.subr.bf16.mxu1 %v8611_v48 }
  0xaa   : > { %1174 = vmatpush1.bf16.msra.mxu0 %v8614_v49 }
  0xab   : > { %1175 = vmatprep.subr.bf16.mxu0 %v8616_v50  ;;  %v11613_v50 = vmov 0  }
  0xac   : > { %1217 = vmatpush1.bf16.msra.mxu1 %v8620_v17 }
  0xad   : > { %1218 = vmatprep.subr.bf16.mxu1 %v8623_v54 }
  0xae   : > { %1176 = vmatpush1.bf16.msra.mxu0 %v8626_v45 }
  0xaf   : > { %1659 = vmatprep.subr.bf16.mxu0 %v8438_v51  ;;  %v895_v51 = vlaneseq }
  0xb0   : > { %1219 = vmatpush1.bf16.msra.mxu1 %v8630_v47 }
  0xb1   : > { %1194 = vmatmul.mubr.bf16.vlgmr.msra.gmra.mrb[4].mxu0 %v1128_v46  ;;  %1702 = vmatprep.subr.bf16.mxu1 %v8447_v55  ;;  %v900_v55 = vld [vmem:[%s8081_s6] ss:$8 sm:$0xf] }
  0xb2   : > { %1660 = vmatpush1.bf16.msra.mxu0 %v8440_v52  ;;  %1691 = vmatprep.mubr.bf16.mxu0 %v11613_v50  ;;  %v8670_v52 = vshrl.u32 %v895_v51, 7 }
  0xb3   : > { %1237 = vmatmul.mubr.bf16.vlgmr.msra.gmra.mrb[4].mxu1 %v1128_v46  ;;  %1661 = vmatprep.subr.bf16.mxu0 %v8442_v53 }
  0xb4   : > { %1703 = vmatpush1.bf16.msra.mxu1 %v8454_v57  ;;  %1734 = vmatprep.mubr.bf16.mxu1 %v11613_v50  ;;  %11614 = vst [vmem:[#allocation24_spill] sm:$0xff] %v8670_v52  ;;  %v8673_v53 = vsub.s32 0, %v8670_v52 }
  0xb5   : > { %1704 = vmatprep.subr.bf16.mxu1 %v8456_v58 }
  0xb6   : > { %1662 = vmatpush1.bf16.msra.mxu0 %v8451_v56  ;;  %11615 = vst [vmem:[#allocation25_spill] sm:$0xff] %v8673_v53  ;;  %v8677_v56 = vsub.s32 1, %v8670_v52  ;;  %v1028_v57 = vrot.slane %v900_v55, %v8673_v53 }
  0xb7   : > { %1663 = vmatprep.subr.bf16.mxu0 %v8458_v59  ;;  %v8682_v59 = vsub.s32 3, %v8670_v52 }
  0xb8   : > { %1705 = vmatpush1.bf16.msra.mxu1 %v8462_v60  ;;  %11616 = vst [vmem:[#allocation26_spill] sm:$0xff] %v8677_v56  ;;  %v1032_v58 = vrot.slane %v900_v55, %v8677_v56 }
  0xb9   : > { %1706 = vmatprep.subr.bf16.mxu1 %v8465_v61  ;;  %11617 = vst [vmem:[#allocation27_spill] sm:$0xff] %v8682_v59 }
  0xba   : > { %1664 = vmatpush1.bf16.msra.mxu0 %v8468_v62 }
  0xbb   : > { %1665 = vmatprep.subr.bf16.mxu0 %v8470_v63 }
  0xbc   : > { %1707 = vmatpush1.bf16.msra.mxu1 %v8474_v0 }
  0xbd   : > { %1708 = vmatprep.subr.bf16.mxu1 %v8477_v1 }
  0xbe   : > { %1666 = vmatpush1.bf16.msra.mxu0 %v8480_v2  ;;  %v8685_v2 = vsub.s32 2, %v8670_v52 }
  0xbf   : > { %1667 = vmatprep.subr.bf16.mxu0 %v8482_v3 }
  0xc0   : > { %1709 = vmatpush1.bf16.msra.mxu1 %v8486_v4  ;;  %11618 = vst [vmem:[#allocation28_spill] sm:$0xff] %v8685_v2 }
  0xc1   : > { %1710 = vmatprep.subr.bf16.mxu1 %v8489_v5 }
  0xc2   : > { %1668 = vmatpush1.bf16.msra.mxu0 %v8492_v6 }
  0xc3   : > { %1669 = vmatprep.subr.bf16.mxu0 %v8494_v7  ;;  %v1040_v7 = vrot.slane %v900_v55, %v8682_v59 }
  0xc4   : > { %1711 = vmatpush1.bf16.msra.mxu1 %v8498_v8 }
  0xc5   : > { %1712 = vmatprep.subr.bf16.mxu1 %v8501_v9 }
  0xc6   : > { %1670 = vmatpush1.bf16.msra.mxu0 %v8504_v10 }
  0xc7   : > { %1671 = vmatprep.subr.bf16.mxu0 %v8506_v11 }
  0xc8   : > { %1713 = vmatpush1.bf16.msra.mxu1 %v8510_v12 }
  0xc9   : > { %1714 = vmatprep.subr.bf16.mxu1 %v8513_v13 }
  0xca   : > { %1672 = vmatpush1.bf16.msra.mxu0 %v8516_v14  ;;  %v1036_v14 = vrot.slane %v900_v55, %v8685_v2 }
  0xcb   : > { %1673 = vmatprep.subr.bf16.mxu0 %v8518_v15 }
  0xcc   : > { %1715 = vmatpush1.bf16.msra.mxu1 %v8522_v16 }
  0xcd   : > { %1716 = vmatprep.subr.bf16.mxu1 %v8525_v19 }
  0xce   : > { %1674 = vmatpush1.bf16.msra.mxu0 %v8528_v20 }
  0xcf   : > { %1882 = vmatprep.subr.bf16.mxu0 %v8530_v21 }
  0xd0   : > { %1717 = vmatpush1.bf16.msra.mxu1 %v8534_v23 }
  0xd1   : > { %1925 = vmatprep.subr.bf16.mxu1 %v8537_v24 }
 0x164   : > { %v972_v60 = vpop.f32.mrb[0].mxu0 }
 0x165   : > { %v1045_v61 = vadd.f32 %v1028_v57, %v972_v60  ;;  %v974_v62 = vpop.f32.mrb[1].mxu0 }
 0x166   : > { %v1046_v63 = vadd.f32 %v1032_v58, %v974_v62  ;;  %v976_v0 = vpop.f32.mrb[2].mxu0  ;;  %v1015_v1 = vpop.f32.mrb[0].mxu1  ;;  %v1101_v62 = vstv %s8690_s25 }
 0x167   : > { %v6981_v3 = vmul.f32 -1.442695, %v1045_v61  ;;  %v1049_v4 = vadd.f32 %v1028_v57, %v976_v0  ;;  %v978_v5 = vpop.f32.mrb[3].mxu0  ;;  %v1017_v6 = vpop.f32.mrb[1].mxu1  ;;  %v1047_v19 = vadd.f32 %v1036_v14, %v1015_v1  ;;  %v8695_v1 = vadd.s32 8, %v8670_v52 }
 0x168   : > { %v6983_v8 = vmul.f32 -1.442695, %v1046_v63  ;;  %v1050_v9 = vadd.f32 %v1032_v58, %v978_v5  ;;  %v1019_v10 = vpop.f32.mrb[2].mxu1  ;;  %v1048_v15 = vadd.f32 %v1040_v7, %v1017_v6  ;;  %v1105_v63 = vstv %s1104_s8  ;;  %v903_v5 = vld [vmem:[#allocation6] sm:$0xff]  ;;  %s3986_s8 = sadd.s32 4294967284, %s8690_s25 }
 0x169   : > { %7323 = vpow2.f32 %v6981_v3  ;;  %v6982_v11 = vmul.f32 -1.442695, %v1049_v4  ;;  %v1021_v12 = vpop.f32.mrb[3].mxu1  ;;  %v1051_v21 = vadd.f32 %v1036_v14, %v1019_v10  ;;  %11619 = vst [vmem:[#allocation29_spill] sm:$0xff] %v8695_v1  ;;  %vm1102_vm0 = vcmp.le.s32.totalorder %v8670_v52, %v1101_v62 }
 0x16a   : > { %7325 = vpow2.f32 %v6983_v8  ;;  %v6984_v13 = vmul.f32 -1.442695, %v1050_v9  ;;  %v1052_v16 = vadd.f32 %v1040_v7, %v1021_v12  ;;  %v6985_v20 = vmul.f32 -1.442695, %v1048_v15  ;;  %v904_v9 = vld [vmem:[#allocation6 + $0x8] sm:$0xff] }
 0x16b   : > { %7327 = vpow2.f32 %v6982_v11  ;;  %v6987_v3 = vld [vmem:[%s8086_s13 + $0x7] ss:$8 sm:$0xf]  ;;  %vm1106_vm1 = vcmp.gt.s32.totalorder %v8670_v52, %v1105_v63  ;;  %vm1103_vm2 = vcmp.le.s32.totalorder %v8695_v1, %v1101_v62  ;;  %vm1107_vm3 = vcmp.gt.s32.totalorder %v8695_v1, %v1105_v63 }
 0x16c   : > { %7329 = vpow2.f32 %v6984_v13  ;;  %v6986_v23 = vmul.f32 -1.442695, %v1052_v16  ;;  %v1251_v11 = vrot.slane %v6987_v3, %v8673_v53  ;;  %v1255_v14 = vrot.slane %v6987_v3, %v8677_v56  ;;  %vm8704_vm4 = vmand %vm1102_vm0, %vm1106_vm1  ;;  %v1601_v56 = vld [vmem:[%s8093_s27 + $0x38] sm:$0x1] }
 0x16d   : > { %7331 = vtanh.f32 %v1047_v19  ;;  %v11620_v16 = vmov 0  ;;  %vm8710_vm5 = vmand %vm1103_vm2, %vm1107_vm3 }
 0x16e   : > { %7333 = vpow2.f32 %v6985_v20  ;;  %v11621_v16 = vsel %vm8704_vm4, 4294967295, %v11620_v16  ;;  %vm7835_vm6 = vmpackc.low %vm8710_vm5, %vm8704_vm4 }
 0x16f   : > { %7335 = vtanh.f32 %v1051_v21  ;;  %11622 = vst [vmem:[#allocation30_spill] sm:$0xff] %v11621_v16  ;;  %v1589_v16 = vld [vmem:[%s8093_s27 + $0x28] sm:$0x1] }
 0x170   : > { %7337 = vpow2.f32 %v6986_v23 }
 0x173   : > { %v7324_v24 = vpop.eup %7323 }
 0x174   : > { %v7326_v46 = vpop.eup %7325  ;;  %v1059_v18 = vadd.f32 1.0, %v7324_v24 }
 0x175   : > { %v7328_v22 = vpop.eup %7327  ;;  %v1071_v51 = vadd.f32 1.0, %v7326_v46  ;;  %v11624_v46 = vmov 0 }
 0x176   : > { %v7330_v55 = vpop.eup %7329  ;;  %7339 = vrcp.f32 %v1059_v18  ;;  %v1060_v57 = vadd.f32 1.0, %v7328_v22  ;;  %v11625_v46 = vsel %vm8710_vm5, 4294967295, %v11624_v46 }
 0x177   : > { %7341 = vrcp.f32 %v1071_v51  ;;  %v1072_v58 = vadd.f32 1.0, %v7330_v55  ;;  %v7332_v60 = vpop.eup %7331  ;;  %11626 = vst [vmem:[#allocation32_spill] sm:$0xff] %v11625_v46  ;;  %v1263_v51 = vrot.slane %v6987_v3, %v8682_v59  ;;  %v1571_v55 = vld [vmem:[%s8093_s27 + $0x10] sm:$0x1]  ;;  %v1577_v46 = vld [vmem:[%s8093_s27 + $0x18] sm:$0x1] }
 0x178   : > { %7343 = vrcp.f32 %v1060_v57  ;;  %v7334_v61 = vpop.eup %7333  ;;  %v1598_v59 = vld [vmem:[%s8093_s27 + $0x34] sm:$0x1] }
 0x179   : > { %7345 = vrcp.f32 %v1072_v58  ;;  %v7336_v0 = vpop.eup %7335  ;;  %v1085_v7 = vadd.f32 1.0, %v7334_v61 }
 0x17a   : > { %v7338_v4 = vpop.eup %7337 }
 0x17b   : > { %v1086_v20 = vadd.f32 1.0, %v7338_v4  ;;  %7347 = vrcp.f32 %v1085_v7 }
 0x180   : > { %v7340_v6 = vpop.eup %7339 }
 0x181   : > { %v7342_v8 = vpop.eup %7341  ;;  %v1093_v10 = vmul.f32 %v7340_v6, %v7332_v60 }
 0x182   : > { %v7344_v12 = vpop.eup %7343  ;;  %v1091_v13 = vmul.f32 %v7342_v8, %v903_v5  ;;  %v1568_v5 = vld [vmem:[%s8093_s27 + $0xc] sm:$0x1] }
 0x183   : > { %v7346_v15 = vpop.eup %7345  ;;  %v1094_v19 = vmul.f32 %v7344_v12, %v7336_v0 }
 0x184   : > { %v1092_v21 = vmul.f32 %v7346_v15, %v904_v9  ;;  %v8708_v23 = vadd.f32 %v1093_v10, %v1091_v13  ;;  %v1195_v24 = vpop.f32.mrb[4].mxu0 }
 0x185   : > { %v1268_v18 = vadd.f32 %v1251_v11, %v1195_v24  ;;  %v1197_v22 = vpop.f32.mrb[5].mxu0  ;;  %v1259_v24 = vrot.slane %v6987_v3, %v8685_v2  ;;  %v1592_v2 = vld [vmem:[%s8093_s27 + $0x2c] sm:$0x1] }
 0x186   : > { %11623 = vst [vmem:[#allocation31_spill] sm:$0xff] %v8708_v23  ;;  %7349 = vtanh.f32 %v8708_v23  ;;  %v8719_v57 = vadd.f32 %v1094_v19, %v1092_v21  ;;  %v1269_v58 = vadd.f32 %v1255_v14, %v1197_v22  ;;  %v1199_v60 = vpop.f32.mrb[6].mxu0  ;;  %v1238_v61 = vpop.f32.mrb[4].mxu1  ;;  %v7981_v19 = vmov 1966171168  }
 0x187   : > { %7351 = vrcp.f32 %v1086_v20  ;;  %v6988_v62 = vmul.f32 -1.442695, %v1268_v18  ;;  %v1272_v63 = vadd.f32 %v1251_v11, %v1199_v60  ;;  %v1201_v0 = vpop.f32.mrb[7].mxu0  ;;  %v1240_v4 = vpop.f32.mrb[5].mxu1  ;;  %v1349_v20 = vunpack.c.l.s4 %v7981_v19  ;;  %v1580_v23 = vld [vmem:[%s8093_s27 + $0x1c] sm:$0x1] }
 0x188   : > { %11627 = vst [vmem:[#allocation33_spill] sm:$0xff] %v8719_v57  ;;  %7353 = vtanh.f32 %v8719_v57  ;;  %v6990_v6 = vmul.f32 -1.442695, %v1269_v58  ;;  %v1273_v7 = vadd.f32 %v1255_v14, %v1201_v0  ;;  %v1242_v8 = vpop.f32.mrb[6].mxu1  ;;  %v1271_v10 = vadd.f32 %v1263_v51, %v1240_v4  ;;  %v7348_v18 = vpop.eup %7347  ;;  %v1574_v57 = vld [vmem:[%s8093_s27 + $0x14] sm:$0x1] }
 0x189   : > { %7355 = vpow2.f32 %v6988_v62  ;;  %v6989_v9 = vmul.f32 -1.442695, %v1272_v63  ;;  %v1244_v12 = vpop.f32.mrb[7].mxu1  ;;  %v1350_v14 = vunpack.c.0.s8 %v1349_v20  ;;  %v7982_v58 = vmov 286326784  }
 0x18a   : > { %7357 = vpow2.f32 %v6990_v6  ;;  %v6991_v13 = vmul.f32 -1.442695, %v1273_v7  ;;  %v1275_v15 = vadd.f32 %v1263_v51, %v1244_v12  ;;  %v6992_v11 = vmul.f32 -1.442695, %v1271_v10 }
 0x18b   : > { %7359 = vpow2.f32 %v6989_v9  ;;  %v1429_v60 = vunpack.c.l.s4 %v7982_v58  ;;  %v1270_v0 = vadd.f32 %v1259_v24, %v1238_v61  ;;  %v1274_v51 = vadd.f32 %v1259_v24, %v1242_v8 }
 0x18c   : > { %7361 = vpow2.f32 %v6991_v13  ;;  %v6993_v21 = vmul.f32 -1.442695, %v1275_v15  ;;  %v8727_v10 = vsub.s32 %v1350_v14, %v8670_v52 }
 0x18d   : > { %7363 = vpow2.f32 %v6992_v11  ;;  %v1430_v3 = vunpack.c.0.s8 %v1429_v60 }
 0x18e   : > { %7365 = vpow2.f32 %v6993_v21  ;;  %11628 = vst [vmem:[#allocation34_spill] sm:$0xff] %v8727_v10 }
 0x18f   : > { %7367 = vtanh.f32 %v1270_v0  ;;  %v8737_v58 = vsub.s32 %v1430_v3, %v8670_v52 }
 0x190   : > { %v7350_v22 = vpop.eup %7349  ;;  %7369 = vtanh.f32 %v1274_v51 }
 0x191   : > { %v7352_v62 = vpop.eup %7351  ;;  %v1099_v63 = vmul.f32 %v7350_v22, %v7348_v18 }
 0x192   : > { %v7354_v4 = vpop.eup %7353 }
 0x193   : > { %v7356_v6 = vpop.eup %7355  ;;  %v1100_v7 = vmul.f32 %v7354_v4, %v7352_v62  ;;  %v1114_v15 = vsel %vm8704_vm4, %v1099_v63, 0.0  ;;  %v8744_v62 = vstv %s899_s10  ;;  %s3780_s10 = ssub.s32 11, %s8690_s25 }
 0x194   : > { %v7358_v9 = vpop.eup %7357  ;;  %v1282_v12 = vadd.f32 1.0, %v7356_v6  ;;  %vm1325_vm9 = vcmp.ge.s32.totalorder %v8670_v52, %v8744_v62  ;;  %vm1326_vm11 = vcmp.ge.s32.totalorder %v8695_v1, %v8744_v62 }
 0x195   : > { %v7360_v13 = vpop.eup %7359  ;;  %v1115_v11 = vsel %vm8710_vm5, %v1100_v7, 0.0  ;;  %v1294_v61 = vadd.f32 1.0, %v7358_v9  ;;  %v7836_v60 = vpack.c.bf16 %v1100_v7, %v1099_v63  ;;  %v8753_v63 = vstv %s1327_s16  ;;  %s4209_s16 = ssub.s32 27, %s8690_s25 }
 0x196   : > { %v7362_v8 = vpop.eup %7361  ;;  %v1345_v19 = vpack.c.bf16 %v1115_v11, %v1114_v15  ;;  %v6994_v20 = vpack.c.bf16 %v1115_v11, %v1115_v11  ;;  %v1283_v21 = vadd.f32 1.0, %v7360_v13  ;;  %7371 = vrcp.f32 %v1282_v12 }
 0x197   : > { %v1295_v24 = vadd.f32 1.0, %v7362_v8  ;;  %v7364_v18 = vpop.eup %7363  ;;  %7373 = vrcp.f32 %v1294_v61  ;;  %7837 = vmatmul.mubr.msk.bf16.vlgmr.msra.gmra.mrb[8].mxu0 %vm7835_vm6, %v7836_v60  ;;  %7840 = vmatmul.mubr.msk.bf16.vlgmr.msra.gmra.mrb[8].mxu1 %vm7835_vm6, %v7836_v60  ;;  %vm1329_vm10 = vcmp.lt.s32.totalorder %v8670_v52, %v8753_v63  ;;  %vm1330_vm12 = vcmp.lt.s32.totalorder %v8695_v1, %v8753_v63 }
 0x198   : > { %v1354_v22 = vrot.slane %v1345_v19, %v8727_v10  ;;  %v1361_v14 = vrot.slane %v6994_v20, %v8727_v10  ;;  %7375 = vrcp.f32 %v1283_v21  ;;  %1883 = vmatpush1.bf16.msra.mxu0 %v8540_v25  ;;  %1926 = vmatpush1.bf16.msra.mxu1 %v8546_v27  ;;  %v7366_v0 = vpop.eup %7365  ;;  %v8755_v7 = vadd.f32 1.0, %v7364_v18  ;;  %vm8938_vm14 = vmand %vm1325_vm9, %vm1329_vm10 }
 0x199   : > { %1884 = vmatprep.subr.bf16.mxu0 %v8542_v26  ;;  %7377 = vrcp.f32 %v1295_v24  ;;  %v8757_v3 = vadd.f32 1.0, %v7366_v0  ;;  %1927 = vmatprep.subr.bf16.mxu1 %v8549_v28  ;;  %v8781_v21 = vpop.eup %7367  ;;  %vm8951_vm15 = vmand %vm1326_vm11, %vm1330_vm12  ;;  %vm2277_vm9 = vsmask.f32 7938 }
 0x19a   : > { %v1362_v4 = vcombine.high %v1354_v22, %v1354_v22  ;;  %v1363_v51 = vcombine.high %v1361_v14, %v1361_v14  ;;  %v1370_v6 = vrot.slane %v1354_v22, %v8727_v10  ;;  %v8750_v9 = vrot.slane %v1361_v14, %v8727_v10  ;;  %1914 = vmatprep.mubr.bf16.mxu0 %v11613_v50  ;;  %v8787_v22 = vpop.eup %7369  ;;  %vm7841_vm0 = vmpackc.low %vm8951_vm15, %vm8938_vm14 }
 0x19b   : > { %1957 = vmatprep.mubr.bf16.mxu1 %v11613_v50  ;;  %7379 = vrcp.f32 %v8755_v7  ;;  %v11638_v7 = vld [vmem:[#allocation23_spill] sm:$0xff]  ;;  %vm9256_vm10 = vmand %vm1556_vm7, %vm2277_vm9  ;;  %vm2997_vm9 = vcmask 1041409  }
 0x19c   : > { %v1384_v25 = vrot.slane %v1362_v4, %v8727_v10  ;;  %v8763_v27 = vrot.slane %v1363_v51, %v8727_v10  ;;  %v1392_v12 = vcombine.high %v1370_v6, %v1370_v6  ;;  %v8767_v26 = vcombine.high %v8750_v9, %v8750_v9  ;;  %1885 = vmatpush1.bf16.msra.mxu0 %v8553_v29  ;;  %v1583_v10 = vld [vmem:[%s8093_s27 + $0x20] sm:$0x1] }
 0x19d   : > { %v1397_v13 = vunpack.i.h.s16 %v1370_v6  ;;  %v1405_v15 = vunpack.i.h.s16 %v8750_v9  ;;  %v6995_v11 = vpack.i.b16 %v1370_v6, %v1370_v6  ;;  %v6999_v28 = vpack.i.b16 %v8750_v9, %v8750_v9  ;;  %1928 = vmatpush1.bf16.msra.mxu1 %v8560_v31  ;;  %1886 = vmatprep.subr.bf16.mxu0 %v8555_v30 }
 0x19e   : > { %v1394_v61 = vcombine.high %v1384_v25, %v1384_v25  ;;  %v8777_v8 = vcombine.high %v8763_v27, %v8763_v27  ;;  %v1399_v19 = vunpack.i.h.s16 %v1384_v25  ;;  %v1401_v20 = vunpack.i.h.s16 %v1392_v12  ;;  %1929 = vmatprep.subr.bf16.mxu1 %v8563_v32 }
 0x19f   : > { %v1407_v24 = vunpack.i.h.s16 %v8763_v27  ;;  %v1409_v18 = vunpack.i.h.s16 %v8767_v26  ;;  %v8785_v29 = vpack.i.b16 %v1397_v13, %v1397_v13  ;;  %v6996_v31 = vpack.i.b16 %v1384_v25, %v1384_v25 }
 0x1a0   : > { %v1403_v14 = vunpack.i.h.s16 %v1394_v61  ;;  %v1411_v60 = vunpack.i.h.s16 %v8777_v8  ;;  %v8790_v0 = vpack.i.b16 %v1399_v19, %v1399_v19  ;;  %v6997_v4 = vpack.i.b16 %v1392_v12, %v1392_v12  ;;  %v8792_v30 = vpop.eup %7371  ;;  %1887 = vmatpush1.bf16.msra.mxu0 %v8566_v33 }
 0x1a1   : > { %v8794_v32 = vpack.i.b16 %v1401_v20, %v1401_v20  ;;  %v6998_v51 = vpack.i.b16 %v1394_v61, %v1394_v61  ;;  %v8796_v6 = vpack.i.b16 %v1405_v15, %v1405_v15  ;;  %v7000_v9 = vpack.i.b16 %v8763_v27, %v8763_v27  ;;  %v8805_v25 = vpop.eup %7373  ;;  %1930 = vmatpush1.bf16.msra.mxu1 %v8572_v35  ;;  %v1559_v35 = vld [vmem:[%s8093_s27] sm:$0x1] }
 0x1a2   : > { %v8807_v12 = vpack.i.b16 %v1403_v14, %v1403_v14  ;;  %v8809_v13 = vpack.i.b16 %v1407_v24, %v1407_v24  ;;  %v7001_v15 = vpack.i.b16 %v8767_v26, %v8767_v26  ;;  %v8813_v27 = vpack.i.b16 %v1409_v18, %v1409_v18  ;;  %v8820_v33 = vpop.eup %7375  ;;  %v1562_v18 = vld [vmem:[%s8093_s27 + $0x4] sm:$0x1]  ;;  %1888 = vmatprep.subr.bf16.mxu0 %v8568_v34 }
 0x1a3   : > { %v7002_v61 = vpack.i.b16 %v8777_v8, %v8777_v8  ;;  %v8824_v26 = vpack.i.b16 %v1411_v60, %v1411_v60  ;;  %v1434_v19 = vrot.slane %v6995_v11, %v8737_v58  ;;  %v1441_v20 = vrot.slane %v8785_v29, %v8737_v58  ;;  %v1565_v60 = vld [vmem:[%s8093_s27 + $0x8] sm:$0x1]  ;;  %1931 = vmatprep.subr.bf16.mxu1 %v8575_v36  ;;  %v7378_v34 = vpop.eup %7377 }
 0x1a4   : > { %v1448_v8 = vrot.slane %v6996_v31, %v8737_v58  ;;  %v1455_v11 = vrot.slane %v8790_v0, %v8737_v58  ;;  %v1462_v29 = vrot.slane %v6997_v4, %v8737_v58  ;;  %v1469_v14 = vrot.slane %v8794_v32, %v8737_v58  ;;  %1889 = vmatpush1.bf16.msra.mxu0 %v8578_v37 }
 0x1a5   : > { %v1476_v31 = vrot.slane %v6998_v51, %v8737_v58  ;;  %v1483_v0 = vrot.slane %v8807_v12, %v8737_v58  ;;  %v1490_v4 = vrot.slane %v6999_v28, %v8737_v58  ;;  %v1497_v32 = vrot.slane %v8796_v6, %v8737_v58  ;;  %v1586_v12 = vld [vmem:[%s8093_s27 + $0x24] sm:$0x1]  ;;  %1932 = vmatpush1.bf16.msra.mxu1 %v8584_v39 }
 0x1a6   : > { %v1504_v36 = vrot.slane %v7000_v9, %v8737_v58  ;;  %v1511_v51 = vrot.slane %v8809_v13, %v8737_v58  ;;  %v1518_v28 = vrot.slane %v7001_v15, %v8737_v58  ;;  %v1525_v6 = vrot.slane %v8813_v27, %v8737_v58  ;;  %v1595_v27 = vld [vmem:[%s8093_s27 + $0x30] sm:$0x1]  ;;  %1890 = vmatprep.subr.bf16.mxu0 %v8580_v38 }
 0x1a7   : > { %v1532_v37 = vrot.slane %v7002_v61, %v8737_v58  ;;  %v1539_v9 = vrot.slane %v8824_v26, %v8737_v58  ;;  %v1560_v13 = vsel %vm8831_vm13, %v1434_v19, %v1559_v35  ;;  %v1563_v15 = vsel %vm8831_vm13, %v1441_v20, %v1562_v18  ;;  %v1604_v20 = vld [vmem:[%s8093_s27 + $0x3c] sm:$0x1]  ;;  %v1126_v38 = vld [vmem:[#allocation8] sm:$0xff]  ;;  %1933 = vmatprep.subr.bf16.mxu1 %v8587_v40 }
 0x1a8   : > { %1561 = vst [vmem:[%s8093_s27] sm:$0x1] %v1560_v13  ;;  %1564 = vst [vmem:[%s8093_s27 + $0x4] sm:$0x1] %v1563_v15  ;;  %v1566_v39 = vsel %vm8831_vm13, %v1448_v8, %v1565_v60  ;;  %v1569_v61 = vsel %vm8831_vm13, %v1455_v11, %v1568_v5  ;;  %v1572_v26 = vsel %vm8831_vm13, %v1462_v29, %v1571_v55  ;;  %v1127_v35 = vld [vmem:[#allocation8 + $0x8] sm:$0xff]  ;;  %1891 = vmatpush1.bf16.msra.mxu0 %v8590_v41  ;;  %v8996_v60 = vld [vmem:[#allocation2] sm:$0xff] }
 0x1a9   : > { %v1575_v19 = vsel %vm8831_vm13, %v1469_v14, %v1574_v57  ;;  %1567 = vst [vmem:[%s8093_s27 + $0x8] sm:$0x1] %v1566_v39  ;;  %1570 = vst [vmem:[%s8093_s27 + $0xc] sm:$0x1] %v1569_v61  ;;  %v1578_v55 = vsel %vm8831_vm13, %v1476_v31, %v1577_v46  ;;  %v1581_v57 = vsel %vm8831_vm13, %v1483_v0, %v1580_v23  ;;  %1934 = vmatpush1.bf16.msra.mxu1 %v8596_v43  ;;  %v9002_v31 = vld [vmem:[#allocation2 + $0x28] sm:$0xff]  ;;  %v9004_v0 = vld [vmem:[#allocation2 + $0x38] sm:$0xff] }
 0x1aa   : > { %1573 = vst [vmem:[%s8093_s27 + $0x10] sm:$0x1] %v1572_v26  ;;  %1576 = vst [vmem:[%s8093_s27 + $0x14] sm:$0x1] %v1575_v19  ;;  %v1584_v5 = vsel %vm8831_vm13, %v1490_v4, %v1583_v10  ;;  %v1587_v40 = vsel %vm8831_vm13, %v1497_v32, %v1586_v12  ;;  %v1590_v46 = vsel %vm8831_vm13, %v1504_v36, %v1589_v16  ;;  %1892 = vmatprep.subr.bf16.mxu0 %v8592_v42  ;;  %v9008_v4 = vld [vmem:[#allocation2 + $0x20] sm:$0xff]  ;;  %v9010_v32 = vld [vmem:[#allocation2 + $0x30] sm:$0xff] }
 0x1ab   : > { %1579 = vst [vmem:[%s8093_s27 + $0x18] sm:$0x1] %v1578_v55  ;;  %1582 = vst [vmem:[%s8093_s27 + $0x1c] sm:$0x1] %v1581_v57  ;;  %v1593_v23 = vsel %vm8831_vm13, %v1511_v51, %v1592_v2  ;;  %v1596_v10 = vsel %vm8831_vm13, %v1518_v28, %v1595_v27  ;;  %v1599_v18 = vsel %vm8831_vm13, %v1525_v6, %v1598_v59  ;;  %1935 = vmatprep.subr.bf16.mxu1 %v8599_v44  ;;  %v11637_v44 = vld [vmem:[#allocation21_spill] sm:$0xff]  ;;  %v9016_v51 = vld [vmem:[#allocation2 + $0x58] sm:$0xff] }
 0x1ac   : > { %1585 = vst [vmem:[%s8093_s27 + $0x20] sm:$0x1] %v1584_v5  ;;  %1588 = vst [vmem:[%s8093_s27 + $0x24] sm:$0x1] %v1587_v40  ;;  %v1602_v41 = vsel %vm8831_vm13, %v1532_v37, %v1601_v56  ;;  %v1605_v16 = vsel %vm8831_vm13, %v1539_v9, %v1604_v20  ;;  %v1314_v2 = vmul.f32 %v8805_v25, %v1126_v38  ;;  %7381 = vrcp.f32 %v8757_v3  ;;  %v9014_v36 = vld [vmem:[#allocation2 + $0x48] sm:$0xff]  ;;  %v9020_v28 = vld [vmem:[#allocation2 + $0x40] sm:$0xff] }
 0x1ad   : > { %1591 = vst [vmem:[%s8093_s27 + $0x28] sm:$0x1] %v1590_v46  ;;  %1594 = vst [vmem:[%s8093_s27 + $0x2c] sm:$0x1] %v1593_v23  ;;  %v1315_v8 = vmul.f32 %v7378_v34, %v1127_v35  ;;  %v1316_v43 = vmul.f32 %v8792_v30, %v8781_v21  ;;  %v1317_v59 = vmul.f32 %v8820_v33, %v8787_v22  ;;  %v11635_v21 = vld [vmem:[#allocation20_spill] sm:$0xff]  ;;  %v11636_v22 = vld [vmem:[#allocation22_spill] sm:$0xff] }
 0x1ae   : > { %1597 = vst [vmem:[%s8093_s27 + $0x30] sm:$0x1] %v1596_v10  ;;  %1600 = vst [vmem:[%s8093_s27 + $0x34] sm:$0x1] %v1599_v18  ;;  %1893 = vmatpush1.bf16.msra.mxu0 %v11635_v21  ;;  %1936 = vmatpush1.bf16.msra.mxu1 %v11636_v22  ;;  %v8998_v34 = vld [vmem:[#allocation2 + $0x10] sm:$0xff]  ;;  %v9026_v12 = vld [vmem:[#allocation2 + $0x68] sm:$0xff] }
 0x1af   : > { %1603 = vst [vmem:[%s8093_s27 + $0x38] sm:$0x1] %v1602_v41  ;;  %1606 = vst [vmem:[%s8093_s27 + $0x3c] sm:$0x1] %v1605_v16  ;;  %v8956_v30 = vadd.f32 %v1316_v43, %v1314_v2  ;;  %v8959_v25 = vadd.f32 %v1317_v59, %v1315_v8  ;;  %1894 = vmatprep.subr.bf16.mxu0 %v11637_v44  ;;  %1937 = vmatprep.subr.bf16.mxu1 %v8611_v48  ;;  %v7380_v48 = vpop.eup %7379  ;;  %v9022_v6 = vld [vmem:[#allocation2 + $0x50] sm:$0xff]  ;;  %v9028_v37 = vld [vmem:[#allocation2 + $0x78] sm:$0xff] }
 0x1b0   : > { %11639 = vst [vmem:[#allocation20_spill] sm:$0xff] %v9028_v37  ;;  %v9032_v9 = vld [vmem:[#allocation2 + $0x60] sm:$0xff]  ;;  %v9034_v13 = vld [vmem:[#allocation2 + $0x70] sm:$0xff]  ;;  %v9038_v15 = vld [vmem:[#allocation2 + $0x88] sm:$0xff] }
 0x1b1   : > { %7383 = vtanh.f32 %v8956_v30  ;;  %11640 = vst [vmem:[#allocation22_spill] sm:$0xff] %v9032_v9  ;;  %11641 = vst [vmem:[#allocation21_spill] sm:$0xff] %v9034_v13  ;;  %v9040_v27 = vld [vmem:[#allocation2 + $0x98] sm:$0xff]  ;;  %v9044_v39 = vld [vmem:[#allocation2 + $0x80] sm:$0xff]  ;;  %v11701_v56 = vsel %vm8951_vm15, %v8959_v25, 0.0 }
 0x1b2   : > { %7385 = vtanh.f32 %v8959_v25  ;;  %1895 = vmatpush1.bf16.msra.mxu0 %v8614_v49  ;;  %1938 = vmatpush1.bf16.msra.mxu1 %v8620_v17  ;;  %11642 = vst [vmem:[#allocation23_spill] sm:$0xff] %v9038_v15  ;;  %11643 = vst [vmem:[#allocation35_spill] sm:$0xff] %v9040_v27  ;;  %v9046_v61 = vld [vmem:[#allocation2 + $0x90] sm:$0xff]  ;;  %v9050_v26 = vld [vmem:[#allocation2 + $0xa8] sm:$0xff] }
 0x1b3   : > { %1896 = vmatprep.subr.bf16.mxu0 %v11638_v7  ;;  %1939 = vmatprep.subr.bf16.mxu1 %v8623_v54  ;;  %11644 = vst [vmem:[#allocation36_spill] sm:$0xff] %v9044_v39  ;;  %11645 = vst [vmem:[#allocation37_spill] sm:$0xff] %v9046_v61  ;;  %v9052_v19 = vld [vmem:[#allocation2 + $0xb8] sm:$0xff]  ;;  %v9056_v20 = vld [vmem:[#allocation2 + $0xa0] sm:$0xff] }
 0x1b4   : > { %11646 = vst [vmem:[#allocation38_spill] sm:$0xff] %v9050_v26  ;;  %11647 = vst [vmem:[#allocation39_spill] sm:$0xff] %v9052_v19  ;;  %v9058_v38 = vld [vmem:[#allocation2 + $0xb0] sm:$0xff]  ;;  %v9062_v35 = vld [vmem:[#allocation2 + $0xc8] sm:$0xff] }
 0x1b5   : > { %11648 = vst [vmem:[#allocation40_spill] sm:$0xff] %v9056_v20  ;;  %11649 = vst [vmem:[#allocation41_spill] sm:$0xff] %v9058_v38  ;;  %v9064_v55 = vld [vmem:[#allocation2 + $0xd8] sm:$0xff]  ;;  %v9068_v57 = vld [vmem:[#allocation2 + $0xc0] sm:$0xff] }
 0x1b6   : > { %1897 = vmatpush1.bf16.msra.mxu0 %v8626_v45  ;;  %1940 = vmatpush1.bf16.msra.mxu1 %v8630_v47  ;;  %v7382_v3 = vpop.eup %7381  ;;  %v8990_v45 = vld [vmem:[#allocation2 + $0x8] sm:$0xff]  ;;  %v8992_v47 = vld [vmem:[#allocation2 + $0x18] sm:$0xff]  ;;  %11650 = vst [vmem:[#allocation42_spill] sm:$0xff] %v9062_v35  ;;  %11651 = vst [vmem:[#allocation43_spill] sm:$0xff] %v9064_v55 }
 0x1b7   : > { %2379 = vmatprep.subr.bf16.mxu0 %v8990_v45  ;;  %2422 = vmatprep.subr.bf16.mxu1 %v8992_v47  ;;  %11652 = vst [vmem:[#allocation44_spill] sm:$0xff] %v9068_v57  ;;  %v9070_v5 = vld [vmem:[#allocation2 + $0xd0] sm:$0xff]  ;;  %v9074_v40 = vld [vmem:[#allocation2 + $0xe8] sm:$0xff]  ;;  %v9076_v46 = vld [vmem:[#allocation2 + $0xf8] sm:$0xff] }
 0x1b8   : > { %11653 = vst [vmem:[#allocation45_spill] sm:$0xff] %v9070_v5  ;;  %11654 = vst [vmem:[#allocation46_spill] sm:$0xff] %v9074_v40  ;;  %v9080_v23 = vld [vmem:[#allocation2 + $0xe0] sm:$0xff]  ;;  %v9082_v10 = vld [vmem:[#allocation2 + $0xf0] sm:$0xff] }
 0x1b9   : > { %11655 = vst [vmem:[#allocation47_spill] sm:$0xff] %v9076_v46  ;;  %11656 = vst [vmem:[#allocation48_spill] sm:$0xff] %v9080_v23  ;;  %v9086_v18 = vld [vmem:[#allocation3 + $0x8] sm:$0xff]  ;;  %v9088_v41 = vld [vmem:[#allocation3 + $0x18] sm:$0xff] }
 0x1ba   : > { %11657 = vst [vmem:[#allocation49_spill] sm:$0xff] %v9082_v10  ;;  %11658 = vst [vmem:[#allocation50_spill] sm:$0xff] %v9086_v18  ;;  %v7007_v16 = vld [vmem:[%s8081_s6 + $0x1] ss:$8 sm:$0xf] }
 0x1bb   : > { %v7384_v33 = vpop.eup %7383  ;;  %11659 = vst [vmem:[#allocation51_spill] sm:$0xff] %v9088_v41  ;;  %v1749_v2 = vrot.slane %v7007_v16, %v8673_v53  ;;  %v11660_v8 = vld [vmem:[#allocation26_spill] sm:$0xff] }
 0x1bc   : > { %v7386_v24 = vpop.eup %7385  ;;  %v1322_v11 = vmul.f32 %v7384_v33, %v7380_v48  ;;  %v1753_v43 = vrot.slane %v7007_v16, %v11660_v8 }
 0x1bd   : > { %v1323_v29 = vmul.f32 %v7386_v24, %v7382_v3 }
 0x1be   : > { %v1337_v14 = vsel %vm8938_vm14, %v1322_v11, 0.0 }
 0x1bf   : > { %v1338_v49 = vsel %vm8951_vm15, %v1323_v29, 0.0  ;;  %v7842_v54 = vpack.c.bf16 %v1323_v29, %v1322_v11 }
 0x1c0   : > { %v7219_v17 = vpack.c.bf16 %v1338_v49, %v1337_v14 }
 0x1c1   : > { %7843 = vmatmul.mubr.msk.bf16.vlgmr.msra.gmra.mrb[12].mxu0 %vm7841_vm0, %v7842_v54  ;;  %7846 = vmatmul.mubr.msk.bf16.vlgmr.msra.gmra.mrb[12].mxu1 %vm7841_vm0, %v7842_v54 }
 0x1c2   : > { %7256 = vst [vmem:[%s8091_s28 + $0x38] sm:$0xff] %v7219_v17   ;;  %2411 = vmatprep.mubr.bf16.mxu0 %v11613_v50  ;;  %2454 = vmatprep.mubr.bf16.mxu1 %v11613_v50  ;;  %v11661_v17 = vld [vmem:[#allocation27_spill] sm:$0xff] }
 0x1c3   : > { %2380 = vmatpush1.bf16.msra.mxu0 %v8996_v60  ;;  %2423 = vmatpush1.bf16.msra.mxu1 %v8998_v34  ;;  %v1761_v54 = vrot.slane %v7007_v16, %v11661_v17 }
 0x1c4   : > { %2381 = vmatprep.subr.bf16.mxu0 %v9002_v31  ;;  %2424 = vmatprep.subr.bf16.mxu1 %v9004_v0 }
 0x1c7   : > { %2382 = vmatpush1.bf16.msra.mxu0 %v9008_v4  ;;  %2425 = vmatpush1.bf16.msra.mxu1 %v9010_v32 }
 0x1c8   : > { %2383 = vmatprep.subr.bf16.mxu0 %v9014_v36  ;;  %2426 = vmatprep.subr.bf16.mxu1 %v9016_v51 }
 0x1cb   : > { %2384 = vmatpush1.bf16.msra.mxu0 %v9020_v28  ;;  %2427 = vmatpush1.bf16.msra.mxu1 %v9022_v6 }
 0x1cc   : > { %2385 = vmatprep.subr.bf16.mxu0 %v9026_v12  ;;  %2428 = vmatprep.subr.bf16.mxu1 %v9028_v37  ;;  %v2306_v37 = vld [vmem:[%s8093_s27 + $0x24] sm:$0x1] }
 0x1cf   : > { %2386 = vmatpush1.bf16.msra.mxu0 %v9032_v9  ;;  %2429 = vmatpush1.bf16.msra.mxu1 %v9034_v13  ;;  %v2300_v13 = vld [vmem:[%s8093_s27 + $0x1c] sm:$0x1] }
 0x1d0   : > { %2387 = vmatprep.subr.bf16.mxu0 %v9038_v15  ;;  %2430 = vmatprep.subr.bf16.mxu1 %v9040_v27  ;;  %v9278_v27 = vld [vmem:[#allocation3 + $0x98] sm:$0xff] }
 0x1d1   : > { %v2297_v15 = vld [vmem:[%s8093_s27 + $0x18] sm:$0x1] }
 0x1d3   : > { %2388 = vmatpush1.bf16.msra.mxu0 %v9044_v39  ;;  %2431 = vmatpush1.bf16.msra.mxu1 %v9046_v61  ;;  %v2288_v61 = vld [vmem:[%s8093_s27 + $0xc] sm:$0x1]  ;;  %v2291_v39 = vld [vmem:[%s8093_s27 + $0x10] sm:$0x1] }
 0x1d4   : > { %2389 = vmatprep.subr.bf16.mxu0 %v9050_v26  ;;  %2432 = vmatprep.subr.bf16.mxu1 %v9052_v19  ;;  %v2285_v26 = vld [vmem:[%s8093_s27 + $0x8] sm:$0x1] }
 0x1d7   : > { %2390 = vmatpush1.bf16.msra.mxu0 %v9056_v20  ;;  %2433 = vmatpush1.bf16.msra.mxu1 %v9058_v38 }
 0x1d8   : > { %2391 = vmatprep.subr.bf16.mxu0 %v9062_v35  ;;  %2434 = vmatprep.subr.bf16.mxu1 %v9064_v55 }
 0x1db   : > { %2392 = vmatpush1.bf16.msra.mxu0 %v9068_v57  ;;  %2435 = vmatpush1.bf16.msra.mxu1 %v9070_v5 }
 0x1dc   : > { %2393 = vmatprep.subr.bf16.mxu0 %v9074_v40  ;;  %2436 = vmatprep.subr.bf16.mxu1 %v9076_v46 }
 0x1df   : > { %2394 = vmatpush1.bf16.msra.mxu0 %v9080_v23  ;;  %2437 = vmatpush1.bf16.msra.mxu1 %v9082_v10 }
 0x1e0   : > { %2602 = vmatprep.subr.bf16.mxu0 %v9086_v18  ;;  %2645 = vmatprep.subr.bf16.mxu1 %v9088_v41  ;;  %v11662_v18 = vld [vmem:[#allocation28_spill] sm:$0xff] }
 0x1e1   : > { %v1757_v10 = vrot.slane %v7007_v16, %v11662_v18 }
 0x26a   : > { %v1693_v59 = vpop.f32.mrb[8].mxu0  ;;  %v1736_v21 = vpop.f32.mrb[8].mxu1 }
 0x26b   : > { %v1766_v22 = vadd.f32 %v1749_v2, %v1693_v59  ;;  %v1695_v44 = vpop.f32.mrb[9].mxu0  ;;  %v1738_v7 = vpop.f32.mrb[9].mxu1 }
 0x26c   : > { %v1767_v48 = vadd.f32 %v1753_v43, %v1695_v44  ;;  %v1697_v3 = vpop.f32.mrb[10].mxu0  ;;  %v1740_v33 = vpop.f32.mrb[10].mxu1  ;;  %v1769_v59 = vadd.f32 %v1761_v54, %v1738_v7  ;;  %v1768_v44 = vadd.f32 %v1757_v10, %v1736_v21  ;;  %v1822_v21 = vstv %s1618_s30  ;;  %s4500_s30 = sadd.s32 5, %s8690_s25 }
 0x26d   : > { %v7008_v24 = vmul.f32 -1.442695, %v1766_v22  ;;  %v1770_v11 = vadd.f32 %v1749_v2, %v1697_v3  ;;  %v1699_v29 = vpop.f32.mrb[11].mxu0  ;;  %v1742_v14 = vpop.f32.mrb[11].mxu1  ;;  %v1772_v22 = vadd.f32 %v1757_v10, %v1740_v33  ;;  %v1826_v7 = vstv %s1825_s7  ;;  %s4707_s7 = sadd.s32 4294967285, %s8690_s25 }
 0x26e   : > { %v7010_v49 = vmul.f32 -1.442695, %v1767_v48  ;;  %v1771_v63 = vadd.f32 %v1753_v43, %v1699_v29  ;;  %v7012_v23 = vmul.f32 -1.442695, %v1769_v59  ;;  %v1773_v46 = vadd.f32 %v1761_v54, %v1742_v14  ;;  %v11664_v59 = vld [vmem:[#allocation31_spill] sm:$0xff] }
 0x26f   : > { %7387 = vpow2.f32 %v7008_v24  ;;  %v7009_v62 = vmul.f32 -1.442695, %v1770_v11  ;;  %vm1823_vm1 = vcmp.le.s32.totalorder %v8670_v52, %v1822_v21  ;;  %vm1827_vm2 = vcmp.gt.s32.totalorder %v8670_v52, %v1826_v7 }
 0x270   : > { %7389 = vpow2.f32 %v7010_v49  ;;  %v7011_v41 = vmul.f32 -1.442695, %v1771_v63  ;;  %v7013_v43 = vmul.f32 -1.442695, %v1773_v46  ;;  %vm9105_vm3 = vmand %vm1823_vm1, %vm1827_vm2  ;;  %vm1824_vm6 = vcmp.le.s32.totalorder %v8695_v1, %v1822_v21 }
 0x271   : > { %7391 = vpow2.f32 %v7009_v62  ;;  %vm1828_vm8 = vcmp.gt.s32.totalorder %v8695_v1, %v1826_v7  ;;  %v7014_v21 = vld [vmem:[%s8086_s13 + $0x6] ss:$8 sm:$0xf] }
 0x272   : > { %7393 = vpow2.f32 %v7011_v41 }
 0x273   : > { %7395 = vtanh.f32 %v1768_v44  ;;  %v11665_v44 = vsel %vm8704_vm4, %v11664_v59, 0.0  ;;  %vm9121_vm4 = vmand %vm1824_vm6, %vm1828_vm8 }
 0x274   : > { %7397 = vpow2.f32 %v7012_v23 }
 0x275   : > { %7399 = vtanh.f32 %v1772_v22 }
 0x279   : > { %v7388_v2 = vpop.eup %7387 }
 0x27a   : > { %v7390_v48 = vpop.eup %7389  ;;  %v1780_v3 = vadd.f32 1.0, %v7388_v2 }
 0x27b   : > { %v1792_v24 = vadd.f32 1.0, %v7390_v48  ;;  %v7392_v63 = vpop.eup %7391  ;;  %v11666_v48 = vmov 0 }
 0x27c   : > { %7401 = vrcp.f32 %v1780_v3  ;;  %v1781_v16 = vadd.f32 1.0, %v7392_v63  ;;  %v7394_v62 = vpop.eup %7393  ;;  %v11667_v48 = vsel %vm9105_vm3, 4294967295, %v11666_v48 }
 0x27d   : > { %7403 = vrcp.f32 %v1792_v24  ;;  %v1793_v41 = vadd.f32 1.0, %v7394_v62  ;;  %v7396_v10 = vpop.eup %7395  ;;  %11668 = vst [vmem:[#allocation30_spill] sm:$0xff] %v11667_v48  ;;  %v9221_v48 = vld [vmem:[#allocation3 + $0x78] sm:$0xff] }
 0x27e   : > { %7405 = vpow2.f32 %v7013_v43  ;;  %v7398_v33 = vpop.eup %7397  ;;  %11689 = vst [vmem:[#allocation63_spill] sm:$0xff] %v9221_v48 }
 0x27f   : > { %7407 = vrcp.f32 %v1781_v16  ;;  %v7400_v11 = vpop.eup %7399  ;;  %v1806_v14 = vadd.f32 1.0, %v7398_v33 }
 0x280   : > { %7409 = vrcp.f32 %v1793_v41  ;;  %v11671_v41 = vld [vmem:[#allocation33_spill] sm:$0xff] }
 0x281   : > { %7411 = vrcp.f32 %v1806_v14 }
 0x286   : > { %v7402_v23 = vpop.eup %7401 }
 0x287   : > { %v7404_v46 = vpop.eup %7403  ;;  %v1814_v29 = vmul.f32 %v7402_v23, %v7396_v10  ;;  %v11672_v10 = vsel %vm8710_vm5, %v11671_v41, 0.0  ;;  %v1980_v41 = vrot.slane %v7014_v21, %v11662_v18  ;;  %vm7847_vm5 = vmpackc.low %vm9121_vm4, %vm9105_vm3 }
 0x288   : > { %v7406_v49 = vpop.eup %7405  ;;  %v1812_v22 = vmul.f32 %v7404_v46, %v11665_v44  ;;  %v1972_v46 = vrot.slane %v7014_v21, %v8673_v53 }
 0x289   : > { %v7408_v2 = vpop.eup %7407  ;;  %v1807_v63 = vadd.f32 1.0, %v7406_v49  ;;  %v1976_v49 = vrot.slane %v7014_v21, %v11660_v8 }
 0x28a   : > { %v9109_v3 = vadd.f32 %v1814_v29, %v1812_v22  ;;  %v1815_v43 = vmul.f32 %v7408_v2, %v7400_v11  ;;  %v7410_v24 = vpop.eup %7409  ;;  %v11673_v11 = vmov 0  ;;  %v1984_v22 = vrot.slane %v7014_v21, %v11661_v17 }
 0x28b   : > { %v1813_v33 = vmul.f32 %v7410_v24, %v11672_v10  ;;  %v11674_v11 = vsel %vm9121_vm4, 4294967295, %v11673_v11  ;;  %v7412_v2 = vpop.eup %7411 }
 0x28c   : > { %11669 = vst [vmem:[#allocation31_spill] sm:$0xff] %v9109_v3  ;;  %7413 = vtanh.f32 %v9109_v3  ;;  %11675 = vst [vmem:[#allocation32_spill] sm:$0xff] %v11674_v11 }
 0x28d   : > { %v9126_v7 = vadd.f32 %v1815_v43, %v1813_v33  ;;  %7415 = vrcp.f32 %v1807_v63 }
 0x28f   : > { %11676 = vst [vmem:[#allocation33_spill] sm:$0xff] %v9126_v7  ;;  %7417 = vtanh.f32 %v9126_v7 }
 0x294   : > { %v1916_v29 = vpop.f32.mrb[12].mxu0  ;;  %v1959_v14 = vpop.f32.mrb[12].mxu1 }
 0x295   : > { %v1989_v54 = vadd.f32 %v1972_v46, %v1916_v29  ;;  %v1918_v59 = vpop.f32.mrb[13].mxu0  ;;  %v1961_v44 = vpop.f32.mrb[13].mxu1  ;;  %v1991_v53 = vadd.f32 %v1980_v41, %v1959_v14 }
 0x296   : > { %v1920_v43 = vpop.f32.mrb[14].mxu0  ;;  %v1963_v24 = vpop.f32.mrb[14].mxu1  ;;  %v1990_v16 = vadd.f32 %v1976_v49, %v1918_v59  ;;  %v1992_v7 = vadd.f32 %v1984_v22, %v1961_v44  ;;  %v9140_v59 = vld [vmem:[#allocation3] sm:$0xff]  ;;  %v9142_v44 = vld [vmem:[#allocation3 + $0x10] sm:$0xff] }
 0x297   : > { %v7414_v63 = vpop.eup %7413  ;;  %v7015_v62 = vmul.f32 -1.442695, %v1989_v54  ;;  %v1922_v10 = vpop.f32.mrb[15].mxu0  ;;  %v1993_v8 = vadd.f32 %v1972_v46, %v1920_v43  ;;  %11677 = vst [vmem:[#allocation52_spill] sm:$0xff] %v9140_v59  ;;  %11678 = vst [vmem:[#allocation53_spill] sm:$0xff] %v9142_v44  ;;  %v9167_v43 = vadd.f32 %v1980_v41, %v1963_v24 }
 0x298   : > { %v1965_v33 = vpop.f32.mrb[15].mxu1  ;;  %v1820_v23 = vmul.f32 %v7414_v63, %v7412_v2  ;;  %v7416_v3 = vpop.eup %7415  ;;  %v7017_v5 = vmul.f32 -1.442695, %v1990_v16  ;;  %v1994_v17 = vadd.f32 %v1976_v49, %v1922_v10  ;;  %v7019_v57 = vmul.f32 -1.442695, %v1992_v7  ;;  %v9144_v16 = vld [vmem:[#allocation3 + $0x28] sm:$0xff] }
 0x299   : > { %7419 = vpow2.f32 %v7015_v62  ;;  %v7418_v29 = vpop.eup %7417  ;;  %v7016_v54 = vmul.f32 -1.442695, %v1993_v8  ;;  %11679 = vst [vmem:[#allocation54_spill] sm:$0xff] %v9144_v16  ;;  %v11680_v7 = vld [vmem:[#allocation34_spill] sm:$0xff]  ;;  %v9172_v62 = vld [vmem:[#allocation3 + $0x48] sm:$0xff]  ;;  %v9174_v10 = vld [vmem:[#allocation3 + $0x58] sm:$0xff] }
 0x29a   : > { %v1821_v40 = vmul.f32 %v7418_v29, %v7416_v3  ;;  %v1835_v55 = vsel %vm9105_vm3, %v1820_v23, 0.0  ;;  %7421 = vtanh.f32 %v1991_v53  ;;  %v7018_v46 = vmul.f32 -1.442695, %v1994_v17  ;;  %11684 = vst [vmem:[#allocation58_spill] sm:$0xff] %v9172_v62  ;;  %11685 = vst [vmem:[#allocation59_spill] sm:$0xff] %v9174_v10 }
 0x29b   : > { %7423 = vpow2.f32 %v7017_v5  ;;  %v1996_v3 = vadd.f32 %v1984_v22, %v1965_v33 }
 0x29c   : > { %v1836_v21 = vsel %vm9121_vm4, %v1821_v40, 0.0  ;;  %7425 = vpow2.f32 %v7019_v57  ;;  %v7848_v53 = vpack.c.bf16 %v1821_v40, %v1820_v23  ;;  %v9161_v40 = vld [vmem:[#allocation3 + $0x20] sm:$0xff]  ;;  %v9163_v23 = vld [vmem:[#allocation3 + $0x30] sm:$0xff] }
 0x29d   : > { %v2066_v18 = vpack.c.bf16 %v1836_v21, %v1835_v55  ;;  %v7021_v2 = vpack.c.bf16 %v1836_v21, %v1836_v21  ;;  %v9152_v55 = vld [vmem:[#allocation3 + $0x38] sm:$0xff]  ;;  %7427 = vpow2.f32 %v7016_v54  ;;  %11682 = vst [vmem:[#allocation56_spill] sm:$0xff] %v9161_v40  ;;  %11683 = vst [vmem:[#allocation57_spill] sm:$0xff] %v9163_v23  ;;  %v9169_v63 = vmul.f32 -1.442695, %v1996_v3 }
 0x29e   : > { %7849 = vmatmul.mubr.msk.bf16.vlgmr.msra.gmra.mrb[16].mxu0 %vm7847_vm5, %v7848_v53  ;;  %7852 = vmatmul.mubr.msk.bf16.vlgmr.msra.gmra.mrb[16].mxu1 %vm7847_vm5, %v7848_v53  ;;  %11681 = vst [vmem:[#allocation55_spill] sm:$0xff] %v9152_v55  ;;  %7429 = vpow2.f32 %v7018_v46 }
 0x29f   : > { %v2075_v14 = vrot.slane %v2066_v18, %v11680_v7  ;;  %v2082_v49 = vrot.slane %v7021_v2, %v11680_v7  ;;  %2603 = vmatpush1.bf16.msra.mxu0 %v9140_v59  ;;  %2646 = vmatpush1.bf16.msra.mxu1 %v9142_v44 }
 0x2a0   : > { %2604 = vmatprep.subr.bf16.mxu0 %v9144_v16  ;;  %2647 = vmatprep.subr.bf16.mxu1 %v9152_v55 }
 0x2a1   : > { %v2083_v18 = vcombine.high %v2075_v14, %v2075_v14  ;;  %v2084_v8 = vcombine.high %v2082_v49, %v2082_v49  ;;  %v2091_v57 = vrot.slane %v2075_v14, %v11680_v7  ;;  %v9158_v17 = vrot.slane %v2082_v49, %v11680_v7  ;;  %2634 = vmatprep.mubr.bf16.mxu0 %v11613_v50 }
 0x2a2   : > { %2677 = vmatprep.mubr.bf16.mxu1 %v11613_v50 }
 0x2a3   : > { %v7420_v5 = vpop.eup %7419  ;;  %v2105_v33 = vrot.slane %v2083_v18, %v11680_v7  ;;  %v9179_v29 = vrot.slane %v2084_v8, %v11680_v7  ;;  %v2113_v21 = vcombine.high %v2091_v57, %v2091_v57  ;;  %v9183_v24 = vcombine.high %v9158_v17, %v9158_v17  ;;  %2605 = vmatpush1.bf16.msra.mxu0 %v9161_v40 }
 0x2a4   : > { %v9165_v22 = vadd.f32 1.0, %v7420_v5  ;;  %v2118_v41 = vunpack.i.h.s16 %v2091_v57  ;;  %v2126_v54 = vunpack.i.h.s16 %v9158_v17  ;;  %v7022_v2 = vpack.i.b16 %v2091_v57, %v2091_v57  ;;  %2648 = vmatpush1.bf16.msra.mxu1 %v9163_v23  ;;  %2606 = vmatprep.subr.bf16.mxu0 %v9172_v62  ;;  %v9197_v5 = vld [vmem:[#allocation3 + $0x40] sm:$0xff]  ;;  %v9203_v23 = vld [vmem:[#allocation3 + $0x50] sm:$0xff]  ;;  %v9205_v40 = vpop.eup %7421 }
 0x2a5   : > { %v7026_v46 = vpack.i.b16 %v9158_v17, %v9158_v17  ;;  %v2115_v3 = vcombine.high %v2105_v33, %v2105_v33  ;;  %v9193_v14 = vcombine.high %v9179_v29, %v9179_v29  ;;  %v2120_v49 = vunpack.i.h.s16 %v2105_v33  ;;  %2649 = vmatprep.subr.bf16.mxu1 %v9174_v10  ;;  %11686 = vst [vmem:[#allocation60_spill] sm:$0xff] %v9197_v5  ;;  %v9210_v10 = vld [vmem:[#allocation3 + $0x68] sm:$0xff]  ;;  %v9212_v59 = vpop.eup %7423 }
 0x2a6   : > { %v2122_v53 = vunpack.i.h.s16 %v2113_v21  ;;  %v2128_v18 = vunpack.i.h.s16 %v9179_v29  ;;  %v2130_v8 = vunpack.i.h.s16 %v9183_v24  ;;  %v9201_v57 = vpack.i.b16 %v2118_v41, %v2118_v41  ;;  %11687 = vst [vmem:[#allocation61_spill] sm:$0xff] %v9203_v23  ;;  %11688 = vst [vmem:[#allocation62_spill] sm:$0xff] %v9210_v10  ;;  %v9223_v35 = vpop.eup %7425 }
 0x2a7   : > { %v7023_v17 = vpack.i.b16 %v2105_v33, %v2105_v33  ;;  %v2124_v55 = vunpack.i.h.s16 %v2115_v3  ;;  %v2132_v16 = vunpack.i.h.s16 %v9193_v14  ;;  %v9208_v44 = vpack.i.b16 %v2120_v49, %v2120_v49  ;;  %2607 = vmatpush1.bf16.msra.mxu0 %v9197_v5 }
 0x2a8   : > { %v7024_v62 = vpack.i.b16 %v2113_v21, %v2113_v21  ;;  %v9214_v7 = vpack.i.b16 %v2122_v53, %v2122_v53  ;;  %v7025_v11 = vpack.i.b16 %v2115_v3, %v2115_v3  ;;  %v9216_v41 = vpack.i.b16 %v2126_v54, %v2126_v54  ;;  %2650 = vmatpush1.bf16.msra.mxu1 %v9203_v23  ;;  %v9236_v54 = vpop.eup %7427 }
 0x2a9   : > { %v7027_v33 = vpack.i.b16 %v9179_v29, %v9179_v29  ;;  %v9225_v49 = vpack.i.b16 %v2124_v55, %v2124_v55  ;;  %v9227_v21 = vpack.i.b16 %v2128_v18, %v2128_v18  ;;  %v7028_v53 = vpack.i.b16 %v9183_v24, %v9183_v24  ;;  %v9234_v29 = vld [vmem:[#allocation3 + $0x60] sm:$0xff]  ;;  %2608 = vmatprep.subr.bf16.mxu0 %v9210_v10 }
 0x2aa   : > { %v9231_v3 = vpack.i.b16 %v2130_v8, %v2130_v8  ;;  %11690 = vst [vmem:[#allocation64_spill] sm:$0xff] %v9234_v29  ;;  %v7029_v5 = vpack.i.b16 %v9193_v14, %v9193_v14  ;;  %v9240_v55 = vpack.i.b16 %v2132_v16, %v2132_v16  ;;  %v2155_v18 = vrot.slane %v7022_v2, %v8737_v58  ;;  %v9246_v8 = vld [vmem:[#allocation3 + $0x70] sm:$0xff]  ;;  %v2282_v10 = vld [vmem:[%s8093_s27 + $0x4] sm:$0x1] }
 0x2ab   : > { %v2162_v24 = vrot.slane %v9201_v57, %v8737_v58  ;;  %11691 = vst [vmem:[#allocation65_spill] sm:$0xff] %v9246_v8  ;;  %v2169_v23 = vrot.slane %v7023_v17, %v8737_v58  ;;  %v2176_v38 = vrot.slane %v9208_v44, %v8737_v58  ;;  %v2183_v16 = vrot.slane %v7024_v62, %v8737_v58  ;;  %v2279_v57 = vld [vmem:[%s8093_s27] sm:$0x1]  ;;  %v9263_v17 = vld [vmem:[#allocation3 + $0x88] sm:$0xff]  ;;  %v9265_v44 = vpop.eup %7429 }
 0x2ac   : > { %v2190_v2 = vrot.slane %v9214_v7, %v8737_v58  ;;  %2651 = vmatprep.subr.bf16.mxu1 %v9221_v48  ;;  %v2197_v62 = vrot.slane %v7025_v11, %v8737_v58  ;;  %v2204_v7 = vrot.slane %v9225_v49, %v8737_v58  ;;  %v2211_v20 = vrot.slane %v7026_v46, %v8737_v58  ;;  %v2294_v48 = vld [vmem:[%s8093_s27 + $0x14] sm:$0x1] }
 0x2ad   : > { %v2218_v19 = vrot.slane %v9216_v41, %v8737_v58  ;;  %2609 = vmatpush1.bf16.msra.mxu0 %v9234_v29  ;;  %v2225_v11 = vrot.slane %v7027_v33, %v8737_v58  ;;  %v2232_v49 = vrot.slane %v9227_v21, %v8737_v58  ;;  %v2239_v46 = vrot.slane %v7028_v53, %v8737_v58  ;;  %v9289_v29 = vld [vmem:[#allocation3 + $0x80] sm:$0xff] }
 0x2ae   : > { %v2246_v41 = vrot.slane %v9231_v3, %v8737_v58  ;;  %2652 = vmatpush1.bf16.msra.mxu1 %v9246_v8  ;;  %v2253_v9 = vrot.slane %v7029_v5, %v8737_v58  ;;  %v2260_v33 = vrot.slane %v9240_v55, %v8737_v58  ;;  %v2280_v21 = vsel %vm9256_vm10, %v2155_v18, %v2279_v57  ;;  %v2303_v3 = vld [vmem:[%s8093_s27 + $0x20] sm:$0x1]  ;;  %v9301_v8 = vld [vmem:[#allocation3 + $0x90] sm:$0xff]  ;;  %v9315_v57 = vld [vmem:[#allocation3 + $0xa8] sm:$0xff] }
 0x2af   : > { %v2283_v53 = vsel %vm9256_vm10, %v2162_v24, %v2282_v10  ;;  %2610 = vmatprep.subr.bf16.mxu0 %v9263_v17  ;;  %2281 = vst [vmem:[%s8093_s27] sm:$0x1] %v2280_v21  ;;  %v2286_v5 = vsel %vm9256_vm10, %v2169_v23, %v2285_v26  ;;  %v2289_v55 = vsel %vm9256_vm10, %v2176_v38, %v2288_v61  ;;  %v2309_v24 = vld [vmem:[%s8093_s27 + $0x28] sm:$0x1]  ;;  %v9317_v26 = vld [vmem:[#allocation3 + $0xb8] sm:$0xff]  ;;  %v2312_v23 = vld [vmem:[%s8093_s27 + $0x2c] sm:$0x1]  ;;  %7431 = vrcp.f32 %v9165_v22 }
 0x2b0   : > { %2284 = vst [vmem:[%s8093_s27 + $0x4] sm:$0x1] %v2283_v53  ;;  %v2292_v10 = vsel %vm9256_vm10, %v2183_v16, %v2291_v39  ;;  %v2295_v18 = vsel %vm9256_vm10, %v2190_v2, %v2294_v48  ;;  %2653 = vmatprep.subr.bf16.mxu1 %v9278_v27  ;;  %2287 = vst [vmem:[%s8093_s27 + $0x8] sm:$0x1] %v2286_v5  ;;  %v2298_v39 = vsel %vm9256_vm10, %v2197_v62, %v2297_v15  ;;  %v2315_v16 = vld [vmem:[%s8093_s27 + $0x30] sm:$0x1] }
 0x2b1   : > { %2290 = vst [vmem:[%s8093_s27 + $0xc] sm:$0x1] %v2289_v55  ;;  %2293 = vst [vmem:[%s8093_s27 + $0x10] sm:$0x1] %v2292_v10  ;;  %v2301_v61 = vsel %vm9256_vm10, %v2204_v7, %v2300_v13  ;;  %v2304_v38 = vsel %vm9256_vm10, %v2211_v20, %v2303_v3  ;;  %v2307_v48 = vsel %vm9256_vm10, %v2218_v19, %v2306_v37  ;;  %v2318_v2 = vld [vmem:[%s8093_s27 + $0x34] sm:$0x1]  ;;  %2611 = vmatpush1.bf16.msra.mxu0 %v9289_v29 }
 0x2b2   : > { %2296 = vst [vmem:[%s8093_s27 + $0x14] sm:$0x1] %v2295_v18  ;;  %2299 = vst [vmem:[%s8093_s27 + $0x18] sm:$0x1] %v2298_v39  ;;  %v2310_v13 = vsel %vm9256_vm10, %v2225_v11, %v2309_v24  ;;  %v2313_v15 = vsel %vm9256_vm10, %v2232_v49, %v2312_v23  ;;  %v2316_v37 = vsel %vm9256_vm10, %v2239_v46, %v2315_v16  ;;  %v2321_v20 = vld [vmem:[%s8093_s27 + $0x38] sm:$0x1]  ;;  %2654 = vmatpush1.bf16.msra.mxu1 %v9301_v8 }
 0x2b3   : > { %2302 = vst [vmem:[%s8093_s27 + $0x1c] sm:$0x1] %v2301_v61  ;;  %2305 = vst [vmem:[%s8093_s27 + $0x20] sm:$0x1] %v2304_v38  ;;  %v2319_v19 = vsel %vm9256_vm10, %v2246_v41, %v2318_v2  ;;  %v2324_v62 = vld [vmem:[%s8093_s27 + $0x3c] sm:$0x1]  ;;  %v2322_v11 = vsel %vm9256_vm10, %v2253_v9, %v2321_v20  ;;  %2612 = vmatprep.subr.bf16.mxu0 %v9315_v57  ;;  %2655 = vmatprep.subr.bf16.mxu1 %v9317_v26  ;;  %7433 = vpow2.f32 %v9169_v63 }
 0x2b4   : > { %2308 = vst [vmem:[%s8093_s27 + $0x24] sm:$0x1] %v2307_v48  ;;  %v9350_v7 = vld [vmem:[#allocation3 + $0xa0] sm:$0xff]  ;;  %2311 = vst [vmem:[%s8093_s27 + $0x28] sm:$0x1] %v2310_v13  ;;  %v2325_v49 = vsel %vm9256_vm10, %v2260_v33, %v2324_v62  ;;  %v2015_v46 = vadd.f32 1.0, %v9212_v59  ;;  %v2045_v33 = vstv %s1619_s18  ;;  %v2049_v53 = vstv %s2048_s9 }
 0x2b5   : > { %2314 = vst [vmem:[%s8093_s27 + $0x2c] sm:$0x1] %v2313_v15  ;;  %2317 = vst [vmem:[%s8093_s27 + $0x30] sm:$0x1] %v2316_v37  ;;  %v9364_v41 = vld [vmem:[#allocation3 + $0xb0] sm:$0xff]  ;;  %v9366_v21 = vld [vmem:[#allocation3 + $0xc8] sm:$0xff]  ;;  %2613 = vmatpush1.bf16.msra.mxu0 %v9350_v7  ;;  %vm2046_vm7 = vcmp.ge.s32.totalorder %v8670_v52, %v2045_v33  ;;  %vm2050_vm11 = vcmp.lt.s32.totalorder %v8670_v52, %v2049_v53  ;;  %vm2047_vm13 = vcmp.ge.s32.totalorder %v8695_v1, %v2045_v33 }
 0x2b6   : > { %2320 = vst [vmem:[%s8093_s27 + $0x34] sm:$0x1] %v2319_v19  ;;  %2323 = vst [vmem:[%s8093_s27 + $0x38] sm:$0x1] %v2322_v11  ;;  %v2004_v9 = vadd.f32 1.0, %v9236_v54  ;;  %v2016_v14 = vadd.f32 1.0, %v9265_v44  ;;  %7435 = vrcp.f32 %v2015_v46  ;;  %2656 = vmatpush1.bf16.msra.mxu1 %v9364_v41  ;;  %2614 = vmatprep.subr.bf16.mxu0 %v9366_v21  ;;  %vm2051_vm0 = vcmp.lt.s32.totalorder %v8695_v1, %v2049_v53 }
 0x2b7   : > { %2326 = vst [vmem:[%s8093_s27 + $0x3c] sm:$0x1] %v2325_v49  ;;  %v9373_v22 = vld [vmem:[#allocation3 + $0xd8] sm:$0xff]  ;;  %7437 = vtanh.f32 %v9167_v43  ;;  %v9379_v59 = vld [vmem:[#allocation3 + $0xc0] sm:$0xff]  ;;  %v9382_v54 = vld [vmem:[#allocation3 + $0xd0] sm:$0xff]  ;;  %v2029_v24 = vadd.f32 1.0, %v9223_v35 }
 0x2b8   : > { %7439 = vrcp.f32 %v2004_v9  ;;  %2657 = vmatprep.subr.bf16.mxu1 %v9373_v22  ;;  %v9384_v44 = vld [vmem:[#allocation3 + $0xe8] sm:$0xff]  ;;  %v9388_v63 = vld [vmem:[#allocation3 + $0xf8] sm:$0xff]  ;;  %v9393_v43 = vld [vmem:[#allocation3 + $0xe0] sm:$0xff]  ;;  %v11696_v61 = vsel %vm8938_vm14, %v8956_v30, 0.0  ;;  %v11697_v48 = vmov 0  ;;  %v11702_v2 = vmov 0 }
 0x2b9   : > { %7441 = vrcp.f32 %v2016_v14  ;;  %2615 = vmatpush1.bf16.msra.mxu0 %v9379_v59  ;;  %11694 = vst [vmem:[#allocation66_spill] sm:$0xff] %v9393_v43  ;;  %v9396_v3 = vld [vmem:[#allocation3 + $0xf0] sm:$0xff]  ;;  %v7432_v5 = vpop.eup %7431  ;;  %vm9410_vm12 = vmand %vm2046_vm7, %vm2050_vm11  ;;  %v11718_v33 = vld [vmem:[#allocation43_spill] sm:$0xff]  ;;  %vm2998_vm10 = vsmask.f32 1280  ;;  %s4501_s18 = ssub.s32 10, %s8690_s25 }
 0x2ba   : > { %2658 = vmatpush1.bf16.msra.mxu1 %v9382_v54  ;;  %2616 = vmatprep.subr.bf16.mxu0 %v9384_v44  ;;  %11695 = vst [vmem:[#allocation67_spill] sm:$0xff] %v9396_v3  ;;  %v2037_v10 = vmul.f32 %v7432_v5, %v9205_v40  ;;  %v11698_v48 = vsel %vm9410_vm12, 4294967295, %v11697_v48  ;;  %7443 = vrcp.f32 %v2029_v24  ;;  %vm9426_vm14 = vmand %vm2047_vm13, %vm2051_vm0  ;;  %v11717_v14 = vld [vmem:[#allocation42_spill] sm:$0xff]  ;;  %v11719_v53 = vld [vmem:[#allocation44_spill] sm:$0xff]  ;;  %s4930_s9 = ssub.s32 26, %s8690_s25 }
 0x2bb   : > { %2659 = vmatprep.subr.bf16.mxu1 %v9388_v63  ;;  %11699 = vst [vmem:[#allocation68_spill] sm:$0xff] %v11698_v48  ;;  %v11703_v2 = vsel %vm9426_vm14, 4294967295, %v11702_v2  ;;  %vm7853_vm15 = vmpackc.low %vm9426_vm14, %vm9410_vm12  ;;  %v11720_v5 = vld [vmem:[#allocation45_spill] sm:$0xff] }
 0x2bc   : > { %11704 = vst [vmem:[#allocation70_spill] sm:$0xff] %v11703_v2  ;;  %v11724_v24 = vld [vmem:[#allocation49_spill] sm:$0xff]  ;;  %vm9592_vm7 = vmand %vm2997_vm9, %vm2998_vm10  ;;  %v3021_v2 = vld [vmem:[%s8093_s27 + $0x1c] sm:$0x2] }
 0x2bd   : > { %2617 = vmatpush1.bf16.msra.mxu0 %v9393_v43  ;;  %v7434_v55 = vpop.eup %7433  ;;  %v3030_v48 = vld [vmem:[%s8093_s27 + $0x28] sm:$0x2]  ;;  %v3039_v43 = vld [vmem:[%s8093_s27 + $0x34] sm:$0x2] }
 0x2be   : > { %2660 = vmatpush1.bf16.msra.mxu1 %v9396_v3  ;;  %3100 = vmatprep.subr.bf16.mxu0 %v8990_v45  ;;  %v3036_v3 = vld [vmem:[%s8093_s27 + $0x30] sm:$0x2] }
 0x2bf   : > { %3143 = vmatprep.subr.bf16.mxu1 %v8992_v47  ;;  %v2030_v47 = vadd.f32 1.0, %v7434_v55  ;;  %v11721_v55 = vld [vmem:[#allocation46_spill] sm:$0xff] }
 0x2c0   : > { %v7436_v18 = vpop.eup %7435 }
 0x2c1   : > { %v7438_v39 = vpop.eup %7437  ;;  %v2035_v38 = vmul.f32 %v7436_v18, %v11696_v61  ;;  %v11723_v18 = vld [vmem:[#allocation48_spill] sm:$0xff]  ;;  %v11726_v61 = vld [vmem:[#allocation51_spill] sm:$0xff] }
 0x2c2   : > { %v7440_v40 = vpop.eup %7439 }
 0x2c3   : > { %v7442_v45 = vpop.eup %7441  ;;  %v9416_v23 = vadd.f32 %v2037_v10, %v2035_v38  ;;  %v2038_v35 = vmul.f32 %v7440_v40, %v7438_v39  ;;  %v11722_v10 = vld [vmem:[#allocation47_spill] sm:$0xff]  ;;  %v11725_v39 = vld [vmem:[#allocation50_spill] sm:$0xff]  ;;  %v11727_v40 = vld [vmem:[#allocation25_spill] sm:$0xff] }
 0x2c4   : > { %v2036_v30 = vmul.f32 %v7442_v45, %v11701_v56  ;;  %v7444_v25 = vpop.eup %7443  ;;  %v7034_v38 = vld [vmem:[%s8081_s6 + $0x2] ss:$8 sm:$0xf] }
 0x2c5   : > { %11700 = vst [vmem:[#allocation69_spill] sm:$0xff] %v9416_v23  ;;  %7445 = vtanh.f32 %v9416_v23  ;;  %v2469_v45 = vrot.slane %v7034_v38, %v11727_v40 }
 0x2c6   : > { %v9430_v13 = vadd.f32 %v2038_v35, %v2036_v30  ;;  %7447 = vrcp.f32 %v2030_v47  ;;  %v11728_v35 = vld [vmem:[#allocation26_spill] sm:$0xff] }
 0x2c7   : > { %v2473_v47 = vrot.slane %v7034_v38, %v11728_v35 }
 0x2c8   : > { %11705 = vst [vmem:[#allocation71_spill] sm:$0xff] %v9430_v13  ;;  %7449 = vtanh.f32 %v9430_v13 }
 0x2cf   : > { %v7446_v15 = vpop.eup %7445 }
 0x2d0   : > { %v2043_v37 = vmul.f32 %v7446_v15, %v7444_v25  ;;  %v7448_v19 = vpop.eup %7447 }
 0x2d2   : > { %v7450_v20 = vpop.eup %7449  ;;  %v2058_v11 = vsel %vm9410_vm12, %v2043_v37, 0.0 }
 0x2d3   : > { %v2044_v62 = vmul.f32 %v7450_v20, %v7448_v19 }
 0x2d5   : > { %v2059_v49 = vsel %vm9426_vm14, %v2044_v62, 0.0  ;;  %v7854_v9 = vpack.c.bf16 %v2044_v62, %v2043_v37 }
 0x2d6   : > { %v7224_v46 = vpack.c.bf16 %v2059_v49, %v2058_v11 }
 0x2d7   : > { %7855 = vmatmul.mubr.msk.bf16.vlgmr.msra.gmra.mrb[20].mxu0 %vm7853_vm15, %v7854_v9  ;;  %7858 = vmatmul.mubr.msk.bf16.vlgmr.msra.gmra.mrb[20].mxu1 %vm7853_vm15, %v7854_v9 }
 0x2d8   : > { %7257 = vst [vmem:[%s8091_s28 + $0x30] sm:$0xff] %v7224_v46   ;;  %3101 = vmatpush1.bf16.msra.mxu0 %v8996_v60  ;;  %3144 = vmatpush1.bf16.msra.mxu1 %v8998_v34  ;;  %v11706_v60 = vld [vmem:[#allocation20_spill] sm:$0xff]  ;;  %v11707_v34 = vld [vmem:[#allocation22_spill] sm:$0xff] }
 0x2d9   : > { %3102 = vmatprep.subr.bf16.mxu0 %v9002_v31  ;;  %3145 = vmatprep.subr.bf16.mxu1 %v9004_v0  ;;  %v11708_v31 = vld [vmem:[#allocation21_spill] sm:$0xff]  ;;  %v11709_v0 = vld [vmem:[#allocation23_spill] sm:$0xff] }
 0x2da   : > { %3132 = vmatprep.mubr.bf16.mxu0 %v11613_v50  ;;  %3175 = vmatprep.mubr.bf16.mxu1 %v11613_v50 }
 0x2dc   : > { %3103 = vmatpush1.bf16.msra.mxu0 %v9008_v4  ;;  %3146 = vmatpush1.bf16.msra.mxu1 %v9010_v32  ;;  %v11710_v4 = vld [vmem:[#allocation35_spill] sm:$0xff]  ;;  %v11711_v32 = vld [vmem:[#allocation36_spill] sm:$0xff] }
 0x2dd   : > { %3104 = vmatprep.subr.bf16.mxu0 %v9014_v36  ;;  %3147 = vmatprep.subr.bf16.mxu1 %v9016_v51  ;;  %v11712_v36 = vld [vmem:[#allocation37_spill] sm:$0xff]  ;;  %v11713_v51 = vld [vmem:[#allocation38_spill] sm:$0xff] }
 0x2e0   : > { %3105 = vmatpush1.bf16.msra.mxu0 %v9020_v28  ;;  %3148 = vmatpush1.bf16.msra.mxu1 %v9022_v6  ;;  %v11714_v28 = vld [vmem:[#allocation39_spill] sm:$0xff]  ;;  %v11715_v6 = vld [vmem:[#allocation40_spill] sm:$0xff] }
 0x2e1   : > { %3106 = vmatprep.subr.bf16.mxu0 %v9026_v12  ;;  %3149 = vmatprep.subr.bf16.mxu1 %v11706_v60  ;;  %v11716_v12 = vld [vmem:[#allocation41_spill] sm:$0xff] }
 0x2e4   : > { %3107 = vmatpush1.bf16.msra.mxu0 %v11707_v34  ;;  %3150 = vmatpush1.bf16.msra.mxu1 %v11708_v31  ;;  %v11729_v34 = vld [vmem:[#allocation27_spill] sm:$0xff] }
 0x2e5   : > { %3108 = vmatprep.subr.bf16.mxu0 %v11709_v0  ;;  %3151 = vmatprep.subr.bf16.mxu1 %v11710_v4  ;;  %v2481_v31 = vrot.slane %v7034_v38, %v11729_v34 }
 0x2e8   : > { %3109 = vmatpush1.bf16.msra.mxu0 %v11711_v32  ;;  %3152 = vmatpush1.bf16.msra.mxu1 %v11712_v36  ;;  %v11730_v36 = vld [vmem:[#allocation28_spill] sm:$0xff] }
 0x2e9   : > { %3110 = vmatprep.subr.bf16.mxu0 %v11713_v51  ;;  %3153 = vmatprep.subr.bf16.mxu1 %v11714_v28  ;;  %v2477_v51 = vrot.slane %v7034_v38, %v11730_v36 }
 0x2ec   : > { %3111 = vmatpush1.bf16.msra.mxu0 %v11715_v6  ;;  %3154 = vmatpush1.bf16.msra.mxu1 %v11716_v12 }
 0x2ed   : > { %3112 = vmatprep.subr.bf16.mxu0 %v11717_v14  ;;  %3155 = vmatprep.subr.bf16.mxu1 %v11718_v33 }
 0x2f0   : > { %3113 = vmatpush1.bf16.msra.mxu0 %v11719_v53  ;;  %3156 = vmatpush1.bf16.msra.mxu1 %v11720_v5 }
 0x2f1   : > { %3114 = vmatprep.subr.bf16.mxu0 %v11721_v55  ;;  %3157 = vmatprep.subr.bf16.mxu1 %v11722_v10 }
 0x2f4   : > { %3115 = vmatpush1.bf16.msra.mxu0 %v11723_v18  ;;  %3158 = vmatpush1.bf16.msra.mxu1 %v11724_v24 }
 0x2f5   : > { %3323 = vmatprep.subr.bf16.mxu0 %v11725_v39  ;;  %3366 = vmatprep.subr.bf16.mxu1 %v11726_v61 }
 0x371   : > { %v2413_v56 = vpop.f32.mrb[16].mxu0  ;;  %v2456_v30 = vpop.f32.mrb[16].mxu1 }
 0x372   : > { %v2486_v25 = vadd.f32 %v2469_v45, %v2413_v56  ;;  %v2415_v15 = vpop.f32.mrb[17].mxu0  ;;  %v2458_v37 = vpop.f32.mrb[17].mxu1  ;;  %v2488_v6 = vadd.f32 %v2477_v51, %v2456_v30  ;;  %v2546_v56 = vstv %s2545_s17  ;;  %s5427_s17 = sadd.s32 4294967286, %s8690_s25 }
 0x373   : > { %v2487_v19 = vadd.f32 %v2473_v47, %v2415_v15  ;;  %v2417_v20 = vpop.f32.mrb[18].mxu0  ;;  %v2460_v62 = vpop.f32.mrb[18].mxu1  ;;  %v2489_v28 = vadd.f32 %v2481_v31, %v2458_v37  ;;  %vm2547_vm2 = vcmp.gt.s32.totalorder %v8670_v52, %v2546_v56  ;;  %vm2548_vm5 = vcmp.gt.s32.totalorder %v8695_v1, %v2546_v56 }
 0x374   : > { %v7035_v11 = vmul.f32 -1.442695, %v2486_v25  ;;  %v2490_v49 = vadd.f32 %v2469_v45, %v2417_v20  ;;  %v2419_v46 = vpop.f32.mrb[19].mxu0  ;;  %v2462_v9 = vpop.f32.mrb[19].mxu1  ;;  %v2492_v33 = vadd.f32 %v2477_v51, %v2460_v62 }
 0x375   : > { %v7037_v60 = vmul.f32 -1.442695, %v2487_v19  ;;  %v2491_v0 = vadd.f32 %v2473_v47, %v2419_v46  ;;  %v7039_v12 = vmul.f32 -1.442695, %v2489_v28  ;;  %v2493_v14 = vadd.f32 %v2481_v31, %v2462_v9  ;;  %v11753_v28 = vld [vmem:[#allocation59_spill] sm:$0xff] }
 0x376   : > { %7451 = vpow2.f32 %v7035_v11  ;;  %v7036_v4 = vmul.f32 -1.442695, %v2490_v49  ;;  %v2542_v47 = vstv %s2338_s15  ;;  %v11732_v49 = vld [vmem:[#allocation31_spill] sm:$0xff]  ;;  %v11734_v31 = vmov 0  ;;  %s5220_s15 = sadd.s32 6, %s8690_s25 }
 0x377   : > { %7453 = vpow2.f32 %v7037_v60  ;;  %v7038_v32 = vmul.f32 -1.442695, %v2491_v0  ;;  %v7040_v10 = vmul.f32 -1.442695, %v2493_v14  ;;  %vm2543_vm1 = vcmp.le.s32.totalorder %v8670_v52, %v2542_v47  ;;  %v11761_v52 = vld [vmem:[#allocation65_spill] sm:$0xff] }
 0x378   : > { %7455 = vpow2.f32 %v7036_v4  ;;  %v11733_v46 = vsel %vm9105_vm3, %v11732_v49, 0.0  ;;  %vm9492_vm6 = vmand %vm2543_vm1, %vm2547_vm2  ;;  %vm2544_vm8 = vcmp.le.s32.totalorder %v8695_v1, %v2542_v47  ;;  %v11760_v1 = vld [vmem:[#allocation64_spill] sm:$0xff] }
 0x379   : > { %7457 = vpow2.f32 %v7038_v32  ;;  %v11735_v31 = vsel %vm9492_vm6, 4294967295, %v11734_v31  ;;  %vm9508_vm3 = vmand %vm2544_vm8, %vm2548_vm5 }
 0x37a   : > { %7459 = vtanh.f32 %v2488_v6  ;;  %11736 = vst [vmem:[#allocation20_spill] sm:$0xff] %v11735_v31 }
 0x37b   : > { %7461 = vpow2.f32 %v7039_v12  ;;  %v11739_v12 = vld [vmem:[#allocation33_spill] sm:$0xff] }
 0x37c   : > { %7463 = vtanh.f32 %v2492_v33  ;;  %v11740_v14 = vsel %vm9121_vm4, %v11739_v12, 0.0  ;;  %vm7859_vm4 = vmpackc.low %vm9508_vm3, %vm9492_vm6 }
 0x380   : > { %v7452_v53 = vpop.eup %7451 }
 0x381   : > { %v7454_v5 = vpop.eup %7453  ;;  %v2500_v55 = vadd.f32 1.0, %v7452_v53  ;;  %v11741_v53 = vmov 0 }
 0x382   : > { %v2512_v18 = vadd.f32 1.0, %v7454_v5  ;;  %v7456_v24 = vpop.eup %7455  ;;  %v11742_v53 = vsel %vm9508_vm3, 4294967295, %v11741_v53 }
 0x383   : > { %7465 = vrcp.f32 %v2500_v55  ;;  %v2501_v39 = vadd.f32 1.0, %v7456_v24  ;;  %v7458_v61 = vpop.eup %7457  ;;  %11743 = vst [vmem:[#allocation21_spill] sm:$0xff] %v11742_v53  ;;  %v11752_v55 = vld [vmem:[#allocation58_spill] sm:$0xff] }
 0x384   : > { %7467 = vrcp.f32 %v2512_v18  ;;  %v2513_v38 = vadd.f32 1.0, %v7458_v61  ;;  %v7460_v45 = vpop.eup %7459 }
 0x385   : > { %7469 = vpow2.f32 %v7040_v10  ;;  %v7462_v30 = vpop.eup %7461 }
 0x386   : > { %7471 = vrcp.f32 %v2501_v39  ;;  %v7464_v25 = vpop.eup %7463  ;;  %v2526_v20 = vadd.f32 1.0, %v7462_v30 }
 0x387   : > { %7473 = vrcp.f32 %v2513_v38 }
 0x388   : > { %7475 = vrcp.f32 %v2526_v20 }
 0x38d   : > { %v7466_v15 = vpop.eup %7465 }
 0x38e   : > { %v7468_v37 = vpop.eup %7467  ;;  %v2534_v19 = vmul.f32 %v7466_v15, %v7460_v45  ;;  %v9519_v45 = vld [vmem:[%s8086_s13 + $0x5] ss:$8 sm:$0xf] }
 0x38f   : > { %v7470_v62 = vpop.eup %7469  ;;  %v2532_v9 = vmul.f32 %v7468_v37, %v11733_v46  ;;  %v9527_v15 = vrot.slane %v9519_v45, %v11727_v40  ;;  %v9531_v37 = vrot.slane %v9519_v45, %v11728_v35 }
 0x390   : > { %v7472_v60 = vpop.eup %7471  ;;  %v2527_v51 = vadd.f32 1.0, %v7470_v62 }
 0x391   : > { %v9496_v0 = vadd.f32 %v2534_v19, %v2532_v9  ;;  %v2535_v4 = vmul.f32 %v7472_v60, %v7464_v25  ;;  %v7474_v32 = vpop.eup %7473  ;;  %v11745_v19 = vld [vmem:[#allocation34_spill] sm:$0xff]  ;;  %v11746_v9 = vld [vmem:[#allocation52_spill] sm:$0xff]  ;;  %v11747_v60 = vld [vmem:[#allocation53_spill] sm:$0xff] }
 0x392   : > { %v2533_v33 = vmul.f32 %v7474_v32, %v11740_v14  ;;  %v7476_v10 = vpop.eup %7475 }
 0x393   : > { %11737 = vst [vmem:[#allocation22_spill] sm:$0xff] %v9496_v0  ;;  %7477 = vtanh.f32 %v9496_v0 }
 0x394   : > { %v9512_v5 = vadd.f32 %v2535_v4, %v2533_v33  ;;  %7479 = vrcp.f32 %v2527_v51  ;;  %v11748_v33 = vld [vmem:[#allocation54_spill] sm:$0xff] }
 0x396   : > { %11744 = vst [vmem:[#allocation23_spill] sm:$0xff] %v9512_v5  ;;  %7481 = vtanh.f32 %v9512_v5 }
 0x39d   : > { %v7478_v18 = vpop.eup %7477 }
 0x39e   : > { %v2540_v24 = vmul.f32 %v7478_v18, %v7476_v10  ;;  %v7480_v39 = vpop.eup %7479 }
 0x3a0   : > { %v7482_v61 = vpop.eup %7481  ;;  %v2555_v47 = vsel %vm9492_vm6, %v2540_v24, 0.0 }
 0x3a1   : > { %v2541_v38 = vmul.f32 %v7482_v61, %v7480_v39  ;;  %v11749_v61 = vld [vmem:[#allocation55_spill] sm:$0xff] }
 0x3a3   : > { %v2556_v56 = vsel %vm9508_vm3, %v2541_v38, 0.0  ;;  %v7860_v11 = vpack.c.bf16 %v2541_v38, %v2540_v24 }
 0x3a4   : > { %v2786_v30 = vpack.c.bf16 %v2556_v56, %v2555_v47  ;;  %v7048_v25 = vpack.c.bf16 %v2556_v56, %v2556_v56 }
 0x3a5   : > { %7861 = vmatmul.mubr.msk.bf16.vlgmr.msra.gmra.mrb[24].mxu0 %vm7859_vm4, %v7860_v11  ;;  %7864 = vmatmul.mubr.msk.bf16.vlgmr.msra.gmra.mrb[24].mxu1 %vm7859_vm4, %v7860_v11 }
 0x3a6   : > { %v2795_v20 = vrot.slane %v2786_v30, %v11745_v19  ;;  %v2802_v62 = vrot.slane %v7048_v25, %v11745_v19  ;;  %3324 = vmatpush1.bf16.msra.mxu0 %v11746_v9  ;;  %3367 = vmatpush1.bf16.msra.mxu1 %v11747_v60  ;;  %v11750_v60 = vld [vmem:[#allocation56_spill] sm:$0xff] }
 0x3a7   : > { %3325 = vmatprep.subr.bf16.mxu0 %v11748_v33  ;;  %3368 = vmatprep.subr.bf16.mxu1 %v11749_v61 }
 0x3a8   : > { %v2803_v4 = vcombine.high %v2795_v20, %v2795_v20  ;;  %v2804_v32 = vcombine.high %v2802_v62, %v2802_v62  ;;  %v2811_v51 = vrot.slane %v2795_v20, %v11745_v19  ;;  %v9545_v6 = vrot.slane %v2802_v62, %v11745_v19  ;;  %3355 = vmatprep.mubr.bf16.mxu0 %v11613_v50 }
 0x3a9   : > { %3398 = vmatprep.mubr.bf16.mxu1 %v11613_v50  ;;  %v11755_v50 = vld [vmem:[#allocation61_spill] sm:$0xff] }
 0x3aa   : > { %v2636_v49 = vpop.f32.mrb[20].mxu0  ;;  %v9539_v46 = vpop.f32.mrb[20].mxu1  ;;  %v2825_v38 = vrot.slane %v2803_v4, %v11745_v19  ;;  %v2832_v47 = vrot.slane %v2804_v32, %v11745_v19  ;;  %v2833_v56 = vcombine.high %v2811_v51, %v2811_v51  ;;  %v2834_v30 = vcombine.high %v9545_v6, %v9545_v6  ;;  %3326 = vmatpush1.bf16.msra.mxu0 %v11750_v60  ;;  %v11751_v4 = vld [vmem:[#allocation57_spill] sm:$0xff] }
 0x3ab   : > { %v2638_v12 = vpop.f32.mrb[21].mxu0  ;;  %v9547_v14 = vpop.f32.mrb[21].mxu1  ;;  %v9551_v10 = vadd.f32 %v9527_v15, %v2636_v49  ;;  %v2838_v62 = vunpack.i.h.s16 %v2811_v51  ;;  %v2846_v11 = vunpack.i.h.s16 %v9545_v6  ;;  %v7049_v49 = vpack.i.b16 %v2811_v51, %v2811_v51  ;;  %3369 = vmatpush1.bf16.msra.mxu1 %v11751_v4  ;;  %3327 = vmatprep.subr.bf16.mxu0 %v11752_v55  ;;  %v11754_v55 = vld [vmem:[#allocation60_spill] sm:$0xff] }
 0x3ac   : > { %v9554_v18 = vadd.f32 %v9531_v37, %v2638_v12  ;;  %v9556_v24 = vpop.f32.mrb[22].mxu0  ;;  %v9558_v39 = vpop.f32.mrb[22].mxu1  ;;  %v7053_v9 = vpack.i.b16 %v9545_v6, %v9545_v6  ;;  %v2835_v32 = vcombine.high %v2825_v38, %v2825_v38  ;;  %v2836_v12 = vcombine.high %v2832_v47, %v2832_v47  ;;  %3370 = vmatprep.subr.bf16.mxu1 %v11753_v28 }
 0x3ad   : > { %v9565_v25 = vpop.f32.mrb[23].mxu0  ;;  %v9567_v20 = vpop.f32.mrb[23].mxu1  ;;  %v2840_v33 = vunpack.i.h.s16 %v2825_v38  ;;  %v2842_v61 = vunpack.i.h.s16 %v2833_v56  ;;  %v2848_v42 = vunpack.i.h.s16 %v2832_v47  ;;  %v2850_v16 = vunpack.i.h.s16 %v2834_v30 }
 0x3ae   : > { %v2854_v19 = vpack.i.b16 %v2838_v62, %v2838_v62  ;;  %v7050_v5 = vpack.i.b16 %v2825_v38, %v2825_v38  ;;  %v2844_v51 = vunpack.i.h.s16 %v2835_v32  ;;  %v2852_v6 = vunpack.i.h.s16 %v2836_v12  ;;  %3328 = vmatpush1.bf16.msra.mxu0 %v11754_v55  ;;  %v11759_v55 = vld [vmem:[#allocation63_spill] sm:$0xff] }
 0x3af   : > { %v2856_v53 = vpack.i.b16 %v2840_v33, %v2840_v33  ;;  %v7051_v60 = vpack.i.b16 %v2833_v56, %v2833_v56  ;;  %v2858_v4 = vpack.i.b16 %v2842_v61, %v2842_v61  ;;  %v7052_v0 = vpack.i.b16 %v2835_v32, %v2835_v32  ;;  %3371 = vmatpush1.bf16.msra.mxu1 %v11755_v50  ;;  %v11758_v32 = vld [vmem:[#allocation62_spill] sm:$0xff]  ;;  %v3006_v61 = vld [vmem:[%s8093_s27 + $0x8] sm:$0x2] }
 0x3b0   : > { %v9578_v31 = vpack.i.b16 %v2846_v11, %v2846_v11  ;;  %v7054_v35 = vpack.i.b16 %v2832_v47, %v2832_v47  ;;  %v2860_v28 = vpack.i.b16 %v2844_v51, %v2844_v51  ;;  %v9581_v40 = vpack.i.b16 %v2848_v42, %v2848_v42  ;;  %3329 = vmatprep.subr.bf16.mxu0 %v11758_v32  ;;  %v3009_v51 = vld [vmem:[%s8093_s27 + $0xc] sm:$0x2] }
 0x3b1   : > { %v7055_v38 = vpack.i.b16 %v2834_v30, %v2834_v30  ;;  %v9583_v62 = vpack.i.b16 %v2850_v16, %v2850_v16  ;;  %v7056_v56 = vpack.i.b16 %v2836_v12, %v2836_v12  ;;  %v9586_v33 = vpack.i.b16 %v2852_v6, %v2852_v6  ;;  %v3000_v30 = vld [vmem:[%s8093_s27] sm:$0x2]  ;;  %v3003_v16 = vld [vmem:[%s8093_s27 + $0x4] sm:$0x2]  ;;  %v3012_v6 = vld [vmem:[%s8093_s27 + $0x10] sm:$0x2]  ;;  %3372 = vmatprep.subr.bf16.mxu1 %v11759_v55 }
 0x3b2   : > { %v2875_v11 = vrot.slane %v7049_v49, %v8737_v58  ;;  %v2882_v47 = vrot.slane %v2854_v19, %v8737_v58  ;;  %v2889_v50 = vrot.slane %v7050_v5, %v8737_v58  ;;  %v2896_v12 = vrot.slane %v2856_v53, %v8737_v58  ;;  %3330 = vmatpush1.bf16.msra.mxu0 %v11760_v1  ;;  %v3027_v55 = vld [vmem:[%s8093_s27 + $0x24] sm:$0x2] }
 0x3b3   : > { %v2903_v49 = vrot.slane %v7051_v60, %v8737_v58  ;;  %v2910_v19 = vrot.slane %v2858_v4, %v8737_v58  ;;  %v2917_v13 = vrot.slane %v7052_v0, %v8737_v58  ;;  %v2924_v32 = vrot.slane %v2860_v28, %v8737_v58  ;;  %v3015_v60 = vld [vmem:[%s8093_s27 + $0x14] sm:$0x2]  ;;  %v3018_v4 = vld [vmem:[%s8093_s27 + $0x18] sm:$0x2]  ;;  %v3024_v28 = vld [vmem:[%s8093_s27 + $0x20] sm:$0x2]  ;;  %3373 = vmatpush1.bf16.msra.mxu1 %v11761_v52 }
 0x3b4   : > { %v2931_v5 = vrot.slane %v7053_v9, %v8737_v58  ;;  %v2938_v53 = vrot.slane %v9578_v31, %v8737_v58  ;;  %v2945_v23 = vrot.slane %v7054_v35, %v8737_v58  ;;  %v2952_v0 = vrot.slane %v9581_v40, %v8737_v58  ;;  %3331 = vmatprep.subr.bf16.mxu0 %v9263_v17  ;;  %v3045_v17 = vld [vmem:[%s8093_s27 + $0x3c] sm:$0x2] }
 0x3b5   : > { %v2959_v9 = vrot.slane %v7055_v38, %v8737_v58  ;;  %v2966_v31 = vrot.slane %v9583_v62, %v8737_v58  ;;  %v2973_v1 = vrot.slane %v7056_v56, %v8737_v58  ;;  %v2980_v35 = vrot.slane %v9586_v33, %v8737_v58  ;;  %v3033_v62 = vld [vmem:[%s8093_s27 + $0x2c] sm:$0x2]  ;;  %3374 = vmatprep.subr.bf16.mxu1 %v9278_v27 }
 0x3b6   : > { %v3001_v40 = vsel %vm9592_vm7, %v2875_v11, %v3000_v30  ;;  %v3004_v38 = vsel %vm9592_vm7, %v2882_v47, %v3003_v16  ;;  %v3007_v52 = vsel %vm9592_vm7, %v2889_v50, %v3006_v61  ;;  %v3010_v56 = vsel %vm9592_vm7, %v2896_v12, %v3009_v51  ;;  %v3042_v47 = vld [vmem:[%s8093_s27 + $0x38] sm:$0x2]  ;;  %3332 = vmatpush1.bf16.msra.mxu0 %v9289_v29 }
 0x3b7   : > { %3002 = vst [vmem:[%s8093_s27] sm:$0x2] %v3001_v40  ;;  %3005 = vst [vmem:[%s8093_s27 + $0x4] sm:$0x2] %v3004_v38  ;;  %v3013_v33 = vsel %vm9592_vm7, %v2903_v49, %v3012_v6  ;;  %v3016_v11 = vsel %vm9592_vm7, %v2910_v19, %v3015_v60  ;;  %v3019_v30 = vsel %vm9592_vm7, %v2917_v13, %v3018_v4  ;;  %3375 = vmatpush1.bf16.msra.mxu1 %v9301_v8  ;;  %v11770_v38 = vld [vmem:[#allocation29_spill] sm:$0xff] }
 0x3b8   : > { %3008 = vst [vmem:[%s8093_s27 + $0x8] sm:$0x2] %v3007_v52  ;;  %3011 = vst [vmem:[%s8093_s27 + $0xc] sm:$0x2] %v3010_v56  ;;  %v3022_v16 = vsel %vm9592_vm7, %v2924_v32, %v3021_v2  ;;  %v3025_v50 = vsel %vm9592_vm7, %v2931_v5, %v3024_v28  ;;  %v3028_v27 = vsel %vm9592_vm7, %v2938_v53, %v3027_v55  ;;  %3333 = vmatprep.subr.bf16.mxu0 %v9315_v57  ;;  %v11764_v32 = vld [vmem:[#allocation24_spill] sm:$0xff] }
 0x3b9   : > { %3014 = vst [vmem:[%s8093_s27 + $0x10] sm:$0x2] %v3013_v33  ;;  %3017 = vst [vmem:[%s8093_s27 + $0x14] sm:$0x2] %v3016_v11  ;;  %v3031_v13 = vsel %vm9592_vm7, %v2945_v23, %v3030_v48  ;;  %v3034_v2 = vsel %vm9592_vm7, %v2952_v0, %v3033_v62  ;;  %v3037_v12 = vsel %vm9592_vm7, %v2959_v9, %v3036_v3  ;;  %v7042_v23 = vmul.f32 -1.442695, %v9551_v10 }
 0x3ba   : > { %3020 = vst [vmem:[%s8093_s27 + $0x18] sm:$0x2] %v3019_v30  ;;  %3023 = vst [vmem:[%s8093_s27 + $0x1c] sm:$0x2] %v3022_v16  ;;  %v3040_v49 = vsel %vm9592_vm7, %v2966_v31, %v3039_v43  ;;  %v3043_v29 = vsel %vm9592_vm7, %v2973_v1, %v3042_v47  ;;  %v3046_v48 = vsel %vm9592_vm7, %v2980_v35, %v3045_v17  ;;  %3376 = vmatprep.subr.bf16.mxu1 %v9317_v26  ;;  %v11766_v9 = vld [vmem:[#allocation69_spill] sm:$0xff]  ;;  %v11772_v11 = vld [vmem:[#allocation71_spill] sm:$0xff] }
 0x3bb   : > { %3026 = vst [vmem:[%s8093_s27 + $0x20] sm:$0x2] %v3025_v50  ;;  %3029 = vst [vmem:[%s8093_s27 + $0x24] sm:$0x2] %v3028_v27  ;;  %v7044_v8 = vmul.f32 -1.442695, %v9554_v18  ;;  %v2704_v43 = vrot.slane %v9519_v45, %v11729_v34  ;;  %v2713_v3 = vadd.f32 %v9527_v15, %v9556_v24  ;;  %7483 = vpow2.f32 %v7042_v23  ;;  %3334 = vmatpush1.bf16.msra.mxu0 %v9350_v7 }
 0x3bc   : > { %3032 = vst [vmem:[%s8093_s27 + $0x28] sm:$0x2] %v3031_v13  ;;  %3035 = vst [vmem:[%s8093_s27 + $0x2c] sm:$0x2] %v3034_v2  ;;  %v2714_v42 = vadd.f32 %v9531_v37, %v9565_v25  ;;  %3377 = vmatpush1.bf16.msra.mxu1 %v9364_v41  ;;  %3335 = vmatprep.subr.bf16.mxu0 %v9366_v21  ;;  %v2700_v26 = vrot.slane %v9519_v45, %v11730_v36  ;;  %v11763_v37 = vld [vmem:[#allocation67_spill] sm:$0xff]  ;;  %v2769_v19 = vstv %s2768_s12  ;;  %v9847_v0 = vld [vmem:[#allocation2 + $0xe0] sm:$0xff] }
 0x3bd   : > { %3038 = vst [vmem:[%s8093_s27 + $0x30] sm:$0x2] %v3037_v12  ;;  %3041 = vst [vmem:[%s8093_s27 + $0x34] sm:$0x2] %v3040_v49  ;;  %7485 = vpow2.f32 %v7044_v8  ;;  %v7043_v57 = vmul.f32 -1.442695, %v2713_v3  ;;  %3378 = vmatprep.subr.bf16.mxu1 %v9373_v22  ;;  %v2712_v15 = vadd.f32 %v2704_v43, %v9547_v14  ;;  %v2716_v21 = vadd.f32 %v2704_v43, %v9567_v20 }
 0x3be   : > { %3044 = vst [vmem:[%s8093_s27 + $0x38] sm:$0x2] %v3043_v29  ;;  %3047 = vst [vmem:[%s8093_s27 + $0x3c] sm:$0x2] %v3046_v48  ;;  %v7045_v10 = vmul.f32 -1.442695, %v2714_v42  ;;  %v2711_v7 = vadd.f32 %v2700_v26, %v9539_v46  ;;  %v2715_v45 = vadd.f32 %v2700_v26, %v9558_v39  ;;  %v2765_v20 = vstv %s2339_s11 }
 0x3bf   : > { %7487 = vpow2.f32 %v7043_v57  ;;  %3336 = vmatpush1.bf16.msra.mxu0 %v9379_v59  ;;  %v7046_v41 = vmul.f32 -1.442695, %v2712_v15  ;;  %v11762_v22 = vld [vmem:[#allocation66_spill] sm:$0xff]  ;;  %vm2766_vm11 = vcmp.ge.s32.totalorder %v11764_v32, %v2765_v20  ;;  %vm2770_vm13 = vcmp.lt.s32.totalorder %v11764_v32, %v2769_v19  ;;  %v9757_v42 = vld [vmem:[#allocation2 + $0x8] sm:$0xff]  ;;  %v9759_v57 = vld [vmem:[#allocation2 + $0x18] sm:$0xff]  ;;  %11794 = vst [vmem:[#allocation27_spill] sm:$0xff] %v9847_v0 }
 0x3c0   : > { %7489 = vpow2.f32 %v7045_v10  ;;  %3379 = vmatpush1.bf16.msra.mxu1 %v9382_v54  ;;  %3337 = vmatprep.subr.bf16.mxu0 %v9384_v44  ;;  %v7047_v44 = vmul.f32 -1.442695, %v2716_v21  ;;  %v11767_v31 = vsel %vm9410_vm12, %v11766_v9, 0.0  ;;  %vm9720_vm0 = vmand %vm2766_vm11, %vm2770_vm13  ;;  %vm2767_vm15 = vcmp.ge.s32.totalorder %v11770_v38, %v2765_v20  ;;  %v9763_v26 = vld [vmem:[#allocation2] sm:$0xff]  ;;  %v9765_v10 = vld [vmem:[#allocation2 + $0x10] sm:$0xff]  ;;  %s5221_s11 = ssub.s32 9, %s8690_s25 }
 0x3c1   : > { %3380 = vmatprep.subr.bf16.mxu1 %v9388_v63  ;;  %7491 = vtanh.f32 %v2711_v7  ;;  %vm2771_vm1 = vcmp.lt.s32.totalorder %v11770_v38, %v2769_v19  ;;  %v11773_v47 = vsel %vm9426_vm14, %v11772_v11, 0.0  ;;  %v11776_v3 = vmov 0   ;;  %v9769_v15 = vld [vmem:[#allocation2 + $0x28] sm:$0xff]  ;;  %v9771_v7 = vld [vmem:[#allocation2 + $0x38] sm:$0xff]  ;;  %v9777_v21 = vld [vmem:[#allocation2 + $0x30] sm:$0xff]  ;;  %s5650_s12 = ssub.s32 25, %s8690_s25 }
 0x3c2   : > { %7493 = vpow2.f32 %v7046_v41  ;;  %vm9736_vm12 = vmand %vm2767_vm15, %vm2771_vm1  ;;  %v9775_v41 = vld [vmem:[#allocation2 + $0x20] sm:$0xff]  ;;  %v9819_v20 = vld [vmem:[#allocation2 + $0xb8] sm:$0xff]  ;;  %vm3718_vm7 = vsmask.f32 7942 }
 0x3c3   : > { %3338 = vmatpush1.bf16.msra.mxu0 %v11762_v22  ;;  %7495 = vtanh.f32 %v2715_v45  ;;  %vm7865_vm14 = vmpackc.low %vm9736_vm12, %vm9720_vm0  ;;  %v9781_v45 = vld [vmem:[#allocation2 + $0x48] sm:$0xff]  ;;  %v9783_v22 = vld [vmem:[#allocation2 + $0x58] sm:$0xff]  ;;  %11785 = vst [vmem:[#allocation43_spill] sm:$0xff] %v9819_v20 }
 0x3c4   : > { %3381 = vmatpush1.bf16.msra.mxu1 %v11763_v37  ;;  %3820 = vmatprep.subr.bf16.mxu0 %v9757_v42  ;;  %v9787_v37 = vld [vmem:[#allocation2 + $0x40] sm:$0xff]  ;;  %v9849_v9 = vld [vmem:[#allocation2 + $0xf0] sm:$0xff]  ;;  %vm10012_vm11 = vmand %vm2997_vm9, %vm3718_vm7  ;;  %vm4438_vm7 = vcmask 1042434  }
 0x3c5   : > { %v7484_v14 = vpop.eup %7483  ;;  %3863 = vmatprep.subr.bf16.mxu1 %v9759_v57  ;;  %v9823_v19 = vld [vmem:[#allocation2 + $0xa0] sm:$0xff]  ;;  %11795 = vst [vmem:[#allocation28_spill] sm:$0xff] %v9849_v9 }
 0x3c6   : > { %v2723_v54 = vadd.f32 1.0, %v7484_v14  ;;  %v9790_v14 = vld [vmem:[#allocation2 + $0x50] sm:$0xff]  ;;  %11786 = vst [vmem:[#allocation44_spill] sm:$0xff] %v9823_v19 }
 0x3c7   : > { %v7486_v59 = vpop.eup %7485 }
 0x3c8   : > { %v2735_v46 = vadd.f32 1.0, %v7486_v59  ;;  %7497 = vrcp.f32 %v2723_v54  ;;  %v9793_v59 = vld [vmem:[#allocation2 + $0x68] sm:$0xff]  ;;  %v9795_v54 = vld [vmem:[#allocation2 + $0x78] sm:$0xff] }
 0x3c9   : > { %v7488_v63 = vpop.eup %7487  ;;  %11777 = vst [vmem:[#allocation35_spill] sm:$0xff] %v9795_v54 }
 0x3ca   : > { %7499 = vrcp.f32 %v2735_v46  ;;  %v2724_v18 = vadd.f32 1.0, %v7488_v63  ;;  %v7490_v24 = vpop.eup %7489  ;;  %v9801_v46 = vld [vmem:[#allocation2 + $0x70] sm:$0xff]  ;;  %v9805_v63 = vld [vmem:[#allocation2 + $0x88] sm:$0xff] }
 0x3cb   : > { %7501 = vpow2.f32 %v7047_v44  ;;  %v2736_v39 = vadd.f32 1.0, %v7490_v24  ;;  %v7492_v25 = vpop.eup %7491  ;;  %v9799_v44 = vld [vmem:[#allocation2 + $0x60] sm:$0xff]  ;;  %11779 = vst [vmem:[#allocation37_spill] sm:$0xff] %v9801_v46  ;;  %11780 = vst [vmem:[#allocation38_spill] sm:$0xff] %v9805_v63 }
 0x3cc   : > { %7503 = vrcp.f32 %v2724_v18  ;;  %v7494_v61 = vpop.eup %7493  ;;  %11778 = vst [vmem:[#allocation36_spill] sm:$0xff] %v9799_v44  ;;  %v9807_v18 = vld [vmem:[#allocation2 + $0x98] sm:$0xff]  ;;  %v9811_v24 = vld [vmem:[#allocation2 + $0x80] sm:$0xff] }
 0x3cd   : > { %7505 = vrcp.f32 %v2736_v39  ;;  %v7496_v51 = vpop.eup %7495  ;;  %v2749_v60 = vadd.f32 1.0, %v7494_v61  ;;  %11781 = vst [vmem:[#allocation39_spill] sm:$0xff] %v9807_v18  ;;  %11782 = vst [vmem:[#allocation40_spill] sm:$0xff] %v9811_v24  ;;  %v9813_v39 = vld [vmem:[#allocation2 + $0x90] sm:$0xff] }
 0x3ce   : > { %11783 = vst [vmem:[#allocation41_spill] sm:$0xff] %v9813_v39  ;;  %v9825_v61 = vld [vmem:[#allocation2 + $0xb0] sm:$0xff] }
 0x3cf   : > { %7507 = vrcp.f32 %v2749_v60  ;;  %11787 = vst [vmem:[#allocation45_spill] sm:$0xff] %v9825_v61  ;;  %v9841_v60 = vld [vmem:[#allocation2 + $0xe8] sm:$0xff] }
 0x3d0   : > { %11792 = vst [vmem:[#allocation50_spill] sm:$0xff] %v9841_v60 }
 0x3d2   : > { %v7498_v6 = vpop.eup %7497 }
 0x3d3   : > { %v2757_v53 = vmul.f32 %v7498_v6, %v7492_v25  ;;  %v9817_v25 = vld [vmem:[#allocation2 + $0xa8] sm:$0xff]  ;;  %v9831_v6 = vld [vmem:[#allocation2 + $0xd8] sm:$0xff] }
 0x3d4   : > { %v7500_v5 = vpop.eup %7499  ;;  %11784 = vst [vmem:[#allocation42_spill] sm:$0xff] %v9817_v25  ;;  %11789 = vst [vmem:[#allocation47_spill] sm:$0xff] %v9831_v6 }
 0x3d5   : > { %v7502_v4 = vpop.eup %7501  ;;  %v2755_v28 = vmul.f32 %v7500_v5, %v11767_v31  ;;  %v9835_v5 = vld [vmem:[#allocation2 + $0xc0] sm:$0xff]  ;;  %v9853_v31 = vld [vmem:[#allocation3 + $0x8] sm:$0xff] }
 0x3d6   : > { %v7504_v55 = vpop.eup %7503  ;;  %v2750_v52 = vadd.f32 1.0, %v7502_v4  ;;  %11790 = vst [vmem:[#allocation48_spill] sm:$0xff] %v9835_v5  ;;  %v9843_v4 = vld [vmem:[#allocation2 + $0xf8] sm:$0xff]  ;;  %11796 = vst [vmem:[#allocation30_spill] sm:$0xff] %v9853_v31 }
 0x3d7   : > { %v9724_v35 = vadd.f32 %v2757_v53, %v2755_v28  ;;  %v2758_v40 = vmul.f32 %v7504_v55, %v7496_v51  ;;  %v7506_v62 = vpop.eup %7505  ;;  %v9829_v51 = vld [vmem:[#allocation2 + $0xc8] sm:$0xff]  ;;  %v9837_v53 = vld [vmem:[#allocation2 + $0xd0] sm:$0xff]  ;;  %11793 = vst [vmem:[#allocation51_spill] sm:$0xff] %v9843_v4  ;;  %v9855_v28 = vld [vmem:[#allocation3 + $0x18] sm:$0xff] }
 0x3d8   : > { %v2756_v17 = vmul.f32 %v7506_v62, %v11773_v47  ;;  %11788 = vst [vmem:[#allocation46_spill] sm:$0xff] %v9829_v51  ;;  %11791 = vst [vmem:[#allocation49_spill] sm:$0xff] %v9837_v53  ;;  %v7061_v55 = vld [vmem:[%s8081_s6 + $0x3] ss:$8 sm:$0xf] }
 0x3d9   : > { %7509 = vtanh.f32 %v9724_v35  ;;  %v7508_v27 = vpop.eup %7507  ;;  %11797 = vst [vmem:[#allocation31_spill] sm:$0xff] %v9855_v28  ;;  %v3202_v50 = vrot.slane %v7061_v55, %v11729_v34 }
 0x3da   : > { %v9740_v16 = vadd.f32 %v2758_v40, %v2756_v17  ;;  %7511 = vrcp.f32 %v2750_v52  ;;  %v11798_v40 = vld [vmem:[#allocation25_spill] sm:$0xff]  ;;  %v11799_v52 = vld [vmem:[#allocation26_spill] sm:$0xff] }
 0x3db   : > { %v3190_v62 = vrot.slane %v7061_v55, %v11798_v40  ;;  %v3194_v33 = vrot.slane %v7061_v55, %v11799_v52 }
 0x3dc   : > { %7513 = vtanh.f32 %v9740_v16  ;;  %v11835_v1 = vsel %vm9736_vm12, %v9740_v16, 0.0 }
 0x3e3   : > { %v7510_v13 = vpop.eup %7509 }
 0x3e4   : > { %v2763_v2 = vmul.f32 %v7510_v13, %v7508_v27  ;;  %v7512_v12 = vpop.eup %7511 }
 0x3e6   : > { %v7514_v49 = vpop.eup %7513  ;;  %v2778_v48 = vsel %vm9720_vm0, %v2763_v2, 0.0 }
 0x3e7   : > { %v2764_v29 = vmul.f32 %v7514_v49, %v7512_v12 }
 0x3e9   : > { %v2779_v23 = vsel %vm9736_vm12, %v2764_v29, 0.0  ;;  %v7866_v43 = vpack.c.bf16 %v2764_v29, %v2763_v2 }
 0x3ea   : > { %v7229_v8 = vpack.c.bf16 %v2779_v23, %v2778_v48 }
 0x3eb   : > { %7867 = vmatmul.mubr.msk.bf16.vlgmr.msra.gmra.mrb[28].mxu0 %vm7865_vm14, %v7866_v43  ;;  %7870 = vmatmul.mubr.msk.bf16.vlgmr.msra.gmra.mrb[28].mxu1 %vm7865_vm14, %v7866_v43 }
 0x3ec   : > { %7258 = vst [vmem:[%s8091_s28 + $0x28] sm:$0xff] %v7229_v8   ;;  %3852 = vmatprep.mubr.bf16.mxu0 %v11776_v3  ;;  %3895 = vmatprep.mubr.bf16.mxu1 %v11776_v3 }
 0x3ed   : > { %3821 = vmatpush1.bf16.msra.mxu0 %v9763_v26  ;;  %3864 = vmatpush1.bf16.msra.mxu1 %v9765_v10 }
 0x3ee   : > { %3822 = vmatprep.subr.bf16.mxu0 %v9769_v15  ;;  %3865 = vmatprep.subr.bf16.mxu1 %v9771_v7 }
 0x3f1   : > { %3823 = vmatpush1.bf16.msra.mxu0 %v9775_v41  ;;  %3866 = vmatpush1.bf16.msra.mxu1 %v9777_v21 }
 0x3f2   : > { %3824 = vmatprep.subr.bf16.mxu0 %v9781_v45  ;;  %3867 = vmatprep.subr.bf16.mxu1 %v9783_v22 }
 0x3f5   : > { %3825 = vmatpush1.bf16.msra.mxu0 %v9787_v37  ;;  %3868 = vmatpush1.bf16.msra.mxu1 %v9790_v14 }
 0x3f6   : > { %3826 = vmatprep.subr.bf16.mxu0 %v9793_v59  ;;  %3869 = vmatprep.subr.bf16.mxu1 %v9795_v54  ;;  %v3756_v54 = vld [vmem:[%s8093_s27 + $0x30] sm:$0x2] }
 0x3f9   : > { %3827 = vmatpush1.bf16.msra.mxu0 %v9799_v44  ;;  %3870 = vmatpush1.bf16.msra.mxu1 %v9801_v46  ;;  %v3750_v46 = vld [vmem:[%s8093_s27 + $0x28] sm:$0x2]  ;;  %v3753_v44 = vld [vmem:[%s8093_s27 + $0x2c] sm:$0x2] }
 0x3fa   : > { %3828 = vmatprep.subr.bf16.mxu0 %v9805_v63  ;;  %3871 = vmatprep.subr.bf16.mxu1 %v9807_v18  ;;  %v3747_v18 = vld [vmem:[%s8093_s27 + $0x24] sm:$0x2] }
 0x3fb   : > { %v10045_v63 = vld [vmem:[#allocation3 + $0x80] sm:$0xff] }
 0x3fd   : > { %3829 = vmatpush1.bf16.msra.mxu0 %v9811_v24  ;;  %3872 = vmatpush1.bf16.msra.mxu1 %v9813_v39  ;;  %v3738_v39 = vld [vmem:[%s8093_s27 + $0x18] sm:$0x2]  ;;  %v3741_v24 = vld [vmem:[%s8093_s27 + $0x1c] sm:$0x2] }
 0x3fe   : > { %3830 = vmatprep.subr.bf16.mxu0 %v9817_v25  ;;  %3873 = vmatprep.subr.bf16.mxu1 %v9819_v20  ;;  %v3732_v20 = vld [vmem:[%s8093_s27 + $0x10] sm:$0x2]  ;;  %v10032_v25 = vld [vmem:[#allocation3 + $0x98] sm:$0xff] }
 0x401   : > { %3831 = vmatpush1.bf16.msra.mxu0 %v9823_v19  ;;  %3874 = vmatpush1.bf16.msra.mxu1 %v9825_v61  ;;  %v3729_v19 = vld [vmem:[%s8093_s27 + $0xc] sm:$0x2] }
 0x402   : > { %3832 = vmatprep.subr.bf16.mxu0 %v9829_v51  ;;  %3875 = vmatprep.subr.bf16.mxu1 %v9831_v6 }
 0x405   : > { %3833 = vmatpush1.bf16.msra.mxu0 %v9835_v5  ;;  %3876 = vmatpush1.bf16.msra.mxu1 %v9837_v53  ;;  %v9973_v5 = vld [vmem:[#allocation3 + $0x68] sm:$0xff] }
 0x406   : > { %3834 = vmatprep.subr.bf16.mxu0 %v9841_v60  ;;  %3877 = vmatprep.subr.bf16.mxu1 %v9843_v4  ;;  %11825 = vst [vmem:[#allocation64_spill] sm:$0xff] %v9973_v5 }
 0x409   : > { %3835 = vmatpush1.bf16.msra.mxu0 %v9847_v0  ;;  %3878 = vmatpush1.bf16.msra.mxu1 %v9849_v9  ;;  %v3198_v9 = vrot.slane %v7061_v55, %v11730_v36 }
 0x40a   : > { %4043 = vmatprep.subr.bf16.mxu0 %v9853_v31  ;;  %4086 = vmatprep.subr.bf16.mxu1 %v9855_v28 }
 0x478   : > { %v3134_v11 = vpop.f32.mrb[24].mxu0  ;;  %v3177_v47 = vpop.f32.mrb[24].mxu1 }
 0x479   : > { %v3207_v17 = vadd.f32 %v3190_v62, %v3134_v11  ;;  %v3136_v27 = vpop.f32.mrb[25].mxu0  ;;  %v3179_v13 = vpop.f32.mrb[25].mxu1 }
 0x47a   : > { %v3208_v2 = vadd.f32 %v3194_v33, %v3136_v27  ;;  %v3138_v12 = vpop.f32.mrb[26].mxu0  ;;  %v3181_v49 = vpop.f32.mrb[26].mxu1  ;;  %v3210_v11 = vadd.f32 %v3202_v50, %v3179_v13  ;;  %v3209_v27 = vadd.f32 %v3198_v9, %v3177_v47  ;;  %v3267_v47 = vstv %s3266_s14  ;;  %s6370_s14 = ssub.s32 24, %s8690_s25 }
 0x47b   : > { %v7062_v29 = vmul.f32 -1.442695, %v3207_v17  ;;  %v3211_v48 = vadd.f32 %v3190_v62, %v3138_v12  ;;  %v3140_v23 = vpop.f32.mrb[27].mxu0  ;;  %v3183_v8 = vpop.f32.mrb[27].mxu1  ;;  %v3213_v17 = vadd.f32 %v3198_v9, %v3181_v49  ;;  %v3263_v9 = vstv %s3059_s26  ;;  %s6148_s26 = sadd.s32 4294967287, %s8690_s25 }
 0x47c   : > { %v7064_v43 = vmul.f32 -1.442695, %v3208_v2  ;;  %v3212_v56 = vadd.f32 %v3194_v33, %v3140_v23  ;;  %v7066_v0 = vmul.f32 -1.442695, %v3210_v11  ;;  %v3214_v4 = vadd.f32 %v3202_v50, %v3183_v8  ;;  %v11801_v11 = vld [vmem:[#allocation22_spill] sm:$0xff] }
 0x47d   : > { %7515 = vpow2.f32 %v7062_v29  ;;  %v7063_v28 = vmul.f32 -1.442695, %v3211_v48  ;;  %vm3264_vm2 = vcmp.le.s32.totalorder %v11764_v32, %v3263_v9  ;;  %vm3268_vm8 = vcmp.gt.s32.totalorder %v11764_v32, %v3267_v47 }
 0x47e   : > { %7517 = vpow2.f32 %v7064_v43  ;;  %v7065_v31 = vmul.f32 -1.442695, %v3212_v56  ;;  %v7067_v33 = vmul.f32 -1.442695, %v3214_v4  ;;  %vm9872_vm5 = vmand %vm3264_vm2, %vm3268_vm8  ;;  %vm3265_vm4 = vcmp.le.s32.totalorder %v11770_v38, %v3263_v9 }
 0x47f   : > { %7519 = vpow2.f32 %v7063_v28  ;;  %vm3269_vm10 = vcmp.gt.s32.totalorder %v11770_v38, %v3267_v47 }
 0x480   : > { %7521 = vpow2.f32 %v7065_v31 }
 0x481   : > { %7523 = vtanh.f32 %v3209_v27  ;;  %v11802_v27 = vsel %vm9492_vm6, %v11801_v11, 0.0  ;;  %vm9888_vm6 = vmand %vm3265_vm4, %vm3269_vm10 }
 0x482   : > { %7525 = vpow2.f32 %v7066_v0 }
 0x483   : > { %7527 = vtanh.f32 %v3213_v17 }
 0x487   : > { %v7516_v62 = vpop.eup %7515 }
 0x488   : > { %v7518_v2 = vpop.eup %7517  ;;  %v3221_v12 = vadd.f32 1.0, %v7516_v62 }
 0x489   : > { %v3233_v29 = vadd.f32 1.0, %v7518_v2  ;;  %v7520_v56 = vpop.eup %7519  ;;  %v11803_v2 = vmov 0 }
 0x48a   : > { %7529 = vrcp.f32 %v3221_v12  ;;  %v3222_v55 = vadd.f32 1.0, %v7520_v56  ;;  %v7522_v28 = vpop.eup %7521  ;;  %v11804_v2 = vsel %vm9872_vm5, 4294967295, %v11803_v2 }
 0x48b   : > { %7531 = vrcp.f32 %v3233_v29  ;;  %v3234_v31 = vadd.f32 1.0, %v7522_v28  ;;  %v7524_v50 = vpop.eup %7523  ;;  %11805 = vst [vmem:[#allocation32_spill] sm:$0xff] %v11804_v2  ;;  %v11817_v28 = vld [vmem:[#allocation34_spill] sm:$0xff] }
 0x48c   : > { %7533 = vpow2.f32 %v7067_v33  ;;  %v7526_v13 = vpop.eup %7525 }
 0x48d   : > { %7535 = vrcp.f32 %v3222_v55  ;;  %v7528_v49 = vpop.eup %7527  ;;  %v3247_v23 = vadd.f32 1.0, %v7526_v13 }
 0x48e   : > { %7537 = vrcp.f32 %v3234_v31  ;;  %v11808_v31 = vld [vmem:[#allocation23_spill] sm:$0xff] }
 0x48f   : > { %7539 = vrcp.f32 %v3247_v23 }
 0x494   : > { %v7530_v0 = vpop.eup %7529 }
 0x495   : > { %v7532_v4 = vpop.eup %7531  ;;  %v3255_v48 = vmul.f32 %v7530_v0, %v7524_v50  ;;  %v11809_v50 = vsel %vm9508_vm3, %v11808_v31, 0.0  ;;  %vm7871_vm3 = vmpackc.low %vm9888_vm6, %vm9872_vm5 }
 0x496   : > { %v7534_v8 = vpop.eup %7533  ;;  %v3253_v17 = vmul.f32 %v7532_v4, %v11802_v27 }
 0x497   : > { %v7536_v62 = vpop.eup %7535  ;;  %v3248_v56 = vadd.f32 1.0, %v7534_v8 }
 0x498   : > { %v9876_v12 = vadd.f32 %v3255_v48, %v3253_v17  ;;  %v3256_v33 = vmul.f32 %v7536_v62, %v7528_v49  ;;  %v7538_v29 = vpop.eup %7537  ;;  %v11810_v49 = vmov 0 }
 0x499   : > { %v3254_v13 = vmul.f32 %v7538_v29, %v11809_v50  ;;  %v11811_v49 = vsel %vm9888_vm6, 4294967295, %v11810_v49  ;;  %v7540_v0 = vpop.eup %7539  ;;  %v9904_v29 = vld [vmem:[#allocation3 + $0x10] sm:$0xff] }
 0x49a   : > { %11806 = vst [vmem:[#allocation33_spill] sm:$0xff] %v9876_v12  ;;  %7541 = vtanh.f32 %v9876_v12  ;;  %11812 = vst [vmem:[#allocation52_spill] sm:$0xff] %v11811_v49  ;;  %v9964_v12 = vld [vmem:[#allocation3 + $0x40] sm:$0xff] }
 0x49b   : > { %v9892_v9 = vadd.f32 %v3256_v33, %v3254_v13  ;;  %7543 = vrcp.f32 %v3248_v56  ;;  %v9902_v33 = vld [vmem:[#allocation3] sm:$0xff]  ;;  %11815 = vst [vmem:[#allocation55_spill] sm:$0xff] %v9904_v29  ;;  %v9906_v56 = vld [vmem:[#allocation3 + $0x28] sm:$0xff]  ;;  %11823 = vst [vmem:[#allocation62_spill] sm:$0xff] %v9964_v12 }
 0x49c   : > { %11814 = vst [vmem:[#allocation54_spill] sm:$0xff] %v9902_v33  ;;  %11816 = vst [vmem:[#allocation56_spill] sm:$0xff] %v9906_v56  ;;  %v9911_v13 = vld [vmem:[%s8086_s13 + $0x4] ss:$8 sm:$0xf] }
 0x49d   : > { %11813 = vst [vmem:[#allocation53_spill] sm:$0xff] %v9892_v9  ;;  %7545 = vtanh.f32 %v9892_v9 }
 0x4a4   : > { %v7542_v4 = vpop.eup %7541 }
 0x4a5   : > { %v3261_v48 = vmul.f32 %v7542_v4, %v7540_v0  ;;  %v7544_v23 = vpop.eup %7543  ;;  %v9917_v4 = vld [vmem:[#allocation3 + $0x38] sm:$0xff] }
 0x4a6   : > { %11818 = vst [vmem:[#allocation57_spill] sm:$0xff] %v9917_v4 }
 0x4a7   : > { %v7546_v8 = vpop.eup %7545  ;;  %v3276_v11 = vsel %vm9872_vm5, %v3261_v48, 0.0 }
 0x4a8   : > { %v3262_v43 = vmul.f32 %v7546_v8, %v7544_v23 }
 0x4aa   : > { %v3277_v27 = vsel %vm9888_vm6, %v3262_v43, 0.0  ;;  %v7872_v0 = vpack.c.bf16 %v3262_v43, %v3261_v48  ;;  %v9928_v48 = vld [vmem:[#allocation3 + $0x30] sm:$0xff]  ;;  %v9932_v43 = vrot.slane %v9911_v13, %v11798_v40 }
 0x4ab   : > { %v3507_v17 = vpack.c.bf16 %v3277_v27, %v3276_v11  ;;  %v7075_v62 = vpack.c.bf16 %v3277_v27, %v3277_v27  ;;  %11820 = vst [vmem:[#allocation59_spill] sm:$0xff] %v9928_v48 }
 0x4ac   : > { %7873 = vmatmul.mubr.msk.bf16.vlgmr.msra.gmra.mrb[32].mxu0 %vm7871_vm3, %v7872_v0  ;;  %7876 = vmatmul.mubr.msk.bf16.vlgmr.msra.gmra.mrb[32].mxu1 %vm7871_vm3, %v7872_v0 }
 0x4ad   : > { %v3516_v31 = vrot.slane %v3507_v17, %v11817_v28  ;;  %v3523_v50 = vrot.slane %v7075_v62, %v11817_v28  ;;  %4044 = vmatpush1.bf16.msra.mxu0 %v9902_v33  ;;  %4087 = vmatpush1.bf16.msra.mxu1 %v9904_v29  ;;  %v9926_v17 = vld [vmem:[#allocation3 + $0x20] sm:$0xff]  ;;  %v9936_v62 = vrot.slane %v9911_v13, %v11799_v52 }
 0x4ae   : > { %4045 = vmatprep.subr.bf16.mxu0 %v9906_v56  ;;  %11819 = vst [vmem:[#allocation58_spill] sm:$0xff] %v9926_v17  ;;  %4088 = vmatprep.subr.bf16.mxu1 %v9917_v4 }
 0x4af   : > { %v3524_v23 = vcombine.high %v3516_v31, %v3516_v31  ;;  %v3525_v8 = vcombine.high %v3523_v50, %v3523_v50  ;;  %v3532_v11 = vrot.slane %v3516_v31, %v11817_v28  ;;  %v9923_v27 = vrot.slane %v3523_v50, %v11817_v28  ;;  %v9939_v31 = vld [vmem:[#allocation3 + $0x48] sm:$0xff]  ;;  %v9941_v50 = vld [vmem:[#allocation3 + $0x58] sm:$0xff]  ;;  %4075 = vmatprep.mubr.bf16.mxu0 %v11776_v3 }
 0x4b0   : > { %11821 = vst [vmem:[#allocation60_spill] sm:$0xff] %v9939_v31  ;;  %11822 = vst [vmem:[#allocation61_spill] sm:$0xff] %v9941_v50  ;;  %4118 = vmatprep.mubr.bf16.mxu1 %v11776_v3 }
 0x4b1   : > { %v3546_v0 = vrot.slane %v3524_v23, %v11817_v28  ;;  %v9946_v47 = vrot.slane %v3525_v8, %v11817_v28  ;;  %v3554_v55 = vcombine.high %v3532_v11, %v3532_v11  ;;  %v9950_v56 = vcombine.high %v9923_v27, %v9923_v27  ;;  %4046 = vmatpush1.bf16.msra.mxu0 %v9926_v17 }
 0x4b2   : > { %v3559_v29 = vunpack.i.h.s16 %v3532_v11  ;;  %v3567_v4 = vunpack.i.h.s16 %v9923_v27  ;;  %v7076_v33 = vpack.i.b16 %v3532_v11, %v3532_v11  ;;  %v7080_v9 = vpack.i.b16 %v9923_v27, %v9923_v27  ;;  %4089 = vmatpush1.bf16.msra.mxu1 %v9928_v48  ;;  %4047 = vmatprep.subr.bf16.mxu0 %v9939_v31  ;;  %v9968_v48 = vld [vmem:[#allocation3 + $0x50] sm:$0xff] }
 0x4b3   : > { %v3556_v23 = vcombine.high %v3546_v0, %v3546_v0  ;;  %v9960_v8 = vcombine.high %v9946_v47, %v9946_v47  ;;  %v3561_v28 = vunpack.i.h.s16 %v3546_v0  ;;  %v3563_v49 = vunpack.i.h.s16 %v3554_v55  ;;  %4090 = vmatprep.subr.bf16.mxu1 %v9941_v50  ;;  %11824 = vst [vmem:[#allocation63_spill] sm:$0xff] %v9968_v48 }
 0x4b4   : > { %v3569_v11 = vunpack.i.h.s16 %v9946_v47  ;;  %v3571_v27 = vunpack.i.h.s16 %v9950_v56  ;;  %v3575_v17 = vpack.i.b16 %v3559_v29, %v3559_v29  ;;  %v7077_v2 = vpack.i.b16 %v3546_v0, %v3546_v0  ;;  %v9982_v29 = vld [vmem:[#allocation3 + $0x78] sm:$0xff] }
 0x4b5   : > { %v3565_v52 = vunpack.i.h.s16 %v3556_v23  ;;  %v3573_v40 = vunpack.i.h.s16 %v9960_v8  ;;  %v9971_v60 = vpack.i.b16 %v3561_v28, %v3561_v28  ;;  %v7078_v53 = vpack.i.b16 %v3554_v55, %v3554_v55  ;;  %4048 = vmatpush1.bf16.msra.mxu0 %v9964_v12  ;;  %11826 = vst [vmem:[#allocation65_spill] sm:$0xff] %v9982_v29  ;;  %v9993_v28 = vld [vmem:[#allocation3 + $0x60] sm:$0xff]  ;;  %v3726_v12 = vld [vmem:[%s8093_s27 + $0x8] sm:$0x2] }
 0x4b6   : > { %v9975_v31 = vpack.i.b16 %v3563_v49, %v3563_v49  ;;  %v7079_v50 = vpack.i.b16 %v3556_v23, %v3556_v23  ;;  %v9977_v6 = vpack.i.b16 %v3567_v4, %v3567_v4  ;;  %v7081_v51 = vpack.i.b16 %v9946_v47, %v9946_v47  ;;  %4091 = vmatpush1.bf16.msra.mxu1 %v9968_v48 }
 0x4b7   : > { %v9984_v0 = vpack.i.b16 %v3565_v52, %v3565_v52  ;;  %v9986_v61 = vpack.i.b16 %v3569_v11, %v3569_v11  ;;  %v7082_v55 = vpack.i.b16 %v9950_v56, %v9950_v56  ;;  %v9990_v49 = vpack.i.b16 %v3571_v27, %v3571_v27  ;;  %11827 = vst [vmem:[#allocation66_spill] sm:$0xff] %v9993_v28  ;;  %v10002_v56 = vld [vmem:[#allocation3 + $0x70] sm:$0xff] }
 0x4b8   : > { %v7083_v47 = vpack.i.b16 %v9960_v8, %v9960_v8  ;;  %v9997_v4 = vpack.i.b16 %v3573_v40, %v3573_v40  ;;  %v3596_v52 = vrot.slane %v7076_v33, %v8737_v58  ;;  %v3603_v23 = vrot.slane %v3575_v17, %v8737_v58  ;;  %4049 = vmatprep.subr.bf16.mxu0 %v9973_v5  ;;  %v3720_v8 = vld [vmem:[%s8093_s27] sm:$0x2]  ;;  %v3723_v5 = vld [vmem:[%s8093_s27 + $0x4] sm:$0x2]  ;;  %v10127_v17 = vld [vmem:[#allocation3 + $0xd8] sm:$0xff] }
 0x4b9   : > { %11828 = vst [vmem:[#allocation67_spill] sm:$0xff] %v10002_v56  ;;  %v3610_v11 = vrot.slane %v7077_v2, %v8737_v58  ;;  %v3617_v27 = vrot.slane %v9971_v60, %v8737_v58  ;;  %v3624_v40 = vrot.slane %v7078_v53, %v8737_v58  ;;  %v3631_v33 = vrot.slane %v9975_v31, %v8737_v58  ;;  %v10019_v2 = vld [vmem:[#allocation3 + $0x88] sm:$0xff] }
 0x4ba   : > { %4092 = vmatprep.subr.bf16.mxu1 %v9982_v29  ;;  %11831 = vst [vmem:[#allocation24_spill] sm:$0xff] %v10019_v2  ;;  %v3638_v60 = vrot.slane %v7079_v50, %v8737_v58  ;;  %v3645_v53 = vrot.slane %v9984_v0, %v8737_v58  ;;  %v3652_v31 = vrot.slane %v7080_v9, %v8737_v58  ;;  %v3735_v29 = vld [vmem:[%s8093_s27 + $0x14] sm:$0x2] }
 0x4bb   : > { %v3659_v48 = vrot.slane %v9977_v6, %v8737_v58  ;;  %4050 = vmatpush1.bf16.msra.mxu0 %v9993_v28  ;;  %v3666_v50 = vrot.slane %v7081_v51, %v8737_v58  ;;  %v3673_v0 = vrot.slane %v9986_v61, %v8737_v58  ;;  %v3680_v9 = vrot.slane %v7082_v55, %v8737_v58  ;;  %v3744_v28 = vld [vmem:[%s8093_s27 + $0x20] sm:$0x2] }
 0x4bc   : > { %v3687_v6 = vrot.slane %v9990_v49, %v8737_v58  ;;  %4093 = vmatpush1.bf16.msra.mxu1 %v10002_v56  ;;  %v3694_v51 = vrot.slane %v7083_v47, %v8737_v58  ;;  %v3701_v61 = vrot.slane %v9997_v4, %v8737_v58  ;;  %v3721_v55 = vsel %vm10012_vm11, %v3596_v52, %v3720_v8  ;;  %v10058_v56 = vld [vmem:[#allocation3 + $0x90] sm:$0xff] }
 0x4bd   : > { %v3724_v49 = vsel %vm10012_vm11, %v3603_v23, %v3723_v5  ;;  %4051 = vmatprep.subr.bf16.mxu0 %v10019_v2  ;;  %3722 = vst [vmem:[%s8093_s27] sm:$0x2] %v3721_v55  ;;  %v3727_v47 = vsel %vm10012_vm11, %v3610_v11, %v3726_v12  ;;  %v3730_v4 = vsel %vm10012_vm11, %v3617_v27, %v3729_v19  ;;  %v3759_v23 = vld [vmem:[%s8093_s27 + $0x34] sm:$0x2]  ;;  %v10074_v55 = vld [vmem:[#allocation3 + $0xa8] sm:$0xff]  ;;  %v3762_v11 = vld [vmem:[%s8093_s27 + $0x38] sm:$0x2] }
 0x4be   : > { %3725 = vst [vmem:[%s8093_s27 + $0x4] sm:$0x2] %v3724_v49  ;;  %v3733_v5 = vsel %vm10012_vm11, %v3624_v40, %v3732_v20  ;;  %v3736_v52 = vsel %vm10012_vm11, %v3631_v33, %v3735_v29  ;;  %v3357_v8 = vpop.f32.mrb[28].mxu0  ;;  %v10071_v2 = vpop.f32.mrb[28].mxu1  ;;  %4094 = vmatprep.subr.bf16.mxu1 %v10032_v25  ;;  %3728 = vst [vmem:[%s8093_s27 + $0x8] sm:$0x2] %v3727_v47  ;;  %v3739_v20 = vsel %vm10012_vm11, %v3638_v60, %v3738_v39 }
 0x4bf   : > { %3731 = vst [vmem:[%s8093_s27 + $0xc] sm:$0x2] %v3730_v4  ;;  %3734 = vst [vmem:[%s8093_s27 + $0x10] sm:$0x2] %v3733_v5  ;;  %v3742_v19 = vsel %vm10012_vm11, %v3645_v53, %v3741_v24  ;;  %v3745_v12 = vsel %vm10012_vm11, %v3652_v31, %v3744_v28  ;;  %v3748_v29 = vsel %vm10012_vm11, %v3659_v48, %v3747_v18  ;;  %v3359_v27 = vpop.f32.mrb[29].mxu0  ;;  %v3402_v40 = vpop.f32.mrb[29].mxu1  ;;  %4052 = vmatpush1.bf16.msra.mxu0 %v10045_v63 }
 0x4c0   : > { %3737 = vst [vmem:[%s8093_s27 + $0x14] sm:$0x2] %v3736_v52  ;;  %v10090_v33 = vld [vmem:[#allocation3 + $0xb8] sm:$0xff]  ;;  %3740 = vst [vmem:[%s8093_s27 + $0x18] sm:$0x2] %v3739_v20  ;;  %v3751_v24 = vsel %vm10012_vm11, %v3666_v50, %v3750_v46  ;;  %v3754_v18 = vsel %vm10012_vm11, %v3673_v0, %v3753_v44  ;;  %v3757_v39 = vsel %vm10012_vm11, %v3680_v9, %v3756_v54  ;;  %v3361_v60 = vpop.f32.mrb[30].mxu0  ;;  %4095 = vmatpush1.bf16.msra.mxu1 %v10058_v56 }
 0x4c1   : > { %3743 = vst [vmem:[%s8093_s27 + $0x1c] sm:$0x2] %v3742_v19  ;;  %3746 = vst [vmem:[%s8093_s27 + $0x20] sm:$0x2] %v3745_v12  ;;  %v3760_v48 = vsel %vm10012_vm11, %v3687_v6, %v3759_v23  ;;  %v3765_v28 = vld [vmem:[%s8093_s27 + $0x3c] sm:$0x2]  ;;  %v3763_v44 = vsel %vm10012_vm11, %v3694_v51, %v3762_v11  ;;  %v3430_v46 = vadd.f32 %v9932_v43, %v3357_v8  ;;  %4053 = vmatprep.subr.bf16.mxu0 %v10074_v55 }
 0x4c2   : > { %3749 = vst [vmem:[%s8093_s27 + $0x24] sm:$0x2] %v3748_v29  ;;  %v3404_v53 = vpop.f32.mrb[30].mxu1  ;;  %v10106_v31 = vld [vmem:[#allocation3 + $0xa0] sm:$0xff]  ;;  %3752 = vst [vmem:[%s8093_s27 + $0x28] sm:$0x2] %v3751_v24  ;;  %v3766_v54 = vsel %vm10012_vm11, %v3701_v61, %v3765_v28  ;;  %v3431_v49 = vadd.f32 %v9936_v62, %v3359_v27  ;;  %v3434_v47 = vadd.f32 %v9932_v43, %v3361_v60  ;;  %4096 = vmatprep.subr.bf16.mxu1 %v10090_v33 }
 0x4c3   : > { %3755 = vst [vmem:[%s8093_s27 + $0x2c] sm:$0x2] %v3754_v18  ;;  %3758 = vst [vmem:[%s8093_s27 + $0x30] sm:$0x2] %v3757_v39  ;;  %v3363_v50 = vpop.f32.mrb[31].mxu0  ;;  %v3406_v0 = vpop.f32.mrb[31].mxu1  ;;  %4054 = vmatpush1.bf16.msra.mxu0 %v10106_v31  ;;  %v3425_v5 = vrot.slane %v9911_v13, %v11729_v34  ;;  %v3421_v19 = vrot.slane %v9911_v13, %v11730_v36 }
 0x4c4   : > { %3761 = vst [vmem:[%s8093_s27 + $0x34] sm:$0x2] %v3760_v48  ;;  %v10118_v9 = vld [vmem:[#allocation3 + $0xb0] sm:$0xff]  ;;  %v10120_v6 = vld [vmem:[#allocation3 + $0xc8] sm:$0xff]  ;;  %3764 = vst [vmem:[%s8093_s27 + $0x38] sm:$0x2] %v3763_v44  ;;  %v3435_v61 = vadd.f32 %v9936_v62, %v3363_v50  ;;  %v3490_v50 = vstv %s3489_s23 }
 0x4c5   : > { %3767 = vst [vmem:[%s8093_s27 + $0x3c] sm:$0x2] %v3766_v54  ;;  %v7069_v51 = vmul.f32 -1.442695, %v3430_v46  ;;  %v7071_v4 = vmul.f32 -1.442695, %v3431_v49  ;;  %4097 = vmatpush1.bf16.msra.mxu1 %v10118_v9  ;;  %4055 = vmatprep.subr.bf16.mxu0 %v10120_v6  ;;  %v3433_v12 = vadd.f32 %v3425_v5, %v3402_v40  ;;  %v3437_v11 = vadd.f32 %v3425_v5, %v3406_v0 }
 0x4c6   : > { %v7070_v52 = vmul.f32 -1.442695, %v3434_v47  ;;  %v10135_v23 = vld [vmem:[#allocation3 + $0xc0] sm:$0xff]  ;;  %v7072_v43 = vmul.f32 -1.442695, %v3435_v61  ;;  %4098 = vmatprep.subr.bf16.mxu1 %v10127_v17  ;;  %v10138_v8 = vld [vmem:[#allocation3 + $0xd0] sm:$0xff]  ;;  %v3432_v24 = vadd.f32 %v3421_v19, %v10071_v2  ;;  %v3436_v28 = vadd.f32 %v3421_v19, %v3404_v53 }
 0x4c7   : > { %7547 = vpow2.f32 %v7069_v51  ;;  %v10140_v62 = vld [vmem:[#allocation3 + $0xe8] sm:$0xff]  ;;  %v10142_v20 = vld [vmem:[#allocation3 + $0xf8] sm:$0xff]  ;;  %4056 = vmatpush1.bf16.msra.mxu0 %v10135_v23  ;;  %v10149_v29 = vld [vmem:[#allocation3 + $0xe0] sm:$0xff]  ;;  %v7073_v13 = vmul.f32 -1.442695, %v3433_v12  ;;  %v3486_v46 = vstv %s3060_s22  ;;  %vm3491_vm13 = vcmp.lt.s32.totalorder %v11764_v32, %v3490_v50 }
 0x4c8   : > { %7549 = vpow2.f32 %v7071_v4  ;;  %4057 = vmatprep.subr.bf16.mxu0 %v10140_v62  ;;  %v10152_v27 = vld [vmem:[#allocation3 + $0xf0] sm:$0xff]  ;;  %v7074_v40 = vmul.f32 -1.442695, %v3437_v11  ;;  %vm3487_vm9 = vcmp.ge.s32.totalorder %v11764_v32, %v3486_v46  ;;  %v11832_v5 = vsel %vm9720_vm0, %v9724_v35, 0.0 }
 0x4c9   : > { %7551 = vpow2.f32 %v7070_v52  ;;  %4099 = vmatpush1.bf16.msra.mxu1 %v10138_v8  ;;  %vm10167_vm15 = vmand %vm3487_vm9, %vm3491_vm13  ;;  %vm3488_vm1 = vcmp.ge.s32.totalorder %v11770_v38, %v3486_v46  ;;  %vm3492_vm14 = vcmp.lt.s32.totalorder %v11770_v38, %v3490_v50  ;;  %v11849_v50 = vld [vmem:[#allocation46_spill] sm:$0xff]  ;;  %vm4439_vm11 = vsmask.f32 2304 }
 0x4ca   : > { %7553 = vpow2.f32 %v7072_v43  ;;  %4100 = vmatprep.subr.bf16.mxu1 %v10142_v20  ;;  %vm10183_vm0 = vmand %vm3488_vm1, %vm3492_vm14 }
 0x4cb   : > { %4058 = vmatpush1.bf16.msra.mxu0 %v10149_v29  ;;  %7555 = vtanh.f32 %v3432_v24  ;;  %vm7877_vm12 = vmpackc.low %vm10183_vm0, %vm10167_vm15 }
 0x4cc   : > { %4541 = vmatprep.subr.bf16.mxu0 %v9757_v42  ;;  %7557 = vpow2.f32 %v7073_v13  ;;  %vm10324_vm9 = vmand %vm4438_vm7, %vm4439_vm11 }
 0x4cd   : > { %4101 = vmatpush1.bf16.msra.mxu1 %v10152_v27  ;;  %7559 = vpow2.f32 %v7074_v40 }
 0x4ce   : > { %4584 = vmatprep.subr.bf16.mxu1 %v9759_v57 }
 0x4d1   : > { %v7548_v18 = vpop.eup %7547 }
 0x4d2   : > { %v7550_v39 = vpop.eup %7549  ;;  %v3444_v48 = vadd.f32 1.0, %v7548_v18 }
 0x4d3   : > { %v3456_v60 = vadd.f32 1.0, %v7550_v39  ;;  %v7552_v2 = vpop.eup %7551 }
 0x4d4   : > { %7561 = vrcp.f32 %v3444_v48  ;;  %v7554_v44 = vpop.eup %7553  ;;  %v3445_v54 = vadd.f32 1.0, %v7552_v2 }
 0x4d5   : > { %7563 = vrcp.f32 %v3456_v60  ;;  %v3457_v42 = vadd.f32 1.0, %v7554_v44  ;;  %v7556_v57 = vpop.eup %7555 }
 0x4d6   : > { %7565 = vtanh.f32 %v3436_v28  ;;  %v7558_v0 = vpop.eup %7557 }
 0x4d7   : > { %7567 = vrcp.f32 %v3445_v54  ;;  %v7560_v49 = vpop.eup %7559  ;;  %v3470_v61 = vadd.f32 1.0, %v7558_v0  ;;  %v11850_v0 = vld [vmem:[#allocation47_spill] sm:$0xff] }
 0x4d8   : > { %7569 = vrcp.f32 %v3457_v42  ;;  %v3471_v13 = vadd.f32 1.0, %v7560_v49  ;;  %v11851_v49 = vld [vmem:[#allocation48_spill] sm:$0xff] }
 0x4d9   : > { %7571 = vrcp.f32 %v3470_v61  ;;  %v11855_v61 = vld [vmem:[#allocation27_spill] sm:$0xff] }
 0x4de   : > { %v7562_v47 = vpop.eup %7561 }
 0x4df   : > { %v7564_v53 = vpop.eup %7563  ;;  %v3478_v51 = vmul.f32 %v7562_v47, %v7556_v57  ;;  %v11852_v47 = vld [vmem:[#allocation49_spill] sm:$0xff] }
 0x4e0   : > { %v7566_v4 = vpop.eup %7565  ;;  %v3476_v52 = vmul.f32 %v7564_v53, %v11832_v5  ;;  %v11853_v53 = vld [vmem:[#allocation50_spill] sm:$0xff] }
 0x4e1   : > { %v7568_v43 = vpop.eup %7567  ;;  %v11857_v5 = vld [vmem:[#allocation30_spill] sm:$0xff] }
 0x4e2   : > { %v7570_v12 = vpop.eup %7569  ;;  %v10173_v11 = vadd.f32 %v3478_v51, %v3476_v52  ;;  %v3479_v24 = vmul.f32 %v7568_v43, %v7566_v4  ;;  %v11854_v51 = vld [vmem:[#allocation51_spill] sm:$0xff]  ;;  %v11856_v4 = vld [vmem:[#allocation28_spill] sm:$0xff] }
 0x4e3   : > { %v3477_v35 = vmul.f32 %v7570_v12, %v11835_v1  ;;  %v7572_v16 = vpop.eup %7571  ;;  %v11858_v52 = vld [vmem:[#allocation31_spill] sm:$0xff]  ;;  %v11859_v12 = vld [vmem:[#allocation25_spill] sm:$0xff] }
 0x4e4   : > { %7573 = vtanh.f32 %v10173_v11  ;;  %v7088_v43 = vld [vmem:[%s8081_s6 + $0x4] ss:$8 sm:$0xf] }
 0x4e5   : > { %v10187_v39 = vadd.f32 %v3479_v24, %v3477_v35  ;;  %7575 = vrcp.f32 %v3471_v13  ;;  %v3910_v24 = vrot.slane %v7088_v43, %v11859_v12  ;;  %v11860_v13 = vld [vmem:[#allocation26_spill] sm:$0xff] }
 0x4e6   : > { %v3914_v1 = vrot.slane %v7088_v43, %v11860_v13 }
 0x4e7   : > { %7577 = vtanh.f32 %v10187_v39  ;;  %v11896_v19 = vsel %vm10183_vm0, %v10187_v39, 0.0 }
 0x4ee   : > { %v7574_v48 = vpop.eup %7573 }
 0x4ef   : > { %v3484_v28 = vmul.f32 %v7574_v48, %v7572_v16  ;;  %v7576_v60 = vpop.eup %7575 }
 0x4f1   : > { %v7578_v2 = vpop.eup %7577  ;;  %v3499_v54 = vsel %vm10167_vm15, %v3484_v28, 0.0 }
 0x4f2   : > { %v3485_v44 = vmul.f32 %v7578_v2, %v7576_v60 }
 0x4f4   : > { %v3500_v42 = vsel %vm10183_vm0, %v3485_v44, 0.0  ;;  %v7878_v46 = vpack.c.bf16 %v3485_v44, %v3484_v28 }
 0x4f5   : > { %v7234_v57 = vpack.c.bf16 %v3500_v42, %v3499_v54 }
 0x4f6   : > { %7879 = vmatmul.mubr.msk.bf16.vlgmr.msra.gmra.mrb[36].mxu0 %vm7877_vm12, %v7878_v46  ;;  %7882 = vmatmul.mubr.msk.bf16.vlgmr.msra.gmra.mrb[36].mxu1 %vm7877_vm12, %v7878_v46 }
 0x4f7   : > { %7259 = vst [vmem:[%s8091_s28 + $0x20] sm:$0xff] %v7234_v57   ;;  %4542 = vmatpush1.bf16.msra.mxu0 %v9763_v26  ;;  %4585 = vmatpush1.bf16.msra.mxu1 %v9765_v10  ;;  %v11838_v26 = vld [vmem:[#allocation35_spill] sm:$0xff]  ;;  %v11839_v10 = vld [vmem:[#allocation36_spill] sm:$0xff] }
 0x4f8   : > { %4543 = vmatprep.subr.bf16.mxu0 %v9769_v15  ;;  %4586 = vmatprep.subr.bf16.mxu1 %v9771_v7  ;;  %v11840_v15 = vld [vmem:[#allocation37_spill] sm:$0xff]  ;;  %v11841_v7 = vld [vmem:[#allocation38_spill] sm:$0xff] }
 0x4f9   : > { %4573 = vmatprep.mubr.bf16.mxu0 %v11776_v3  ;;  %4616 = vmatprep.mubr.bf16.mxu1 %v11776_v3 }
 0x4fb   : > { %4544 = vmatpush1.bf16.msra.mxu0 %v9775_v41  ;;  %4587 = vmatpush1.bf16.msra.mxu1 %v9777_v21  ;;  %v11842_v41 = vld [vmem:[#allocation39_spill] sm:$0xff]  ;;  %v11843_v21 = vld [vmem:[#allocation40_spill] sm:$0xff] }
 0x4fc   : > { %4545 = vmatprep.subr.bf16.mxu0 %v9781_v45  ;;  %4588 = vmatprep.subr.bf16.mxu1 %v9783_v22  ;;  %v11844_v45 = vld [vmem:[#allocation41_spill] sm:$0xff]  ;;  %v11845_v22 = vld [vmem:[#allocation42_spill] sm:$0xff] }
 0x4ff   : > { %4546 = vmatpush1.bf16.msra.mxu0 %v9787_v37  ;;  %4589 = vmatpush1.bf16.msra.mxu1 %v9790_v14  ;;  %v11846_v37 = vld [vmem:[#allocation43_spill] sm:$0xff]  ;;  %v11847_v14 = vld [vmem:[#allocation44_spill] sm:$0xff] }
 0x500   : > { %4547 = vmatprep.subr.bf16.mxu0 %v9793_v59  ;;  %4590 = vmatprep.subr.bf16.mxu1 %v11838_v26  ;;  %v11848_v59 = vld [vmem:[#allocation45_spill] sm:$0xff] }
 0x503   : > { %4548 = vmatpush1.bf16.msra.mxu0 %v11839_v10  ;;  %4591 = vmatpush1.bf16.msra.mxu1 %v11840_v15  ;;  %v3922_v15 = vrot.slane %v7088_v43, %v11729_v34 }
 0x504   : > { %4549 = vmatprep.subr.bf16.mxu0 %v11841_v7  ;;  %4592 = vmatprep.subr.bf16.mxu1 %v11842_v41 }
 0x507   : > { %4550 = vmatpush1.bf16.msra.mxu0 %v11843_v21  ;;  %4593 = vmatpush1.bf16.msra.mxu1 %v11844_v45  ;;  %v3918_v45 = vrot.slane %v7088_v43, %v11730_v36 }
 0x508   : > { %4551 = vmatprep.subr.bf16.mxu0 %v11845_v22  ;;  %4594 = vmatprep.subr.bf16.mxu1 %v11846_v37 }
 0x50b   : > { %4552 = vmatpush1.bf16.msra.mxu0 %v11847_v14  ;;  %4595 = vmatpush1.bf16.msra.mxu1 %v11848_v59 }
 0x50c   : > { %4553 = vmatprep.subr.bf16.mxu0 %v11849_v50  ;;  %4596 = vmatprep.subr.bf16.mxu1 %v11850_v0 }
 0x50f   : > { %4554 = vmatpush1.bf16.msra.mxu0 %v11851_v49  ;;  %4597 = vmatpush1.bf16.msra.mxu1 %v11852_v47 }
 0x510   : > { %4555 = vmatprep.subr.bf16.mxu0 %v11853_v53  ;;  %4598 = vmatprep.subr.bf16.mxu1 %v11854_v51 }
 0x513   : > { %4556 = vmatpush1.bf16.msra.mxu0 %v11855_v61  ;;  %4599 = vmatpush1.bf16.msra.mxu1 %v11856_v4 }
 0x514   : > { %4764 = vmatprep.subr.bf16.mxu0 %v11857_v5  ;;  %4807 = vmatprep.subr.bf16.mxu1 %v11858_v52 }
 0x57f   : > { %v3854_v35 = vpop.f32.mrb[32].mxu0  ;;  %v3897_v16 = vpop.f32.mrb[32].mxu1 }
 0x580   : > { %v3927_v48 = vadd.f32 %v3910_v24, %v3854_v35  ;;  %v3856_v28 = vpop.f32.mrb[33].mxu0  ;;  %v3899_v60 = vpop.f32.mrb[33].mxu1  ;;  %v3929_v37 = vadd.f32 %v3918_v45, %v3897_v16 }
 0x581   : > { %v3928_v2 = vadd.f32 %v3914_v1, %v3856_v28  ;;  %v3858_v44 = vpop.f32.mrb[34].mxu0  ;;  %v3901_v54 = vpop.f32.mrb[34].mxu1  ;;  %v3930_v22 = vadd.f32 %v3922_v15, %v3899_v60 }
 0x582   : > { %v7089_v42 = vmul.f32 -1.442695, %v3927_v48  ;;  %v3931_v57 = vadd.f32 %v3910_v24, %v3858_v44  ;;  %v3860_v46 = vpop.f32.mrb[35].mxu0  ;;  %v3903_v26 = vpop.f32.mrb[35].mxu1  ;;  %v3933_v50 = vadd.f32 %v3918_v45, %v3901_v54  ;;  %v3983_v24 = vstv %s3779_s19  ;;  %v11884_v45 = vld [vmem:[#allocation62_spill] sm:$0xff] }
 0x583   : > { %v7091_v10 = vmul.f32 -1.442695, %v3928_v2  ;;  %v3932_v7 = vadd.f32 %v3914_v1, %v3860_v46  ;;  %v7093_v14 = vmul.f32 -1.442695, %v3930_v22  ;;  %v3934_v59 = vadd.f32 %v3922_v15, %v3903_v26 }
 0x584   : > { %7579 = vpow2.f32 %v7089_v42  ;;  %v7090_v41 = vmul.f32 -1.442695, %v3931_v57  ;;  %v3987_v1 = vstv %s3986_s8  ;;  %vm3984_vm2 = vcmp.le.s32.totalorder %v11764_v32, %v3983_v24  ;;  %v11862_v42 = vld [vmem:[#allocation33_spill] sm:$0xff] }
 0x585   : > { %7581 = vpow2.f32 %v7091_v10  ;;  %v7092_v21 = vmul.f32 -1.442695, %v3932_v7  ;;  %v7094_v53 = vmul.f32 -1.442695, %v3934_v59  ;;  %vm3988_vm8 = vcmp.gt.s32.totalorder %v11764_v32, %v3987_v1 }
 0x586   : > { %7583 = vpow2.f32 %v7090_v41  ;;  %v11863_v57 = vsel %vm9872_vm5, %v11862_v42, 0.0  ;;  %vm10249_vm4 = vmand %vm3984_vm2, %vm3988_vm8  ;;  %v11864_v10 = vmov 0  ;;  %vm3985_vm10 = vcmp.le.s32.totalorder %v11770_v38, %v3983_v24 }
 0x587   : > { %7585 = vpow2.f32 %v7092_v21  ;;  %v11865_v10 = vsel %vm10249_vm4, 4294967295, %v11864_v10  ;;  %vm3989_vm3 = vcmp.gt.s32.totalorder %v11770_v38, %v3987_v1 }
 0x588   : > { %7587 = vtanh.f32 %v3929_v37  ;;  %11866 = vst [vmem:[#allocation68_spill] sm:$0xff] %v11865_v10  ;;  %v11869_v37 = vld [vmem:[#allocation53_spill] sm:$0xff]  ;;  %vm10265_vm5 = vmand %vm3985_vm10, %vm3989_vm3  ;;  %v11891_v10 = vld [vmem:[#allocation67_spill] sm:$0xff] }
 0x589   : > { %7589 = vpow2.f32 %v7093_v14  ;;  %v11870_v14 = vsel %vm9888_vm6, %v11869_v37, 0.0  ;;  %vm7883_vm6 = vmpackc.low %vm10265_vm5, %vm10249_vm4 }
 0x58a   : > { %7591 = vtanh.f32 %v3933_v50  ;;  %v11871_v50 = vmov 0 }
 0x58b   : > { %v11872_v50 = vsel %vm10265_vm5, 4294967295, %v11871_v50 }
 0x58c   : > { %11873 = vst [vmem:[#allocation29_spill] sm:$0xff] %v11872_v50 }
 0x58e   : > { %v7580_v0 = vpop.eup %7579 }
 0x58f   : > { %v7582_v49 = vpop.eup %7581  ;;  %v3941_v47 = vadd.f32 1.0, %v7580_v0 }
 0x590   : > { %v3953_v51 = vadd.f32 1.0, %v7582_v49  ;;  %v7584_v61 = vpop.eup %7583 }
 0x591   : > { %7593 = vrcp.f32 %v3941_v47  ;;  %v3942_v4 = vadd.f32 1.0, %v7584_v61  ;;  %v7586_v5 = vpop.eup %7585 }
 0x592   : > { %7595 = vrcp.f32 %v3953_v51  ;;  %v3954_v52 = vadd.f32 1.0, %v7586_v5  ;;  %v7588_v43 = vpop.eup %7587 }
 0x593   : > { %7597 = vpow2.f32 %v7094_v53  ;;  %v7590_v35 = vpop.eup %7589 }
 0x594   : > { %7599 = vrcp.f32 %v3942_v4  ;;  %v7592_v16 = vpop.eup %7591  ;;  %v3967_v2 = vadd.f32 1.0, %v7590_v35  ;;  %v11875_v35 = vld [vmem:[#allocation34_spill] sm:$0xff] }
 0x595   : > { %7601 = vrcp.f32 %v3954_v52 }
 0x596   : > { %7603 = vrcp.f32 %v3967_v2  ;;  %v11876_v2 = vld [vmem:[#allocation54_spill] sm:$0xff] }
 0x59b   : > { %v7594_v48 = vpop.eup %7593 }
 0x59c   : > { %v7596_v28 = vpop.eup %7595  ;;  %v3975_v60 = vmul.f32 %v7594_v48, %v7588_v43 }
 0x59d   : > { %v7598_v44 = vpop.eup %7597  ;;  %v3973_v46 = vmul.f32 %v7596_v28, %v11863_v57  ;;  %v10282_v28 = vld [vmem:[%s8086_s13 + $0x3] ss:$8 sm:$0xf] }
 0x59e   : > { %v7600_v26 = vpop.eup %7599  ;;  %v3968_v21 = vadd.f32 1.0, %v7598_v44  ;;  %v11877_v44 = vld [vmem:[#allocation55_spill] sm:$0xff] }
 0x59f   : > { %v10253_v15 = vadd.f32 %v3975_v60, %v3973_v46  ;;  %v3976_v7 = vmul.f32 %v7600_v26, %v7592_v16  ;;  %v7602_v41 = vpop.eup %7601  ;;  %v11878_v26 = vld [vmem:[#allocation56_spill] sm:$0xff] }
 0x5a0   : > { %v3974_v59 = vmul.f32 %v7602_v41, %v11870_v14  ;;  %v7604_v47 = vpop.eup %7603  ;;  %v10299_v41 = vrot.slane %v10282_v28, %v11860_v13  ;;  %v4477_v13 = vld [vmem:[%s8093_s27 + $0x30] sm:$0x4] }
 0x5a1   : > { %11867 = vst [vmem:[#allocation69_spill] sm:$0xff] %v10253_v15  ;;  %7605 = vtanh.f32 %v10253_v15  ;;  %v4471_v15 = vld [vmem:[%s8093_s27 + $0x28] sm:$0x4] }
 0x5a2   : > { %v10269_v0 = vadd.f32 %v3976_v7, %v3974_v59  ;;  %7607 = vrcp.f32 %v3968_v21  ;;  %v10295_v7 = vrot.slane %v10282_v28, %v11859_v12  ;;  %v11879_v21 = vld [vmem:[#allocation57_spill] sm:$0xff]  ;;  %v4480_v12 = vld [vmem:[%s8093_s27 + $0x34] sm:$0x4] }
 0x5a4   : > { %11874 = vst [vmem:[#allocation70_spill] sm:$0xff] %v10269_v0  ;;  %7609 = vtanh.f32 %v10269_v0  ;;  %v11890_v0 = vld [vmem:[#allocation66_spill] sm:$0xff] }
 0x5ab   : > { %v7606_v53 = vpop.eup %7605 }
 0x5ac   : > { %v3981_v51 = vmul.f32 %v7606_v53, %v7604_v47  ;;  %v7608_v61 = vpop.eup %7607 }
 0x5ae   : > { %v7610_v4 = vpop.eup %7609  ;;  %v3996_v52 = vsel %vm10249_vm4, %v3981_v51, 0.0 }
 0x5af   : > { %v3982_v5 = vmul.f32 %v7610_v4, %v7608_v61  ;;  %v11880_v4 = vld [vmem:[#allocation58_spill] sm:$0xff] }
 0x5b1   : > { %v3997_v43 = vsel %vm10265_vm5, %v3982_v5, 0.0  ;;  %v7884_v60 = vpack.c.bf16 %v3982_v5, %v3981_v51  ;;  %v11881_v5 = vld [vmem:[#allocation59_spill] sm:$0xff] }
 0x5b2   : > { %v4227_v24 = vpack.c.bf16 %v3997_v43, %v3996_v52  ;;  %v7102_v1 = vpack.c.bf16 %v3997_v43, %v3997_v43 }
 0x5b3   : > { %7885 = vmatmul.mubr.msk.bf16.vlgmr.msra.gmra.mrb[40].mxu0 %vm7883_vm6, %v7884_v60  ;;  %7888 = vmatmul.mubr.msk.bf16.vlgmr.msra.gmra.mrb[40].mxu1 %vm7883_vm6, %v7884_v60 }
 0x5b4   : > { %v4236_v16 = vrot.slane %v4227_v24, %v11875_v35  ;;  %v4243_v48 = vrot.slane %v7102_v1, %v11875_v35  ;;  %4765 = vmatpush1.bf16.msra.mxu0 %v11876_v2  ;;  %4808 = vmatpush1.bf16.msra.mxu1 %v11877_v44 }
 0x5b5   : > { %4766 = vmatprep.subr.bf16.mxu0 %v11878_v26  ;;  %4809 = vmatprep.subr.bf16.mxu1 %v11879_v21 }
 0x5b6   : > { %v4244_v54 = vcombine.high %v4236_v16, %v4236_v16  ;;  %v4245_v42 = vcombine.high %v4243_v48, %v4243_v48  ;;  %v4252_v57 = vrot.slane %v4236_v16, %v11875_v35  ;;  %v4259_v46 = vrot.slane %v4243_v48, %v11875_v35  ;;  %4796 = vmatprep.mubr.bf16.mxu0 %v11776_v3  ;;  %v11882_v16 = vld [vmem:[#allocation60_spill] sm:$0xff]  ;;  %v11883_v48 = vld [vmem:[#allocation61_spill] sm:$0xff] }
 0x5b7   : > { %4839 = vmatprep.mubr.bf16.mxu1 %v11776_v3 }
 0x5b8   : > { %v4266_v22 = vrot.slane %v4244_v54, %v11875_v35  ;;  %v4273_v37 = vrot.slane %v4245_v42, %v11875_v35  ;;  %v4274_v14 = vcombine.high %v4252_v57, %v4252_v57  ;;  %v4275_v59 = vcombine.high %v4259_v46, %v4259_v46  ;;  %4767 = vmatpush1.bf16.msra.mxu0 %v11880_v4  ;;  %v4462_v35 = vld [vmem:[%s8093_s27 + $0x1c] sm:$0x4] }
 0x5b9   : > { %v4279_v47 = vunpack.i.h.s16 %v4252_v57  ;;  %v4287_v53 = vunpack.i.h.s16 %v4259_v46  ;;  %v7103_v51 = vpack.i.b16 %v4252_v57, %v4252_v57  ;;  %v7107_v61 = vpack.i.b16 %v4259_v46, %v4259_v46  ;;  %4810 = vmatpush1.bf16.msra.mxu1 %v11881_v5  ;;  %4768 = vmatprep.subr.bf16.mxu0 %v11882_v16 }
 0x5ba   : > { %v4276_v52 = vcombine.high %v4266_v22, %v4266_v22  ;;  %v4277_v43 = vcombine.high %v4273_v37, %v4273_v37  ;;  %v4281_v24 = vunpack.i.h.s16 %v4266_v22  ;;  %v4283_v1 = vunpack.i.h.s16 %v4274_v14  ;;  %4811 = vmatprep.subr.bf16.mxu1 %v11883_v48 }
 0x5bb   : > { %v4289_v60 = vunpack.i.h.s16 %v4273_v37  ;;  %v4291_v2 = vunpack.i.h.s16 %v4275_v59  ;;  %v4295_v44 = vpack.i.b16 %v4279_v47, %v4279_v47  ;;  %v7104_v54 = vpack.i.b16 %v4266_v22, %v4266_v22  ;;  %v11885_v47 = vld [vmem:[#allocation63_spill] sm:$0xff] }
 0x5bc   : > { %v4285_v42 = vunpack.i.h.s16 %v4276_v52  ;;  %v4293_v26 = vunpack.i.h.s16 %v4277_v43  ;;  %v4297_v57 = vpack.i.b16 %v4281_v24, %v4281_v24  ;;  %v7105_v46 = vpack.i.b16 %v4274_v14, %v4274_v14  ;;  %4769 = vmatpush1.bf16.msra.mxu0 %v11884_v45 }
 0x5bd   : > { %v4299_v21 = vpack.i.b16 %v4283_v1, %v4283_v1  ;;  %v7106_v4 = vpack.i.b16 %v4276_v52, %v4276_v52  ;;  %v10310_v5 = vpack.i.b16 %v4287_v53, %v4287_v53  ;;  %v7108_v49 = vpack.i.b16 %v4273_v37, %v4273_v37  ;;  %4812 = vmatpush1.bf16.msra.mxu1 %v11885_v47  ;;  %v4444_v52 = vld [vmem:[%s8093_s27 + $0x4] sm:$0x4]  ;;  %v11889_v47 = vld [vmem:[#allocation65_spill] sm:$0xff] }
 0x5be   : > { %v4301_v16 = vpack.i.b16 %v4285_v42, %v4285_v42  ;;  %v10313_v30 = vpack.i.b16 %v4289_v60, %v4289_v60  ;;  %v7109_v48 = vpack.i.b16 %v4275_v59, %v4275_v59  ;;  %v10315_v22 = vpack.i.b16 %v4291_v2, %v4291_v2  ;;  %v4441_v59 = vld [vmem:[%s8093_s27] sm:$0x4]  ;;  %v4450_v42 = vld [vmem:[%s8093_s27 + $0xc] sm:$0x4]  ;;  %4813 = vmatprep.subr.bf16.mxu1 %v11889_v47  ;;  %v4468_v47 = vld [vmem:[%s8093_s27 + $0x24] sm:$0x4] }
 0x5bf   : > { %v7110_v14 = vpack.i.b16 %v4277_v43, %v4277_v43  ;;  %v10318_v24 = vpack.i.b16 %v4293_v26, %v4293_v26  ;;  %v4316_v53 = vrot.slane %v7103_v51, %v8737_v58  ;;  %v4323_v37 = vrot.slane %v4295_v44, %v8737_v58  ;;  %v11888_v1 = vld [vmem:[#allocation64_spill] sm:$0xff]  ;;  %v4447_v44 = vld [vmem:[%s8093_s27 + $0x8] sm:$0x4]  ;;  %v4453_v26 = vld [vmem:[%s8093_s27 + $0x10] sm:$0x4] }
 0x5c0   : > { %4770 = vmatprep.subr.bf16.mxu0 %v11888_v1  ;;  %v4330_v43 = vrot.slane %v7104_v54, %v8737_v58  ;;  %v4337_v60 = vrot.slane %v4297_v57, %v8737_v58  ;;  %v4344_v51 = vrot.slane %v7105_v46, %v8737_v58  ;;  %v4351_v2 = vrot.slane %v4299_v21, %v8737_v58  ;;  %v4456_v46 = vld [vmem:[%s8093_s27 + $0x14] sm:$0x4]  ;;  %v4459_v21 = vld [vmem:[%s8093_s27 + $0x18] sm:$0x4] }
 0x5c1   : > { %v4358_v40 = vrot.slane %v7106_v4, %v8737_v58  ;;  %v4365_v1 = vrot.slane %v4301_v16, %v8737_v58  ;;  %v4372_v54 = vrot.slane %v7107_v61, %v8737_v58  ;;  %v4379_v57 = vrot.slane %v10310_v5, %v8737_v58  ;;  %4771 = vmatpush1.bf16.msra.mxu0 %v11890_v0  ;;  %v4465_v16 = vld [vmem:[%s8093_s27 + $0x20] sm:$0x4] }
 0x5c2   : > { %v4386_v50 = vrot.slane %v7108_v49, %v8737_v58  ;;  %v4393_v4 = vrot.slane %v10313_v30, %v8737_v58  ;;  %v4400_v61 = vrot.slane %v7109_v48, %v8737_v58  ;;  %v4407_v5 = vrot.slane %v10315_v22, %v8737_v58  ;;  %4814 = vmatpush1.bf16.msra.mxu1 %v11891_v10  ;;  %v4474_v22 = vld [vmem:[%s8093_s27 + $0x2c] sm:$0x4]  ;;  %v11892_v10 = vld [vmem:[#allocation24_spill] sm:$0xff] }
 0x5c3   : > { %v4414_v0 = vrot.slane %v7110_v14, %v8737_v58  ;;  %v4421_v49 = vrot.slane %v10318_v24, %v8737_v58  ;;  %v4442_v30 = vsel %vm10324_vm9, %v4316_v53, %v4441_v59  ;;  %v4445_v48 = vsel %vm10324_vm9, %v4323_v37, %v4444_v52  ;;  %4772 = vmatprep.subr.bf16.mxu0 %v11892_v10  ;;  %v4483_v59 = vld [vmem:[%s8093_s27 + $0x38] sm:$0x4]  ;;  %v4486_v52 = vld [vmem:[%s8093_s27 + $0x3c] sm:$0x4] }
 0x5c4   : > { %4443 = vst [vmem:[%s8093_s27] sm:$0x4] %v4442_v30  ;;  %4446 = vst [vmem:[%s8093_s27 + $0x4] sm:$0x4] %v4445_v48  ;;  %v4448_v14 = vsel %vm10324_vm9, %v4330_v43, %v4447_v44  ;;  %v4451_v24 = vsel %vm10324_vm9, %v4337_v60, %v4450_v42  ;;  %v4454_v53 = vsel %vm10324_vm9, %v4344_v51, %v4453_v26  ;;  %4815 = vmatprep.subr.bf16.mxu1 %v10032_v25 }
 0x5c5   : > { %v4457_v37 = vsel %vm10324_vm9, %v4351_v2, %v4456_v46  ;;  %4449 = vst [vmem:[%s8093_s27 + $0x8] sm:$0x4] %v4448_v14  ;;  %4452 = vst [vmem:[%s8093_s27 + $0xc] sm:$0x4] %v4451_v24  ;;  %v4460_v43 = vsel %vm10324_vm9, %v4358_v40, %v4459_v21  ;;  %v4463_v60 = vsel %vm10324_vm9, %v4365_v1, %v4462_v35  ;;  %4773 = vmatpush1.bf16.msra.mxu0 %v10045_v63 }
 0x5c6   : > { %4455 = vst [vmem:[%s8093_s27 + $0x10] sm:$0x4] %v4454_v53  ;;  %4458 = vst [vmem:[%s8093_s27 + $0x14] sm:$0x4] %v4457_v37  ;;  %v4466_v51 = vsel %vm10324_vm9, %v4372_v54, %v4465_v16  ;;  %v4469_v2 = vsel %vm10324_vm9, %v4379_v57, %v4468_v47  ;;  %v4472_v40 = vsel %vm10324_vm9, %v4386_v50, %v4471_v15  ;;  %4816 = vmatpush1.bf16.msra.mxu1 %v10058_v56 }
 0x5c7   : > { %4461 = vst [vmem:[%s8093_s27 + $0x18] sm:$0x4] %v4460_v43  ;;  %4464 = vst [vmem:[%s8093_s27 + $0x1c] sm:$0x4] %v4463_v60  ;;  %v4475_v35 = vsel %vm10324_vm9, %v4393_v4, %v4474_v22  ;;  %v4478_v42 = vsel %vm10324_vm9, %v4400_v61, %v4477_v13  ;;  %v4481_v26 = vsel %vm10324_vm9, %v4407_v5, %v4480_v12  ;;  %4774 = vmatprep.subr.bf16.mxu0 %v10074_v55 }
 0x5c8   : > { %4467 = vst [vmem:[%s8093_s27 + $0x20] sm:$0x4] %v4466_v51  ;;  %4470 = vst [vmem:[%s8093_s27 + $0x24] sm:$0x4] %v4469_v2  ;;  %v4484_v15 = vsel %vm10324_vm9, %v4414_v0, %v4483_v59  ;;  %v4487_v50 = vsel %vm10324_vm9, %v4421_v49, %v4486_v52  ;;  %4817 = vmatprep.subr.bf16.mxu1 %v10090_v33  ;;  %v4145_v5 = vrot.slane %v10282_v28, %v11729_v34  ;;  %vm5159_vm9 = vsmask.f32 7946 }
 0x5c9   : > { %v4077_v44 = vpop.f32.mrb[36].mxu0  ;;  %v4120_v25 = vpop.f32.mrb[36].mxu1  ;;  %4473 = vst [vmem:[%s8093_s27 + $0x28] sm:$0x4] %v4472_v40  ;;  %4476 = vst [vmem:[%s8093_s27 + $0x2c] sm:$0x4] %v4475_v35  ;;  %4775 = vmatpush1.bf16.msra.mxu0 %v10106_v31  ;;  %v4141_v33 = vrot.slane %v10282_v28, %v11730_v36  ;;  %v4206_v49 = vstv %s3780_s10  ;;  %v4210_v30 = vstv %s4209_s16 }
 0x5ca   : > { %v4079_v1 = vpop.f32.mrb[37].mxu0  ;;  %v4122_v63 = vpop.f32.mrb[37].mxu1  ;;  %4479 = vst [vmem:[%s8093_s27 + $0x30] sm:$0x4] %v4478_v42  ;;  %4482 = vst [vmem:[%s8093_s27 + $0x34] sm:$0x4] %v4481_v26  ;;  %v4150_v13 = vadd.f32 %v10295_v7, %v4077_v44  ;;  %4818 = vmatpush1.bf16.msra.mxu1 %v10118_v9  ;;  %4776 = vmatprep.subr.bf16.mxu0 %v10120_v6  ;;  %vm4207_vm13 = vcmp.ge.s32.totalorder %v11764_v32, %v4206_v49 }
 0x5cb   : > { %v4081_v54 = vpop.f32.mrb[38].mxu0  ;;  %v4124_v57 = vpop.f32.mrb[38].mxu1  ;;  %4485 = vst [vmem:[%s8093_s27 + $0x38] sm:$0x4] %v4484_v15  ;;  %4488 = vst [vmem:[%s8093_s27 + $0x3c] sm:$0x4] %v4487_v50  ;;  %v4151_v56 = vadd.f32 %v10299_v41, %v4079_v1  ;;  %4819 = vmatprep.subr.bf16.mxu1 %v10127_v17  ;;  %v4153_v31 = vadd.f32 %v4145_v5, %v4122_v63  ;;  %v4152_v6 = vadd.f32 %v4141_v33, %v4120_v25 }
 0x5cc   : > { %v4154_v12 = vadd.f32 %v10295_v7, %v4081_v54  ;;  %v4083_v46 = vpop.f32.mrb[39].mxu0  ;;  %v4126_v21 = vpop.f32.mrb[39].mxu1  ;;  %v7096_v4 = vmul.f32 -1.442695, %v4150_v13  ;;  %vm4211_vm1 = vcmp.lt.s32.totalorder %v11764_v32, %v4210_v30  ;;  %v11893_v59 = vsel %vm10167_vm15, %v10173_v11, 0.0 }
 0x5cd   : > { %v4155_v45 = vadd.f32 %v10299_v41, %v4083_v46  ;;  %v7098_v61 = vmul.f32 -1.442695, %v4151_v56  ;;  %4777 = vmatpush1.bf16.msra.mxu0 %v10135_v23  ;;  %v4157_v9 = vadd.f32 %v4145_v5, %v4126_v21  ;;  %v7100_v17 = vmul.f32 -1.442695, %v4153_v31  ;;  %vm10446_vm14 = vmand %vm4207_vm13, %vm4211_vm1  ;;  %v10485_v46 = vld [vmem:[#allocation2 + $0x18] sm:$0xff]  ;;  %v10489_v21 = vld [vmem:[#allocation2] sm:$0xff] }
 0x5ce   : > { %v7097_v55 = vmul.f32 -1.442695, %v4154_v12  ;;  %7611 = vpow2.f32 %v7096_v4  ;;  %4820 = vmatpush1.bf16.msra.mxu1 %v10138_v8  ;;  %4778 = vmatprep.subr.bf16.mxu0 %v10140_v62  ;;  %v4156_v8 = vadd.f32 %v4141_v33, %v4124_v57  ;;  %vm4208_vm12 = vcmp.ge.s32.totalorder %v11770_v38, %v4206_v49  ;;  %v10483_v12 = vld [vmem:[#allocation2 + $0x8] sm:$0xff]  ;;  %v10491_v4 = vld [vmem:[#allocation2 + $0x10] sm:$0xff]  ;;  %v10501_v5 = vld [vmem:[#allocation2 + $0x20] sm:$0xff] }
 0x5cf   : > { %v7099_v7 = vmul.f32 -1.442695, %v4155_v45  ;;  %7613 = vpow2.f32 %v7098_v61  ;;  %4821 = vmatprep.subr.bf16.mxu1 %v10142_v20  ;;  %v7101_v41 = vmul.f32 -1.442695, %v4157_v9  ;;  %vm4212_vm2 = vcmp.lt.s32.totalorder %v11770_v38, %v4210_v30  ;;  %v10495_v45 = vld [vmem:[#allocation2 + $0x28] sm:$0xff]  ;;  %v10497_v61 = vld [vmem:[#allocation2 + $0x38] sm:$0xff]  ;;  %vm10735_vm13 = vmand %vm4438_vm7, %vm5159_vm9 }
 0x5d0   : > { %7615 = vpow2.f32 %v7097_v55  ;;  %vm10462_vm15 = vmand %vm4208_vm12, %vm4212_vm2  ;;  %v10503_v55 = vld [vmem:[#allocation2 + $0x30] sm:$0xff]  ;;  %v10509_v33 = vld [vmem:[#allocation2 + $0x58] sm:$0xff]  ;;  %vm5879_vm9 = vcmask 1043459  }
 0x5d1   : > { %7617 = vpow2.f32 %v7099_v7  ;;  %4779 = vmatpush1.bf16.msra.mxu0 %v10149_v29  ;;  %vm7889_vm0 = vmpackc.low %vm10462_vm15, %vm10446_vm14  ;;  %v10507_v7 = vld [vmem:[#allocation2 + $0x48] sm:$0xff]  ;;  %v10513_v31 = vld [vmem:[#allocation2 + $0x40] sm:$0xff] }
 0x5d2   : > { %4822 = vmatpush1.bf16.msra.mxu1 %v10152_v27  ;;  %7619 = vtanh.f32 %v4152_v6  ;;  %5261 = vmatprep.subr.bf16.mxu0 %v10483_v12  ;;  %v10516_v9 = vld [vmem:[#allocation2 + $0x50] sm:$0xff]  ;;  %v10519_v6 = vld [vmem:[#allocation2 + $0x68] sm:$0xff]  ;;  %v10557_v49 = vld [vmem:[#allocation2 + $0xd8] sm:$0xff] }
 0x5d3   : > { %7621 = vpow2.f32 %v7100_v17  ;;  %5304 = vmatprep.subr.bf16.mxu1 %v10485_v46  ;;  %v10521_v17 = vld [vmem:[#allocation2 + $0x78] sm:$0xff]  ;;  %11910 = vst [vmem:[#allocation41_spill] sm:$0xff] %v10557_v49  ;;  %v10561_v30 = vld [vmem:[#allocation2 + $0xc0] sm:$0xff] }
 0x5d4   : > { %7623 = vpow2.f32 %v7101_v41  ;;  %v10525_v41 = vld [vmem:[#allocation2 + $0x60] sm:$0xff]  ;;  %11911 = vst [vmem:[#allocation42_spill] sm:$0xff] %v10561_v30 }
 0x5d5   : > { %11899 = vst [vmem:[#allocation71_spill] sm:$0xff] %v10525_v41 }
 0x5d8   : > { %v7612_v28 = vpop.eup %7611 }
 0x5d9   : > { %v7614_v23 = vpop.eup %7613  ;;  %v4164_v16 = vadd.f32 1.0, %v7612_v28  ;;  %v10527_v28 = vld [vmem:[#allocation2 + $0x70] sm:$0xff] }
 0x5da   : > { %v4176_v62 = vadd.f32 1.0, %v7614_v23  ;;  %v7616_v47 = vpop.eup %7615  ;;  %11900 = vst [vmem:[#allocation20_spill] sm:$0xff] %v10527_v28  ;;  %v10531_v23 = vld [vmem:[#allocation2 + $0x88] sm:$0xff] }
 0x5db   : > { %7625 = vrcp.f32 %v4164_v16  ;;  %v7618_v20 = vpop.eup %7617  ;;  %v4165_v0 = vadd.f32 1.0, %v7616_v47  ;;  %11901 = vst [vmem:[#allocation22_spill] sm:$0xff] %v10531_v23  ;;  %v10533_v16 = vld [vmem:[#allocation2 + $0x98] sm:$0xff]  ;;  %v10543_v47 = vld [vmem:[#allocation2 + $0xa8] sm:$0xff] }
 0x5dc   : > { %7627 = vrcp.f32 %v4176_v62  ;;  %v4177_v29 = vadd.f32 1.0, %v7618_v20  ;;  %v7620_v27 = vpop.eup %7619  ;;  %11902 = vst [vmem:[#allocation21_spill] sm:$0xff] %v10533_v16  ;;  %v10539_v62 = vld [vmem:[#allocation2 + $0x90] sm:$0xff]  ;;  %11905 = vst [vmem:[#allocation36_spill] sm:$0xff] %v10543_v47  ;;  %v10545_v20 = vld [vmem:[#allocation2 + $0xb8] sm:$0xff] }
 0x5dd   : > { %7629 = vtanh.f32 %v4156_v8  ;;  %v7622_v48 = vpop.eup %7621  ;;  %v10537_v8 = vld [vmem:[#allocation2 + $0x80] sm:$0xff]  ;;  %11904 = vst [vmem:[#allocation35_spill] sm:$0xff] %v10539_v62  ;;  %11906 = vst [vmem:[#allocation37_spill] sm:$0xff] %v10545_v20 }
 0x5de   : > { %7631 = vrcp.f32 %v4165_v0  ;;  %v7624_v22 = vpop.eup %7623  ;;  %v4190_v53 = vadd.f32 1.0, %v7622_v48  ;;  %11903 = vst [vmem:[#allocation23_spill] sm:$0xff] %v10537_v8  ;;  %v10549_v0 = vld [vmem:[#allocation2 + $0xa0] sm:$0xff]  ;;  %v10563_v48 = vld [vmem:[#allocation2 + $0xd0] sm:$0xff] }
 0x5df   : > { %7633 = vrcp.f32 %v4177_v29  ;;  %v4191_v25 = vadd.f32 1.0, %v7624_v22  ;;  %11907 = vst [vmem:[#allocation38_spill] sm:$0xff] %v10549_v0  ;;  %v10551_v29 = vld [vmem:[#allocation2 + $0xb0] sm:$0xff]  ;;  %11912 = vst [vmem:[#allocation43_spill] sm:$0xff] %v10563_v48  ;;  %v10567_v22 = vld [vmem:[#allocation2 + $0xe8] sm:$0xff] }
 0x5e0   : > { %7635 = vrcp.f32 %v4190_v53  ;;  %11908 = vst [vmem:[#allocation39_spill] sm:$0xff] %v10551_v29  ;;  %11913 = vst [vmem:[#allocation44_spill] sm:$0xff] %v10567_v22  ;;  %v10579_v53 = vld [vmem:[#allocation3 + $0x8] sm:$0xff] }
 0x5e1   : > { %11917 = vst [vmem:[#allocation48_spill] sm:$0xff] %v10579_v53 }
 0x5e5   : > { %v7626_v10 = vpop.eup %7625 }
 0x5e6   : > { %v7628_v14 = vpop.eup %7627  ;;  %v4198_v24 = vmul.f32 %v7626_v10, %v7620_v27  ;;  %v10555_v27 = vld [vmem:[#allocation2 + $0xc8] sm:$0xff]  ;;  %v10569_v10 = vld [vmem:[#allocation2 + $0xf8] sm:$0xff] }
 0x5e7   : > { %v7630_v37 = vpop.eup %7629  ;;  %v4196_v52 = vmul.f32 %v7628_v14, %v11893_v59  ;;  %11909 = vst [vmem:[#allocation40_spill] sm:$0xff] %v10555_v27  ;;  %11914 = vst [vmem:[#allocation45_spill] sm:$0xff] %v10569_v10  ;;  %v10573_v14 = vld [vmem:[#allocation2 + $0xe0] sm:$0xff] }
 0x5e8   : > { %v7632_v43 = vpop.eup %7631  ;;  %11915 = vst [vmem:[#allocation46_spill] sm:$0xff] %v10573_v14  ;;  %v7115_v59 = vld [vmem:[%s8081_s6 + $0x5] ss:$8 sm:$0xf] }
 0x5e9   : > { %v7634_v51 = vpop.eup %7633  ;;  %v10452_v2 = vadd.f32 %v4198_v24, %v4196_v52  ;;  %v4199_v44 = vmul.f32 %v7632_v43, %v7630_v37  ;;  %v10575_v24 = vld [vmem:[#allocation2 + $0xf0] sm:$0xff]  ;;  %v10581_v37 = vld [vmem:[#allocation3 + $0x18] sm:$0xff]  ;;  %v11919_v52 = vld [vmem:[#allocation25_spill] sm:$0xff]  ;;  %v4643_v18 = vrot.slane %v7115_v59, %v11729_v34 }
 0x5ea   : > { %v4197_v11 = vmul.f32 %v7634_v51, %v11896_v19  ;;  %v7636_v39 = vpop.eup %7635  ;;  %11916 = vst [vmem:[#allocation47_spill] sm:$0xff] %v10575_v24  ;;  %11918 = vst [vmem:[#allocation49_spill] sm:$0xff] %v10581_v37  ;;  %v4631_v43 = vrot.slane %v7115_v59, %v11919_v52  ;;  %v11920_v51 = vld [vmem:[#allocation26_spill] sm:$0xff] }
 0x5eb   : > { %7637 = vtanh.f32 %v10452_v2 }
 0x5ec   : > { %v10466_v42 = vadd.f32 %v4199_v44, %v4197_v11  ;;  %7639 = vrcp.f32 %v4191_v25  ;;  %v4635_v44 = vrot.slane %v7115_v59, %v11920_v51 }
 0x5ee   : > { %7641 = vtanh.f32 %v10466_v42  ;;  %v11955_v60 = vsel %vm10462_vm15, %v10466_v42, 0.0 }
 0x5f5   : > { %v7638_v26 = vpop.eup %7637 }
 0x5f6   : > { %v4204_v1 = vmul.f32 %v7638_v26, %v7636_v39  ;;  %v7640_v63 = vpop.eup %7639 }
 0x5f8   : > { %v7642_v15 = vpop.eup %7641  ;;  %v4219_v13 = vsel %vm10446_vm14, %v4204_v1, 0.0 }
 0x5f9   : > { %v4205_v50 = vmul.f32 %v7642_v15, %v7640_v63 }
 0x5fb   : > { %v4220_v54 = vsel %vm10462_vm15, %v4205_v50, 0.0  ;;  %v7890_v56 = vpack.c.bf16 %v4205_v50, %v4204_v1 }
 0x5fc   : > { %v7239_v57 = vpack.c.bf16 %v4220_v54, %v4219_v13 }
 0x5fd   : > { %7891 = vmatmul.mubr.msk.bf16.vlgmr.msra.gmra.mrb[44].mxu0 %vm7889_vm0, %v7890_v56  ;;  %7894 = vmatmul.mubr.msk.bf16.vlgmr.msra.gmra.mrb[44].mxu1 %vm7889_vm0, %v7890_v56 }
 0x5fe   : > { %7260 = vst [vmem:[%s8091_s28 + $0x18] sm:$0xff] %v7239_v57   ;;  %5293 = vmatprep.mubr.bf16.mxu0 %v11776_v3  ;;  %5336 = vmatprep.mubr.bf16.mxu1 %v11776_v3 }
 0x5ff   : > { %5262 = vmatpush1.bf16.msra.mxu0 %v10489_v21  ;;  %5305 = vmatpush1.bf16.msra.mxu1 %v10491_v4 }
 0x600   : > { %5263 = vmatprep.subr.bf16.mxu0 %v10495_v45  ;;  %5306 = vmatprep.subr.bf16.mxu1 %v10497_v61 }
 0x603   : > { %5264 = vmatpush1.bf16.msra.mxu0 %v10501_v5  ;;  %5307 = vmatpush1.bf16.msra.mxu1 %v10503_v55 }
 0x604   : > { %5265 = vmatprep.subr.bf16.mxu0 %v10507_v7  ;;  %5308 = vmatprep.subr.bf16.mxu1 %v10509_v33 }
 0x607   : > { %5266 = vmatpush1.bf16.msra.mxu0 %v10513_v31  ;;  %5309 = vmatpush1.bf16.msra.mxu1 %v10516_v9 }
 0x608   : > { %5267 = vmatprep.subr.bf16.mxu0 %v10519_v6  ;;  %5310 = vmatprep.subr.bf16.mxu1 %v10521_v17 }
 0x60b   : > { %5268 = vmatpush1.bf16.msra.mxu0 %v10525_v41  ;;  %5311 = vmatpush1.bf16.msra.mxu1 %v10527_v28  ;;  %v5191_v28 = vld [vmem:[%s8093_s27 + $0x28] sm:$0x4]  ;;  %v10780_v41 = vld [vmem:[#allocation3 + $0x90] sm:$0xff] }
 0x60c   : > { %5269 = vmatprep.subr.bf16.mxu0 %v10531_v23  ;;  %5312 = vmatprep.subr.bf16.mxu1 %v10533_v16  ;;  %v5185_v16 = vld [vmem:[%s8093_s27 + $0x20] sm:$0x4] }
 0x60d   : > { %v10768_v23 = vld [vmem:[#allocation3 + $0x80] sm:$0xff] }
 0x60f   : > { %5270 = vmatpush1.bf16.msra.mxu0 %v10537_v8  ;;  %5313 = vmatpush1.bf16.msra.mxu1 %v10539_v62  ;;  %v5179_v62 = vld [vmem:[%s8093_s27 + $0x18] sm:$0x4]  ;;  %v5182_v8 = vld [vmem:[%s8093_s27 + $0x1c] sm:$0x4] }
 0x610   : > { %5271 = vmatprep.subr.bf16.mxu0 %v10543_v47  ;;  %5314 = vmatprep.subr.bf16.mxu1 %v10545_v20  ;;  %v5173_v20 = vld [vmem:[%s8093_s27 + $0x10] sm:$0x4]  ;;  %v10755_v47 = vld [vmem:[#allocation3 + $0x98] sm:$0xff] }
 0x613   : > { %5272 = vmatpush1.bf16.msra.mxu0 %v10549_v0  ;;  %5315 = vmatpush1.bf16.msra.mxu1 %v10551_v29  ;;  %v5170_v0 = vld [vmem:[%s8093_s27 + $0xc] sm:$0x4] }
 0x614   : > { %5273 = vmatprep.subr.bf16.mxu0 %v10555_v27  ;;  %5316 = vmatprep.subr.bf16.mxu1 %v10557_v49 }
 0x617   : > { %5274 = vmatpush1.bf16.msra.mxu0 %v10561_v30  ;;  %5317 = vmatpush1.bf16.msra.mxu1 %v10563_v48  ;;  %v10699_v30 = vld [vmem:[#allocation3 + $0x68] sm:$0xff] }
 0x618   : > { %5275 = vmatprep.subr.bf16.mxu0 %v10567_v22  ;;  %5318 = vmatprep.subr.bf16.mxu1 %v10569_v10  ;;  %11946 = vst [vmem:[#allocation58_spill] sm:$0xff] %v10699_v30 }
 0x61b   : > { %5276 = vmatpush1.bf16.msra.mxu0 %v10573_v14  ;;  %5319 = vmatpush1.bf16.msra.mxu1 %v10575_v24  ;;  %v4639_v24 = vrot.slane %v7115_v59, %v11730_v36 }
 0x61c   : > { %5484 = vmatprep.subr.bf16.mxu0 %v10579_v53  ;;  %5527 = vmatprep.subr.bf16.mxu1 %v10581_v37 }
 0x686   : > { %v4575_v25 = vpop.f32.mrb[40].mxu0  ;;  %v4618_v19 = vpop.f32.mrb[40].mxu1 }
 0x687   : > { %v4648_v11 = vadd.f32 %v4631_v43, %v4575_v25  ;;  %v4577_v39 = vpop.f32.mrb[41].mxu0  ;;  %v4620_v26 = vpop.f32.mrb[41].mxu1 }
 0x688   : > { %v4649_v1 = vadd.f32 %v4635_v44, %v4577_v39  ;;  %v4579_v63 = vpop.f32.mrb[42].mxu0  ;;  %v4622_v15 = vpop.f32.mrb[42].mxu1  ;;  %v4651_v25 = vadd.f32 %v4643_v18, %v4620_v26  ;;  %v4650_v39 = vadd.f32 %v4639_v24, %v4618_v19  ;;  %v4708_v19 = vstv %s4707_s7 }
 0x689   : > { %v7116_v50 = vmul.f32 -1.442695, %v4648_v11  ;;  %v4652_v13 = vadd.f32 %v4631_v43, %v4579_v63  ;;  %v4581_v54 = vpop.f32.mrb[43].mxu0  ;;  %v4624_v57 = vpop.f32.mrb[43].mxu1  ;;  %v4654_v11 = vadd.f32 %v4639_v24, %v4622_v15  ;;  %v4704_v24 = vstv %s4500_s30 }
 0x68a   : > { %v7118_v56 = vmul.f32 -1.442695, %v4649_v1  ;;  %v4653_v40 = vadd.f32 %v4635_v44, %v4581_v54  ;;  %v7120_v14 = vmul.f32 -1.442695, %v4651_v25  ;;  %v4655_v10 = vadd.f32 %v4643_v18, %v4624_v57  ;;  %v11922_v25 = vld [vmem:[#allocation69_spill] sm:$0xff] }
 0x68b   : > { %7643 = vpow2.f32 %v7116_v50  ;;  %v7117_v37 = vmul.f32 -1.442695, %v4652_v13  ;;  %vm4705_vm8 = vcmp.le.s32.totalorder %v11764_v32, %v4704_v24  ;;  %vm4709_vm10 = vcmp.gt.s32.totalorder %v11764_v32, %v4708_v19 }
 0x68c   : > { %7645 = vpow2.f32 %v7118_v56  ;;  %v7119_v53 = vmul.f32 -1.442695, %v4653_v40  ;;  %v7121_v44 = vmul.f32 -1.442695, %v4655_v10  ;;  %vm10598_vm3 = vmand %vm4705_vm8, %vm4709_vm10  ;;  %vm4706_vm6 = vcmp.le.s32.totalorder %v11770_v38, %v4704_v24 }
 0x68d   : > { %7647 = vpow2.f32 %v7117_v37  ;;  %vm4710_vm11 = vcmp.gt.s32.totalorder %v11770_v38, %v4708_v19 }
 0x68e   : > { %7649 = vpow2.f32 %v7119_v53 }
 0x68f   : > { %7651 = vtanh.f32 %v4650_v39  ;;  %v11923_v39 = vsel %vm10249_vm4, %v11922_v25, 0.0  ;;  %vm10614_vm4 = vmand %vm4706_vm6, %vm4710_vm11 }
 0x690   : > { %7653 = vpow2.f32 %v7120_v14 }
 0x691   : > { %7655 = vtanh.f32 %v4654_v11 }
 0x695   : > { %v7644_v43 = vpop.eup %7643 }
 0x696   : > { %v7646_v1 = vpop.eup %7645  ;;  %v4662_v63 = vadd.f32 1.0, %v7644_v43 }
 0x697   : > { %v4674_v50 = vadd.f32 1.0, %v7646_v1  ;;  %v7648_v40 = vpop.eup %7647  ;;  %v11924_v1 = vmov 0 }
 0x698   : > { %7657 = vrcp.f32 %v4662_v63  ;;  %v4663_v59 = vadd.f32 1.0, %v7648_v40  ;;  %v7650_v37 = vpop.eup %7649  ;;  %v11925_v1 = vsel %vm10598_vm3, 4294967295, %v11924_v1 }
 0x699   : > { %7659 = vrcp.f32 %v4674_v50  ;;  %v4675_v53 = vadd.f32 1.0, %v7650_v37  ;;  %v7652_v18 = vpop.eup %7651  ;;  %11926 = vst [vmem:[#allocation50_spill] sm:$0xff] %v11925_v1  ;;  %v11938_v37 = vld [vmem:[#allocation34_spill] sm:$0xff] }
 0x69a   : > { %7661 = vpow2.f32 %v7121_v44  ;;  %v7654_v26 = vpop.eup %7653 }
 0x69b   : > { %7663 = vrcp.f32 %v4663_v59  ;;  %v7656_v15 = vpop.eup %7655  ;;  %v4688_v54 = vadd.f32 1.0, %v7654_v26 }
 0x69c   : > { %7665 = vrcp.f32 %v4675_v53  ;;  %v11929_v53 = vld [vmem:[#allocation70_spill] sm:$0xff] }
 0x69d   : > { %7667 = vrcp.f32 %v4688_v54 }
 0x6a2   : > { %v7658_v14 = vpop.eup %7657 }
 0x6a3   : > { %v7660_v10 = vpop.eup %7659  ;;  %v4696_v13 = vmul.f32 %v7658_v14, %v7652_v18  ;;  %v11930_v18 = vsel %vm10265_vm5, %v11929_v53, 0.0  ;;  %vm7895_vm5 = vmpackc.low %vm10614_vm4, %vm10598_vm3 }
 0x6a4   : > { %v7662_v57 = vpop.eup %7661  ;;  %v4694_v11 = vmul.f32 %v7660_v10, %v11923_v39 }
 0x6a5   : > { %v7664_v43 = vpop.eup %7663  ;;  %v4689_v40 = vadd.f32 1.0, %v7662_v57 }
 0x6a6   : > { %v10602_v63 = vadd.f32 %v4696_v13, %v4694_v11  ;;  %v4697_v44 = vmul.f32 %v7664_v43, %v7656_v15  ;;  %v7666_v50 = vpop.eup %7665  ;;  %v11931_v15 = vmov 0 }
 0x6a7   : > { %v4695_v26 = vmul.f32 %v7666_v50, %v11930_v18  ;;  %v11932_v15 = vsel %vm10614_vm4, 4294967295, %v11931_v15  ;;  %v7668_v14 = vpop.eup %7667  ;;  %v10630_v50 = vld [vmem:[#allocation3 + $0x10] sm:$0xff] }
 0x6a8   : > { %11927 = vst [vmem:[#allocation51_spill] sm:$0xff] %v10602_v63  ;;  %7669 = vtanh.f32 %v10602_v63  ;;  %11933 = vst [vmem:[#allocation27_spill] sm:$0xff] %v11932_v15  ;;  %v10690_v63 = vld [vmem:[#allocation3 + $0x40] sm:$0xff] }
 0x6a9   : > { %v10618_v24 = vadd.f32 %v4697_v44, %v4695_v26  ;;  %7671 = vrcp.f32 %v4689_v40  ;;  %v10628_v44 = vld [vmem:[#allocation3] sm:$0xff]  ;;  %11936 = vst [vmem:[#allocation31_spill] sm:$0xff] %v10630_v50  ;;  %v10632_v40 = vld [vmem:[#allocation3 + $0x28] sm:$0xff]  ;;  %11944 = vst [vmem:[#allocation56_spill] sm:$0xff] %v10690_v63 }
 0x6aa   : > { %11935 = vst [vmem:[#allocation30_spill] sm:$0xff] %v10628_v44  ;;  %11937 = vst [vmem:[#allocation32_spill] sm:$0xff] %v10632_v40  ;;  %v10637_v26 = vld [vmem:[%s8086_s13 + $0x2] ss:$8 sm:$0xf] }
 0x6ab   : > { %11934 = vst [vmem:[#allocation28_spill] sm:$0xff] %v10618_v24  ;;  %7673 = vtanh.f32 %v10618_v24 }
 0x6b2   : > { %v7670_v10 = vpop.eup %7669 }
 0x6b3   : > { %v4702_v13 = vmul.f32 %v7670_v10, %v7668_v14  ;;  %v7672_v54 = vpop.eup %7671  ;;  %v10643_v10 = vld [vmem:[#allocation3 + $0x38] sm:$0xff] }
 0x6b4   : > { %11939 = vst [vmem:[#allocation33_spill] sm:$0xff] %v10643_v10 }
 0x6b5   : > { %v7674_v57 = vpop.eup %7673  ;;  %v4717_v25 = vsel %vm10598_vm3, %v4702_v13, 0.0 }
 0x6b6   : > { %v4703_v56 = vmul.f32 %v7674_v57, %v7672_v54 }
 0x6b8   : > { %v4718_v39 = vsel %vm10614_vm4, %v4703_v56, 0.0  ;;  %v7896_v14 = vpack.c.bf16 %v4703_v56, %v4702_v13  ;;  %v10654_v13 = vld [vmem:[#allocation3 + $0x30] sm:$0xff]  ;;  %v10658_v56 = vrot.slane %v10637_v26, %v11919_v52 }
 0x6b9   : > { %v4948_v11 = vpack.c.bf16 %v4718_v39, %v4717_v25  ;;  %v7129_v43 = vpack.c.bf16 %v4718_v39, %v4718_v39  ;;  %11941 = vst [vmem:[#allocation53_spill] sm:$0xff] %v10654_v13 }
 0x6ba   : > { %7897 = vmatmul.mubr.msk.bf16.vlgmr.msra.gmra.mrb[48].mxu0 %vm7895_vm5, %v7896_v14  ;;  %7900 = vmatmul.mubr.msk.bf16.vlgmr.msra.gmra.mrb[48].mxu1 %vm7895_vm5, %v7896_v14 }
 0x6bb   : > { %v4957_v53 = vrot.slane %v4948_v11, %v11938_v37  ;;  %v4964_v18 = vrot.slane %v7129_v43, %v11938_v37  ;;  %5485 = vmatpush1.bf16.msra.mxu0 %v10628_v44  ;;  %5528 = vmatpush1.bf16.msra.mxu1 %v10630_v50  ;;  %v10652_v11 = vld [vmem:[#allocation3 + $0x20] sm:$0xff]  ;;  %v10662_v43 = vrot.slane %v10637_v26, %v11920_v51 }
 0x6bc   : > { %5486 = vmatprep.subr.bf16.mxu0 %v10632_v40  ;;  %11940 = vst [vmem:[#allocation52_spill] sm:$0xff] %v10652_v11  ;;  %5529 = vmatprep.subr.bf16.mxu1 %v10643_v10 }
 0x6bd   : > { %v4965_v54 = vcombine.high %v4957_v53, %v4957_v53  ;;  %v4966_v57 = vcombine.high %v4964_v18, %v4964_v18  ;;  %v4973_v25 = vrot.slane %v4957_v53, %v11938_v37  ;;  %v10649_v39 = vrot.slane %v4964_v18, %v11938_v37  ;;  %v10665_v53 = vld [vmem:[#allocation3 + $0x48] sm:$0xff]  ;;  %v10667_v18 = vld [vmem:[#allocation3 + $0x58] sm:$0xff]  ;;  %5516 = vmatprep.mubr.bf16.mxu0 %v11776_v3 }
 0x6be   : > { %11942 = vst [vmem:[#allocation54_spill] sm:$0xff] %v10665_v53  ;;  %11943 = vst [vmem:[#allocation55_spill] sm:$0xff] %v10667_v18  ;;  %5559 = vmatprep.mubr.bf16.mxu1 %v11776_v3 }
 0x6bf   : > { %v4987_v14 = vrot.slane %v4965_v54, %v11938_v37  ;;  %v10672_v19 = vrot.slane %v4966_v57, %v11938_v37  ;;  %v4995_v59 = vcombine.high %v4973_v25, %v4973_v25  ;;  %v10676_v40 = vcombine.high %v10649_v39, %v10649_v39  ;;  %5487 = vmatpush1.bf16.msra.mxu0 %v10652_v11 }
 0x6c0   : > { %v5000_v50 = vunpack.i.h.s16 %v4973_v25  ;;  %v5008_v10 = vunpack.i.h.s16 %v10649_v39  ;;  %v7130_v44 = vpack.i.b16 %v4973_v25, %v4973_v25  ;;  %v7134_v24 = vpack.i.b16 %v10649_v39, %v10649_v39  ;;  %5530 = vmatpush1.bf16.msra.mxu1 %v10654_v13  ;;  %5488 = vmatprep.subr.bf16.mxu0 %v10665_v53  ;;  %v10694_v13 = vld [vmem:[#allocation3 + $0x50] sm:$0xff] }
 0x6c1   : > { %v4997_v54 = vcombine.high %v4987_v14, %v4987_v14  ;;  %v10686_v57 = vcombine.high %v10672_v19, %v10672_v19  ;;  %v5002_v37 = vunpack.i.h.s16 %v4987_v14  ;;  %v5004_v15 = vunpack.i.h.s16 %v4995_v59  ;;  %5531 = vmatprep.subr.bf16.mxu1 %v10667_v18  ;;  %11945 = vst [vmem:[#allocation57_spill] sm:$0xff] %v10694_v13 }
 0x6c2   : > { %v5010_v25 = vunpack.i.h.s16 %v10672_v19  ;;  %v5012_v39 = vunpack.i.h.s16 %v10676_v40  ;;  %v5016_v11 = vpack.i.b16 %v5000_v50, %v5000_v50  ;;  %v7131_v1 = vpack.i.b16 %v4987_v14, %v4987_v14  ;;  %v10706_v50 = vld [vmem:[#allocation3 + $0x78] sm:$0xff] }
 0x6c3   : > { %v5006_v51 = vunpack.i.h.s16 %v4997_v54  ;;  %v5014_v52 = vunpack.i.h.s16 %v10686_v57  ;;  %v10697_v22 = vpack.i.b16 %v5002_v37, %v5002_v37  ;;  %v7132_v48 = vpack.i.b16 %v4995_v59, %v4995_v59  ;;  %5489 = vmatpush1.bf16.msra.mxu0 %v10690_v63  ;;  %11947 = vst [vmem:[#allocation59_spill] sm:$0xff] %v10706_v50  ;;  %v10717_v37 = vld [vmem:[#allocation3 + $0x60] sm:$0xff]  ;;  %v5167_v63 = vld [vmem:[%s8093_s27 + $0x8] sm:$0x4] }
 0x6c4   : > { %v5020_v53 = vpack.i.b16 %v5004_v15, %v5004_v15  ;;  %v7133_v18 = vpack.i.b16 %v4997_v54, %v4997_v54  ;;  %v10701_v49 = vpack.i.b16 %v5008_v10, %v5008_v10  ;;  %v7135_v27 = vpack.i.b16 %v10672_v19, %v10672_v19  ;;  %5532 = vmatpush1.bf16.msra.mxu1 %v10694_v13 }
 0x6c5   : > { %v10708_v14 = vpack.i.b16 %v5006_v51, %v5006_v51  ;;  %v10710_v29 = vpack.i.b16 %v5010_v25, %v5010_v25  ;;  %v7136_v59 = vpack.i.b16 %v10676_v40, %v10676_v40  ;;  %v10714_v15 = vpack.i.b16 %v5012_v39, %v5012_v39  ;;  %11948 = vst [vmem:[#allocation60_spill] sm:$0xff] %v10717_v37  ;;  %v10726_v40 = vld [vmem:[#allocation3 + $0x70] sm:$0xff] }
 0x6c6   : > { %v7137_v19 = vpack.i.b16 %v10686_v57, %v10686_v57  ;;  %v10721_v10 = vpack.i.b16 %v5014_v52, %v5014_v52  ;;  %v5037_v51 = vrot.slane %v7130_v44, %v8737_v58  ;;  %v5044_v54 = vrot.slane %v5016_v11, %v8737_v58  ;;  %5490 = vmatprep.subr.bf16.mxu0 %v10699_v30  ;;  %v5161_v11 = vld [vmem:[%s8093_s27] sm:$0x4]  ;;  %v5164_v30 = vld [vmem:[%s8093_s27 + $0x4] sm:$0x4]  ;;  %v10850_v44 = vld [vmem:[#allocation3 + $0xd8] sm:$0xff] }
 0x6c7   : > { %11949 = vst [vmem:[#allocation61_spill] sm:$0xff] %v10726_v40  ;;  %v5051_v25 = vrot.slane %v7131_v1, %v8737_v58  ;;  %v5058_v39 = vrot.slane %v10697_v22, %v8737_v58  ;;  %v5065_v52 = vrot.slane %v7132_v48, %v8737_v58  ;;  %v5072_v57 = vrot.slane %v5020_v53, %v8737_v58  ;;  %v10742_v1 = vld [vmem:[#allocation3 + $0x88] sm:$0xff] }
 0x6c8   : > { %5533 = vmatprep.subr.bf16.mxu1 %v10706_v50  ;;  %v5079_v22 = vrot.slane %v7133_v18, %v8737_v58  ;;  %v5086_v48 = vrot.slane %v10708_v14, %v8737_v58  ;;  %v5093_v53 = vrot.slane %v7134_v24, %v8737_v58  ;;  %v5100_v13 = vrot.slane %v10701_v49, %v8737_v58  ;;  %v5176_v50 = vld [vmem:[%s8093_s27 + $0x14] sm:$0x4] }
 0x6c9   : > { %5491 = vmatpush1.bf16.msra.mxu0 %v10717_v37  ;;  %v5107_v18 = vrot.slane %v7135_v27, %v8737_v58  ;;  %v5114_v14 = vrot.slane %v10710_v29, %v8737_v58  ;;  %v5121_v24 = vrot.slane %v7136_v59, %v8737_v58  ;;  %v5128_v49 = vrot.slane %v10714_v15, %v8737_v58  ;;  %v5188_v37 = vld [vmem:[%s8093_s27 + $0x24] sm:$0x4] }
 0x6ca   : > { %5534 = vmatpush1.bf16.msra.mxu1 %v10726_v40  ;;  %v5135_v27 = vrot.slane %v7137_v19, %v8737_v58  ;;  %v5142_v29 = vrot.slane %v10721_v10, %v8737_v58  ;;  %v5162_v59 = vsel %vm10735_vm13, %v5037_v51, %v5161_v11  ;;  %v5165_v15 = vsel %vm10735_vm13, %v5044_v54, %v5164_v30  ;;  %v5194_v40 = vld [vmem:[%s8093_s27 + $0x2c] sm:$0x4]  ;;  %v5197_v54 = vld [vmem:[%s8093_s27 + $0x30] sm:$0x4]  ;;  %v5200_v11 = vld [vmem:[%s8093_s27 + $0x34] sm:$0x4] }
 0x6cb   : > { %5492 = vmatprep.subr.bf16.mxu0 %v10742_v1  ;;  %5163 = vst [vmem:[%s8093_s27] sm:$0x4] %v5162_v59  ;;  %5166 = vst [vmem:[%s8093_s27 + $0x4] sm:$0x4] %v5165_v15  ;;  %v5168_v19 = vsel %vm10735_vm13, %v5051_v25, %v5167_v63  ;;  %v5171_v10 = vsel %vm10735_vm13, %v5058_v39, %v5170_v0  ;;  %v5174_v30 = vsel %vm10735_vm13, %v5065_v52, %v5173_v20  ;;  %v10795_v59 = vld [vmem:[#allocation3 + $0xa8] sm:$0xff]  ;;  %v5203_v25 = vld [vmem:[%s8093_s27 + $0x38] sm:$0x4] }
 0x6cc   : > { %v5177_v51 = vsel %vm10735_vm13, %v5072_v57, %v5176_v50  ;;  %5535 = vmatprep.subr.bf16.mxu1 %v10755_v47  ;;  %5169 = vst [vmem:[%s8093_s27 + $0x8] sm:$0x4] %v5168_v19  ;;  %5172 = vst [vmem:[%s8093_s27 + $0xc] sm:$0x4] %v5171_v10  ;;  %v5180_v20 = vsel %vm10735_vm13, %v5079_v22, %v5179_v62  ;;  %v5183_v0 = vsel %vm10735_vm13, %v5086_v48, %v5182_v8  ;;  %v10813_v57 = vld [vmem:[#allocation3 + $0xb8] sm:$0xff]  ;;  %v10843_v15 = vld [vmem:[#allocation3 + $0xc8] sm:$0xff] }
 0x6cd   : > { %5175 = vst [vmem:[%s8093_s27 + $0x10] sm:$0x4] %v5174_v30  ;;  %5178 = vst [vmem:[%s8093_s27 + $0x14] sm:$0x4] %v5177_v51  ;;  %v5186_v63 = vsel %vm10735_vm13, %v5093_v53, %v5185_v16  ;;  %v5189_v50 = vsel %vm10735_vm13, %v5100_v13, %v5188_v37  ;;  %5493 = vmatpush1.bf16.msra.mxu0 %v10768_v23  ;;  %v5192_v16 = vsel %vm10735_vm13, %v5107_v18, %v5191_v28  ;;  %v5206_v37 = vld [vmem:[%s8093_s27 + $0x3c] sm:$0x4] }
 0x6ce   : > { %5181 = vst [vmem:[%s8093_s27 + $0x18] sm:$0x4] %v5180_v20  ;;  %5184 = vst [vmem:[%s8093_s27 + $0x1c] sm:$0x4] %v5183_v0  ;;  %v5195_v8 = vsel %vm10735_vm13, %v5114_v14, %v5194_v40  ;;  %v5198_v62 = vsel %vm10735_vm13, %v5121_v24, %v5197_v54  ;;  %v5201_v13 = vsel %vm10735_vm13, %v5128_v49, %v5200_v11  ;;  %5536 = vmatpush1.bf16.msra.mxu1 %v10780_v41  ;;  %v10829_v53 = vld [vmem:[#allocation3 + $0xa0] sm:$0xff]  ;;  %v10841_v49 = vld [vmem:[#allocation3 + $0xb0] sm:$0xff] }
 0x6cf   : > { %5187 = vst [vmem:[%s8093_s27 + $0x20] sm:$0x4] %v5186_v63  ;;  %5190 = vst [vmem:[%s8093_s27 + $0x24] sm:$0x4] %v5189_v50  ;;  %v5204_v28 = vsel %vm10735_vm13, %v5135_v27, %v5203_v25  ;;  %v5207_v40 = vsel %vm10735_vm13, %v5142_v29, %v5206_v37  ;;  %5494 = vmatprep.subr.bf16.mxu0 %v10795_v59  ;;  %5537 = vmatprep.subr.bf16.mxu1 %v10813_v57  ;;  %v10861_v63 = vld [vmem:[#allocation3 + $0xd0] sm:$0xff]  ;;  %v10865_v50 = vld [vmem:[#allocation3 + $0xf8] sm:$0xff] }
 0x6d0   : > { %v4798_v39 = vpop.f32.mrb[44].mxu0  ;;  %v10810_v52 = vpop.f32.mrb[44].mxu1  ;;  %5193 = vst [vmem:[%s8093_s27 + $0x28] sm:$0x4] %v5192_v16  ;;  %5196 = vst [vmem:[%s8093_s27 + $0x2c] sm:$0x4] %v5195_v8  ;;  %v4866_v11 = vrot.slane %v10637_v26, %v11729_v34  ;;  %v4862_v25 = vrot.slane %v10637_v26, %v11730_v36 }
 0x6d1   : > { %v4800_v22 = vpop.f32.mrb[45].mxu0  ;;  %v4843_v48 = vpop.f32.mrb[45].mxu1  ;;  %5199 = vst [vmem:[%s8093_s27 + $0x30] sm:$0x4] %v5198_v62  ;;  %5202 = vst [vmem:[%s8093_s27 + $0x34] sm:$0x4] %v5201_v13  ;;  %v4871_v18 = vadd.f32 %v10658_v56, %v4798_v39  ;;  %5495 = vmatpush1.bf16.msra.mxu0 %v10829_v53 }
 0x6d2   : > { %v4802_v14 = vpop.f32.mrb[46].mxu0  ;;  %v4845_v24 = vpop.f32.mrb[46].mxu1  ;;  %5205 = vst [vmem:[%s8093_s27 + $0x38] sm:$0x4] %v5204_v28  ;;  %5208 = vst [vmem:[%s8093_s27 + $0x3c] sm:$0x4] %v5207_v40  ;;  %v4872_v19 = vadd.f32 %v10662_v43, %v4800_v22  ;;  %5538 = vmatpush1.bf16.msra.mxu1 %v10841_v49  ;;  %5496 = vmatprep.subr.bf16.mxu0 %v10843_v15  ;;  %v4874_v39 = vadd.f32 %v4866_v11, %v4843_v48 }
 0x6d3   : > { %v4875_v10 = vadd.f32 %v10658_v56, %v4802_v14  ;;  %v4804_v27 = vpop.f32.mrb[47].mxu0  ;;  %v4847_v30 = vpop.f32.mrb[47].mxu1  ;;  %v7123_v29 = vmul.f32 -1.442695, %v4871_v18  ;;  %v10858_v56 = vld [vmem:[#allocation3 + $0xc0] sm:$0xff]  ;;  %5539 = vmatprep.subr.bf16.mxu1 %v10850_v44  ;;  %v10875_v62 = vld [vmem:[#allocation3 + $0xf0] sm:$0xff]  ;;  %v4873_v13 = vadd.f32 %v4862_v25, %v10810_v52  ;;  %v4877_v40 = vadd.f32 %v4862_v25, %v4845_v24 }
 0x6d4   : > { %v4876_v51 = vadd.f32 %v10662_v43, %v4804_v27  ;;  %v7125_v54 = vmul.f32 -1.442695, %v4872_v19  ;;  %v10863_v43 = vld [vmem:[#allocation3 + $0xe8] sm:$0xff]  ;;  %v10872_v16 = vld [vmem:[#allocation3 + $0xe0] sm:$0xff]  ;;  %v4878_v8 = vadd.f32 %v4866_v11, %v4847_v30  ;;  %v7127_v26 = vmul.f32 -1.442695, %v4874_v39 }
 0x6d5   : > { %v7124_v20 = vmul.f32 -1.442695, %v4875_v10  ;;  %7675 = vpow2.f32 %v7123_v29  ;;  %5497 = vmatpush1.bf16.msra.mxu0 %v10858_v56  ;;  %v4927_v10 = vstv %s4501_s18  ;;  %v4931_v27 = vstv %s4930_s9 }
 0x6d6   : > { %v7126_v0 = vmul.f32 -1.442695, %v4876_v51  ;;  %7677 = vpow2.f32 %v7125_v54  ;;  %5540 = vmatpush1.bf16.msra.mxu1 %v10861_v63  ;;  %5498 = vmatprep.subr.bf16.mxu0 %v10863_v43  ;;  %v7128_v37 = vmul.f32 -1.442695, %v4878_v8  ;;  %vm4928_vm7 = vcmp.ge.s32.totalorder %v11764_v32, %v4927_v10 }
 0x6d7   : > { %7679 = vpow2.f32 %v7124_v20  ;;  %5541 = vmatprep.subr.bf16.mxu1 %v10865_v50  ;;  %vm4932_vm1 = vcmp.lt.s32.totalorder %v11764_v32, %v4931_v27  ;;  %vm4929_vm2 = vcmp.ge.s32.totalorder %v11770_v38, %v4927_v10  ;;  %vm4933_vm0 = vcmp.lt.s32.totalorder %v11770_v38, %v4931_v27 }
 0x6d8   : > { %7681 = vpow2.f32 %v7126_v0  ;;  %v11952_v0 = vsel %vm10446_vm14, %v10452_v2, 0.0  ;;  %vm10890_vm12 = vmand %vm4928_vm7, %vm4932_vm1  ;;  %vm5880_vm13 = vsmask.f32 3328 }
 0x6d9   : > { %5499 = vmatpush1.bf16.msra.mxu0 %v10872_v16  ;;  %7683 = vtanh.f32 %v4873_v13  ;;  %vm10906_vm14 = vmand %vm4929_vm2, %vm4933_vm0 }
 0x6da   : > { %5542 = vmatpush1.bf16.msra.mxu1 %v10875_v62  ;;  %5982 = vmatprep.subr.bf16.mxu0 %v10483_v12  ;;  %7685 = vpow2.f32 %v7127_v26  ;;  %vm7901_vm15 = vmpackc.low %vm10906_vm14, %vm10890_vm12 }
 0x6db   : > { %6025 = vmatprep.subr.bf16.mxu1 %v10485_v46  ;;  %7687 = vpow2.f32 %v7128_v37  ;;  %vm11047_vm7 = vmand %vm5879_vm9, %vm5880_vm13 }
 0x6df   : > { %v7676_v22 = vpop.eup %7675 }
 0x6e0   : > { %v7678_v48 = vpop.eup %7677  ;;  %v4885_v28 = vadd.f32 1.0, %v7676_v22 }
 0x6e1   : > { %v4897_v18 = vadd.f32 1.0, %v7678_v48  ;;  %v7680_v52 = vpop.eup %7679 }
 0x6e2   : > { %7689 = vrcp.f32 %v4885_v28  ;;  %v7682_v14 = vpop.eup %7681  ;;  %v4886_v19 = vadd.f32 1.0, %v7680_v52 }
 0x6e3   : > { %7691 = vrcp.f32 %v4897_v18  ;;  %v4898_v12 = vadd.f32 1.0, %v7682_v14  ;;  %v7684_v46 = vpop.eup %7683 }
 0x6e4   : > { %7693 = vtanh.f32 %v4877_v40  ;;  %v7686_v30 = vpop.eup %7685 }
 0x6e5   : > { %7695 = vrcp.f32 %v4886_v19  ;;  %v7688_v29 = vpop.eup %7687  ;;  %v4911_v11 = vadd.f32 1.0, %v7686_v30 }
 0x6e6   : > { %7697 = vrcp.f32 %v4898_v12  ;;  %v4912_v22 = vadd.f32 1.0, %v7688_v29  ;;  %v11970_v29 = vld [vmem:[#allocation42_spill] sm:$0xff] }
 0x6e7   : > { %7699 = vrcp.f32 %v4911_v11  ;;  %v11974_v11 = vld [vmem:[#allocation46_spill] sm:$0xff] }
 0x6ec   : > { %v7690_v51 = vpop.eup %7689 }
 0x6ed   : > { %v7692_v24 = vpop.eup %7691  ;;  %v4919_v54 = vmul.f32 %v7690_v51, %v7684_v46  ;;  %v11971_v51 = vld [vmem:[#allocation43_spill] sm:$0xff] }
 0x6ee   : > { %v7694_v20 = vpop.eup %7693  ;;  %v4917_v25 = vmul.f32 %v7692_v24, %v11952_v0  ;;  %v11972_v24 = vld [vmem:[#allocation44_spill] sm:$0xff] }
 0x6ef   : > { %v7696_v39 = vpop.eup %7695  ;;  %v11976_v0 = vld [vmem:[#allocation48_spill] sm:$0xff] }
 0x6f0   : > { %v7698_v13 = vpop.eup %7697  ;;  %v10896_v26 = vadd.f32 %v4919_v54, %v4917_v25  ;;  %v4920_v37 = vmul.f32 %v7696_v39, %v7694_v20  ;;  %v11973_v54 = vld [vmem:[#allocation45_spill] sm:$0xff]  ;;  %v11975_v20 = vld [vmem:[#allocation47_spill] sm:$0xff] }
 0x6f1   : > { %v4918_v2 = vmul.f32 %v7698_v13, %v11955_v60  ;;  %v7700_v42 = vpop.eup %7699  ;;  %v11977_v25 = vld [vmem:[#allocation49_spill] sm:$0xff] }
 0x6f2   : > { %7701 = vtanh.f32 %v10896_v26  ;;  %v7142_v39 = vld [vmem:[%s8081_s6 + $0x6] ss:$8 sm:$0xf] }
 0x6f3   : > { %v10910_v40 = vadd.f32 %v4920_v37, %v4918_v2  ;;  %7703 = vrcp.f32 %v4912_v22  ;;  %v11978_v13 = vld [vmem:[#allocation25_spill] sm:$0xff]  ;;  %v11979_v22 = vld [vmem:[#allocation26_spill] sm:$0xff] }
 0x6f4   : > { %v5351_v37 = vrot.slane %v7142_v39, %v11978_v13  ;;  %v5355_v60 = vrot.slane %v7142_v39, %v11979_v22 }
 0x6f5   : > { %7705 = vtanh.f32 %v10910_v40  ;;  %v12014_v8 = vsel %vm10906_vm14, %v10910_v40, 0.0 }
 0x6fc   : > { %v7702_v18 = vpop.eup %7701 }
 0x6fd   : > { %v4925_v52 = vmul.f32 %v7702_v18, %v7700_v42  ;;  %v7704_v14 = vpop.eup %7703 }
 0x6ff   : > { %v7706_v19 = vpop.eup %7705  ;;  %v4940_v46 = vsel %vm10890_vm12, %v4925_v52, 0.0 }
 0x700   : > { %v4926_v12 = vmul.f32 %v7706_v19, %v7704_v14 }
 0x702   : > { %v4941_v10 = vsel %vm10906_vm14, %v4926_v12, 0.0  ;;  %v7902_v30 = vpack.c.bf16 %v4926_v12, %v4925_v52 }
 0x703   : > { %v7244_v27 = vpack.c.bf16 %v4941_v10, %v4940_v46 }
 0x704   : > { %7903 = vmatmul.mubr.msk.bf16.vlgmr.msra.gmra.mrb[52].mxu0 %vm7901_vm15, %v7902_v30  ;;  %7906 = vmatmul.mubr.msk.bf16.vlgmr.msra.gmra.mrb[52].mxu1 %vm7901_vm15, %v7902_v30 }
 0x705   : > { %7261 = vst [vmem:[%s8091_s28 + $0x10] sm:$0xff] %v7244_v27   ;;  %5983 = vmatpush1.bf16.msra.mxu0 %v10489_v21  ;;  %6026 = vmatpush1.bf16.msra.mxu1 %v10491_v4  ;;  %v11958_v21 = vld [vmem:[#allocation71_spill] sm:$0xff]  ;;  %v11959_v4 = vld [vmem:[#allocation20_spill] sm:$0xff] }
 0x706   : > { %5984 = vmatprep.subr.bf16.mxu0 %v10495_v45  ;;  %6027 = vmatprep.subr.bf16.mxu1 %v10497_v61  ;;  %v11960_v45 = vld [vmem:[#allocation22_spill] sm:$0xff]  ;;  %v11961_v61 = vld [vmem:[#allocation21_spill] sm:$0xff] }
 0x707   : > { %6014 = vmatprep.mubr.bf16.mxu0 %v11776_v3  ;;  %6057 = vmatprep.mubr.bf16.mxu1 %v11776_v3 }
 0x709   : > { %5985 = vmatpush1.bf16.msra.mxu0 %v10501_v5  ;;  %6028 = vmatpush1.bf16.msra.mxu1 %v10503_v55  ;;  %v11962_v5 = vld [vmem:[#allocation23_spill] sm:$0xff] }
 0x70a   : > { %5986 = vmatprep.subr.bf16.mxu0 %v10507_v7  ;;  %6029 = vmatprep.subr.bf16.mxu1 %v10509_v33  ;;  %v11963_v55 = vld [vmem:[#allocation35_spill] sm:$0xff]  ;;  %v11964_v7 = vld [vmem:[#allocation36_spill] sm:$0xff]  ;;  %v11965_v33 = vld [vmem:[#allocation37_spill] sm:$0xff] }
 0x70d   : > { %5987 = vmatpush1.bf16.msra.mxu0 %v10513_v31  ;;  %6030 = vmatpush1.bf16.msra.mxu1 %v10516_v9  ;;  %v11966_v31 = vld [vmem:[#allocation38_spill] sm:$0xff]  ;;  %v11967_v9 = vld [vmem:[#allocation39_spill] sm:$0xff] }
 0x70e   : > { %5988 = vmatprep.subr.bf16.mxu0 %v10519_v6  ;;  %6031 = vmatprep.subr.bf16.mxu1 %v10521_v17  ;;  %v11968_v6 = vld [vmem:[#allocation40_spill] sm:$0xff]  ;;  %v11969_v17 = vld [vmem:[#allocation41_spill] sm:$0xff] }
 0x711   : > { %5989 = vmatpush1.bf16.msra.mxu0 %v11958_v21  ;;  %6032 = vmatpush1.bf16.msra.mxu1 %v11959_v4 }
 0x712   : > { %5990 = vmatprep.subr.bf16.mxu0 %v11960_v45  ;;  %6033 = vmatprep.subr.bf16.mxu1 %v11961_v61  ;;  %v5363_v45 = vrot.slane %v7142_v39, %v11729_v34 }
 0x715   : > { %5991 = vmatpush1.bf16.msra.mxu0 %v11962_v5  ;;  %6034 = vmatpush1.bf16.msra.mxu1 %v11963_v55 }
 0x716   : > { %5992 = vmatprep.subr.bf16.mxu0 %v11964_v7  ;;  %6035 = vmatprep.subr.bf16.mxu1 %v11965_v33  ;;  %v5359_v7 = vrot.slane %v7142_v39, %v11730_v36 }
 0x719   : > { %5993 = vmatpush1.bf16.msra.mxu0 %v11966_v31  ;;  %6036 = vmatpush1.bf16.msra.mxu1 %v11967_v9 }
 0x71a   : > { %5994 = vmatprep.subr.bf16.mxu0 %v11968_v6  ;;  %6037 = vmatprep.subr.bf16.mxu1 %v11969_v17 }
 0x71d   : > { %5995 = vmatpush1.bf16.msra.mxu0 %v11970_v29  ;;  %6038 = vmatpush1.bf16.msra.mxu1 %v11971_v51 }
 0x71e   : > { %5996 = vmatprep.subr.bf16.mxu0 %v11972_v24  ;;  %6039 = vmatprep.subr.bf16.mxu1 %v11973_v54 }
 0x721   : > { %5997 = vmatpush1.bf16.msra.mxu0 %v11974_v11  ;;  %6040 = vmatpush1.bf16.msra.mxu1 %v11975_v20 }
 0x722   : > { %6204 = vmatprep.subr.bf16.mxu0 %v11976_v0  ;;  %6247 = vmatprep.subr.bf16.mxu1 %v11977_v25 }
 0x78d   : > { %v5295_v2 = vpop.f32.mrb[48].mxu0  ;;  %v5338_v42 = vpop.f32.mrb[48].mxu1 }
 0x78e   : > { %v5368_v18 = vadd.f32 %v5351_v37, %v5295_v2  ;;  %v5297_v52 = vpop.f32.mrb[49].mxu0  ;;  %v5340_v14 = vpop.f32.mrb[49].mxu1  ;;  %v5370_v31 = vadd.f32 %v5359_v7, %v5338_v42  ;;  %v5428_v2 = vstv %s5427_s17 }
 0x78f   : > { %v5369_v19 = vadd.f32 %v5355_v60, %v5297_v52  ;;  %v5299_v12 = vpop.f32.mrb[50].mxu0  ;;  %v5342_v46 = vpop.f32.mrb[50].mxu1  ;;  %v5371_v33 = vadd.f32 %v5363_v45, %v5340_v14  ;;  %vm5429_vm10 = vcmp.gt.s32.totalorder %v11764_v32, %v5428_v2  ;;  %vm5430_vm5 = vcmp.gt.s32.totalorder %v11770_v38, %v5428_v2 }
 0x790   : > { %v7143_v10 = vmul.f32 -1.442695, %v5368_v18  ;;  %v5372_v27 = vadd.f32 %v5351_v37, %v5299_v12  ;;  %v5301_v30 = vpop.f32.mrb[51].mxu0  ;;  %v5344_v21 = vpop.f32.mrb[51].mxu1  ;;  %v5374_v17 = vadd.f32 %v5359_v7, %v5342_v46 }
 0x791   : > { %v7145_v4 = vmul.f32 -1.442695, %v5369_v19  ;;  %v5373_v61 = vadd.f32 %v5355_v60, %v5301_v30  ;;  %v7147_v9 = vmul.f32 -1.442695, %v5371_v33  ;;  %v5375_v6 = vadd.f32 %v5363_v45, %v5344_v21  ;;  %v12003_v33 = vld [vmem:[#allocation56_spill] sm:$0xff] }
 0x792   : > { %7707 = vpow2.f32 %v7143_v10  ;;  %v7144_v5 = vmul.f32 -1.442695, %v5372_v27  ;;  %v5424_v60 = vstv %s5220_s15  ;;  %v11981_v27 = vld [vmem:[#allocation51_spill] sm:$0xff]  ;;  %v11983_v45 = vmov 0 }
 0x793   : > { %7709 = vpow2.f32 %v7145_v4  ;;  %v7146_v55 = vmul.f32 -1.442695, %v5373_v61  ;;  %v7148_v54 = vmul.f32 -1.442695, %v5375_v6  ;;  %vm5425_vm8 = vcmp.le.s32.totalorder %v11764_v32, %v5424_v60  ;;  %v11996_v10 = vld [vmem:[#allocation31_spill] sm:$0xff] }
 0x794   : > { %7711 = vpow2.f32 %v7144_v5  ;;  %v11982_v30 = vsel %vm10598_vm3, %v11981_v27, 0.0  ;;  %vm10972_vm6 = vmand %vm5425_vm8, %vm5429_vm10  ;;  %vm5426_vm11 = vcmp.le.s32.totalorder %v11770_v38, %v5424_v60 }
 0x795   : > { %7713 = vpow2.f32 %v7146_v55  ;;  %v11984_v45 = vsel %vm10972_vm6, 4294967295, %v11983_v45  ;;  %vm10988_vm3 = vmand %vm5426_vm11, %vm5430_vm5 }
 0x796   : > { %7715 = vtanh.f32 %v5370_v31  ;;  %11985 = vst [vmem:[#allocation62_spill] sm:$0xff] %v11984_v45  ;;  %v11998_v31 = vld [vmem:[#allocation33_spill] sm:$0xff] }
 0x797   : > { %7717 = vpow2.f32 %v7147_v9  ;;  %v11988_v9 = vld [vmem:[#allocation28_spill] sm:$0xff]  ;;  %v12010_v45 = vld [vmem:[#allocation61_spill] sm:$0xff] }
 0x798   : > { %7719 = vtanh.f32 %v5374_v17  ;;  %v11989_v6 = vsel %vm10614_vm4, %v11988_v9, 0.0  ;;  %vm7907_vm4 = vmpackc.low %vm10988_vm3, %vm10972_vm6 }
 0x79c   : > { %v7708_v29 = vpop.eup %7707 }
 0x79d   : > { %v7710_v51 = vpop.eup %7709  ;;  %v5382_v24 = vadd.f32 1.0, %v7708_v29  ;;  %v11990_v29 = vmov 0 }
 0x79e   : > { %v5394_v11 = vadd.f32 1.0, %v7710_v51  ;;  %v7712_v20 = vpop.eup %7711  ;;  %v11991_v29 = vsel %vm10988_vm3, 4294967295, %v11990_v29 }
 0x79f   : > { %7721 = vrcp.f32 %v5382_v24  ;;  %v5383_v0 = vadd.f32 1.0, %v7712_v20  ;;  %v7714_v25 = vpop.eup %7713  ;;  %11992 = vst [vmem:[#allocation64_spill] sm:$0xff] %v11991_v29 }
 0x7a0   : > { %7723 = vrcp.f32 %v5394_v11  ;;  %v5395_v39 = vadd.f32 1.0, %v7714_v25  ;;  %v7716_v37 = vpop.eup %7715 }
 0x7a1   : > { %7725 = vpow2.f32 %v7148_v54  ;;  %v7718_v42 = vpop.eup %7717 }
 0x7a2   : > { %7727 = vrcp.f32 %v5383_v0  ;;  %v7720_v18 = vpop.eup %7719  ;;  %v5408_v12 = vadd.f32 1.0, %v7718_v42 }
 0x7a3   : > { %7729 = vrcp.f32 %v5395_v39 }
 0x7a4   : > { %7731 = vrcp.f32 %v5408_v12 }
 0x7a9   : > { %v7722_v52 = vpop.eup %7721 }
 0x7aa   : > { %v7724_v14 = vpop.eup %7723  ;;  %v5416_v19 = vmul.f32 %v7722_v52, %v7716_v37 }
 0x7ab   : > { %v7726_v46 = vpop.eup %7725  ;;  %v5414_v21 = vmul.f32 %v7724_v14, %v11982_v30 }
 0x7ac   : > { %v7728_v4 = vpop.eup %7727  ;;  %v5409_v7 = vadd.f32 1.0, %v7726_v46  ;;  %v11995_v46 = vld [vmem:[#allocation30_spill] sm:$0xff] }
 0x7ad   : > { %v10976_v61 = vadd.f32 %v5416_v19, %v5414_v21  ;;  %v5417_v5 = vmul.f32 %v7728_v4, %v7720_v18  ;;  %v7730_v55 = vpop.eup %7729  ;;  %v11994_v18 = vld [vmem:[#allocation34_spill] sm:$0xff] }
 0x7ae   : > { %v5415_v17 = vmul.f32 %v7730_v55, %v11989_v6  ;;  %v7732_v54 = vpop.eup %7731  ;;  %v11005_v19 = vld [vmem:[%s8086_s13 + $0x1] ss:$8 sm:$0xf] }
 0x7af   : > { %11986 = vst [vmem:[#allocation63_spill] sm:$0xff] %v10976_v61  ;;  %7733 = vtanh.f32 %v10976_v61  ;;  %v11018_v55 = vrot.slane %v11005_v19, %v11978_v13  ;;  %v5912_v61 = vld [vmem:[%s8093_s27 + $0x28] sm:$0x8]  ;;  %v5921_v13 = vld [vmem:[%s8093_s27 + $0x34] sm:$0x8] }
 0x7b0   : > { %v10992_v51 = vadd.f32 %v5417_v5, %v5415_v17  ;;  %7735 = vrcp.f32 %v5409_v7  ;;  %v11997_v5 = vld [vmem:[#allocation32_spill] sm:$0xff]  ;;  %v11022_v7 = vrot.slane %v11005_v19, %v11979_v22  ;;  %v5918_v22 = vld [vmem:[%s8093_s27 + $0x30] sm:$0x8] }
 0x7b2   : > { %11993 = vst [vmem:[#allocation65_spill] sm:$0xff] %v10992_v51  ;;  %7737 = vtanh.f32 %v10992_v51  ;;  %v12009_v51 = vld [vmem:[#allocation60_spill] sm:$0xff] }
 0x7b9   : > { %v7734_v11 = vpop.eup %7733 }
 0x7ba   : > { %v5422_v20 = vmul.f32 %v7734_v11, %v7732_v54  ;;  %v7736_v0 = vpop.eup %7735 }
 0x7bc   : > { %v7738_v25 = vpop.eup %7737  ;;  %v5437_v37 = vsel %vm10972_vm6, %v5422_v20, 0.0 }
 0x7bd   : > { %v5423_v39 = vmul.f32 %v7738_v25, %v7736_v0 }
 0x7bf   : > { %v5438_v60 = vsel %vm10988_vm3, %v5423_v39, 0.0  ;;  %v7908_v12 = vpack.c.bf16 %v5423_v39, %v5422_v20  ;;  %v11999_v39 = vld [vmem:[#allocation52_spill] sm:$0xff] }
 0x7c0   : > { %v5668_v2 = vpack.c.bf16 %v5438_v60, %v5437_v37  ;;  %v7156_v42 = vpack.c.bf16 %v5438_v60, %v5438_v60  ;;  %v12000_v37 = vld [vmem:[#allocation53_spill] sm:$0xff] }
 0x7c1   : > { %7909 = vmatmul.mubr.msk.bf16.vlgmr.msra.gmra.mrb[56].mxu0 %vm7907_vm4, %v7908_v12  ;;  %7912 = vmatmul.mubr.msk.bf16.vlgmr.msra.gmra.mrb[56].mxu1 %vm7907_vm4, %v7908_v12  ;;  %v12002_v12 = vld [vmem:[#allocation55_spill] sm:$0xff] }
 0x7c2   : > { %v5677_v52 = vrot.slane %v5668_v2, %v11994_v18  ;;  %v5684_v14 = vrot.slane %v7156_v42, %v11994_v18  ;;  %6205 = vmatpush1.bf16.msra.mxu0 %v11995_v46  ;;  %6248 = vmatpush1.bf16.msra.mxu1 %v11996_v10 }
 0x7c3   : > { %6206 = vmatprep.subr.bf16.mxu0 %v11997_v5  ;;  %6249 = vmatprep.subr.bf16.mxu1 %v11998_v31 }
 0x7c4   : > { %v5685_v27 = vcombine.high %v5677_v52, %v5677_v52  ;;  %v5686_v30 = vcombine.high %v5684_v14, %v5684_v14  ;;  %v5693_v21 = vrot.slane %v5677_v52, %v11994_v18  ;;  %v5700_v4 = vrot.slane %v5684_v14, %v11994_v18  ;;  %6236 = vmatprep.mubr.bf16.mxu0 %v11776_v3  ;;  %v12001_v14 = vld [vmem:[#allocation54_spill] sm:$0xff] }
 0x7c5   : > { %6279 = vmatprep.mubr.bf16.mxu1 %v11776_v3 }
 0x7c6   : > { %v5707_v9 = vrot.slane %v5685_v27, %v11994_v18  ;;  %v5714_v6 = vrot.slane %v5686_v30, %v11994_v18  ;;  %v5715_v17 = vcombine.high %v5693_v21, %v5693_v21  ;;  %v5716_v54 = vcombine.high %v5700_v4, %v5700_v4  ;;  %6207 = vmatpush1.bf16.msra.mxu0 %v11999_v39  ;;  %v5903_v18 = vld [vmem:[%s8093_s27 + $0x1c] sm:$0x8] }
 0x7c7   : > { %v5720_v11 = vunpack.i.h.s16 %v5693_v21  ;;  %v5728_v20 = vunpack.i.h.s16 %v5700_v4  ;;  %v7157_v0 = vpack.i.b16 %v5693_v21, %v5693_v21  ;;  %v7161_v25 = vpack.i.b16 %v5700_v4, %v5700_v4  ;;  %6250 = vmatpush1.bf16.msra.mxu1 %v12000_v37  ;;  %6208 = vmatprep.subr.bf16.mxu0 %v12001_v14 }
 0x7c8   : > { %v5717_v60 = vcombine.high %v5707_v9, %v5707_v9  ;;  %v5718_v2 = vcombine.high %v5714_v6, %v5714_v6  ;;  %v5722_v42 = vunpack.i.h.s16 %v5707_v9  ;;  %v5724_v52 = vunpack.i.h.s16 %v5715_v17  ;;  %6251 = vmatprep.subr.bf16.mxu1 %v12002_v12 }
 0x7c9   : > { %v5730_v46 = vunpack.i.h.s16 %v5714_v6  ;;  %v5732_v10 = vunpack.i.h.s16 %v5716_v54  ;;  %v5736_v27 = vpack.i.b16 %v5720_v11, %v5720_v11  ;;  %v7158_v3 = vpack.i.b16 %v5707_v9, %v5707_v9  ;;  %v12004_v11 = vld [vmem:[#allocation57_spill] sm:$0xff] }
 0x7ca   : > { %v5726_v30 = vunpack.i.h.s16 %v5717_v60  ;;  %v5734_v5 = vunpack.i.h.s16 %v5718_v2  ;;  %v5738_v21 = vpack.i.b16 %v5722_v42, %v5722_v42  ;;  %v7159_v4 = vpack.i.b16 %v5715_v17, %v5715_v17  ;;  %6209 = vmatpush1.bf16.msra.mxu0 %v12003_v33 }
 0x7cb   : > { %v5740_v31 = vpack.i.b16 %v5724_v52, %v5724_v52  ;;  %v7160_v39 = vpack.i.b16 %v5717_v60, %v5717_v60  ;;  %v11033_v37 = vpack.i.b16 %v5728_v20, %v5728_v20  ;;  %v7162_v24 = vpack.i.b16 %v5714_v6, %v5714_v6  ;;  %6252 = vmatpush1.bf16.msra.mxu1 %v12004_v11  ;;  %v5885_v60 = vld [vmem:[%s8093_s27 + $0x4] sm:$0x8]  ;;  %v12007_v52 = vld [vmem:[#allocation58_spill] sm:$0xff]  ;;  %v12008_v11 = vld [vmem:[#allocation59_spill] sm:$0xff] }
 0x7cc   : > { %v5742_v14 = vpack.i.b16 %v5726_v30, %v5726_v30  ;;  %v11036_v35 = vpack.i.b16 %v5730_v46, %v5730_v46  ;;  %v7163_v12 = vpack.i.b16 %v5716_v54, %v5716_v54  ;;  %v11038_v9 = vpack.i.b16 %v5732_v10, %v5732_v10  ;;  %v5882_v54 = vld [vmem:[%s8093_s27] sm:$0x8]  ;;  %6210 = vmatprep.subr.bf16.mxu0 %v12007_v52  ;;  %v5891_v30 = vld [vmem:[%s8093_s27 + $0xc] sm:$0x8] }
 0x7cd   : > { %v7164_v17 = vpack.i.b16 %v5718_v2, %v5718_v2  ;;  %v11041_v42 = vpack.i.b16 %v5734_v5, %v5734_v5  ;;  %v5757_v20 = vrot.slane %v7157_v0, %v8737_v58  ;;  %v5764_v6 = vrot.slane %v5736_v27, %v8737_v58  ;;  %v5888_v27 = vld [vmem:[%s8093_s27 + $0x8] sm:$0x8]  ;;  %v5894_v5 = vld [vmem:[%s8093_s27 + $0x10] sm:$0x8]  ;;  %6253 = vmatprep.subr.bf16.mxu1 %v12008_v11  ;;  %v5909_v11 = vld [vmem:[%s8093_s27 + $0x24] sm:$0x8] }
 0x7ce   : > { %v5771_v2 = vrot.slane %v7158_v3, %v8737_v58  ;;  %v5778_v46 = vrot.slane %v5738_v21, %v8737_v58  ;;  %v5785_v0 = vrot.slane %v7159_v4, %v8737_v58  ;;  %v5792_v10 = vrot.slane %v5740_v31, %v8737_v58  ;;  %v5897_v4 = vld [vmem:[%s8093_s27 + $0x14] sm:$0x8]  ;;  %v5900_v31 = vld [vmem:[%s8093_s27 + $0x18] sm:$0x8]  ;;  %6211 = vmatpush1.bf16.msra.mxu0 %v12009_v51 }
 0x7cf   : > { %v5799_v48 = vrot.slane %v7160_v39, %v8737_v58  ;;  %v5806_v52 = vrot.slane %v5742_v14, %v8737_v58  ;;  %v5813_v3 = vrot.slane %v7161_v25, %v8737_v58  ;;  %v5820_v21 = vrot.slane %v11033_v37, %v8737_v58  ;;  %v5906_v14 = vld [vmem:[%s8093_s27 + $0x20] sm:$0x8]  ;;  %6254 = vmatpush1.bf16.msra.mxu1 %v12010_v45 }
 0x7d0   : > { %v5827_v29 = vrot.slane %v7162_v24, %v8737_v58  ;;  %v5834_v39 = vrot.slane %v11036_v35, %v8737_v58  ;;  %v5841_v25 = vrot.slane %v7163_v12, %v8737_v58  ;;  %v5848_v37 = vrot.slane %v11038_v9, %v8737_v58  ;;  %v5915_v9 = vld [vmem:[%s8093_s27 + $0x2c] sm:$0x8]  ;;  %6212 = vmatprep.subr.bf16.mxu0 %v10742_v1 }
 0x7d1   : > { %v5855_v51 = vrot.slane %v7164_v17, %v8737_v58  ;;  %v5862_v24 = vrot.slane %v11041_v42, %v8737_v58  ;;  %v5883_v35 = vsel %vm11047_vm7, %v5757_v20, %v5882_v54  ;;  %v5886_v12 = vsel %vm11047_vm7, %v5764_v6, %v5885_v60  ;;  %v5924_v6 = vld [vmem:[%s8093_s27 + $0x38] sm:$0x8]  ;;  %v5927_v54 = vld [vmem:[%s8093_s27 + $0x3c] sm:$0x8]  ;;  %6255 = vmatprep.subr.bf16.mxu1 %v10755_v47 }
 0x7d2   : > { %5884 = vst [vmem:[%s8093_s27] sm:$0x8] %v5883_v35  ;;  %5887 = vst [vmem:[%s8093_s27 + $0x4] sm:$0x8] %v5886_v12  ;;  %v5889_v45 = vsel %vm11047_vm7, %v5771_v2, %v5888_v27  ;;  %v5892_v17 = vsel %vm11047_vm7, %v5778_v46, %v5891_v30  ;;  %v5895_v42 = vsel %vm11047_vm7, %v5785_v0, %v5894_v5  ;;  %6213 = vmatpush1.bf16.msra.mxu0 %v10768_v23 }
 0x7d3   : > { %v5898_v20 = vsel %vm11047_vm7, %v5792_v10, %v5897_v4  ;;  %5890 = vst [vmem:[%s8093_s27 + $0x8] sm:$0x8] %v5889_v45  ;;  %5893 = vst [vmem:[%s8093_s27 + $0xc] sm:$0x8] %v5892_v17  ;;  %v5901_v1 = vsel %vm11047_vm7, %v5799_v48, %v5900_v31  ;;  %v5904_v60 = vsel %vm11047_vm7, %v5806_v52, %v5903_v18  ;;  %6256 = vmatpush1.bf16.msra.mxu1 %v10780_v41 }
 0x7d4   : > { %5896 = vst [vmem:[%s8093_s27 + $0x10] sm:$0x8] %v5895_v42  ;;  %5899 = vst [vmem:[%s8093_s27 + $0x14] sm:$0x8] %v5898_v20  ;;  %v5907_v2 = vsel %vm11047_vm7, %v5813_v3, %v5906_v14  ;;  %v5910_v46 = vsel %vm11047_vm7, %v5820_v21, %v5909_v11  ;;  %v5913_v48 = vsel %vm11047_vm7, %v5827_v29, %v5912_v61  ;;  %6214 = vmatprep.subr.bf16.mxu0 %v10795_v59 }
 0x7d5   : > { %5902 = vst [vmem:[%s8093_s27 + $0x18] sm:$0x8] %v5901_v1  ;;  %5905 = vst [vmem:[%s8093_s27 + $0x1c] sm:$0x8] %v5904_v60  ;;  %v5916_v18 = vsel %vm11047_vm7, %v5834_v39, %v5915_v9  ;;  %v5919_v10 = vsel %vm11047_vm7, %v5841_v25, %v5918_v22  ;;  %v5922_v27 = vsel %vm11047_vm7, %v5848_v37, %v5921_v13  ;;  %6257 = vmatprep.subr.bf16.mxu1 %v10813_v57 }
 0x7d6   : > { %5908 = vst [vmem:[%s8093_s27 + $0x20] sm:$0x8] %v5907_v2  ;;  %5911 = vst [vmem:[%s8093_s27 + $0x24] sm:$0x8] %v5910_v46  ;;  %v5925_v61 = vsel %vm11047_vm7, %v5855_v51, %v5924_v6  ;;  %v5928_v29 = vsel %vm11047_vm7, %v5862_v24, %v5927_v54  ;;  %6215 = vmatpush1.bf16.msra.mxu0 %v10829_v53  ;;  %v5586_v39 = vrot.slane %v11005_v19, %v11729_v34 }
 0x7d7   : > { %v5518_v0 = vpop.f32.mrb[52].mxu0  ;;  %v5561_v47 = vpop.f32.mrb[52].mxu1  ;;  %5914 = vst [vmem:[%s8093_s27 + $0x28] sm:$0x8] %v5913_v48  ;;  %5917 = vst [vmem:[%s8093_s27 + $0x2c] sm:$0x8] %v5916_v18  ;;  %6258 = vmatpush1.bf16.msra.mxu1 %v10841_v49  ;;  %6216 = vmatprep.subr.bf16.mxu0 %v10843_v15  ;;  %v5582_v57 = vrot.slane %v11005_v19, %v11730_v36  ;;  %v5647_v11 = vstv %s5221_s11  ;;  %v5651_v51 = vstv %s5650_s12 }
 0x7d8   : > { %v5520_v30 = vpop.f32.mrb[53].mxu0  ;;  %v5563_v23 = vpop.f32.mrb[53].mxu1  ;;  %5920 = vst [vmem:[%s8093_s27 + $0x30] sm:$0x8] %v5919_v10  ;;  %5923 = vst [vmem:[%s8093_s27 + $0x34] sm:$0x8] %v5922_v27  ;;  %v5591_v22 = vadd.f32 %v11018_v55, %v5518_v0  ;;  %6259 = vmatprep.subr.bf16.mxu1 %v10850_v44  ;;  %vm5648_vm1 = vcmp.ge.s32.totalorder %v11764_v32, %v5647_v11  ;;  %vm5652_vm2 = vcmp.lt.s32.totalorder %v11764_v32, %v5651_v51 }
 0x7d9   : > { %v5522_v5 = vpop.f32.mrb[54].mxu0  ;;  %v5565_v52 = vpop.f32.mrb[54].mxu1  ;;  %5926 = vst [vmem:[%s8093_s27 + $0x38] sm:$0x8] %v5925_v61  ;;  %5929 = vst [vmem:[%s8093_s27 + $0x3c] sm:$0x8] %v5928_v29  ;;  %v5592_v41 = vadd.f32 %v11022_v7, %v5520_v30  ;;  %v5594_v53 = vadd.f32 %v5586_v39, %v5563_v23  ;;  %v5593_v15 = vadd.f32 %v5582_v57, %v5561_v47 }
 0x7da   : > { %v5595_v13 = vadd.f32 %v11018_v55, %v5522_v5  ;;  %v5524_v3 = vpop.f32.mrb[55].mxu0  ;;  %v5567_v21 = vpop.f32.mrb[55].mxu1  ;;  %v7150_v4 = vmul.f32 -1.442695, %v5591_v22  ;;  %6217 = vmatpush1.bf16.msra.mxu0 %v10858_v56  ;;  %v12011_v20 = vsel %vm10890_vm12, %v10896_v26, 0.0  ;;  %vm11169_vm0 = vmand %vm5648_vm1, %vm5652_vm2  ;;  %vm5649_vm15 = vcmp.ge.s32.totalorder %v11770_v38, %v5647_v11 }
 0x7db   : > { %v5596_v33 = vadd.f32 %v11022_v7, %v5524_v3  ;;  %v7152_v31 = vmul.f32 -1.442695, %v5592_v41  ;;  %6260 = vmatpush1.bf16.msra.mxu1 %v10861_v63  ;;  %6218 = vmatprep.subr.bf16.mxu0 %v10863_v43  ;;  %v5598_v49 = vadd.f32 %v5586_v39, %v5567_v21  ;;  %v7154_v44 = vmul.f32 -1.442695, %v5594_v53  ;;  %v12018_v21 = vld [vmem:[#allocation26_spill] sm:$0xff] }
 0x7dc   : > { %v7151_v59 = vmul.f32 -1.442695, %v5595_v13  ;;  %7739 = vpow2.f32 %v7150_v4  ;;  %6261 = vmatprep.subr.bf16.mxu1 %v10865_v50  ;;  %v5597_v63 = vadd.f32 %v5582_v57, %v5565_v52  ;;  %vm5653_vm8 = vcmp.lt.s32.totalorder %v11770_v38, %v5651_v51  ;;  %v7169_v41 = vld [vmem:[%s8081_s6 + $0x7] ss:$8 sm:$0xf]  ;;  %s5941_s6 = sadd.s32 7, %s8690_s25 }
 0x7dd   : > { %v7153_v55 = vmul.f32 -1.442695, %v5596_v33  ;;  %7741 = vpow2.f32 %v7152_v31  ;;  %v7155_v7 = vmul.f32 -1.442695, %v5598_v49  ;;  %vm11185_vm12 = vmand %vm5649_vm15, %vm5653_vm8  ;;  %v12017_v13 = vld [vmem:[#allocation25_spill] sm:$0xff]  ;;  %v6076_v4 = vrot.slane %v7169_v41, %v12018_v21 }
 0x7de   : > { %7743 = vpow2.f32 %v7151_v59  ;;  %6219 = vmatpush1.bf16.msra.mxu0 %v10872_v16  ;;  %vm7913_vm14 = vmpackc.low %vm11185_vm12, %vm11169_vm0  ;;  %v6072_v3 = vrot.slane %v7169_v41, %v12017_v13 }
 0x7df   : > { %7745 = vpow2.f32 %v7153_v55  ;;  %6262 = vmatpush1.bf16.msra.mxu1 %v10875_v62 }
 0x7e0   : > { %7747 = vtanh.f32 %v5593_v15 }
 0x7e1   : > { %7749 = vpow2.f32 %v7154_v44 }
 0x7e2   : > { %7751 = vpow2.f32 %v7155_v7 }
 0x7e6   : > { %v7740_v19 = vpop.eup %7739 }
 0x7e7   : > { %v7742_v56 = vpop.eup %7741  ;;  %v5605_v25 = vadd.f32 1.0, %v7740_v19 }
 0x7e8   : > { %v5617_v43 = vadd.f32 1.0, %v7742_v56  ;;  %v7744_v37 = vpop.eup %7743 }
 0x7e9   : > { %7753 = vrcp.f32 %v5605_v25  ;;  %v7746_v50 = vpop.eup %7745  ;;  %v5606_v14 = vadd.f32 1.0, %v7744_v37  ;;  %v6084_v25 = vrot.slane %v7169_v41, %v11729_v34 }
 0x7ea   : > { %7755 = vrcp.f32 %v5617_v43  ;;  %v5618_v16 = vadd.f32 1.0, %v7746_v50  ;;  %v7748_v62 = vpop.eup %7747  ;;  %v6080_v50 = vrot.slane %v7169_v41, %v11730_v36 }
 0x7eb   : > { %7757 = vtanh.f32 %v5597_v63  ;;  %v7750_v24 = vpop.eup %7749 }
 0x7ec   : > { %7759 = vrcp.f32 %v5606_v14  ;;  %v7752_v35 = vpop.eup %7751  ;;  %v5631_v17 = vadd.f32 1.0, %v7750_v24 }
 0x7ed   : > { %7761 = vrcp.f32 %v5618_v16  ;;  %v5632_v0 = vadd.f32 1.0, %v7752_v35 }
 0x7ee   : > { %7763 = vrcp.f32 %v5631_v17 }
 0x7f3   : > { %v7754_v12 = vpop.eup %7753 }
 0x7f4   : > { %v7756_v9 = vpop.eup %7755  ;;  %v5639_v45 = vmul.f32 %v7754_v12, %v7748_v62 }
 0x7f5   : > { %v7758_v42 = vpop.eup %7757  ;;  %v5637_v6 = vmul.f32 %v7756_v9, %v12011_v20 }
 0x7f6   : > { %v7760_v54 = vpop.eup %7759 }
 0x7f7   : > { %v7762_v60 = vpop.eup %7761  ;;  %v11175_v2 = vadd.f32 %v5639_v45, %v5637_v6  ;;  %v5640_v46 = vmul.f32 %v7760_v54, %v7758_v42 }
 0x7f8   : > { %v5638_v26 = vmul.f32 %v7762_v60, %v12014_v8  ;;  %v7764_v40 = vpop.eup %7763  ;;  %v6145_v60 = vstv %s5941_s6 }
 0x7f9   : > { %7765 = vtanh.f32 %v11175_v2  ;;  %v5662_v47 = vsel %vm11169_vm0, %v11175_v2, 0.0  ;;  %vm6146_vm10 = vcmp.le.s32.totalorder %v11764_v32, %v6145_v60  ;;  %vm6147_vm4 = vcmp.le.s32.totalorder %v11770_v38, %v6145_v60 }
 0x7fa   : > { %v11189_v18 = vadd.f32 %v5640_v46, %v5638_v26  ;;  %7767 = vrcp.f32 %v5632_v0  ;;  %v6149_v46 = vstv %s6148_s26 }
 0x7fb   : > { %vm6150_vm11 = vcmp.gt.s32.totalorder %v11764_v32, %v6149_v46  ;;  %vm6151_vm13 = vcmp.gt.s32.totalorder %v11770_v38, %v6149_v46 }
 0x7fc   : > { %7769 = vtanh.f32 %v11189_v18  ;;  %v5663_v28 = vsel %vm11185_vm12, %v11189_v18, 0.0  ;;  %vm11217_vm5 = vmand %vm6146_vm10, %vm6150_vm11 }
 0x803   : > { %v7766_v10 = vpop.eup %7765 }
 0x804   : > { %v5645_v27 = vmul.f32 %v7766_v10, %v7764_v40  ;;  %v7768_v30 = vpop.eup %7767 }
 0x806   : > { %v7770_v23 = vpop.eup %7769  ;;  %v5660_v29 = vsel %vm11169_vm0, %v5645_v27, 0.0 }
 0x807   : > { %v5646_v61 = vmul.f32 %v7770_v23, %v7768_v30 }
 0x809   : > { %v5661_v22 = vsel %vm11185_vm12, %v5646_v61, 0.0  ;;  %v7914_v52 = vpack.c.bf16 %v5646_v61, %v5645_v27  ;;  %v12020_v61 = vld [vmem:[#allocation63_spill] sm:$0xff] }
 0x80a   : > { %v7249_v5 = vpack.c.bf16 %v5661_v22, %v5660_v29  ;;  %v12021_v29 = vsel %vm10972_vm6, %v12020_v61, 0.0  ;;  %vm6153_vm6 = vmand %vm6147_vm4, %vm6151_vm13 }
 0x80b   : > { %7915 = vmatmul.mubr.msk.bf16.vlgmr.msra.gmra.mrb[60].mxu0 %vm7913_vm14, %v7914_v52  ;;  %7918 = vmatmul.mubr.msk.bf16.vlgmr.msra.gmra.mrb[60].mxu1 %vm7913_vm14, %v7914_v52 }
 0x80c   : > { %7262 = vst [vmem:[%s8091_s28 + $0x8] sm:$0xff] %v7249_v5  }
 0x894   : > { %v6016_v33 = vpop.f32.mrb[56].mxu0  ;;  %v6059_v31 = vpop.f32.mrb[56].mxu1 }
 0x895   : > { %v6089_v39 = vadd.f32 %v6072_v3, %v6016_v33  ;;  %v6018_v59 = vpop.f32.mrb[57].mxu0  ;;  %v6061_v55 = vpop.f32.mrb[57].mxu1  ;;  %v6091_v16 = vadd.f32 %v6080_v50, %v6059_v31 }
 0x896   : > { %v6090_v57 = vadd.f32 %v6076_v4, %v6018_v59  ;;  %v6020_v53 = vpop.f32.mrb[58].mxu0  ;;  %v6063_v49 = vpop.f32.mrb[58].mxu1  ;;  %v6092_v14 = vadd.f32 %v6084_v25, %v6061_v55  ;;  %v12025_v59 = vld [vmem:[#allocation65_spill] sm:$0xff] }
 0x897   : > { %v7170_v15 = vmul.f32 -1.442695, %v6089_v39  ;;  %v6093_v44 = vadd.f32 %v6072_v3, %v6020_v53  ;;  %v6022_v7 = vpop.f32.mrb[59].mxu0  ;;  %v6065_v19 = vpop.f32.mrb[59].mxu1  ;;  %v6095_v51 = vadd.f32 %v6080_v50, %v6063_v49  ;;  %v12026_v55 = vsel %vm10988_vm3, %v12025_v59, 0.0 }
 0x898   : > { %v7172_v56 = vmul.f32 -1.442695, %v6090_v57  ;;  %v6094_v63 = vadd.f32 %v6076_v4, %v6022_v7  ;;  %v7174_v62 = vmul.f32 -1.442695, %v6092_v14  ;;  %v6096_v11 = vadd.f32 %v6084_v25, %v6065_v19  ;;  %v12027_v14 = vld [vmem:[#allocation34_spill] sm:$0xff] }
 0x899   : > { %7771 = vpow2.f32 %v7170_v15  ;;  %v7171_v43 = vmul.f32 -1.442695, %v6093_v44  ;;  %vm6599_vm3 = vsmask.f32 7950 }
 0x89a   : > { %7773 = vpow2.f32 %v7172_v56  ;;  %v7173_v37 = vmul.f32 -1.442695, %v6094_v63  ;;  %v7175_v9 = vmul.f32 -1.442695, %v6096_v11  ;;  %vm11258_vm7 = vmand %vm5879_vm9, %vm6599_vm3 }
 0x89b   : > { %7775 = vpow2.f32 %v7171_v43  ;;  %v11234_v11 = vld [vmem:[%s8086_s13] ss:$8 sm:$0xf]  ;;  %s5942_s13 = ssub.s32 8, %s8690_s25  ;;  %s7194_s25 = sshll.u32 (%p8059_p5), %s7965_s21, 5 }
 0x89c   : > { %7777 = vpow2.f32 %v7173_v37  ;;  %s6678_s22 = sadd.s32 (%p8059_p5), %s7961_s20, %s7194_s25 }
 0x89d   : > { %7779 = vtanh.f32 %v6091_v16  ;;  %s7195_s29 = sshll.u32 (%p8059_p5), %s6678_s22, 2 }
 0x89e   : > { %7781 = vpow2.f32 %v7174_v62  ;;  %s6680_s19 = scalar_lea.vmem (%p8059_p5), %s11416_s4, %s7195_s29 }
 0x89f   : > { %7783 = vtanh.f32 %v6095_v51 }
 0x8a3   : > { %v7772_v24 = vpop.eup %7771 }
 0x8a4   : > { %v7774_v35 = vpop.eup %7773  ;;  %v6103_v12 = vadd.f32 1.0, %v7772_v24 }
 0x8a5   : > { %v6115_v45 = vadd.f32 1.0, %v7774_v35  ;;  %v7776_v17 = vpop.eup %7775 }
 0x8a6   : > { %7785 = vrcp.f32 %v6103_v12  ;;  %v6104_v42 = vadd.f32 1.0, %v7776_v17  ;;  %v7778_v20 = vpop.eup %7777 }
 0x8a7   : > { %7787 = vrcp.f32 %v6115_v45  ;;  %v6116_v6 = vadd.f32 1.0, %v7778_v20  ;;  %v7780_v54 = vpop.eup %7779  ;;  %v11244_v45 = vrot.slane %v11234_v11, %v12018_v21 }
 0x8a8   : > { %7789 = vpow2.f32 %v7175_v9  ;;  %v7782_v0 = vpop.eup %7781  ;;  %v11240_v9 = vrot.slane %v11234_v11, %v12017_v13 }
 0x8a9   : > { %7791 = vrcp.f32 %v6104_v42  ;;  %v7784_v8 = vpop.eup %7783  ;;  %v6129_v27 = vadd.f32 1.0, %v7782_v0 }
 0x8aa   : > { %7793 = vrcp.f32 %v6116_v6 }
 0x8ab   : > { %7795 = vrcp.f32 %v6129_v27 }
 0x8b0   : > { %v7786_v26 = vpop.eup %7785 }
 0x8b1   : > { %v7788_v40 = vpop.eup %7787  ;;  %v6137_v10 = vmul.f32 %v7786_v26, %v7780_v54 }
 0x8b2   : > { %v7790_v30 = vpop.eup %7789  ;;  %v6135_v22 = vmul.f32 %v7788_v40, %v12021_v29 }
 0x8b3   : > { %v7792_v5 = vpop.eup %7791  ;;  %v6130_v33 = vadd.f32 1.0, %v7790_v30 }
 0x8b4   : > { %v6139_v41 = vadd.f32 %v6137_v10, %v6135_v22  ;;  %v6138_v3 = vmul.f32 %v7792_v5, %v7784_v8  ;;  %v7794_v4 = vpop.eup %7793 }
 0x8b5   : > { %v6136_v57 = vmul.f32 %v7794_v4, %v12026_v55  ;;  %v7796_v15 = vpop.eup %7795 }
 0x8b6   : > { %7797 = vtanh.f32 %v6139_v41  ;;  %v6160_v31 = vsel %vm11217_vm5, %v6139_v41, 0.0 }
 0x8b7   : > { %6164 = vst [vmem:[#allocation6] sm:$0xff] %v6160_v31  ;;  %v6140_v53 = vadd.f32 %v6138_v3, %v6136_v57  ;;  %7799 = vrcp.f32 %v6130_v33 }
 0x8b9   : > { %7801 = vtanh.f32 %v6140_v53  ;;  %v6161_v49 = vsel %vm6153_vm6, %v6140_v53, 0.0 }
 0x8ba   : > { %6165 = vst [vmem:[#allocation6 + $0x8] sm:$0xff] %v6161_v49 }
 0x8c0   : > { %v7798_v44 = vpop.eup %7797 }
 0x8c1   : > { %v6143_v7 = vmul.f32 %v7798_v44, %v7796_v15  ;;  %v7800_v19 = vpop.eup %7799 }
 0x8c3   : > { %v6158_v56 = vsel %vm11217_vm5, %v6143_v7, 0.0  ;;  %v7802_v25 = vpop.eup %7801 }
 0x8c4   : > { %6162 = vst [vmem:[#allocation5] sm:$0xff] %v6158_v56  ;;  %v6144_v63 = vmul.f32 %v7802_v25, %v7800_v19  ;;  %v6306_v19 = vrot.slane %v11234_v11, %v11729_v34 }
 0x8c6   : > { %v6159_v43 = vsel %vm6153_vm6, %v6144_v63, 0.0 }
 0x8c7   : > { %6163 = vst [vmem:[#allocation5 + $0x8] sm:$0xff] %v6159_v43  ;;  %v6388_v37 = vpack.c.bf16 %v6159_v43, %v6158_v56  ;;  %v7182_v50 = vpack.c.bf16 %v6159_v43, %v6159_v43 }
 0x8c9   : > { %v6397_v16 = vrot.slane %v6388_v37, %v12027_v14  ;;  %v6404_v62 = vrot.slane %v7182_v50, %v12027_v14  ;;  %v6601_v37 = vld [vmem:[%s8093_s27] sm:$0x8]  ;;  %v6604_v50 = vld [vmem:[%s8093_s27 + $0x4] sm:$0x8] }
 0x8cb   : > { %v6405_v51 = vcombine.high %v6397_v16, %v6397_v16  ;;  %v6406_v24 = vcombine.high %v6404_v62, %v6404_v62  ;;  %v6413_v35 = vrot.slane %v6397_v16, %v12027_v14  ;;  %v6420_v12 = vrot.slane %v6404_v62, %v12027_v14 }
 0x8cd   : > { %v6427_v17 = vrot.slane %v6405_v51, %v12027_v14  ;;  %v6434_v42 = vrot.slane %v6406_v24, %v12027_v14  ;;  %v6435_v20 = vcombine.high %v6413_v35, %v6413_v35  ;;  %v6436_v6 = vcombine.high %v6420_v12, %v6420_v12  ;;  %v6607_v14 = vld [vmem:[%s8093_s27 + $0x8] sm:$0x8] }
 0x8ce   : > { %v6440_v54 = vunpack.i.h.s16 %v6413_v35  ;;  %v6448_v60 = vunpack.i.h.s16 %v6420_v12  ;;  %v7183_v46 = vpack.i.b16 %v6413_v35, %v6413_v35  ;;  %v7187_v0 = vpack.i.b16 %v6420_v12, %v6420_v12  ;;  %v6610_v35 = vld [vmem:[%s8093_s27 + $0xc] sm:$0x8]  ;;  %v6613_v12 = vld [vmem:[%s8093_s27 + $0x10] sm:$0x8] }
 0x8cf   : > { %v6437_v8 = vcombine.high %v6427_v17, %v6427_v17  ;;  %v6438_v26 = vcombine.high %v6434_v42, %v6434_v42  ;;  %v6442_v40 = vunpack.i.h.s16 %v6427_v17  ;;  %v6444_v10 = vunpack.i.h.s16 %v6435_v20 }
 0x8d0   : > { %v6450_v13 = vunpack.i.h.s16 %v6434_v42  ;;  %v6452_v27 = vunpack.i.h.s16 %v6436_v6  ;;  %v6456_v30 = vpack.i.b16 %v6440_v54, %v6440_v54  ;;  %v7184_v23 = vpack.i.b16 %v6427_v17, %v6427_v17  ;;  %v6616_v17 = vld [vmem:[%s8093_s27 + $0x14] sm:$0x8] }
 0x8d1   : > { %v6446_v21 = vunpack.i.h.s16 %v6437_v8  ;;  %v6454_v61 = vunpack.i.h.s16 %v6438_v26  ;;  %v6458_v29 = vpack.i.b16 %v6442_v40, %v6442_v40  ;;  %v7185_v22 = vpack.i.b16 %v6435_v20, %v6435_v20 }
 0x8d2   : > { %v6460_v5 = vpack.i.b16 %v6444_v10, %v6444_v10  ;;  %v7186_v52 = vpack.i.b16 %v6437_v8, %v6437_v8  ;;  %v6464_v41 = vpack.i.b16 %v6448_v60, %v6448_v60  ;;  %v7188_v3 = vpack.i.b16 %v6434_v42, %v6434_v42  ;;  %v6619_v60 = vld [vmem:[%s8093_s27 + $0x18] sm:$0x8]  ;;  %v6628_v10 = vld [vmem:[%s8093_s27 + $0x24] sm:$0x8] }
 0x8d3   : > { %v6462_v4 = vpack.i.b16 %v6446_v21, %v6446_v21  ;;  %v6466_v33 = vpack.i.b16 %v6450_v13, %v6450_v13  ;;  %v7189_v31 = vpack.i.b16 %v6436_v6, %v6436_v6  ;;  %v6468_v39 = vpack.i.b16 %v6452_v27, %v6452_v27  ;;  %v6631_v13 = vld [vmem:[%s8093_s27 + $0x28] sm:$0x8]  ;;  %v6634_v27 = vld [vmem:[%s8093_s27 + $0x2c] sm:$0x8] }
 0x8d4   : > { %v7190_v59 = vpack.i.b16 %v6438_v26, %v6438_v26  ;;  %v11248_v55 = vpack.i.b16 %v6454_v61, %v6454_v61  ;;  %v6477_v57 = vrot.slane %v7183_v46, %v8737_v58  ;;  %v6484_v53 = vrot.slane %v6456_v30, %v8737_v58  ;;  %v6622_v46 = vld [vmem:[%s8093_s27 + $0x1c] sm:$0x8] }
 0x8d5   : > { %v6491_v49 = vrot.slane %v7184_v23, %v8737_v58  ;;  %v6498_v15 = vrot.slane %v6458_v29, %v8737_v58  ;;  %v6505_v44 = vrot.slane %v7185_v22, %v8737_v58  ;;  %v6512_v7 = vrot.slane %v6460_v5, %v8737_v58  ;;  %v6637_v29 = vld [vmem:[%s8093_s27 + $0x30] sm:$0x8]  ;;  %v6640_v22 = vld [vmem:[%s8093_s27 + $0x34] sm:$0x8] }
 0x8d6   : > { %v6519_v56 = vrot.slane %v7186_v52, %v8737_v58  ;;  %v6526_v25 = vrot.slane %v6462_v4, %v8737_v58  ;;  %v6533_v63 = vrot.slane %v7187_v0, %v8737_v58  ;;  %v6540_v43 = vrot.slane %v6464_v41, %v8737_v58  ;;  %v6625_v0 = vld [vmem:[%s8093_s27 + $0x20] sm:$0x8] }
 0x8d7   : > { %v6547_v16 = vrot.slane %v7188_v3, %v8737_v58  ;;  %v6554_v62 = vrot.slane %v6466_v33, %v8737_v58  ;;  %v6561_v51 = vrot.slane %v7189_v31, %v8737_v58  ;;  %v6568_v24 = vrot.slane %v6468_v39, %v8737_v58  ;;  %v6643_v31 = vld [vmem:[%s8093_s27 + $0x38] sm:$0x8]  ;;  %v6646_v39 = vld [vmem:[%s8093_s27 + $0x3c] sm:$0x8] }
 0x8d8   : > { %v6575_v42 = vrot.slane %v7190_v59, %v8737_v58  ;;  %v6582_v20 = vrot.slane %v11248_v55, %v8737_v58  ;;  %v6602_v6 = vsel %vm11258_vm7, %v6477_v57, %v6601_v37  ;;  %v6605_v54 = vsel %vm11258_vm7, %v6484_v53, %v6604_v50 }
 0x8d9   : > { %6603 = vst [vmem:[%s8093_s27] sm:$0x8] %v6602_v6  ;;  %6606 = vst [vmem:[%s8093_s27 + $0x4] sm:$0x8] %v6605_v54  ;;  %v6608_v8 = vsel %vm11258_vm7, %v6491_v49, %v6607_v14  ;;  %v6611_v58 = vsel %vm11258_vm7, %v6498_v15, %v6610_v35  ;;  %v6614_v26 = vsel %vm11258_vm7, %v6505_v44, %v6613_v12 }
 0x8da   : > { %v6617_v40 = vsel %vm11258_vm7, %v6512_v7, %v6616_v17  ;;  %6609 = vst [vmem:[%s8093_s27 + $0x8] sm:$0x8] %v6608_v8  ;;  %6612 = vst [vmem:[%s8093_s27 + $0xc] sm:$0x8] %v6611_v58  ;;  %v6620_v30 = vsel %vm11258_vm7, %v6519_v56, %v6619_v60  ;;  %v6623_v23 = vsel %vm11258_vm7, %v6526_v25, %v6622_v46  ;;  %v6367_v46 = vstv %s5942_s13 }
 0x8db   : > { %6615 = vst [vmem:[%s8093_s27 + $0x10] sm:$0x8] %v6614_v26  ;;  %6618 = vst [vmem:[%s8093_s27 + $0x14] sm:$0x8] %v6617_v40  ;;  %v6626_v21 = vsel %vm11258_vm7, %v6533_v63, %v6625_v0  ;;  %v6629_v61 = vsel %vm11258_vm7, %v6540_v43, %v6628_v10  ;;  %v6632_v41 = vsel %vm11258_vm7, %v6547_v16, %v6631_v13  ;;  %v6371_v0 = vstv %s6370_s14 }
 0x8dc   : > { %6621 = vst [vmem:[%s8093_s27 + $0x18] sm:$0x8] %v6620_v30  ;;  %6624 = vst [vmem:[%s8093_s27 + $0x1c] sm:$0x8] %v6623_v23  ;;  %v6635_v3 = vsel %vm11258_vm7, %v6554_v62, %v6634_v27  ;;  %v6638_v4 = vsel %vm11258_vm7, %v6561_v51, %v6637_v29  ;;  %v6641_v33 = vsel %vm11258_vm7, %v6568_v24, %v6640_v22 }
 0x8dd   : > { %6627 = vst [vmem:[%s8093_s27 + $0x20] sm:$0x8] %v6626_v21  ;;  %6630 = vst [vmem:[%s8093_s27 + $0x24] sm:$0x8] %v6629_v61  ;;  %v6644_v57 = vsel %vm11258_vm7, %v6575_v42, %v6643_v31  ;;  %v6647_v53 = vsel %vm11258_vm7, %v6582_v20, %v6646_v39  ;;  %v6302_v62 = vrot.slane %v11234_v11, %v11730_v36 }
 0x8de   : > { %v6238_v5 = vpop.f32.mrb[60].mxu0  ;;  %v6281_v52 = vpop.f32.mrb[60].mxu1  ;;  %6633 = vst [vmem:[%s8093_s27 + $0x28] sm:$0x8] %v6632_v41  ;;  %6636 = vst [vmem:[%s8093_s27 + $0x2c] sm:$0x8] %v6635_v3  ;;  %vm6368_vm9 = vcmp.ge.s32.totalorder %v11764_v32, %v6367_v46  ;;  %vm6372_vm1 = vcmp.lt.s32.totalorder %v11764_v32, %v6371_v0  ;;  %vm6369_vm15 = vcmp.ge.s32.totalorder %v11770_v38, %v6367_v46 }
 0x8df   : > { %v6240_v59 = vpop.f32.mrb[61].mxu0  ;;  %v6283_v55 = vpop.f32.mrb[61].mxu1  ;;  %6639 = vst [vmem:[%s8093_s27 + $0x30] sm:$0x8] %v6638_v4  ;;  %6642 = vst [vmem:[%s8093_s27 + $0x34] sm:$0x8] %v6641_v33  ;;  %v6311_v49 = vadd.f32 %v11240_v9, %v6238_v5  ;;  %v6313_v24 = vadd.f32 %v6302_v62, %v6281_v52  ;;  %vm6373_vm8 = vcmp.lt.s32.totalorder %v11770_v38, %v6371_v0 }
 0x8e0   : > { %v6242_v15 = vpop.f32.mrb[62].mxu0  ;;  %v6285_v44 = vpop.f32.mrb[62].mxu1  ;;  %6645 = vst [vmem:[%s8093_s27 + $0x38] sm:$0x8] %v6644_v57  ;;  %6648 = vst [vmem:[%s8093_s27 + $0x3c] sm:$0x8] %v6647_v53  ;;  %v6312_v7 = vadd.f32 %v11244_v45, %v6240_v59  ;;  %v6314_v51 = vadd.f32 %v6306_v19, %v6283_v55 }
 0x8e1   : > { %v6315_v56 = vadd.f32 %v11240_v9, %v6242_v15  ;;  %v6244_v25 = vpop.f32.mrb[63].mxu0  ;;  %v6287_v63 = vpop.f32.mrb[63].mxu1  ;;  %v7176_v43 = vmul.f32 -1.442695, %v6311_v49  ;;  %v6317_v42 = vadd.f32 %v6302_v62, %v6285_v44  ;;  %vm11353_vm2 = vmand %vm6368_vm9, %vm6372_vm1  ;;  %v6696_v31 = vld [vmem:[%s8093_s27] sm:$0xf] (%p8059_p5) }
 0x8e2   : > { %v6316_v37 = vadd.f32 %v11244_v45, %v6244_v25  ;;  %v7178_v50 = vmul.f32 -1.442695, %v6312_v7  ;;  %v6318_v9 = vadd.f32 %v6306_v19, %v6287_v63  ;;  %v7180_v35 = vmul.f32 -1.442695, %v6314_v51  ;;  %vm6375_vm0 = vmand %vm6369_vm15, %vm6373_vm8  ;;  %v6698_v39 = vld [vmem:[%s8093_s27 + $0x4] sm:$0xf] (%p8059_p5) }
 0x8e3   : > { %v7177_v14 = vmul.f32 -1.442695, %v6315_v56  ;;  %7803 = vpow2.f32 %v7176_v43  ;;  %v6700_v59 = vld [vmem:[%s8093_s27 + $0x8] sm:$0xf] (%p8059_p5)  ;;  %v6702_v55 = vld [vmem:[%s8093_s27 + $0xc] sm:$0xf] (%p8059_p5) }
 0x8e4   : > { %v7179_v16 = vmul.f32 -1.442695, %v6316_v37  ;;  %7805 = vpow2.f32 %v7178_v50  ;;  %v7181_v12 = vmul.f32 -1.442695, %v6318_v9  ;;  %v6704_v57 = vld [vmem:[%s8093_s27 + $0x10] sm:$0xf] (%p8059_p5) }
 0x8e5   : > { %7807 = vpow2.f32 %v7177_v14  ;;  %v6706_v53 = vld [vmem:[%s8093_s27 + $0x14] sm:$0xf] (%p8059_p5)  ;;  %v6708_v49 = vld [vmem:[%s8093_s27 + $0x18] sm:$0xf] (%p8059_p5)  ;;  %v6710_v15 = vld [vmem:[%s8093_s27 + $0x1c] sm:$0xf] (%p8059_p5) }
 0x8e6   : > { %7809 = vpow2.f32 %v7179_v16  ;;  %v6712_v44 = vld [vmem:[%s8093_s27 + $0x20] sm:$0xf] (%p8059_p5)  ;;  %v6714_v7 = vld [vmem:[%s8093_s27 + $0x24] sm:$0xf] (%p8059_p5)  ;;  %6697 = vst [vmem:[%s6680_s19] sm:$0xf] (%p8059_p5), %v6696_v31 }
 0x8e7   : > { %7811 = vtanh.f32 %v6313_v24  ;;  %6699 = vst [vmem:[%s6680_s19 + $0x8] sm:$0xf] (%p8059_p5), %v6698_v39  ;;  %6701 = vst [vmem:[%s6680_s19 + $0x10] sm:$0xf] (%p8059_p5), %v6700_v59  ;;  %v6716_v56 = vld [vmem:[%s8093_s27 + $0x28] sm:$0xf] (%p8059_p5) }
 0x8e8   : > { %7813 = vpow2.f32 %v7180_v35  ;;  %6703 = vst [vmem:[%s6680_s19 + $0x18] sm:$0xf] (%p8059_p5), %v6702_v55  ;;  %6705 = vst [vmem:[%s6680_s19 + $0x20] sm:$0xf] (%p8059_p5), %v6704_v57  ;;  %v6718_v25 = vld [vmem:[%s8093_s27 + $0x2c] sm:$0xf] (%p8059_p5) }
 0x8e9   : > { %7815 = vpow2.f32 %v7181_v12  ;;  %6707 = vst [vmem:[%s6680_s19 + $0x28] sm:$0xf] (%p8059_p5), %v6706_v53  ;;  %6709 = vst [vmem:[%s6680_s19 + $0x30] sm:$0xf] (%p8059_p5), %v6708_v49  ;;  %v6720_v63 = vld [vmem:[%s8093_s27 + $0x30] sm:$0xf] (%p8059_p5) }
 0x8ea   : > { %6711 = vst [vmem:[%s6680_s19 + $0x38] sm:$0xf] (%p8059_p5), %v6710_v15  ;;  %6713 = vst [vmem:[%s6680_s19 + $0x40] sm:$0xf] (%p8059_p5), %v6712_v44  ;;  %v6722_v43 = vld [vmem:[%s8093_s27 + $0x34] sm:$0xf] (%p8059_p5) }
 0x8eb   : > { %6715 = vst [vmem:[%s6680_s19 + $0x48] sm:$0xf] (%p8059_p5), %v6714_v7  ;;  %6717 = vst [vmem:[%s6680_s19 + $0x50] sm:$0xf] (%p8059_p5), %v6716_v56  ;;  %v6724_v37 = vld [vmem:[%s8093_s27 + $0x38] sm:$0xf] (%p8059_p5) }
 0x8ec   : > { %6719 = vst [vmem:[%s6680_s19 + $0x58] sm:$0xf] (%p8059_p5), %v6718_v25  ;;  %6721 = vst [vmem:[%s6680_s19 + $0x60] sm:$0xf] (%p8059_p5), %v6720_v63  ;;  %v6726_v50 = vld [vmem:[%s8093_s27 + $0x3c] sm:$0xf] (%p8059_p5) }
 0x8ed   : > { %v7804_v17 = vpop.eup %7803  ;;  %6723 = vst [vmem:[%s6680_s19 + $0x68] sm:$0xf] (%p8059_p5), %v6722_v43  ;;  %6725 = vst [vmem:[%s6680_s19 + $0x70] sm:$0xf] (%p8059_p5), %v6724_v37 }
 0x8ee   : > { %v7806_v45 = vpop.eup %7805  ;;  %v6325_v34 = vadd.f32 1.0, %v7804_v17  ;;  %6727 = vst [vmem:[%s6680_s19 + $0x78] sm:$0xf] (%p8059_p5), %v6726_v50 }
 0x8ef   : > { %v6337_v20 = vadd.f32 1.0, %v7806_v45  ;;  %v7808_v6 = vpop.eup %7807 }
 0x8f0   : > { %7817 = vrcp.f32 %v6325_v34  ;;  %v7810_v36 = vpop.eup %7809  ;;  %v6326_v11 = vadd.f32 1.0, %v7808_v6 }
 0x8f1   : > { %7819 = vrcp.f32 %v6337_v20  ;;  %v6338_v54 = vadd.f32 1.0, %v7810_v36  ;;  %v7812_v60 = vpop.eup %7811 }
 0x8f2   : > { %7821 = vtanh.f32 %v6317_v42  ;;  %v7814_v8 = vpop.eup %7813 }
 0x8f3   : > { %7823 = vrcp.f32 %v6326_v11  ;;  %v7816_v58 = vpop.eup %7815  ;;  %v6351_v13 = vadd.f32 1.0, %v7814_v8 }
 0x8f4   : > { %7825 = vrcp.f32 %v6338_v54  ;;  %v6352_v22 = vadd.f32 1.0, %v7816_v58 }
 0x8f5   : > { %7827 = vrcp.f32 %v6351_v13 }
 0x8fa   : > { %v7818_v26 = vpop.eup %7817 }
 0x8fb   : > { %v7820_v40 = vpop.eup %7819  ;;  %v6359_v10 = vmul.f32 %v7818_v26, %v7812_v60 }
 0x8fc   : > { %v7822_v27 = vpop.eup %7821  ;;  %v6357_v30 = vmul.f32 %v7820_v40, %v5662_v47 }
 0x8fd   : > { %v7824_v23 = vpop.eup %7823 }
 0x8fe   : > { %v7826_v61 = vpop.eup %7825  ;;  %v6361_v32 = vadd.f32 %v6359_v10, %v6357_v30  ;;  %v6360_v29 = vmul.f32 %v7824_v23, %v7822_v27 }
 0x8ff   : > { %v6358_v1 = vmul.f32 %v7826_v61, %v5663_v28  ;;  %v7828_v5 = vpop.eup %7827 }
 0x900   : > { %7829 = vtanh.f32 %v6361_v32  ;;  %v6382_v2 = vsel %vm11353_vm2, %v6361_v32, 0.0 }
 0x901   : > { %6386 = vst [vmem:[#allocation8] sm:$0xff] %v6382_v2  ;;  %v6362_v47 = vadd.f32 %v6360_v29, %v6358_v1  ;;  %7831 = vrcp.f32 %v6352_v22 }
 0x903   : > { %7833 = vtanh.f32 %v6362_v47  ;;  %v6383_v38 = vsel %vm6375_vm0, %v6362_v47, 0.0 }
 0x904   : > { %6387 = vst [vmem:[#allocation8 + $0x8] sm:$0xff] %v6383_v38 }
 0x90a   : > { %v7830_v52 = vpop.eup %7829 }
 0x90b   : > { %v6365_v41 = vmul.f32 %v7830_v52, %v7828_v5  ;;  %v7832_v3 = vpop.eup %7831 }
 0x90d   : > { %v7834_v48 = vpop.eup %7833  ;;  %v6380_v18 = vsel %vm11353_vm2, %v6365_v41, 0.0  ;;  %6676 = sbr.rel (!%p8059_p5) target bundleno = 2324 (0x914), region = 110 }
 0x90e   : > { %6384 = vst [vmem:[#allocation7] sm:$0xff] %v6380_v18  ;;  %v6366_v28 = vmul.f32 %v7834_v48, %v7832_v3 }
 0x910   : > { %v6381_v4 = vsel %vm6375_vm0, %v6366_v28, 0.0 }
 0x911   : > { %6385 = vst [vmem:[#allocation7 + $0x8] sm:$0xff] %v6381_v4  ;;  %v7254_v33 = vpack.c.bf16 %v6381_v4, %v6380_v18 }
 0x913   : > { %7255 = vst [vmem:[%s8091_s28] sm:$0xff] %v7254_v33  }
 0x914 PF: > { %s16_s24 = sadd.s32 1, %s7977_s24   ;;  %s12032_s18 = sld [smem:[#allocation14_spill]] }
 0x915   : > { %p13_p0 = scmp.ge.s32.totalorder %s16_s24, 6   ;;  %s12033_s19 = sld [smem:[#allocation19_spill]] }
 0x916   : > { %s12034_s20 = sld [smem:[#allocation15_spill]]  ;;  %s12035_s21 = sld [smem:[#allocation16_spill]] }
 0x917   : > { %s12036_s22 = sld [smem:[#allocation17_spill]]  ;;  %s12037_s23 = sld [smem:[#allocation18_spill]] }
 0x918   :  { %15 = sbr.rel (!%p13_p0) target bundleno = 4 (0x4), region = 243 }
 0x91f   :  { %6811 = vsyncmov [#allocation4] }
 0x922   :  { %s6812_s27 = vpop.sfrf %6811 }
 0x923   :  { %p7198_p1 = scmp.ne.s32.totalorder %s6812_s27, 0 }
 0x925   :  { %6816 = shalt.err (%p7198_p1)  }
 0x926   :  { %6818 = vsyncmov [#allocation4 + $0x1] }
 0x929   :  { %s6819_s8 = vpop.sfrf %6818 }
 0x92a   :  { %p7199_p2 = scmp.ne.s32.totalorder %s6819_s8, 0 }
 0x92c   :  { %6823 = shalt.err (%p7199_p2)  }

</bundles_post_ra>
